<compile_context>
chip_gen: v7x
topology: tpu7x:2x2x1
jax: 0.10.0
libtpu: 0.0.40
codegen_flags: <defaults>
</compile_context>

<pallas_src>
import numpy as np
import jax
import jax.numpy as jnp
from jax.experimental import pallas as pl
from jax.experimental.pallas import tpu as pltpu


# ----------------------------------------------------------------------------
# Kernel 1: conv (as im2col GEMM) + bias + ReLU + 2x2 max-pool.
#   p_ref: (4, H2, W2, K)   -- the 4 pool-window offsets on the leading dim
#   w_ref: (K, Cout),  b_ref: (1, Cout),  o_ref: (1, H2, W2, Cout)
# ----------------------------------------------------------------------------
def _conv_gemm_relu_pool_kernel(p_ref, w_ref, b_ref, o_ref):
    RS, H2, W2, K = p_ref.shape           # RS == 4 (2x2 pool window)
    Cout = w_ref.shape[1]

    # Layout-preserving merge of outer dims (W2 is a multiple of 8).
    p2 = p_ref[...].reshape(RS * H2 * W2, K)
    y = jnp.dot(p2, w_ref[...], preferred_element_type=jnp.float32)
    y = jnp.maximum(y + b_ref[...], 0.0)                  # bias + ReLU
    # Layout-preserving split; pool = elementwise max over the 4 offsets.
    y = y.reshape(RS, H2, W2, Cout)
    y = jnp.maximum(jnp.maximum(y[0], y[1]), jnp.maximum(y[2], y[3]))
    o_ref[0] = y


def conv_relu_pool(x_nhwc, w, b):
    B, H, W, Cin = x_nhwc.shape
    KH, KW, _, Cout = w.shape
    pad = (KH - 1) // 2
    H2, W2 = H // 2, W // 2
    K = KH * KW * Cin

    # im2col in the wrapper (plain XLA): (B, H, W, KH*KW*Cin)
    xp = jnp.pad(x_nhwc, ((0, 0), (pad, pad), (pad, pad), (0, 0)))
    patches = jnp.concatenate(
        [xp[:, kh:kh + H, kw:kw + W, :] for kh in range(KH) for kw in range(KW)],
        axis=-1)
    # Space-to-depth so the 2x2 pool window becomes a leading dim:
    # (B, H, W, K) -> (B*4, H2, W2, K), index [b*4 + (r*2+s), h2, w2]
    # holds the patch of output pixel (2*h2 + r, 2*w2 + s).
    patches = patches.reshape(B, H2, 2, W2, 2, K).transpose(0, 2, 4, 1, 3, 5)
    patches = patches.reshape(B * 4, H2, W2, K)
    w2d = w.reshape(K, Cout)

    return pl.pallas_call(
        _conv_gemm_relu_pool_kernel,
        out_shape=jax.ShapeDtypeStruct((B, H2, W2, Cout), jnp.float32),
        grid=(B,),
        in_specs=[
            pl.BlockSpec((4, H2, W2, K), lambda b: (b, 0, 0, 0)),
            pl.BlockSpec((K, Cout), lambda b: (0, 0)),
            pl.BlockSpec((1, Cout), lambda b: (0, 0)),
        ],
        out_specs=pl.BlockSpec((1, H2, W2, Cout), lambda b: (b, 0, 0, 0)),
        compiler_params=pltpu.CompilerParams(
            dimension_semantics=("parallel",)),
    )(patches, w2d, b.reshape(1, Cout))


# ----------------------------------------------------------------------------
# Kernel 2: fused fc1 (ReLU) + fc2.  Grid = (N1 tiles, K tiles).
#   Per N-tile j: accumulate x @ w1[:, j-tile] over K, then in the last K step
#   compute h = relu(acc + b1_j) and the partial logits h @ w2[j-tile, :].
#   Partial logits (one block per j) are summed in the wrapper.
# ----------------------------------------------------------------------------
def _head_kernel(x_ref, w1_ref, b1_ref, w2_ref, o_ref, acc_ref):
    k = pl.program_id(1)

    @pl.when(k == 0)
    def _():
        acc_ref[...] = jnp.zeros_like(acc_ref)

    acc_ref[...] += jnp.dot(x_ref[...], w1_ref[...],
                            preferred_element_type=jnp.float32)

    @pl.when(k == pl.num_programs(1) - 1)
    def _():
        h = jnp.maximum(acc_ref[...] + b1_ref[...], 0.0)        # (B, tn) f32
        o_ref[0] = jnp.dot(h, w2_ref[...],
                           preferred_element_type=jnp.float32)  # (B, 128)


def mlp_head(x, w1, b1, w2_padded, *, tk=2048, tn=512):
    """x: (B, K) f32, w1: (K, N1), b1: (N1,), w2_padded: (N1, 128).
    Returns partial-summed logits (B, 128) = relu(x @ w1 + b1) @ w2_padded."""
    B, Kf = x.shape
    N1 = w1.shape[1]
    N2P = w2_padded.shape[1]
    NT, KT = N1 // tn, Kf // tk

    partial = pl.pallas_call(
        _head_kernel,
        out_shape=jax.ShapeDtypeStruct((NT, B, N2P), jnp.float32),
        grid=(NT, KT),
        in_specs=[
            pl.BlockSpec((B, tk), lambda j, k: (0, k)),
            pl.BlockSpec((tk, tn), lambda j, k: (k, j)),
            pl.BlockSpec((1, tn), lambda j, k: (0, j)),
            pl.BlockSpec((tn, N2P), lambda j, k: (j, 0)),
        ],
        out_specs=pl.BlockSpec((1, B, N2P), lambda j, k: (j, 0, 0)),
        scratch_shapes=[pltpu.VMEM((B, tn), jnp.float32)],
        compiler_params=pltpu.CompilerParams(
            dimension_semantics=("parallel", "arbitrary")),
    )(x.astype(jnp.bfloat16), w1.astype(jnp.bfloat16),
      b1.reshape(1, N1), w2_padded)
    return jnp.sum(partial, axis=0)                              # (B, N2P)


# ----------------------------------------------------------------------------
# Full forward pass (glue in plain JAX, hot paths in Pallas).
# ----------------------------------------------------------------------------
@jax.jit
def cnn_forward(x_nchw, p):
    x = jnp.transpose(x_nchw, (0, 2, 3, 1)).astype(jnp.float32)   # NCHW -> NHWC
    x = conv_relu_pool(x, p['conv1_w'], p['conv1_b'])             # (B, 16, 16, 64)
    x = conv_relu_pool(x, p['conv2_w'], p['conv2_b'])             # (B,  8,  8, 128)
    B = x.shape[0]
    # flatten in PyTorch's x.view(-1, 128*8*8) order: (B, C, H, W) -> (B, C*H*W)
    x = jnp.transpose(x, (0, 3, 1, 2)).reshape(B, 128 * 8 * 8)
    n_cls = p['fc2_w'].shape[1]
    w2p = jnp.pad(p['fc2_w'], ((0, 0), (0, 128 - n_cls)))         # lane-dense N
    logits = mlp_head(x, p['fc1_w'], p['fc1_b'], w2p)             # (B, 128)
    return logits[:, :n_cls] + p['fc2_b']                         # (B, 10)


# ----------------------------------------------------------------------------
# Pure-JAX reference (matches PyTorch semantics) for a correctness check.
# ----------------------------------------------------------------------------
def reference_forward(x_nchw, p):
    def conv(x, w, b):
        w_oihw = jnp.transpose(w, (3, 2, 0, 1))     # (KH,KW,Cin,Cout)->(O,I,H,W)
        y = jax.lax.conv_general_dilated(
            x, w_oihw, (1, 1), ((2, 2), (2, 2)),
            dimension_numbers=('NCHW', 'OIHW', 'NCHW'))
        return jnp.maximum(y + b[None, :, None, None], 0.0)

    def pool(x):
        return jax.lax.reduce_window(x, -jnp.inf, jax.lax.max,
                                     (1, 1, 2, 2), (1, 1, 2, 2), 'VALID')

    y = pool(conv(x_nchw, p['conv1_w'], p['conv1_b']))
    y = pool(conv(y, p['conv2_w'], p['conv2_b']))
    y = y.reshape(y.shape[0], -1)
    y = jnp.maximum(y @ p['fc1_w'] + p['fc1_b'], 0.0)
    return y @ p['fc2_w'] + p['fc2_b']


def init_params(key):
    def uinit(k, shape, fan_in):
        bound = 1.0 / np.sqrt(fan_in)
        return jax.random.uniform(k, shape, jnp.float32, -bound, bound)

    ks = jax.random.split(key, 8)
    return {
        'conv1_w': uinit(ks[0], (5, 5, 3, 64), 3 * 5 * 5),
        'conv1_b': uinit(ks[1], (64,), 3 * 5 * 5),
        'conv2_w': uinit(ks[2], (5, 5, 64, 128), 64 * 5 * 5),
        'conv2_b': uinit(ks[3], (128,), 64 * 5 * 5),
        'fc1_w':  uinit(ks[4], (128 * 8 * 8, 1024), 128 * 8 * 8),
        'fc1_b':  uinit(ks[5], (1024,), 128 * 8 * 8),
        'fc2_w':  uinit(ks[6], (1024, 10), 1024),
        'fc2_b':  uinit(ks[7], (10,), 1024),
    }


if __name__ == "__main__":
    key = jax.random.PRNGKey(0)
    k_x, k_p = jax.random.split(key)
    # CIFAR-shaped input: fc1's 128*8*8 input dim implies 3x32x32 images.
    x = jax.random.normal(k_x, (2, 3, 32, 32), jnp.float32)
    params = init_params(k_p)

    out = cnn_forward(x, params)
    out = jax.block_until_ready(out)
    assert out.shape == (2, 10), out.shape

    ref = jax.block_until_ready(reference_forward(x, params))
    np.testing.assert_allclose(np.asarray(out), np.asarray(ref),
                               rtol=2e-2, atol=2e-2)
    print("KERNEL_OK")
</pallas_src>

<mosaic_0001>
module attributes {stable_mosaic.version = 11 : i64} {
  func.func @_conv_gemm_relu_pool_kernel(%arg0: i32, %arg1: memref<4x16x16x75xf32, #tpu.memory_space<vmem>>, %arg2: memref<75x64xf32, #tpu.memory_space<vmem>>, %arg3: memref<1x64xf32, #tpu.memory_space<vmem>>, %arg4: memref<1x16x16x64xf32, #tpu.memory_space<vmem>>) attributes {dimension_semantics = [#tpu.dimension_semantics<parallel>], iteration_bounds = array<i64: 2>, scalar_prefetch = 0 : i64, scratch_operands = 0 : i64, tpu.core_type = #tpu.core_type<tc>, window_params = [{transform_indices = @transform_0, window_bounds = array<i64: 4, 16, 16, 75>}, {pipeline_mode = #tpu.pipeline_mode<synchronous>, transform_indices = @transform_1, window_bounds = array<i64: 75, 64>}, {pipeline_mode = #tpu.pipeline_mode<synchronous>, transform_indices = @transform_2, window_bounds = array<i64: 1, 64>}, {transform_indices = @transform_3, window_bounds = array<i64: 1, 16, 16, 64>}]} {
    %c0 = arith.constant 0 : index
    %c0_0 = arith.constant 0 : index
    %c0_1 = arith.constant 0 : index
    %c0_2 = arith.constant 0 : index
    %0 = vector.load %arg1[%c0, %c0_0, %c0_1, %c0_2] : memref<4x16x16x75xf32, #tpu.memory_space<vmem>>, vector<4x16x16x75xf32>
    %1 = vector.shape_cast %0 : vector<4x16x16x75xf32> to vector<1024x75xf32>
    %c0_3 = arith.constant 0 : index
    %c0_4 = arith.constant 0 : index
    %2 = vector.load %arg2[%c0_3, %c0_4] : memref<75x64xf32, #tpu.memory_space<vmem>>, vector<75x64xf32>
    %cst = arith.constant dense<0.000000e+00> : vector<1024x64xf32>
    %3 = tpu.matmul %1, %2, %cst {dimension_numbers = #tpu.dot_dimension_numbers<[1], [0], [0], [1], [0, 0, 1, 1], [], []>} : vector<1024x75xf32>, vector<75x64xf32>, vector<1024x64xf32> -> vector<1024x64xf32>
    %c0_5 = arith.constant 0 : index
    %c0_6 = arith.constant 0 : index
    %4 = vector.load %arg3[%c0_5, %c0_6] : memref<1x64xf32, #tpu.memory_space<vmem>>, vector<1x64xf32>
    %5 = vector.broadcast %4 : vector<1x64xf32> to vector<1024x64xf32>
    %6 = arith.addf %3, %5 : vector<1024x64xf32>
    %cst_7 = arith.constant 0.000000e+00 : f32
    %7 = vector.broadcast %cst_7 : f32 to vector<1024x64xf32>
    %8 = arith.maximumf %6, %7 : vector<1024x64xf32>
    %9 = vector.shape_cast %8 : vector<1024x64xf32> to vector<4x16x16x64xf32>
    %10 = vector.extract_strided_slice %9 {offsets = [0, 0, 0, 0], sizes = [1, 16, 16, 64], strides = [1, 1, 1, 1]} : vector<4x16x16x64xf32> to vector<1x16x16x64xf32>
    %11 = vector.shape_cast %10 : vector<1x16x16x64xf32> to vector<16x16x64xf32>
    %12 = vector.extract_strided_slice %9 {offsets = [1, 0, 0, 0], sizes = [1, 16, 16, 64], strides = [1, 1, 1, 1]} : vector<4x16x16x64xf32> to vector<1x16x16x64xf32>
    %13 = vector.shape_cast %12 : vector<1x16x16x64xf32> to vector<16x16x64xf32>
    %14 = arith.maximumf %11, %13 : vector<16x16x64xf32>
    %15 = vector.extract_strided_slice %9 {offsets = [2, 0, 0, 0], sizes = [1, 16, 16, 64], strides = [1, 1, 1, 1]} : vector<4x16x16x64xf32> to vector<1x16x16x64xf32>
    %16 = vector.shape_cast %15 : vector<1x16x16x64xf32> to vector<16x16x64xf32>
    %17 = vector.extract_strided_slice %9 {offsets = [3, 0, 0, 0], sizes = [1, 16, 16, 64], strides = [1, 1, 1, 1]} : vector<4x16x16x64xf32> to vector<1x16x16x64xf32>
    %18 = vector.shape_cast %17 : vector<1x16x16x64xf32> to vector<16x16x64xf32>
    %19 = arith.maximumf %16, %18 : vector<16x16x64xf32>
    %20 = arith.maximumf %14, %19 : vector<16x16x64xf32>
    %c0_8 = arith.constant 0 : index
    %c0_9 = arith.constant 0 : index
    %c0_10 = arith.constant 0 : index
    %c0_11 = arith.constant 0 : index
    %21 = vector.load %arg4[%c0_8, %c0_9, %c0_10, %c0_11] : memref<1x16x16x64xf32, #tpu.memory_space<vmem>>, vector<1x16x16x64xf32>
    %22 = vector.shape_cast %21 : vector<1x16x16x64xf32> to vector<16x16x64xf32>
    %23 = vector.shape_cast %20 : vector<16x16x64xf32> to vector<1x16x16x64xf32>
    tpu.vector_store %arg4[%c0_8, %c0_9, %c0_10, %c0_11], %23 {strides = array<i32>} : memref<1x16x16x64xf32, #tpu.memory_space<vmem>>, vector<1x16x16x64xf32>,
    return
  }
  func.func @transform_0(%arg0: i32) -> (i32, i32, i32, i32) {
    %c0_i32 = arith.constant 0 : i32
    %c0_i32_0 = arith.constant 0 : i32
    %c0_i32_1 = arith.constant 0 : i32
    %c0_i32_2 = arith.constant 0 : i32
    return %arg0, %c0_i32, %c0_i32_0, %c0_i32_1 : i32, i32, i32, i32
  }
  func.func @transform_1(%arg0: i32) -> (i32, i32) {
    %c0_i32 = arith.constant 0 : i32
    %c0_i32_0 = arith.constant 0 : i32
    %c0_i32_1 = arith.constant 0 : i32
    return %c0_i32, %c0_i32_0 : i32, i32
  }
  func.func @transform_2(%arg0: i32) -> (i32, i32) {
    %c0_i32 = arith.constant 0 : i32
    %c0_i32_0 = arith.constant 0 : i32
    %c0_i32_1 = arith.constant 0 : i32
    return %c0_i32, %c0_i32_0 : i32, i32
  }
  func.func @transform_3(%arg0: i32) -> (i32, i32, i32, i32) {
    %c0_i32 = arith.constant 0 : i32
    %c0_i32_0 = arith.constant 0 : i32
    %c0_i32_1 = arith.constant 0 : i32
    %c0_i32_2 = arith.constant 0 : i32
    return %arg0, %c0_i32, %c0_i32_0, %c0_i32_1 : i32, i32, i32, i32
  }
}

module attributes {stable_mosaic.version = 11 : i64} {
  func.func @_conv_gemm_relu_pool_kernel(%arg0: i32, %arg1: memref<4x8x8x1600xf32, #tpu.memory_space<vmem>>, %arg2: memref<1600x128xf32, #tpu.memory_space<vmem>>, %arg3: memref<1x128xf32, #tpu.memory_space<vmem>>, %arg4: memref<1x8x8x128xf32, #tpu.memory_space<vmem>>) attributes {dimension_semantics = [#tpu.dimension_semantics<parallel>], iteration_bounds = array<i64: 2>, scalar_prefetch = 0 : i64, scratch_operands = 0 : i64, tpu.core_type = #tpu.core_type<tc>, window_params = [{transform_indices = @transform_0, window_bounds = array<i64: 4, 8, 8, 1600>}, {pipeline_mode = #tpu.pipeline_mode<synchronous>, transform_indices = @transform_1, window_bounds = array<i64: 1600, 128>}, {pipeline_mode = #tpu.pipeline_mode<synchronous>, transform_indices = @transform_2, window_bounds = array<i64: 1, 128>}, {transform_indices = @transform_3, window_bounds = array<i64: 1, 8, 8, 128>}]} {
    %c0 = arith.constant 0 : index
    %c0_0 = arith.constant 0 : index
    %c0_1 = arith.constant 0 : index
    %c0_2 = arith.constant 0 : index
    %0 = vector.load %arg1[%c0, %c0_0, %c0_1, %c0_2] : memref<4x8x8x1600xf32, #tpu.memory_space<vmem>>, vector<4x8x8x1600xf32>
    %1 = vector.shape_cast %0 : vector<4x8x8x1600xf32> to vector<256x1600xf32>
    %c0_3 = arith.constant 0 : index
    %c0_4 = arith.constant 0 : index
    %2 = vector.load %arg2[%c0_3, %c0_4] : memref<1600x128xf32, #tpu.memory_space<vmem>>, vector<1600x128xf32>
    %cst = arith.constant dense<0.000000e+00> : vector<256x128xf32>
    %3 = tpu.matmul %1, %2, %cst {dimension_numbers = #tpu.dot_dimension_numbers<[1], [0], [0], [1], [0, 0, 1, 1], [], []>} : vector<256x1600xf32>, vector<1600x128xf32>, vector<256x128xf32> -> vector<256x128xf32>
    %c0_5 = arith.constant 0 : index
    %c0_6 = arith.constant 0 : index
    %4 = vector.load %arg3[%c0_5, %c0_6] : memref<1x128xf32, #tpu.memory_space<vmem>>, vector<1x128xf32>
    %5 = vector.broadcast %4 : vector<1x128xf32> to vector<256x128xf32>
    %6 = arith.addf %3, %5 : vector<256x128xf32>
    %cst_7 = arith.constant 0.000000e+00 : f32
    %7 = vector.broadcast %cst_7 : f32 to vector<256x128xf32>
    %8 = arith.maximumf %6, %7 : vector<256x128xf32>
    %9 = vector.shape_cast %8 : vector<256x128xf32> to vector<4x8x8x128xf32>
    %10 = vector.extract_strided_slice %9 {offsets = [0, 0, 0, 0], sizes = [1, 8, 8, 128], strides = [1, 1, 1, 1]} : vector<4x8x8x128xf32> to vector<1x8x8x128xf32>
    %11 = vector.shape_cast %10 : vector<1x8x8x128xf32> to vector<8x8x128xf32>
    %12 = vector.extract_strided_slice %9 {offsets = [1, 0, 0, 0], sizes = [1, 8, 8, 128], strides = [1, 1, 1, 1]} : vector<4x8x8x128xf32> to vector<1x8x8x128xf32>
    %13 = vector.shape_cast %12 : vector<1x8x8x128xf32> to vector<8x8x128xf32>
    %14 = arith.maximumf %11, %13 : vector<8x8x128xf32>
    %15 = vector.extract_strided_slice %9 {offsets = [2, 0, 0, 0], sizes = [1, 8, 8, 128], strides = [1, 1, 1, 1]} : vector<4x8x8x128xf32> to vector<1x8x8x128xf32>
    %16 = vector.shape_cast %15 : vector<1x8x8x128xf32> to vector<8x8x128xf32>
    %17 = vector.extract_strided_slice %9 {offsets = [3, 0, 0, 0], sizes = [1, 8, 8, 128], strides = [1, 1, 1, 1]} : vector<4x8x8x128xf32> to vector<1x8x8x128xf32>
    %18 = vector.shape_cast %17 : vector<1x8x8x128xf32> to vector<8x8x128xf32>
    %19 = arith.maximumf %16, %18 : vector<8x8x128xf32>
    %20 = arith.maximumf %14, %19 : vector<8x8x128xf32>
    %c0_8 = arith.constant 0 : index
    %c0_9 = arith.constant 0 : index
    %c0_10 = arith.constant 0 : index
    %c0_11 = arith.constant 0 : index
    %21 = vector.load %arg4[%c0_8, %c0_9, %c0_10, %c0_11] : memref<1x8x8x128xf32, #tpu.memory_space<vmem>>, vector<1x8x8x128xf32>
    %22 = vector.shape_cast %21 : vector<1x8x8x128xf32> to vector<8x8x128xf32>
    %23 = vector.shape_cast %20 : vector<8x8x128xf32> to vector<1x8x8x128xf32>
    tpu.vector_store %arg4[%c0_8, %c0_9, %c0_10, %c0_11], %23 {strides = array<i32>} : memref<1x8x8x128xf32, #tpu.memory_space<vmem>>, vector<1x8x8x128xf32>,
    return
  }
  func.func @transform_0(%arg0: i32) -> (i32, i32, i32, i32) {
    %c0_i32 = arith.constant 0 : i32
    %c0_i32_0 = arith.constant 0 : i32
    %c0_i32_1 = arith.constant 0 : i32
    %c0_i32_2 = arith.constant 0 : i32
    return %arg0, %c0_i32, %c0_i32_0, %c0_i32_1 : i32, i32, i32, i32
  }
  func.func @transform_1(%arg0: i32) -> (i32, i32) {
    %c0_i32 = arith.constant 0 : i32
    %c0_i32_0 = arith.constant 0 : i32
    %c0_i32_1 = arith.constant 0 : i32
    return %c0_i32, %c0_i32_0 : i32, i32
  }
  func.func @transform_2(%arg0: i32) -> (i32, i32) {
    %c0_i32 = arith.constant 0 : i32
    %c0_i32_0 = arith.constant 0 : i32
    %c0_i32_1 = arith.constant 0 : i32
    return %c0_i32, %c0_i32_0 : i32, i32
  }
  func.func @transform_3(%arg0: i32) -> (i32, i32, i32, i32) {
    %c0_i32 = arith.constant 0 : i32
    %c0_i32_0 = arith.constant 0 : i32
    %c0_i32_1 = arith.constant 0 : i32
    %c0_i32_2 = arith.constant 0 : i32
    return %arg0, %c0_i32, %c0_i32_0, %c0_i32_1 : i32, i32, i32, i32
  }
}

module attributes {stable_mosaic.version = 11 : i64} {
  func.func @_head_kernel(%arg0: i32, %arg1: i32, %arg2: memref<2x2048xbf16, #tpu.memory_space<vmem>>, %arg3: memref<2048x512xbf16, #tpu.memory_space<vmem>>, %arg4: memref<1x512xf32, #tpu.memory_space<vmem>>, %arg5: memref<512x128xf32, #tpu.memory_space<vmem>>, %arg6: memref<1x2x128xf32, #tpu.memory_space<vmem>>, %arg7: memref<2x512xf32, #tpu.memory_space<vmem>>) attributes {dimension_semantics = [#tpu.dimension_semantics<parallel>, #tpu.dimension_semantics<arbitrary>], iteration_bounds = array<i64: 2, 4>, scalar_prefetch = 0 : i64, scratch_operands = 1 : i64, tpu.core_type = #tpu.core_type<tc>, window_params = [{transform_indices = @transform_0, window_bounds = array<i64: 2, 2048>}, {transform_indices = @transform_1, window_bounds = array<i64: 2048, 512>}, {transform_indices = @transform_2, window_bounds = array<i64: 1, 512>}, {transform_indices = @transform_3, window_bounds = array<i64: 512, 128>}, {transform_indices = @transform_4, window_bounds = array<i64: 1, 2, 128>}]} {
    %c0_i32 = arith.constant 0 : i32
    %0 = arith.cmpi eq, %arg1, %c0_i32 : i32
    %1 = arith.extui %0 : i1 to i32
    %c0_i32_0 = arith.constant 0 : i32
    %2 = arith.cmpi ne, %1, %c0_i32_0 : i32
    scf.if %2 {
      %cst_9 = arith.constant 0.000000e+00 : f32
      %12 = vector.broadcast %cst_9 : f32 to vector<2x512xf32>
      %c0_10 = arith.constant 0 : index
      %c0_11 = arith.constant 0 : index
      %13 = vector.load %arg7[%c0_10, %c0_11] : memref<2x512xf32, #tpu.memory_space<vmem>>, vector<2x512xf32>
      tpu.vector_store %arg7[%c0_10, %c0_11], %12 {strides = array<i32>} : memref<2x512xf32, #tpu.memory_space<vmem>>, vector<2x512xf32>,
    } else {
    }
    %c0 = arith.constant 0 : index
    %c0_1 = arith.constant 0 : index
    %3 = vector.load %arg7[%c0, %c0_1] : memref<2x512xf32, #tpu.memory_space<vmem>>, vector<2x512xf32>
    %c0_2 = arith.constant 0 : index
    %c0_3 = arith.constant 0 : index
    %4 = vector.load %arg2[%c0_2, %c0_3] : memref<2x2048xbf16, #tpu.memory_space<vmem>>, vector<2x2048xbf16>
    %c0_4 = arith.constant 0 : index
    %c0_5 = arith.constant 0 : index
    %5 = vector.load %arg3[%c0_4, %c0_5] : memref<2048x512xbf16, #tpu.memory_space<vmem>>, vector<2048x512xbf16>
    %cst = arith.constant dense<0.000000e+00> : vector<2x512xf32>
    %6 = tpu.matmul %4, %5, %cst {dimension_numbers = #tpu.dot_dimension_numbers<[1], [0], [0], [1], [0, 0, 1, 1], [], []>} : vector<2x2048xbf16>, vector<2048x512xbf16>, vector<2x512xf32> -> vector<2x512xf32>
    %7 = arith.addf %3, %6 : vector<2x512xf32>
    %c0_6 = arith.constant 0 : index
    %c0_7 = arith.constant 0 : index
    %8 = vector.load %arg7[%c0_6, %c0_7] : memref<2x512xf32, #tpu.memory_space<vmem>>, vector<2x512xf32>
    tpu.vector_store %arg7[%c0_6, %c0_7], %7 {strides = array<i32>} : memref<2x512xf32, #tpu.memory_space<vmem>>, vector<2x512xf32>,
    %c3_i32 = arith.constant 3 : i32
    %9 = arith.cmpi eq, %arg1, %c3_i32 : i32
    %10 = arith.extui %9 : i1 to i32
    %c0_i32_8 = arith.constant 0 : i32
    %11 = arith.cmpi ne, %10, %c0_i32_8 : i32
    scf.if %11 {
      %c0_9 = arith.constant 0 : index
      %c0_10 = arith.constant 0 : index
      %12 = vector.load %arg7[%c0_9, %c0_10] : memref<2x512xf32, #tpu.memory_space<vmem>>, vector<2x512xf32>
      %c0_11 = arith.constant 0 : index
      %c0_12 = arith.constant 0 : index
      %13 = vector.load %arg4[%c0_11, %c0_12] : memref<1x512xf32, #tpu.memory_space<vmem>>, vector<1x512xf32>
      %14 = vector.broadcast %13 : vector<1x512xf32> to vector<2x512xf32>
      %15 = arith.addf %12, %14 : vector<2x512xf32>
      %cst_13 = arith.constant 0.000000e+00 : f32
      %16 = vector.broadcast %cst_13 : f32 to vector<2x512xf32>
      %17 = arith.maximumf %15, %16 : vector<2x512xf32>
      %c0_14 = arith.constant 0 : index
      %c0_15 = arith.constant 0 : index
      %18 = vector.load %arg5[%c0_14, %c0_15] : memref<512x128xf32, #tpu.memory_space<vmem>>, vector<512x128xf32>
      %cst_16 = arith.constant dense<0.000000e+00> : vector<2x128xf32>
      %19 = tpu.matmul %17, %18, %cst_16 {dimension_numbers = #tpu.dot_dimension_numbers<[1], [0], [0], [1], [0, 0, 1, 1], [], []>} : vector<2x512xf32>, vector<512x128xf32>, vector<2x128xf32> -> vector<2x128xf32>
      %c0_17 = arith.constant 0 : index
      %c0_18 = arith.constant 0 : index
      %c0_19 = arith.constant 0 : index
      %20 = vector.load %arg6[%c0_17, %c0_18, %c0_19] : memref<1x2x128xf32, #tpu.memory_space<vmem>>, vector<1x2x128xf32>
      %21 = vector.shape_cast %20 : vector<1x2x128xf32> to vector<2x128xf32>
      %22 = vector.shape_cast %19 : vector<2x128xf32> to vector<1x2x128xf32>
      tpu.vector_store %arg6[%c0_17, %c0_18, %c0_19], %22 {strides = array<i32>} : memref<1x2x128xf32, #tpu.memory_space<vmem>>, vector<1x2x128xf32>,
    } else {
    }
    return
  }
  func.func @transform_0(%arg0: i32, %arg1: i32) -> (i32, i32) {
    %c0_i32 = arith.constant 0 : i32
    %c0_i32_0 = arith.constant 0 : i32
    return %c0_i32, %arg1 : i32, i32
  }
  func.func @transform_1(%arg0: i32, %arg1: i32) -> (i32, i32) {
    %c0_i32 = arith.constant 0 : i32
    return %arg1, %arg0 : i32, i32
  }
  func.func @transform_2(%arg0: i32, %arg1: i32) -> (i32, i32) {
    %c0_i32 = arith.constant 0 : i32
    %c0_i32_0 = arith.constant 0 : i32
    return %c0_i32, %arg0 : i32, i32
  }
  func.func @transform_3(%arg0: i32, %arg1: i32) -> (i32, i32) {
    %c0_i32 = arith.constant 0 : i32
    %c0_i32_0 = arith.constant 0 : i32
    return %arg0, %c0_i32 : i32, i32
  }
  func.func @transform_4(%arg0: i32, %arg1: i32) -> (i32, i32, i32) {
    %c0_i32 = arith.constant 0 : i32
    %c0_i32_0 = arith.constant 0 : i32
    %c0_i32_1 = arith.constant 0 : i32
    return %arg0, %c0_i32, %c0_i32_0 : i32, i32, i32
  }
}

</mosaic_0001>

<bundles_post_ra>
// kernel: cnn_forward.3
= control target key start
LH: loop header
LB: loop body
LE: loop exit
PB: predicated region body
PF: predicated region fallthrough
CT: control target
= control target key end

     0   :  { %s2291_s12 = smov 0   ;;  %s3255_s0 = inlined_call_operand.vmem [shape: f32[8,16,16,75], index: 0, kind: input, shape index: {}]   ;;  %s3256_s1 = inlined_call_operand.vmem [shape: f32[75,64], index: 1, kind: input, shape index: {}]   ;;  %s3257_s2 = inlined_call_operand.vmem [shape: f32[1,64], index: 2, kind: input, shape index: {}]   ;;  %s3258_s3 = inlined_call_operand.vmem [shape: f32[2,16,16,64], index: 3, kind: output, shape index: {}]  }
   0x1 LB: > { %s2297_s13 = sadd.s32 4294967295, %s2268_s12   ;;  %p1731_p0 = scmp.ge.s32.totalorder %s2268_s12, 1  ;;  %s2268_s12 = sphi %s2291_s12, %s13_s12  }
   0x2   : > { %p139_p1 = scmp.lt.s32.totalorder %s2268_s12, 3 }
   0x4   : > { %p140_p2 = pnand %p1731_p0, %p139_p1 }
   0x6   : > { %143 = sbr.rel (%p140_p2) target bundleno = 393 (0x189), region = 32 }
   0xd   : > { %v304_v0 = vld [vmem:[%s3256_s1] sm:$0xff]  ;;  %v305_v1 = vld [vmem:[%s3256_s1 + $0x8] sm:$0xff]  ;;  %v306_v2 = vld [vmem:[%s3256_s1 + $0x10] sm:$0xff]  ;;  %s1732_s20 = sshll.u32 %s2297_s13, 2  ;;  %vm321_vm0 = vcmask 613376   ;;  %vm706_vm1 = vcmask 1042432  }
   0xe   : > { %v2221_v3 = vpack.c.bf16 %v305_v1, %v304_v0  ;;  %v307_v4 = vld [vmem:[%s3256_s1 + $0x18] sm:$0xff]  ;;  %p165_p3 = scmp.lt.s32.totalorder %s1732_s20, 7  ;;  %v308_v6 = vld [vmem:[%s3256_s1 + $0x20] sm:$0xff]  ;;  %v309_v7 = vld [vmem:[%s3256_s1 + $0x28] sm:$0xff]  ;;  %vm2270_vm2 = vmmov 1   ;;  %p171_p4 = scmp.lt.s32.totalorder %s2297_s13, 1 }
   0xf   : > { %v2225_v5 = vpack.c.bf16 %v307_v4, %v306_v2  ;;  %v2229_v8 = vpack.c.bf16 %v309_v7, %v308_v6  ;;  %v310_v9 = vld [vmem:[%s3256_s1 + $0x30] sm:$0xff]  ;;  %v311_v10 = vld [vmem:[%s3256_s1 + $0x38] sm:$0xff]  ;;  %v312_v14 = vld [vmem:[%s3256_s1 + $0x40] sm:$0xff]  ;;  %vm1639_vm4 = vcmask 523264  }
  0x10   : > { %2222 = vmatprep.subr.bf16.mxu0 %v2221_v3  ;;  %2243 = vmatprep.subr.bf16.mxu1 %v2221_v3  ;;  %s3353_s20 = smov (!%p165_p3, %s1732_s20), 7  ;;  %v2233_v13 = vpack.c.bf16 %v311_v10, %v310_v9  ;;  %v313_v15 = vld [vmem:[%s3256_s1 + $0x48] sm:$0x7]  ;;  %vm2238_vm3 = vmpackc.low %vm706_vm1, %vm2270_vm2  ;;  %s3355_s13 = smov (!%p171_p4, %s2297_s13), 1 }
  0x11   : > { %2224 = vmatpush3.bf16.msra.mxu0 %v2221_v3  ;;  %2248 = vmatpush3.bf16.msra.mxu1 %v2221_v3  ;;  %s1869_s27 = sshll.u32 %s3353_s20, 8  ;;  %v2237_v16 = vpack.c.bf16 %v313_v15, %v312_v14  ;;  %s1870_s16 = sshll.u32 %s3355_s13, 8 }
  0x12   : > { %2226 = vmatprep.subr.bf16.mxu0 %v2225_v5  ;;  %2244 = vmatprep.subr.bf16.mxu1 %v2225_v5  ;;  %s2329_s7 = scalar_lea.vmem %s3255_s0, %s1869_s27  ;;  %s2946_s18 = scalar_lea.vmem %s3258_s3, %s1870_s16 }
  0x13   : > { %v176_v11 = vld [vmem:[%s2329_s7] sm:$0xff]  ;;  %v177_v17 = vld [vmem:[%s2329_s7 + $0x8] sm:$0xff]  ;;  %v178_v19 = vld [vmem:[%s2329_s7 + $0x10] sm:$0xff] }
  0x14   : > { %v240_v12 = vld [vmem:[%s2329_s7 + $0x200] sm:$0xff]  ;;  %2029 = vmatprep.mubr.msk.f32.mxu0 %vm321_vm0, %v176_v11  ;;  %v241_v18 = vld [vmem:[%s2329_s7 + $0x208] sm:$0xff]  ;;  %v242_v20 = vld [vmem:[%s2329_s7 + $0x210] sm:$0xff] }
  0x15   : > { %2228 = vmatpush3.bf16.msra.mxu0 %v2225_v5  ;;  %2249 = vmatpush3.bf16.msra.mxu1 %v2225_v5  ;;  %v179_v21 = vld [vmem:[%s2329_s7 + $0x18] sm:$0xff]  ;;  %v180_v23 = vld [vmem:[%s2329_s7 + $0x20] sm:$0xff]  ;;  %v181_v25 = vld [vmem:[%s2329_s7 + $0x28] sm:$0xff] }
  0x16   : > { %2230 = vmatprep.subr.bf16.mxu0 %v2229_v8  ;;  %2245 = vmatprep.subr.bf16.mxu1 %v2229_v8  ;;  %v243_v22 = vld [vmem:[%s2329_s7 + $0x218] sm:$0xff]  ;;  %v244_v24 = vld [vmem:[%s2329_s7 + $0x220] sm:$0xff]  ;;  %v245_v26 = vld [vmem:[%s2329_s7 + $0x228] sm:$0xff] }
  0x17   : > { %2125 = vmatprep.mubr.msk.f32.mxu1 %vm321_vm0, %v240_v12  ;;  %v182_v27 = vld [vmem:[%s2329_s7 + $0x30] sm:$0xff]  ;;  %v183_v29 = vld [vmem:[%s2329_s7 + $0x38] sm:$0xff]  ;;  %v184_v31 = vld [vmem:[%s2329_s7 + $0x40] sm:$0xff] }
  0x18   : > { %v246_v28 = vld [vmem:[%s2329_s7 + $0x230] sm:$0xff]  ;;  %v247_v30 = vld [vmem:[%s2329_s7 + $0x238] sm:$0xff]  ;;  %v248_v32 = vld [vmem:[%s2329_s7 + $0x240] sm:$0xff] }
  0x19   : > { %2232 = vmatpush3.bf16.msra.mxu0 %v2229_v8  ;;  %2250 = vmatpush3.bf16.msra.mxu1 %v2229_v8  ;;  %v185_v33 = vld [vmem:[%s2329_s7 + $0x48] sm:$0xff]  ;;  %v186_v35 = vld [vmem:[%s2329_s7 + $0x50] sm:$0xff]  ;;  %v187_v37 = vld [vmem:[%s2329_s7 + $0x58] sm:$0xff] }
  0x1a   : > { %2234 = vmatprep.subr.bf16.mxu0 %v2233_v13  ;;  %2246 = vmatprep.subr.bf16.mxu1 %v2233_v13  ;;  %v249_v34 = vld [vmem:[%s2329_s7 + $0x248] sm:$0xff]  ;;  %v250_v36 = vld [vmem:[%s2329_s7 + $0x250] sm:$0xff]  ;;  %v251_v38 = vld [vmem:[%s2329_s7 + $0x258] sm:$0xff] }
  0x1b   : > { %v188_v39 = vld [vmem:[%s2329_s7 + $0x60] sm:$0xff]  ;;  %v189_v41 = vld [vmem:[%s2329_s7 + $0x68] sm:$0xff]  ;;  %v190_v43 = vld [vmem:[%s2329_s7 + $0x70] sm:$0xff] }
  0x1c   : > { %v252_v40 = vld [vmem:[%s2329_s7 + $0x260] sm:$0xff]  ;;  %v253_v42 = vld [vmem:[%s2329_s7 + $0x268] sm:$0xff]  ;;  %v254_v44 = vld [vmem:[%s2329_s7 + $0x270] sm:$0xff] }
  0x1d   : > { %2236 = vmatpush3.bf16.msra.mxu0 %v2233_v13  ;;  %2251 = vmatpush3.bf16.msra.mxu1 %v2233_v13  ;;  %v191_v45 = vld [vmem:[%s2329_s7 + $0x78] sm:$0xff]  ;;  %v192_v47 = vld [vmem:[%s2329_s7 + $0x80] sm:$0xff]  ;;  %v193_v49 = vld [vmem:[%s2329_s7 + $0x88] sm:$0xff] }
  0x1e   : > { %2239 = vmatprep.subr.msk.bf16.mxu0 %vm2238_vm3, %v2237_v16  ;;  %2247 = vmatprep.subr.msk.bf16.mxu1 %vm2238_vm3, %v2237_v16  ;;  %v255_v46 = vld [vmem:[%s2329_s7 + $0x278] sm:$0xff]  ;;  %v256_v48 = vld [vmem:[%s2329_s7 + $0x280] sm:$0xff]  ;;  %v257_v50 = vld [vmem:[%s2329_s7 + $0x288] sm:$0xff] }
  0x1f   : > { %v194_v51 = vld [vmem:[%s2329_s7 + $0x90] sm:$0xff]  ;;  %v195_v53 = vld [vmem:[%s2329_s7 + $0x98] sm:$0xff]  ;;  %v196_v55 = vld [vmem:[%s2329_s7 + $0xa0] sm:$0xff] }
  0x20   : > { %v258_v52 = vld [vmem:[%s2329_s7 + $0x290] sm:$0xff]  ;;  %v259_v54 = vld [vmem:[%s2329_s7 + $0x298] sm:$0xff]  ;;  %v260_v56 = vld [vmem:[%s2329_s7 + $0x2a0] sm:$0xff] }
  0x21   : > { %2242 = vmatpush3.bf16.msk.msra.mxu0 %vm2238_vm3, %v2237_v16  ;;  %2252 = vmatpush3.bf16.msk.msra.mxu1 %vm2238_vm3, %v2237_v16  ;;  %v197_v57 = vld [vmem:[%s2329_s7 + $0xa8] sm:$0xff]  ;;  %v198_v59 = vld [vmem:[%s2329_s7 + $0xb0] sm:$0xff]  ;;  %v199_v61 = vld [vmem:[%s2329_s7 + $0xb8] sm:$0xff] }
  0x22   : > { %v261_v58 = vld [vmem:[%s2329_s7 + $0x2a8] sm:$0xff]  ;;  %v262_v60 = vld [vmem:[%s2329_s7 + $0x2b0] sm:$0xff]  ;;  %v263_v62 = vld [vmem:[%s2329_s7 + $0x2b8] sm:$0xff] }
  0x23   : > { %v200_v63 = vld [vmem:[%s2329_s7 + $0xc0] sm:$0xff]  ;;  %v201_v1 = vld [vmem:[%s2329_s7 + $0xc8] sm:$0xff]  ;;  %v202_v3 = vld [vmem:[%s2329_s7 + $0xd0] sm:$0xff] }
  0x24   : > { %2030 = vmatmul.mubr.msk.f32.vlgmr.msra.gmra.mrb[0].mxu0 %vm321_vm0, %v177_v17  ;;  %2126 = vmatmul.mubr.msk.f32.vlgmr.msra.gmra.mrb[0].mxu1 %vm321_vm0, %v241_v18  ;;  %v264_v0 = vld [vmem:[%s2329_s7 + $0x2c0] sm:$0xff]  ;;  %v265_v2 = vld [vmem:[%s2329_s7 + $0x2c8] sm:$0xff]  ;;  %v266_v4 = vld [vmem:[%s2329_s7 + $0x2d0] sm:$0xff] }
  0x25   : > { %2032 = vmatprep.mubr.msk.f32.mxu0 %vm321_vm0, %v178_v19  ;;  %2128 = vmatprep.mubr.msk.f32.mxu1 %vm321_vm0, %v242_v20  ;;  %v203_v5 = vld [vmem:[%s2329_s7 + $0xd8] sm:$0xff]  ;;  %v204_v7 = vld [vmem:[%s2329_s7 + $0xe0] sm:$0xff]  ;;  %v205_v9 = vld [vmem:[%s2329_s7 + $0xe8] sm:$0xff] }
  0x26   : > { %v267_v6 = vld [vmem:[%s2329_s7 + $0x2d8] sm:$0xff]  ;;  %v268_v8 = vld [vmem:[%s2329_s7 + $0x2e0] sm:$0xff]  ;;  %v269_v10 = vld [vmem:[%s2329_s7 + $0x2e8] sm:$0xff] }
  0x27   : > { %v206_v11 = vld [vmem:[%s2329_s7 + $0xf0] sm:$0xff]  ;;  %v207_v13 = vld [vmem:[%s2329_s7 + $0xf8] sm:$0xff]  ;;  %v208_v15 = vld [vmem:[%s2329_s7 + $0x100] sm:$0xff] }
  0x28   : > { %2033 = vmatmul.mubr.msk.f32.gmra.mrb[2].mxu0 %vm321_vm0, %v179_v21  ;;  %2129 = vmatmul.mubr.msk.f32.gmra.mrb[2].mxu1 %vm321_vm0, %v243_v22  ;;  %v270_v12 = vld [vmem:[%s2329_s7 + $0x2f0] sm:$0xff]  ;;  %v271_v14 = vld [vmem:[%s2329_s7 + $0x2f8] sm:$0xff]  ;;  %v272_v16 = vld [vmem:[%s2329_s7 + $0x300] sm:$0xff] }
  0x29   : > { %2035 = vmatprep.mubr.msk.f32.mxu0 %vm321_vm0, %v180_v23  ;;  %2131 = vmatprep.mubr.msk.f32.mxu1 %vm321_vm0, %v244_v24  ;;  %v209_v17 = vld [vmem:[%s2329_s7 + $0x108] sm:$0xff]  ;;  %v210_v19 = vld [vmem:[%s2329_s7 + $0x110] sm:$0xff]  ;;  %v211_v21 = vld [vmem:[%s2329_s7 + $0x118] sm:$0xff] }
  0x2a   : > { %v273_v18 = vld [vmem:[%s2329_s7 + $0x308] sm:$0xff]  ;;  %v274_v20 = vld [vmem:[%s2329_s7 + $0x310] sm:$0xff]  ;;  %v275_v22 = vld [vmem:[%s2329_s7 + $0x318] sm:$0xff] }
  0x2b   : > { %v212_v23 = vld [vmem:[%s2329_s7 + $0x120] sm:$0xff] }
  0x2c   : > { %2036 = vmatmul.mubr.msk.f32.gmra.mrb[4].mxu0 %vm321_vm0, %v181_v25  ;;  %2132 = vmatmul.mubr.msk.f32.gmra.mrb[4].mxu1 %vm321_vm0, %v245_v26  ;;  %v276_v24 = vld [vmem:[%s2329_s7 + $0x320] sm:$0xff]  ;;  %v213_v25 = vld [vmem:[%s2329_s7 + $0x128] sm:$0xff] }
  0x2d   : > { %2038 = vmatprep.mubr.msk.f32.mxu0 %vm321_vm0, %v182_v27  ;;  %2134 = vmatprep.mubr.msk.f32.mxu1 %vm321_vm0, %v246_v28  ;;  %v277_v26 = vld [vmem:[%s2329_s7 + $0x328] sm:$0xff]  ;;  %v214_v27 = vld [vmem:[%s2329_s7 + $0x130] sm:$0xff] }
  0x2e   : > { %v278_v28 = vld [vmem:[%s2329_s7 + $0x330] sm:$0xff] }
  0x30   : > { %2039 = vmatmul.mubr.msk.f32.gmra.mrb[6].mxu0 %vm321_vm0, %v183_v29  ;;  %2135 = vmatmul.mubr.msk.f32.gmra.mrb[6].mxu1 %vm321_vm0, %v247_v30  ;;  %v215_v29 = vld [vmem:[%s2329_s7 + $0x138] sm:$0xff] }
  0x31   : > { %2041 = vmatprep.mubr.msk.f32.mxu0 %vm321_vm0, %v184_v31  ;;  %2137 = vmatprep.mubr.msk.f32.mxu1 %vm321_vm0, %v248_v32  ;;  %v279_v30 = vld [vmem:[%s2329_s7 + $0x338] sm:$0xff]  ;;  %v216_v31 = vld [vmem:[%s2329_s7 + $0x140] sm:$0xff] }
  0x32   : > { %v280_v32 = vld [vmem:[%s2329_s7 + $0x340] sm:$0xff] }
  0x34   : > { %2042 = vmatmul.mubr.msk.f32.gmra.mrb[8].mxu0 %vm321_vm0, %v185_v33  ;;  %2138 = vmatmul.mubr.msk.f32.gmra.mrb[8].mxu1 %vm321_vm0, %v249_v34  ;;  %v217_v33 = vld [vmem:[%s2329_s7 + $0x148] sm:$0xff] }
  0x35   : > { %2044 = vmatprep.mubr.msk.f32.mxu0 %vm321_vm0, %v186_v35  ;;  %2140 = vmatprep.mubr.msk.f32.mxu1 %vm321_vm0, %v250_v36  ;;  %v281_v34 = vld [vmem:[%s2329_s7 + $0x348] sm:$0xff]  ;;  %v218_v35 = vld [vmem:[%s2329_s7 + $0x150] sm:$0xff] }
  0x36   : > { %v282_v36 = vld [vmem:[%s2329_s7 + $0x350] sm:$0xff] }
  0x38   : > { %2045 = vmatmul.mubr.msk.f32.gmra.mrb[10].mxu0 %vm321_vm0, %v187_v37  ;;  %2141 = vmatmul.mubr.msk.f32.gmra.mrb[10].mxu1 %vm321_vm0, %v251_v38  ;;  %v219_v37 = vld [vmem:[%s2329_s7 + $0x158] sm:$0xff] }
  0x39   : > { %2047 = vmatprep.mubr.msk.f32.mxu0 %vm321_vm0, %v188_v39  ;;  %2143 = vmatprep.mubr.msk.f32.mxu1 %vm321_vm0, %v252_v40  ;;  %v283_v38 = vld [vmem:[%s2329_s7 + $0x358] sm:$0xff]  ;;  %v220_v39 = vld [vmem:[%s2329_s7 + $0x160] sm:$0xff] }
  0x3a   : > { %v284_v40 = vld [vmem:[%s2329_s7 + $0x360] sm:$0xff] }
  0x3c   : > { %2048 = vmatmul.mubr.msk.f32.gmra.mrb[12].mxu0 %vm321_vm0, %v189_v41  ;;  %2144 = vmatmul.mubr.msk.f32.gmra.mrb[12].mxu1 %vm321_vm0, %v253_v42  ;;  %v221_v41 = vld [vmem:[%s2329_s7 + $0x168] sm:$0xff] }
  0x3d   : > { %2050 = vmatprep.mubr.msk.f32.mxu0 %vm321_vm0, %v190_v43  ;;  %2146 = vmatprep.mubr.msk.f32.mxu1 %vm321_vm0, %v254_v44  ;;  %v285_v42 = vld [vmem:[%s2329_s7 + $0x368] sm:$0xff]  ;;  %v222_v43 = vld [vmem:[%s2329_s7 + $0x170] sm:$0xff] }
  0x3e   : > { %v286_v44 = vld [vmem:[%s2329_s7 + $0x370] sm:$0xff] }
  0x40   : > { %2051 = vmatmul.mubr.msk.f32.gmra.mrb[14].mxu0 %vm321_vm0, %v191_v45  ;;  %2147 = vmatmul.mubr.msk.f32.gmra.mrb[14].mxu1 %vm321_vm0, %v255_v46  ;;  %v223_v45 = vld [vmem:[%s2329_s7 + $0x178] sm:$0xff] }
  0x41   : > { %2053 = vmatprep.mubr.msk.f32.mxu0 %vm321_vm0, %v192_v47  ;;  %2149 = vmatprep.mubr.msk.f32.mxu1 %vm321_vm0, %v256_v48  ;;  %v287_v46 = vld [vmem:[%s2329_s7 + $0x378] sm:$0xff]  ;;  %v224_v47 = vld [vmem:[%s2329_s7 + $0x180] sm:$0xff] }
  0x42   : > { %v288_v48 = vld [vmem:[%s2329_s7 + $0x380] sm:$0xff] }
  0x44   : > { %2054 = vmatmul.mubr.msk.f32.gmra.mrb[16].mxu0 %vm321_vm0, %v193_v49  ;;  %2150 = vmatmul.mubr.msk.f32.gmra.mrb[16].mxu1 %vm321_vm0, %v257_v50  ;;  %v225_v49 = vld [vmem:[%s2329_s7 + $0x188] sm:$0xff] }
  0x45   : > { %2056 = vmatprep.mubr.msk.f32.mxu0 %vm321_vm0, %v194_v51  ;;  %2152 = vmatprep.mubr.msk.f32.mxu1 %vm321_vm0, %v258_v52  ;;  %v289_v50 = vld [vmem:[%s2329_s7 + $0x388] sm:$0xff]  ;;  %v226_v51 = vld [vmem:[%s2329_s7 + $0x190] sm:$0xff] }
  0x46   : > { %v290_v52 = vld [vmem:[%s2329_s7 + $0x390] sm:$0xff] }
  0x48   : > { %2057 = vmatmul.mubr.msk.f32.gmra.mrb[18].mxu0 %vm321_vm0, %v195_v53  ;;  %2153 = vmatmul.mubr.msk.f32.gmra.mrb[18].mxu1 %vm321_vm0, %v259_v54  ;;  %v227_v53 = vld [vmem:[%s2329_s7 + $0x198] sm:$0xff] }
  0x49   : > { %2059 = vmatprep.mubr.msk.f32.mxu0 %vm321_vm0, %v196_v55  ;;  %2155 = vmatprep.mubr.msk.f32.mxu1 %vm321_vm0, %v260_v56  ;;  %v291_v54 = vld [vmem:[%s2329_s7 + $0x398] sm:$0xff]  ;;  %v228_v55 = vld [vmem:[%s2329_s7 + $0x1a0] sm:$0xff] }
  0x4a   : > { %v292_v56 = vld [vmem:[%s2329_s7 + $0x3a0] sm:$0xff] }
  0x4c   : > { %2060 = vmatmul.mubr.msk.f32.gmra.mrb[20].mxu0 %vm321_vm0, %v197_v57  ;;  %2156 = vmatmul.mubr.msk.f32.gmra.mrb[20].mxu1 %vm321_vm0, %v261_v58  ;;  %v229_v57 = vld [vmem:[%s2329_s7 + $0x1a8] sm:$0xff] }
  0x4d   : > { %2062 = vmatprep.mubr.msk.f32.mxu0 %vm321_vm0, %v198_v59  ;;  %2158 = vmatprep.mubr.msk.f32.mxu1 %vm321_vm0, %v262_v60  ;;  %v293_v58 = vld [vmem:[%s2329_s7 + $0x3a8] sm:$0xff]  ;;  %v230_v59 = vld [vmem:[%s2329_s7 + $0x1b0] sm:$0xff] }
  0x4e   : > { %v294_v60 = vld [vmem:[%s2329_s7 + $0x3b0] sm:$0xff] }
  0x50   : > { %2063 = vmatmul.mubr.msk.f32.gmra.mrb[22].mxu0 %vm321_vm0, %v199_v61  ;;  %2159 = vmatmul.mubr.msk.f32.gmra.mrb[22].mxu1 %vm321_vm0, %v263_v62  ;;  %v231_v61 = vld [vmem:[%s2329_s7 + $0x1b8] sm:$0xff] }
  0x51   : > { %2065 = vmatprep.mubr.msk.f32.mxu0 %vm321_vm0, %v200_v63  ;;  %2161 = vmatprep.mubr.msk.f32.mxu1 %vm321_vm0, %v264_v0  ;;  %v295_v62 = vld [vmem:[%s2329_s7 + $0x3b8] sm:$0xff]  ;;  %v232_v63 = vld [vmem:[%s2329_s7 + $0x1c0] sm:$0xff] }
  0x52   : > { %v296_v0 = vld [vmem:[%s2329_s7 + $0x3c0] sm:$0xff] }
  0x54   : > { %2066 = vmatmul.mubr.msk.f32.gmra.mrb[24].mxu0 %vm321_vm0, %v201_v1  ;;  %2162 = vmatmul.mubr.msk.f32.gmra.mrb[24].mxu1 %vm321_vm0, %v265_v2  ;;  %v233_v1 = vld [vmem:[%s2329_s7 + $0x1c8] sm:$0xff] }
  0x55   : > { %2068 = vmatprep.mubr.msk.f32.mxu0 %vm321_vm0, %v202_v3  ;;  %2164 = vmatprep.mubr.msk.f32.mxu1 %vm321_vm0, %v266_v4  ;;  %v297_v2 = vld [vmem:[%s2329_s7 + $0x3c8] sm:$0xff]  ;;  %v234_v3 = vld [vmem:[%s2329_s7 + $0x1d0] sm:$0xff] }
  0x56   : > { %v298_v4 = vld [vmem:[%s2329_s7 + $0x3d0] sm:$0xff] }
  0x58   : > { %2069 = vmatmul.mubr.msk.f32.gmra.mrb[26].mxu0 %vm321_vm0, %v203_v5  ;;  %2165 = vmatmul.mubr.msk.f32.gmra.mrb[26].mxu1 %vm321_vm0, %v267_v6  ;;  %v235_v5 = vld [vmem:[%s2329_s7 + $0x1d8] sm:$0xff] }
  0x59   : > { %2071 = vmatprep.mubr.msk.f32.mxu0 %vm321_vm0, %v204_v7  ;;  %2167 = vmatprep.mubr.msk.f32.mxu1 %vm321_vm0, %v268_v8  ;;  %v299_v6 = vld [vmem:[%s2329_s7 + $0x3d8] sm:$0xff]  ;;  %v236_v7 = vld [vmem:[%s2329_s7 + $0x1e0] sm:$0xff] }
  0x5a   : > { %v300_v8 = vld [vmem:[%s2329_s7 + $0x3e0] sm:$0xff] }
  0x5c   : > { %2072 = vmatmul.mubr.msk.f32.gmra.mrb[28].mxu0 %vm321_vm0, %v205_v9  ;;  %2168 = vmatmul.mubr.msk.f32.gmra.mrb[28].mxu1 %vm321_vm0, %v269_v10  ;;  %v237_v9 = vld [vmem:[%s2329_s7 + $0x1e8] sm:$0xff] }
  0x5d   : > { %2074 = vmatprep.mubr.msk.f32.mxu0 %vm321_vm0, %v206_v11  ;;  %2170 = vmatprep.mubr.msk.f32.mxu1 %vm321_vm0, %v270_v12  ;;  %v301_v10 = vld [vmem:[%s2329_s7 + $0x3e8] sm:$0xff]  ;;  %v238_v11 = vld [vmem:[%s2329_s7 + $0x1f0] sm:$0xff] }
  0x5e   : > { %v302_v12 = vld [vmem:[%s2329_s7 + $0x3f0] sm:$0xff] }
  0x60   : > { %2075 = vmatmul.mubr.msk.f32.gmra.mrb[30].mxu0 %vm321_vm0, %v207_v13  ;;  %2171 = vmatmul.mubr.msk.f32.gmra.mrb[30].mxu1 %vm321_vm0, %v271_v14  ;;  %v239_v13 = vld [vmem:[%s2329_s7 + $0x1f8] sm:$0xff] }
  0x61   : > { %2077 = vmatprep.mubr.msk.f32.mxu0 %vm321_vm0, %v208_v15  ;;  %2173 = vmatprep.mubr.msk.f32.mxu1 %vm321_vm0, %v272_v16  ;;  %v303_v14 = vld [vmem:[%s2329_s7 + $0x3f8] sm:$0xff] }
  0x64   : > { %2078 = vmatmul.mubr.msk.f32.gmra.mrb[32].mxu0 %vm321_vm0, %v209_v17  ;;  %2174 = vmatmul.mubr.msk.f32.gmra.mrb[32].mxu1 %vm321_vm0, %v273_v18 }
  0x65   : > { %2080 = vmatprep.mubr.msk.f32.mxu0 %vm321_vm0, %v210_v19  ;;  %2176 = vmatprep.mubr.msk.f32.mxu1 %vm321_vm0, %v274_v20 }
  0x68   : > { %2081 = vmatmul.mubr.msk.f32.gmra.mrb[34].mxu0 %vm321_vm0, %v211_v21  ;;  %2177 = vmatmul.mubr.msk.f32.gmra.mrb[34].mxu1 %vm321_vm0, %v275_v22 }
  0x69   : > { %2083 = vmatprep.mubr.msk.f32.mxu0 %vm321_vm0, %v212_v23  ;;  %2179 = vmatprep.mubr.msk.f32.mxu1 %vm321_vm0, %v276_v24 }
  0x6c   : > { %2084 = vmatmul.mubr.msk.f32.gmra.mrb[36].mxu0 %vm321_vm0, %v213_v25  ;;  %2180 = vmatmul.mubr.msk.f32.gmra.mrb[36].mxu1 %vm321_vm0, %v277_v26 }
  0x6d   : > { %2086 = vmatprep.mubr.msk.f32.mxu0 %vm321_vm0, %v214_v27  ;;  %2182 = vmatprep.mubr.msk.f32.mxu1 %vm321_vm0, %v278_v28 }
  0x70   : > { %2087 = vmatmul.mubr.msk.f32.gmra.mrb[38].mxu0 %vm321_vm0, %v215_v29  ;;  %2183 = vmatmul.mubr.msk.f32.gmra.mrb[38].mxu1 %vm321_vm0, %v279_v30 }
  0x71   : > { %2089 = vmatprep.mubr.msk.f32.mxu0 %vm321_vm0, %v216_v31  ;;  %2185 = vmatprep.mubr.msk.f32.mxu1 %vm321_vm0, %v280_v32 }
  0x74   : > { %2090 = vmatmul.mubr.msk.f32.gmra.mrb[40].mxu0 %vm321_vm0, %v217_v33  ;;  %2186 = vmatmul.mubr.msk.f32.gmra.mrb[40].mxu1 %vm321_vm0, %v281_v34 }
  0x75   : > { %2092 = vmatprep.mubr.msk.f32.mxu0 %vm321_vm0, %v218_v35  ;;  %2188 = vmatprep.mubr.msk.f32.mxu1 %vm321_vm0, %v282_v36 }
  0x78   : > { %2093 = vmatmul.mubr.msk.f32.gmra.mrb[42].mxu0 %vm321_vm0, %v219_v37  ;;  %2189 = vmatmul.mubr.msk.f32.gmra.mrb[42].mxu1 %vm321_vm0, %v283_v38 }
  0x79   : > { %2095 = vmatprep.mubr.msk.f32.mxu0 %vm321_vm0, %v220_v39  ;;  %2191 = vmatprep.mubr.msk.f32.mxu1 %vm321_vm0, %v284_v40 }
  0x7c   : > { %2096 = vmatmul.mubr.msk.f32.gmra.mrb[44].mxu0 %vm321_vm0, %v221_v41  ;;  %2192 = vmatmul.mubr.msk.f32.gmra.mrb[44].mxu1 %vm321_vm0, %v285_v42 }
  0x7d   : > { %2098 = vmatprep.mubr.msk.f32.mxu0 %vm321_vm0, %v222_v43  ;;  %2194 = vmatprep.mubr.msk.f32.mxu1 %vm321_vm0, %v286_v44 }
  0x80   : > { %2099 = vmatmul.mubr.msk.f32.gmra.mrb[46].mxu0 %vm321_vm0, %v223_v45  ;;  %2195 = vmatmul.mubr.msk.f32.gmra.mrb[46].mxu1 %vm321_vm0, %v287_v46 }
  0x81   : > { %2101 = vmatprep.mubr.msk.f32.mxu0 %vm321_vm0, %v224_v47  ;;  %2197 = vmatprep.mubr.msk.f32.mxu1 %vm321_vm0, %v288_v48 }
  0x84   : > { %2102 = vmatmul.mubr.msk.f32.gmra.mrb[48].mxu0 %vm321_vm0, %v225_v49  ;;  %2198 = vmatmul.mubr.msk.f32.gmra.mrb[48].mxu1 %vm321_vm0, %v289_v50 }
  0x85   : > { %2104 = vmatprep.mubr.msk.f32.mxu0 %vm321_vm0, %v226_v51  ;;  %2200 = vmatprep.mubr.msk.f32.mxu1 %vm321_vm0, %v290_v52 }
  0x88   : > { %2105 = vmatmul.mubr.msk.f32.gmra.mrb[50].mxu0 %vm321_vm0, %v227_v53  ;;  %2201 = vmatmul.mubr.msk.f32.gmra.mrb[50].mxu1 %vm321_vm0, %v291_v54 }
  0x89   : > { %2107 = vmatprep.mubr.msk.f32.mxu0 %vm321_vm0, %v228_v55  ;;  %2203 = vmatprep.mubr.msk.f32.mxu1 %vm321_vm0, %v292_v56  ;;  %v2644_v55 = vld [vmem:[%s3257_s2] ss:$0 sm:$0xff] }
  0x8c   : > { %2108 = vmatmul.mubr.msk.f32.gmra.mrb[52].mxu0 %vm321_vm0, %v229_v57  ;;  %2204 = vmatmul.mubr.msk.f32.gmra.mrb[52].mxu1 %vm321_vm0, %v293_v58 }
  0x8d   : > { %2110 = vmatprep.mubr.msk.f32.mxu0 %vm321_vm0, %v230_v59  ;;  %2206 = vmatprep.mubr.msk.f32.mxu1 %vm321_vm0, %v294_v60 }
  0x90   : > { %2111 = vmatmul.mubr.msk.f32.gmra.mrb[54].mxu0 %vm321_vm0, %v231_v61  ;;  %2207 = vmatmul.mubr.msk.f32.gmra.mrb[54].mxu1 %vm321_vm0, %v295_v62 }
  0x91   : > { %2113 = vmatprep.mubr.msk.f32.mxu0 %vm321_vm0, %v232_v63  ;;  %2209 = vmatprep.mubr.msk.f32.mxu1 %vm321_vm0, %v296_v0 }
  0x94   : > { %2114 = vmatmul.mubr.msk.f32.gmra.mrb[56].mxu0 %vm321_vm0, %v233_v1  ;;  %2210 = vmatmul.mubr.msk.f32.gmra.mrb[56].mxu1 %vm321_vm0, %v297_v2 }
  0x95   : > { %2116 = vmatprep.mubr.msk.f32.mxu0 %vm321_vm0, %v234_v3  ;;  %2212 = vmatprep.mubr.msk.f32.mxu1 %vm321_vm0, %v298_v4 }
  0x98   : > { %2117 = vmatmul.mubr.msk.f32.gmra.mrb[58].mxu0 %vm321_vm0, %v235_v5  ;;  %2213 = vmatmul.mubr.msk.f32.gmra.mrb[58].mxu1 %vm321_vm0, %v299_v6 }
  0x99   : > { %2119 = vmatprep.mubr.msk.f32.mxu0 %vm321_vm0, %v236_v7  ;;  %2215 = vmatprep.mubr.msk.f32.mxu1 %vm321_vm0, %v300_v8 }
  0x9c   : > { %2120 = vmatmul.mubr.msk.f32.gmra.mrb[60].mxu0 %vm321_vm0, %v237_v9  ;;  %2216 = vmatmul.mubr.msk.f32.gmra.mrb[60].mxu1 %vm321_vm0, %v301_v10 }
  0x9d   : > { %2122 = vmatprep.mubr.msk.f32.mxu0 %vm321_vm0, %v238_v11  ;;  %2218 = vmatprep.mubr.msk.f32.mxu1 %vm321_vm0, %v302_v12 }
  0xa0   : > { %2123 = vmatmul.mubr.msk.f32.gmra.mrb[62].mxu0 %vm321_vm0, %v239_v13  ;;  %2219 = vmatmul.mubr.msk.f32.gmra.mrb[62].mxu1 %vm321_vm0, %v303_v14 }
  0xf7   : > { %v2031_v15 = vpop.f32.mrb[0].mxu0  ;;  %v2127_v16 = vpop.f32.mrb[0].mxu1 }
  0xf8   : > { %v776_v17 = vpop.f32.mrb[1].mxu0  ;;  %v1096_v18 = vpop.f32.mrb[1].mxu1  ;;  %v2651_v58 = vadd.f32 %v2031_v15, %v2644_v55  ;;  %v2654_v59 = vadd.f32 %v2127_v16, %v2644_v55 }
  0xf9   : > { %v2661_v62 = vadd.f32 %v2644_v55, %v776_v17  ;;  %v2664_v63 = vadd.f32 %v2644_v55, %v1096_v18 }
  0xfb   : > { %v2034_v19 = vpop.f32.mrb[2].mxu0  ;;  %v2130_v20 = vpop.f32.mrb[2].mxu1 }
  0xfc   : > { %v786_v21 = vpop.f32.mrb[3].mxu0  ;;  %v1106_v22 = vpop.f32.mrb[3].mxu1  ;;  %v2667_v0 = vadd.f32 %v2034_v19, %v2644_v55  ;;  %v2670_v1 = vadd.f32 %v2130_v20, %v2644_v55 }
  0xfd   : > { %v2673_v2 = vadd.f32 %v2644_v55, %v786_v21  ;;  %v2676_v3 = vadd.f32 %v2644_v55, %v1106_v22 }
  0xff   : > { %v2037_v23 = vpop.f32.mrb[4].mxu0  ;;  %v2133_v24 = vpop.f32.mrb[4].mxu1 }
 0x100   : > { %v796_v25 = vpop.f32.mrb[5].mxu0  ;;  %v1116_v26 = vpop.f32.mrb[5].mxu1  ;;  %v2679_v4 = vadd.f32 %v2037_v23, %v2644_v55  ;;  %v2682_v5 = vadd.f32 %v2133_v24, %v2644_v55 }
 0x101   : > { %v2691_v10 = vadd.f32 %v2644_v55, %v796_v25  ;;  %v2694_v11 = vadd.f32 %v2644_v55, %v1116_v26 }
 0x103   : > { %v2040_v27 = vpop.f32.mrb[6].mxu0  ;;  %v2136_v28 = vpop.f32.mrb[6].mxu1 }
 0x104   : > { %v806_v29 = vpop.f32.mrb[7].mxu0  ;;  %v1126_v30 = vpop.f32.mrb[7].mxu1  ;;  %v2703_v16 = vadd.f32 %v2040_v27, %v2644_v55  ;;  %v2706_v17 = vadd.f32 %v2136_v28, %v2644_v55 }
 0x105   : > { %v2711_v20 = vadd.f32 %v2644_v55, %v806_v29  ;;  %v2714_v21 = vadd.f32 %v2644_v55, %v1126_v30 }
 0x107   : > { %v2593_v31 = vpop.f32.mrb[8].mxu0  ;;  %v2595_v32 = vpop.f32.mrb[8].mxu1 }
 0x108   : > { %v2597_v33 = vpop.f32.mrb[9].mxu0  ;;  %v2599_v34 = vpop.f32.mrb[9].mxu1  ;;  %v2728_v30 = vadd.f32 %v2593_v31, %v2644_v55  ;;  %v2732_v22 = vadd.f32 %v2595_v32, %v2644_v55 }
 0x109   : > { %v2742_v28 = vadd.f32 %v2644_v55, %v2597_v33  ;;  %v2746_v31 = vadd.f32 %v2644_v55, %v2599_v34 }
 0x10b   : > { %v2601_v35 = vpop.f32.mrb[10].mxu0  ;;  %v2603_v36 = vpop.f32.mrb[10].mxu1 }
 0x10c   : > { %v2605_v37 = vpop.f32.mrb[11].mxu0  ;;  %v2607_v38 = vpop.f32.mrb[11].mxu1  ;;  %v2752_v18 = vadd.f32 %v2601_v35, %v2644_v55  ;;  %v2756_v25 = vadd.f32 %v2603_v36, %v2644_v55 }
 0x10d   : > { %v2760_v33 = vadd.f32 %v2644_v55, %v2605_v37  ;;  %v2764_v34 = vadd.f32 %v2644_v55, %v2607_v38 }
 0x10f   : > { %v2609_v39 = vpop.f32.mrb[12].mxu0  ;;  %v2611_v40 = vpop.f32.mrb[12].mxu1 }
 0x110   : > { %v2613_v41 = vpop.f32.mrb[13].mxu0  ;;  %v2615_v42 = vpop.f32.mrb[13].mxu1  ;;  %v2768_v29 = vadd.f32 %v2609_v39, %v2644_v55  ;;  %v2772_v35 = vadd.f32 %v2611_v40, %v2644_v55 }
 0x111   : > { %v2782_v38 = vadd.f32 %v2644_v55, %v2613_v41  ;;  %v2786_v39 = vadd.f32 %v2644_v55, %v2615_v42 }
 0x113   : > { %v2617_v43 = vpop.f32.mrb[14].mxu0  ;;  %v2619_v44 = vpop.f32.mrb[14].mxu1 }
 0x114   : > { %v2621_v45 = vpop.f32.mrb[15].mxu0  ;;  %v2623_v46 = vpop.f32.mrb[15].mxu1  ;;  %v2796_v19 = vadd.f32 %v2617_v43, %v2644_v55  ;;  %v2800_v41 = vadd.f32 %v2619_v44, %v2644_v55 }
 0x115   : > { %v2806_v8 = vadd.f32 %v2644_v55, %v2621_v45  ;;  %v2810_v14 = vadd.f32 %v2644_v55, %v2623_v46 }
 0x117   : > { %v2625_v47 = vpop.f32.mrb[16].mxu0  ;;  %v2627_v48 = vpop.f32.mrb[16].mxu1 }
 0x118   : > { %v2629_v49 = vpop.f32.mrb[17].mxu0  ;;  %v2631_v50 = vpop.f32.mrb[17].mxu1  ;;  %v2824_v46 = vadd.f32 %v2625_v47, %v2644_v55  ;;  %v2828_v43 = vadd.f32 %v2627_v48, %v2644_v55 }
 0x119   : > { %v2838_v45 = vadd.f32 %v2644_v55, %v2629_v49  ;;  %v2842_v47 = vadd.f32 %v2644_v55, %v2631_v50 }
 0x11b   : > { %v2633_v51 = vpop.f32.mrb[18].mxu0  ;;  %v2635_v52 = vpop.f32.mrb[18].mxu1  ;;  %3273 = vst [vmem:[#allocation7_spill] sm:$0xff] %v2838_v45  ;;  %3274 = vst [vmem:[#allocation8_spill] sm:$0xff] %v2842_v47 }
 0x11c   : > { %v2637_v53 = vpop.f32.mrb[19].mxu0  ;;  %v2639_v54 = vpop.f32.mrb[19].mxu1  ;;  %v2852_v9 = vadd.f32 %v2635_v52, %v2644_v55 }
 0x11d   : > { %v2857_v49 = vadd.f32 %v2644_v55, %v2637_v53  ;;  %v2861_v50 = vadd.f32 %v2644_v55, %v2639_v54 }
 0x11e   : > { %3276 = vst [vmem:[#allocation10_spill] sm:$0xff] %v2852_v9 }
 0x11f   : > { %v2646_v56 = vpop.f32.mrb[20].mxu0  ;;  %v2648_v57 = vpop.f32.mrb[20].mxu1 }
 0x120   : > { %v2656_v60 = vpop.f32.mrb[21].mxu0  ;;  %v2658_v61 = vpop.f32.mrb[21].mxu1  ;;  %v2865_v48 = vadd.f32 %v2646_v56, %v2644_v55 }
 0x121   : > { %v2879_v54 = vadd.f32 %v2644_v55, %v2656_v60  ;;  %v2883_v56 = vadd.f32 %v2644_v55, %v2658_v61 }
 0x123   : > { %v2684_v6 = vpop.f32.mrb[22].mxu0  ;;  %v2686_v7 = vpop.f32.mrb[22].mxu1  ;;  %3280 = vst [vmem:[#allocation14_spill] sm:$0xff] %v2879_v54 }
 0x124   : > { %v2696_v12 = vpop.f32.mrb[23].mxu0  ;;  %v2698_v13 = vpop.f32.mrb[23].mxu1  ;;  %v2893_v53 = vadd.f32 %v2684_v6, %v2644_v55  ;;  %v2897_v60 = vadd.f32 %v2686_v7, %v2644_v55 }
 0x126   : > { %3283 = vst [vmem:[#allocation17_spill] sm:$0xff] %v2897_v60 }
 0x127   : > { %v2720_v26 = vpop.f32.mrb[24].mxu0  ;;  %v2722_v27 = vpop.f32.mrb[24].mxu1 }
 0x128   : > { %v2734_v23 = vpop.f32.mrb[25].mxu0  ;;  %v2736_v24 = vpop.f32.mrb[25].mxu1 }
 0x12b   : > { %v2774_v32 = vpop.f32.mrb[26].mxu0  ;;  %v2776_v36 = vpop.f32.mrb[26].mxu1 }
 0x12c   : > { %v2788_v15 = vpop.f32.mrb[27].mxu0  ;;  %v2790_v40 = vpop.f32.mrb[27].mxu1 }
 0x12d   : > { %3268 = vst [vmem:[#allocation2_spill] sm:$0xff] %v2788_v15  ;;  %3269 = vst [vmem:[#allocation3_spill] sm:$0xff] %v2790_v40 }
 0x12f   : > { %v2816_v15 = vpop.f32.mrb[28].mxu0  ;;  %v2818_v42 = vpop.f32.mrb[28].mxu1 }
 0x130   : > { %3270 = vst [vmem:[#allocation4_spill] sm:$0xff] %v2818_v42  ;;  %v2830_v40 = vpop.f32.mrb[29].mxu0  ;;  %v2832_v44 = vpop.f32.mrb[29].mxu1 }
 0x131   : > { %3271 = vst [vmem:[#allocation5_spill] sm:$0xff] %v2830_v40  ;;  %3272 = vst [vmem:[#allocation6_spill] sm:$0xff] %v2832_v44  ;;  %v2848_v40 = vadd.f32 %v2633_v51, %v2644_v55  ;;  %v2869_v51 = vadd.f32 %v2648_v57, %v2644_v55 }
 0x133   : > { %3275 = vst [vmem:[#allocation9_spill] sm:$0xff] %v2848_v40  ;;  %3277 = vst [vmem:[#allocation11_spill] sm:$0xff] %v2869_v51  ;;  %v2871_v37 = vpop.f32.mrb[30].mxu0  ;;  %v2873_v52 = vpop.f32.mrb[30].mxu1 }
 0x134   : > { %3278 = vst [vmem:[#allocation12_spill] sm:$0xff] %v2871_v37  ;;  %3279 = vst [vmem:[#allocation13_spill] sm:$0xff] %v2873_v52  ;;  %v2885_v57 = vpop.f32.mrb[31].mxu0  ;;  %v2887_v44 = vpop.f32.mrb[31].mxu1  ;;  %v2907_v37 = vadd.f32 %v2644_v55, %v2698_v13 }
 0x135   : > { %3281 = vst [vmem:[#allocation15_spill] sm:$0xff] %v2885_v57  ;;  %3282 = vst [vmem:[#allocation16_spill] sm:$0xff] %v2887_v44  ;;  %v2903_v44 = vadd.f32 %v2644_v55, %v2696_v12  ;;  %v3287_v12 = vmax.f32 %v2654_v59, 0.0 }
 0x136   : > { %3285 = vst [vmem:[#allocation19_spill] sm:$0xff] %v2907_v37 }
 0x137   : > { %3284 = vst [vmem:[#allocation18_spill] sm:$0xff] %v2903_v44  ;;  %v2079_v42 = vpop.f32.mrb[32].mxu0  ;;  %v2175_v57 = vpop.f32.mrb[32].mxu1 }
 0x138   : > { %v942_v13 = vadd.f32 %v2079_v42, %v2644_v55  ;;  %v1262_v40 = vadd.f32 %v2175_v57, %v2644_v55  ;;  %v936_v47 = vpop.f32.mrb[33].mxu0  ;;  %v1256_v45 = vpop.f32.mrb[33].mxu1  ;;  %v2931_v42 = vadd.f32 %v2720_v26, %v2644_v55  ;;  %v2935_v57 = vadd.f32 %v2722_v27, %v2644_v55 }
 0x139   : > { %v937_v52 = vadd.f32 %v2644_v55, %v936_v47  ;;  %v1257_v61 = vadd.f32 %v2644_v55, %v1256_v45  ;;  %v3286_v45 = vmax.f32 %v2651_v58, 0.0  ;;  %v3288_v27 = vmax.f32 %v2661_v62, 0.0 }
 0x13a   : > { %v1448_v54 = vmax.f32 %v942_v13, 0.0  ;;  %v1512_v9 = vmax.f32 %v1262_v40, 0.0  ;;  %v3289_v58 = vmax.f32 %v2664_v63, 0.0  ;;  %v2960_v62 = vadd.f32 %v2644_v55, %v2736_v24 }
 0x13b   : > { %v1447_v7 = vmax.f32 %v937_v52, 0.0  ;;  %v1511_v6 = vmax.f32 %v1257_v61, 0.0  ;;  %v2082_v47 = vpop.f32.mrb[34].mxu0  ;;  %v2178_v60 = vpop.f32.mrb[34].mxu1 }
 0x13c   : > { %v1544_v51 = vmax.f32 %v3286_v45, %v1448_v54  ;;  %v1576_v13 = vmax.f32 %v3287_v12, %v1512_v9  ;;  %v952_v40 = vadd.f32 %v2082_v47, %v2644_v55  ;;  %v1272_v37 = vadd.f32 %v2178_v60, %v2644_v55  ;;  %v946_v26 = vpop.f32.mrb[35].mxu0  ;;  %v1266_v44 = vpop.f32.mrb[35].mxu1 }
 0x13d   : > { %v1543_v52 = vmax.f32 %v3288_v27, %v1447_v7  ;;  %v1575_v54 = vmax.f32 %v3289_v58, %v1511_v6  ;;  %v947_v59 = vadd.f32 %v2644_v55, %v946_v26  ;;  %v1267_v9 = vadd.f32 %v2644_v55, %v1266_v44 }
 0x13e   : > { %v2956_v60 = vadd.f32 %v2644_v55, %v2734_v23  ;;  %v1608_v61 = vmax.f32 %v1544_v51, %v1576_v13  ;;  %v1450_v12 = vmax.f32 %v952_v40, 0.0  ;;  %v1514_v47 = vmax.f32 %v1272_v37, 0.0 }
 0x13f   : > { %v1607_v7 = vmax.f32 %v1543_v52, %v1575_v54  ;;  %v1449_v45 = vmax.f32 %v947_v59, 0.0  ;;  %v1513_v63 = vmax.f32 %v1267_v9, 0.0  ;;  %v2085_v6 = vpop.f32.mrb[36].mxu0  ;;  %v2181_v27 = vpop.f32.mrb[36].mxu1  ;;  %v3290_v44 = vmax.f32 %v2667_v0, 0.0 }
 0x140   : > { %1641 = vst.msk [vmem:[%s2946_s18 + $0x8] sm:$0xff] %vm1639_vm4, %v1608_v61  ;;  %v3291_v23 = vmax.f32 %v2670_v1, 0.0  ;;  %v962_v13 = vadd.f32 %v2085_v6, %v2644_v55  ;;  %v1282_v37 = vadd.f32 %v2181_v27, %v2644_v55  ;;  %v956_v40 = vpop.f32.mrb[37].mxu0  ;;  %v1276_v24 = vpop.f32.mrb[37].mxu1  ;;  %v3292_v52 = vmax.f32 %v2673_v2, 0.0 }
 0x141   : > { %v1546_v26 = vmax.f32 %v3290_v44, %v1450_v12  ;;  %1640 = vst.msk [vmem:[%s2946_s18] sm:$0xff] %vm1639_vm4, %v1607_v7  ;;  %v3293_v54 = vmax.f32 %v2676_v3, 0.0  ;;  %v957_v0 = vadd.f32 %v2644_v55, %v956_v40  ;;  %v1277_v1 = vadd.f32 %v2644_v55, %v1276_v24 }
 0x142   : > { %v1578_v51 = vmax.f32 %v3291_v23, %v1514_v47  ;;  %v1545_v58 = vmax.f32 %v3292_v52, %v1449_v45  ;;  %v1440_v9 = vmax.f32 %v2931_v42, 0.0  ;;  %v1452_v12 = vmax.f32 %v962_v13, 0.0 }
 0x143   : > { %v1577_v59 = vmax.f32 %v3293_v54, %v1513_v63  ;;  %v1516_v47 = vmax.f32 %v1282_v37, 0.0  ;;  %v1504_v6 = vmax.f32 %v2935_v57, 0.0  ;;  %v1451_v7 = vmax.f32 %v957_v0, 0.0  ;;  %v2088_v2 = vpop.f32.mrb[38].mxu0  ;;  %v2184_v45 = vpop.f32.mrb[38].mxu1 }
 0x144   : > { %v1610_v61 = vmax.f32 %v1546_v26, %v1578_v51  ;;  %v1515_v44 = vmax.f32 %v1277_v1, 0.0  ;;  %v3294_v3 = vmax.f32 %v2679_v4, 0.0  ;;  %v3295_v23 = vmax.f32 %v2682_v5, 0.0  ;;  %v966_v13 = vpop.f32.mrb[39].mxu0  ;;  %v1286_v37 = vpop.f32.mrb[39].mxu1 }
 0x145   : > { %v1609_v27 = vmax.f32 %v1545_v58, %v1577_v59  ;;  %v972_v26 = vadd.f32 %v2088_v2, %v2644_v55  ;;  %v1292_v51 = vadd.f32 %v2184_v45, %v2644_v55  ;;  %v3296_v24 = vmax.f32 %v2691_v10, 0.0 }
 0x146   : > { %1643 = vst.msk [vmem:[%s2946_s18 + $0x18] sm:$0xff] %vm1639_vm4, %v1610_v61  ;;  %v1548_v63 = vmax.f32 %v3294_v3, %v1452_v12  ;;  %v1580_v40 = vmax.f32 %v3295_v23, %v1516_v47  ;;  %v3297_v58 = vmax.f32 %v2694_v11, 0.0  ;;  %v967_v4 = vadd.f32 %v2644_v55, %v966_v13 }
 0x147   : > { %1642 = vst.msk [vmem:[%s2946_s18 + $0x10] sm:$0xff] %vm1639_vm4, %v1609_v27  ;;  %v1547_v52 = vmax.f32 %v3296_v24, %v1451_v7  ;;  %v1287_v5 = vadd.f32 %v2644_v55, %v1286_v37  ;;  %v1439_v59 = vmax.f32 %v2956_v60, 0.0  ;;  %v1454_v1 = vmax.f32 %v972_v26, 0.0  ;;  %v2091_v10 = vpop.f32.mrb[40].mxu0  ;;  %v2187_v7 = vpop.f32.mrb[40].mxu1 }
 0x148   : > { %v1579_v54 = vmax.f32 %v3297_v58, %v1515_v44  ;;  %v1612_v0 = vmax.f32 %v1548_v63, %v1580_v40  ;;  %v1518_v61 = vmax.f32 %v1292_v51, 0.0  ;;  %v1503_v12 = vmax.f32 %v2960_v62, 0.0  ;;  %v976_v40 = vpop.f32.mrb[41].mxu0  ;;  %v1296_v26 = vpop.f32.mrb[41].mxu1 }
 0x149   : > { %v1453_v27 = vmax.f32 %v967_v4, 0.0  ;;  %v1517_v2 = vmax.f32 %v1287_v5, 0.0  ;;  %v3298_v11 = vmax.f32 %v2703_v16, 0.0  ;;  %v3299_v45 = vmax.f32 %v2706_v17, 0.0 }
 0x14a   : > { %v1611_v47 = vmax.f32 %v1547_v52, %v1579_v54  ;;  %1645 = vst.msk [vmem:[%s2946_s18 + $0x28] sm:$0xff] %vm1639_vm4, %v1612_v0  ;;  %v982_v63 = vadd.f32 %v2091_v10, %v2644_v55  ;;  %v1302_v23 = vadd.f32 %v2187_v7, %v2644_v55  ;;  %v3300_v51 = vmax.f32 %v2711_v20, 0.0 }
 0x14b   : > { %v1550_v44 = vmax.f32 %v3298_v11, %v1454_v1  ;;  %v1582_v3 = vmax.f32 %v3299_v45, %v1518_v61  ;;  %v3301_v37 = vmax.f32 %v2714_v21, 0.0  ;;  %v977_v16 = vadd.f32 %v2644_v55, %v976_v40  ;;  %v2094_v1 = vpop.f32.mrb[42].mxu0  ;;  %v2190_v61 = vpop.f32.mrb[42].mxu1 }
 0x14c   : > { %1644 = vst.msk [vmem:[%s2946_s18 + $0x20] sm:$0xff] %vm1639_vm4, %v1611_v47  ;;  %v1549_v13 = vmax.f32 %v3300_v51, %v1453_v27  ;;  %v1297_v17 = vadd.f32 %v2644_v55, %v1296_v26  ;;  %v3016_v52 = vadd.f32 %v2774_v32, %v2644_v55  ;;  %v1456_v54 = vmax.f32 %v982_v63, 0.0  ;;  %v986_v11 = vpop.f32.mrb[43].mxu0 }
 0x14d   : > { %v1581_v24 = vmax.f32 %v3301_v37, %v1517_v2  ;;  %v1614_v58 = vmax.f32 %v1550_v44, %v1582_v3  ;;  %v1520_v4 = vmax.f32 %v1302_v23, 0.0  ;;  %v3020_v5 = vadd.f32 %v2776_v36, %v2644_v55  ;;  %v1306_v36 = vpop.f32.mrb[43].mxu1  ;;  %v3306_v23 = vld [vmem:[#allocation2_spill] sm:$0xff]  ;;  %v3307_v37 = vld [vmem:[#allocation3_spill] sm:$0xff] }
 0x14e   : > { %v1455_v0 = vmax.f32 %v977_v16, 0.0  ;;  %v1519_v21 = vmax.f32 %v1297_v17, 0.0  ;;  %v3302_v47 = vmax.f32 %v2728_v30, 0.0  ;;  %v3303_v32 = vmax.f32 %v2732_v22, 0.0 }
 0x14f   : > { %v1613_v20 = vmax.f32 %v1549_v13, %v1581_v24  ;;  %1647 = vst.msk [vmem:[%s2946_s18 + $0x38] sm:$0xff] %vm1639_vm4, %v1614_v58  ;;  %v992_v10 = vadd.f32 %v2094_v1, %v2644_v55  ;;  %v1312_v7 = vadd.f32 %v2190_v61, %v2644_v55  ;;  %v3304_v44 = vmax.f32 %v2742_v28, 0.0  ;;  %v2097_v17 = vpop.f32.mrb[44].mxu0  ;;  %v2193_v58 = vpop.f32.mrb[44].mxu1 }
 0x150   : > { %v1552_v27 = vmax.f32 %v3302_v47, %v1456_v54  ;;  %v1584_v2 = vmax.f32 %v3303_v32, %v1520_v4  ;;  %v3305_v3 = vmax.f32 %v2746_v31, 0.0  ;;  %v987_v30 = vadd.f32 %v2644_v55, %v986_v11  ;;  %v996_v61 = vpop.f32.mrb[45].mxu0  ;;  %v1316_v47 = vpop.f32.mrb[45].mxu1 }
 0x151   : > { %1646 = vst.msk [vmem:[%s2946_s18 + $0x30] sm:$0xff] %vm1639_vm4, %v1613_v20  ;;  %v1551_v45 = vmax.f32 %v3304_v44, %v1455_v0  ;;  %v1307_v22 = vadd.f32 %v2644_v55, %v1306_v36  ;;  %v3040_v40 = vadd.f32 %v2644_v55, %v3306_v23  ;;  %v1458_v51 = vmax.f32 %v992_v10, 0.0 }
 0x152   : > { %v1583_v63 = vmax.f32 %v3305_v3, %v1519_v21  ;;  %v1616_v26 = vmax.f32 %v1552_v27, %v1584_v2  ;;  %v1522_v13 = vmax.f32 %v1312_v7, 0.0  ;;  %v3044_v24 = vadd.f32 %v2644_v55, %v3307_v37 }
 0x153   : > { %v1457_v16 = vmax.f32 %v987_v30, 0.0  ;;  %v1521_v31 = vmax.f32 %v1307_v22, 0.0  ;;  %v3308_v54 = vmax.f32 %v2752_v18, 0.0  ;;  %v3309_v20 = vmax.f32 %v2756_v25, 0.0  ;;  %v2196_v22 = vpop.f32.mrb[46].mxu1 }
 0x154   : > { %v1615_v28 = vmax.f32 %v1551_v45, %v1583_v63  ;;  %1649 = vst.msk [vmem:[%s2946_s18 + $0x48] sm:$0xff] %vm1639_vm4, %v1616_v26  ;;  %v1002_v21 = vadd.f32 %v2097_v17, %v2644_v55  ;;  %v1322_v1 = vadd.f32 %v2193_v58, %v2644_v55  ;;  %v3310_v27 = vmax.f32 %v2760_v33, 0.0  ;;  %v2100_v33 = vpop.f32.mrb[46].mxu0 }
 0x155   : > { %v1554_v4 = vmax.f32 %v3308_v54, %v1458_v51  ;;  %v1586_v0 = vmax.f32 %v3309_v20, %v1522_v13  ;;  %v3311_v2 = vmax.f32 %v2764_v34, 0.0  ;;  %v997_v18 = vadd.f32 %v2644_v55, %v996_v61 }
 0x156   : > { %1648 = vst.msk [vmem:[%s2946_s18 + $0x40] sm:$0xff] %vm1639_vm4, %v1615_v28  ;;  %v1553_v32 = vmax.f32 %v3310_v27, %v1457_v16  ;;  %v1317_v25 = vadd.f32 %v2644_v55, %v1316_v47  ;;  %v1442_v7 = vmax.f32 %v3016_v52, 0.0  ;;  %v1460_v36 = vmax.f32 %v1002_v21, 0.0  ;;  %v1006_v28 = vpop.f32.mrb[47].mxu0  ;;  %v1326_v16 = vpop.f32.mrb[47].mxu1 }
 0x157   : > { %v1585_v10 = vmax.f32 %v3311_v2, %v1521_v31  ;;  %v1618_v11 = vmax.f32 %v1554_v4, %v1586_v0  ;;  %v1524_v44 = vmax.f32 %v1322_v1, 0.0  ;;  %v1506_v45 = vmax.f32 %v3020_v5, 0.0 }
 0x158   : > { %v1459_v63 = vmax.f32 %v997_v18, 0.0  ;;  %v1523_v30 = vmax.f32 %v1317_v25, 0.0  ;;  %v3312_v34 = vmax.f32 %v2768_v29, 0.0  ;;  %v3313_v26 = vmax.f32 %v2772_v35, 0.0 }
 0x159   : > { %v1617_v3 = vmax.f32 %v1553_v32, %v1585_v10  ;;  %1651 = vst.msk [vmem:[%s2946_s18 + $0x58] sm:$0xff] %vm1639_vm4, %v1618_v11  ;;  %v1012_v13 = vadd.f32 %v2100_v33, %v2644_v55  ;;  %v1332_v37 = vadd.f32 %v2196_v22, %v2644_v55  ;;  %v3314_v31 = vmax.f32 %v2782_v38, 0.0  ;;  %v2103_v38 = vpop.f32.mrb[48].mxu0  ;;  %v2199_v32 = vpop.f32.mrb[48].mxu1 }
 0x15a   : > { %v1556_v23 = vmax.f32 %v3312_v34, %v1460_v36  ;;  %v1588_v51 = vmax.f32 %v3313_v26, %v1524_v44  ;;  %v3315_v58 = vmax.f32 %v2786_v39, 0.0  ;;  %v1007_v29 = vadd.f32 %v2644_v55, %v1006_v28  ;;  %v1016_v36 = vpop.f32.mrb[49].mxu0  ;;  %v1336_v44 = vpop.f32.mrb[49].mxu1 }
 0x15b   : > { %1650 = vst.msk [vmem:[%s2946_s18 + $0x50] sm:$0xff] %vm1639_vm4, %v1617_v3  ;;  %v1555_v17 = vmax.f32 %v3314_v31, %v1459_v63  ;;  %v1327_v35 = vadd.f32 %v2644_v55, %v1326_v16  ;;  %v1441_v4 = vmax.f32 %v3040_v40, 0.0  ;;  %v1462_v0 = vmax.f32 %v1012_v13, 0.0  ;;  %v2106_v28 = vpop.f32.mrb[50].mxu0  ;;  %v2202_v16 = vpop.f32.mrb[50].mxu1 }
 0x15c   : > { %v1587_v54 = vmax.f32 %v3315_v58, %v1523_v30  ;;  %v1620_v20 = vmax.f32 %v1556_v23, %v1588_v51  ;;  %v1526_v21 = vmax.f32 %v1332_v37, 0.0  ;;  %v1505_v1 = vmax.f32 %v3044_v24, 0.0  ;;  %v3320_v51 = vld [vmem:[#allocation4_spill] sm:$0xff] }
 0x15d   : > { %v1461_v47 = vmax.f32 %v1007_v29, 0.0  ;;  %v1525_v27 = vmax.f32 %v1327_v35, 0.0  ;;  %v3316_v39 = vmax.f32 %v2796_v19, 0.0  ;;  %v3317_v10 = vmax.f32 %v2800_v41, 0.0  ;;  %v1026_v35 = vpop.f32.mrb[51].mxu0 }
 0x15e   : > { %v1619_v61 = vmax.f32 %v1555_v17, %v1587_v54  ;;  %1653 = vst.msk [vmem:[%s2946_s18 + $0x68] sm:$0xff] %vm1639_vm4, %v1620_v20  ;;  %v1022_v25 = vadd.f32 %v2103_v38, %v2644_v55  ;;  %v1342_v11 = vadd.f32 %v2199_v32, %v2644_v55  ;;  %v3318_v3 = vmax.f32 %v2806_v8, 0.0  ;;  %v1346_v20 = vpop.f32.mrb[51].mxu1  ;;  %v3327_v32 = vld [vmem:[#allocation5_spill] sm:$0xff] }
 0x15f   : > { %v1558_v2 = vmax.f32 %v3316_v39, %v1462_v0  ;;  %v1590_v18 = vmax.f32 %v3317_v10, %v1526_v21  ;;  %v3319_v30 = vmax.f32 %v2810_v14, 0.0  ;;  %v1017_v19 = vadd.f32 %v2644_v55, %v1016_v36  ;;  %v3323_v0 = vld [vmem:[#allocation7_spill] sm:$0xff] }
 0x160   : > { %1652 = vst.msk [vmem:[%s2946_s18 + $0x60] sm:$0xff] %vm1639_vm4, %v1619_v61  ;;  %v1557_v63 = vmax.f32 %v3318_v3, %v1461_v47  ;;  %v1337_v41 = vadd.f32 %v2644_v55, %v1336_v44  ;;  %v3100_v22 = vadd.f32 %v2816_v15, %v2644_v55  ;;  %v1464_v23 = vmax.f32 %v1022_v25, 0.0  ;;  %v3325_v47 = vld [vmem:[#allocation8_spill] sm:$0xff]  ;;  %v3328_v25 = vld [vmem:[#allocation6_spill] sm:$0xff] }
 0x161   : > { %v1589_v33 = vmax.f32 %v3319_v30, %v1525_v27  ;;  %v1622_v34 = vmax.f32 %v1558_v2, %v1590_v18  ;;  %v1528_v26 = vmax.f32 %v1342_v11, 0.0  ;;  %v3104_v13 = vadd.f32 %v3320_v51, %v2644_v55  ;;  %v2205_v30 = vpop.f32.mrb[52].mxu1 }
 0x162   : > { %v1463_v37 = vmax.f32 %v1017_v19, 0.0  ;;  %v1527_v14 = vmax.f32 %v1337_v41, 0.0  ;;  %v3321_v31 = vmax.f32 %v2824_v46, 0.0  ;;  %v3322_v15 = vmax.f32 %v2828_v43, 0.0 }
 0x163   : > { %v1621_v8 = vmax.f32 %v1557_v63, %v1589_v33  ;;  %1655 = vst.msk [vmem:[%s2946_s18 + $0x78] sm:$0xff] %vm1639_vm4, %v1622_v34  ;;  %v1032_v54 = vadd.f32 %v2106_v28, %v2644_v55  ;;  %v1352_v29 = vadd.f32 %v2202_v16, %v2644_v55  ;;  %v3324_v21 = vmax.f32 %v3323_v0, 0.0  ;;  %v2109_v63 = vpop.f32.mrb[52].mxu0  ;;  %v3329_v33 = vld [vmem:[#allocation9_spill] sm:$0xff]  ;;  %v3331_v34 = vld [vmem:[#allocation10_spill] sm:$0xff] }
 0x164   : > { %v1560_v17 = vmax.f32 %v3321_v31, %v1464_v23  ;;  %v1592_v58 = vmax.f32 %v3322_v15, %v1528_v26  ;;  %v3326_v27 = vmax.f32 %v3325_v47, 0.0  ;;  %v1027_v46 = vadd.f32 %v2644_v55, %v1026_v35 }
 0x165   : > { %1654 = vst.msk [vmem:[%s2946_s18 + $0x70] sm:$0xff] %vm1639_vm4, %v1621_v8  ;;  %v1559_v61 = vmax.f32 %v3324_v21, %v1463_v37  ;;  %v1347_v43 = vadd.f32 %v2644_v55, %v1346_v20  ;;  %v3124_v39 = vadd.f32 %v2644_v55, %v3327_v32  ;;  %v1466_v10 = vmax.f32 %v1032_v54, 0.0  ;;  %v1036_v37 = vpop.f32.mrb[53].mxu0 }
 0x166   : > { %v1591_v38 = vmax.f32 %v3326_v27, %v1527_v14  ;;  %v1624_v2 = vmax.f32 %v1560_v17, %v1592_v58  ;;  %v1530_v18 = vmax.f32 %v1352_v29, 0.0  ;;  %v3128_v11 = vadd.f32 %v2644_v55, %v3328_v25  ;;  %v1356_v14 = vpop.f32.mrb[53].mxu1 }
 0x167   : > { %v1465_v44 = vmax.f32 %v1027_v46, 0.0  ;;  %v1529_v3 = vmax.f32 %v1347_v43, 0.0  ;;  %v3330_v19 = vmax.f32 %v3329_v33, 0.0  ;;  %v3332_v23 = vmax.f32 %v3331_v34, 0.0  ;;  %v2208_v27 = vpop.f32.mrb[54].mxu1  ;;  %v3336_v46 = vld [vmem:[#allocation11_spill] sm:$0xff] }
 0x168   : > { %v1623_v36 = vmax.f32 %v1559_v61, %v1591_v38  ;;  %1657 = vst.msk [vmem:[%s2946_s18 + $0x88] sm:$0xff] %vm1639_vm4, %v1624_v2  ;;  %v1042_v51 = vadd.f32 %v2109_v63, %v2644_v55  ;;  %v1362_v8 = vadd.f32 %v2205_v30, %v2644_v55  ;;  %v3333_v28 = vmax.f32 %v2857_v49, 0.0  ;;  %v2112_v49 = vpop.f32.mrb[54].mxu0  ;;  %v1366_v25 = vpop.f32.mrb[55].mxu1 }
 0x169   : > { %v1562_v41 = vmax.f32 %v3330_v19, %v1466_v10  ;;  %v1594_v26 = vmax.f32 %v3332_v23, %v1530_v18  ;;  %v3334_v31 = vmax.f32 %v2861_v50, 0.0  ;;  %v1037_v15 = vadd.f32 %v2644_v55, %v1036_v37  ;;  %v1046_v18 = vpop.f32.mrb[55].mxu0 }
 0x16a   : > { %1656 = vst.msk [vmem:[%s2946_s18 + $0x80] sm:$0xff] %vm1639_vm4, %v1623_v36  ;;  %v1561_v16 = vmax.f32 %v3333_v28, %v1465_v44  ;;  %v1357_v58 = vadd.f32 %v2644_v55, %v1356_v14  ;;  %v1444_v54 = vmax.f32 %v3100_v22, 0.0  ;;  %v1468_v35 = vmax.f32 %v1042_v51, 0.0  ;;  %v3338_v36 = vld [vmem:[#allocation14_spill] sm:$0xff]  ;;  %v2115_v14 = vpop.f32.mrb[56].mxu0  ;;  %v2211_v28 = vpop.f32.mrb[56].mxu1 }
 0x16b   : > { %v1593_v17 = vmax.f32 %v3334_v31, %v1529_v3  ;;  %v1626_v29 = vmax.f32 %v1562_v41, %v1594_v26  ;;  %v1532_v20 = vmax.f32 %v1362_v8, 0.0  ;;  %v1508_v0 = vmax.f32 %v3104_v13, 0.0  ;;  %v3342_v31 = vld [vmem:[#allocation17_spill] sm:$0xff] }
 0x16c   : > { %v1467_v61 = vmax.f32 %v1037_v15, 0.0  ;;  %v1531_v47 = vmax.f32 %v1357_v58, 0.0  ;;  %v3335_v50 = vmax.f32 %v2865_v48, 0.0  ;;  %v3337_v43 = vmax.f32 %v3336_v46, 0.0  ;;  %v3348_v46 = vld [vmem:[#allocation12_spill] sm:$0xff] }
 0x16d   : > { %v1625_v21 = vmax.f32 %v1561_v16, %v1593_v17  ;;  %1659 = vst.msk [vmem:[%s2946_s18 + $0x98] sm:$0xff] %vm1639_vm4, %v1626_v29  ;;  %v1052_v2 = vadd.f32 %v2112_v49, %v2644_v55  ;;  %v1372_v10 = vadd.f32 %v2208_v27, %v2644_v55  ;;  %v3339_v44 = vmax.f32 %v3338_v36, 0.0  ;;  %v3346_v49 = vld [vmem:[#allocation19_spill] sm:$0xff] }
 0x16e   : > { %v1564_v38 = vmax.f32 %v3335_v50, %v1468_v35  ;;  %v1596_v32 = vmax.f32 %v3337_v43, %v1532_v20  ;;  %v3340_v63 = vmax.f32 %v2883_v56, 0.0  ;;  %v1047_v48 = vadd.f32 %v2644_v55, %v1046_v18  ;;  %v1056_v35 = vpop.f32.mrb[57].mxu0  ;;  %v1376_v20 = vpop.f32.mrb[57].mxu1  ;;  %v3349_v18 = vld [vmem:[#allocation13_spill] sm:$0xff] }
 0x16f   : > { %1658 = vst.msk [vmem:[%s2946_s18 + $0x90] sm:$0xff] %vm1639_vm4, %v1625_v21  ;;  %v1563_v3 = vmax.f32 %v3339_v44, %v1467_v61  ;;  %v1367_v33 = vadd.f32 %v2644_v55, %v1366_v25  ;;  %v1443_v19 = vmax.f32 %v3124_v39, 0.0  ;;  %v1470_v34 = vmax.f32 %v1052_v2, 0.0  ;;  %v3344_v21 = vld [vmem:[#allocation18_spill] sm:$0xff] }
 0x170   : > { %v1595_v30 = vmax.f32 %v3340_v63, %v1531_v47  ;;  %v1628_v41 = vmax.f32 %v1564_v38, %v1596_v32  ;;  %v1534_v23 = vmax.f32 %v1372_v10, 0.0  ;;  %v1507_v26 = vmax.f32 %v3128_v11, 0.0  ;;  %v2118_v63 = vpop.f32.mrb[58].mxu0 }
 0x171   : > { %v1469_v8 = vmax.f32 %v1047_v48, 0.0  ;;  %v1533_v37 = vmax.f32 %v1367_v33, 0.0  ;;  %v3341_v56 = vmax.f32 %v2893_v53, 0.0  ;;  %v3343_v17 = vmax.f32 %v3342_v31, 0.0 }
 0x172   : > { %v1627_v51 = vmax.f32 %v1563_v3, %v1595_v30  ;;  %1661 = vst.msk [vmem:[%s2946_s18 + $0xa8] sm:$0xff] %vm1639_vm4, %v1628_v41  ;;  %v1062_v58 = vadd.f32 %v2115_v14, %v2644_v55  ;;  %v1382_v29 = vadd.f32 %v2211_v28, %v2644_v55  ;;  %v3345_v61 = vmax.f32 %v3344_v21, 0.0  ;;  %v2214_v30 = vpop.f32.mrb[58].mxu1 }
 0x173   : > { %v1566_v16 = vmax.f32 %v3341_v56, %v1470_v34  ;;  %v1598_v15 = vmax.f32 %v3343_v17, %v1534_v23  ;;  %v3347_v27 = vmax.f32 %v3346_v49, 0.0  ;;  %v1057_v53 = vadd.f32 %v2644_v55, %v1056_v35  ;;  %v1066_v23 = vpop.f32.mrb[59].mxu0 }
 0x174   : > { %1660 = vst.msk [vmem:[%s2946_s18 + $0xa0] sm:$0xff] %vm1639_vm4, %v1627_v51  ;;  %v1565_v47 = vmax.f32 %v3345_v61, %v1469_v8  ;;  %v1377_v38 = vadd.f32 %v2644_v55, %v1376_v20  ;;  %v3184_v43 = vadd.f32 %v3348_v46, %v2644_v55  ;;  %v1472_v2 = vmax.f32 %v1062_v58, 0.0  ;;  %v1386_v51 = vpop.f32.mrb[59].mxu1 }
 0x175   : > { %v1597_v50 = vmax.f32 %v3347_v27, %v1533_v37  ;;  %v1630_v32 = vmax.f32 %v1566_v16, %v1598_v15  ;;  %v1536_v10 = vmax.f32 %v1382_v29, 0.0  ;;  %v3188_v25 = vadd.f32 %v3349_v18, %v2644_v55  ;;  %v3351_v16 = vld [vmem:[#allocation16_spill] sm:$0xff]  ;;  %v2121_v15 = vpop.f32.mrb[60].mxu0  ;;  %v2217_v62 = vpop.f32.mrb[60].mxu1 }
 0x176   : > { %v1471_v44 = vmax.f32 %v1057_v53, 0.0  ;;  %v1535_v3 = vmax.f32 %v1377_v38, 0.0  ;;  %v1568_v48 = vmax.f32 %v1440_v9, %v1472_v2  ;;  %v1072_v41 = vadd.f32 %v2118_v63, %v2644_v55  ;;  %v3350_v9 = vld [vmem:[#allocation15_spill] sm:$0xff]  ;;  %v1076_v20 = vpop.f32.mrb[61].mxu0  ;;  %v1396_v21 = vpop.f32.mrb[61].mxu1 }
 0x177   : > { %v1629_v36 = vmax.f32 %v1565_v47, %v1597_v50  ;;  %1663 = vst.msk [vmem:[%s2946_s18 + $0xb8] sm:$0xff] %vm1639_vm4, %v1630_v32  ;;  %v1600_v33 = vmax.f32 %v1504_v6, %v1536_v10  ;;  %v1392_v34 = vadd.f32 %v2214_v30, %v2644_v55  ;;  %v1067_v42 = vadd.f32 %v2644_v55, %v1066_v23  ;;  %v2124_v40 = vpop.f32.mrb[62].mxu0 }
 0x178   : > { %v1567_v8 = vmax.f32 %v1439_v59, %v1471_v44  ;;  %v1599_v37 = vmax.f32 %v1503_v12, %v1535_v3  ;;  %v1387_v57 = vadd.f32 %v2644_v55, %v1386_v51  ;;  %v927_v6 = vadd.f32 %v2644_v55, %v3350_v9  ;;  %v1086_v2 = vpop.f32.mrb[63].mxu0 }
 0x179   : > { %1662 = vst.msk [vmem:[%s2946_s18 + $0xb0] sm:$0xff] %vm1639_vm4, %v1629_v36  ;;  %v1632_v14 = vmax.f32 %v1568_v48, %v1600_v33  ;;  %v1474_v28 = vmax.f32 %v1072_v41, 0.0  ;;  %v1538_v56 = vmax.f32 %v1392_v34, 0.0  ;;  %v1247_v31 = vadd.f32 %v2644_v55, %v3351_v16 }
 0x17a   : > { %v1631_v17 = vmax.f32 %v1567_v8, %v1599_v37  ;;  %v1473_v60 = vmax.f32 %v1067_v42, 0.0  ;;  %v1537_v59 = vmax.f32 %v1387_v57, 0.0  ;;  %v1082_v29 = vadd.f32 %v2121_v15, %v2644_v55 }
 0x17b   : > { %1665 = vst.msk [vmem:[%s2946_s18 + $0xc8] sm:$0xff] %vm1639_vm4, %v1632_v14  ;;  %v1570_v12 = vmax.f32 %v1442_v7, %v1474_v28  ;;  %v1602_v58 = vmax.f32 %v1506_v45, %v1538_v56  ;;  %v1402_v35 = vadd.f32 %v2217_v62, %v2644_v55  ;;  %v1077_v52 = vadd.f32 %v2644_v55, %v1076_v20 }
 0x17c   : > { %1664 = vst.msk [vmem:[%s2946_s18 + $0xc0] sm:$0xff] %vm1639_vm4, %v1631_v17  ;;  %v1569_v61 = vmax.f32 %v1441_v4, %v1473_v60  ;;  %v1601_v47 = vmax.f32 %v1505_v1, %v1537_v59  ;;  %v1397_v5 = vadd.f32 %v2644_v55, %v1396_v21  ;;  %v1446_v7 = vmax.f32 %v3184_v43, 0.0  ;;  %v2220_v4 = vpop.f32.mrb[62].mxu1 }
 0x17d   : > { %v1634_v45 = vmax.f32 %v1570_v12, %v1602_v58  ;;  %v1476_v49 = vmax.f32 %v1082_v29, 0.0  ;;  %v1540_v27 = vmax.f32 %v1402_v35, 0.0  ;;  %v1510_v50 = vmax.f32 %v3188_v25, 0.0  ;;  %v1406_v10 = vpop.f32.mrb[63].mxu1 }
 0x17e   : > { %v1633_v53 = vmax.f32 %v1569_v61, %v1601_v47  ;;  %v1475_v38 = vmax.f32 %v1077_v52, 0.0  ;;  %v1539_v46 = vmax.f32 %v1397_v5, 0.0  ;;  %v1092_v43 = vadd.f32 %v2124_v40, %v2644_v55 }
 0x17f   : > { %1667 = vst.msk [vmem:[%s2946_s18 + $0xd8] sm:$0xff] %vm1639_vm4, %v1634_v45  ;;  %v1572_v24 = vmax.f32 %v1444_v54, %v1476_v49  ;;  %v1604_v1 = vmax.f32 %v1508_v0, %v1540_v27  ;;  %v1412_v32 = vadd.f32 %v2220_v4, %v2644_v55  ;;  %v1087_v54 = vadd.f32 %v2644_v55, %v1086_v2 }
 0x180   : > { %1666 = vst.msk [vmem:[%s2946_s18 + $0xd0] sm:$0xff] %vm1639_vm4, %v1633_v53  ;;  %v1571_v18 = vmax.f32 %v1443_v19, %v1475_v38  ;;  %v1603_v22 = vmax.f32 %v1507_v26, %v1539_v46  ;;  %v1407_v13 = vadd.f32 %v2644_v55, %v1406_v10  ;;  %v1445_v0 = vmax.f32 %v927_v6, 0.0 }
 0x181   : > { %v1636_v25 = vmax.f32 %v1572_v24, %v1604_v1  ;;  %v1478_v36 = vmax.f32 %v1092_v43, 0.0  ;;  %v1542_v44 = vmax.f32 %v1412_v32, 0.0  ;;  %v1509_v3 = vmax.f32 %v1247_v31, 0.0 }
 0x182   : > { %v1635_v63 = vmax.f32 %v1571_v18, %v1603_v22  ;;  %v1477_v30 = vmax.f32 %v1087_v54, 0.0  ;;  %v1541_v48 = vmax.f32 %v1407_v13, 0.0 }
 0x183   : > { %1669 = vst.msk [vmem:[%s2946_s18 + $0xe8] sm:$0xff] %vm1639_vm4, %v1636_v25  ;;  %v1574_v39 = vmax.f32 %v1446_v7, %v1478_v36  ;;  %v1606_v19 = vmax.f32 %v1510_v50, %v1542_v44 }
 0x184   : > { %1668 = vst.msk [vmem:[%s2946_s18 + $0xe0] sm:$0xff] %vm1639_vm4, %v1635_v63  ;;  %v1573_v11 = vmax.f32 %v1445_v0, %v1477_v30  ;;  %v1605_v26 = vmax.f32 %v1509_v3, %v1541_v48 }
 0x185   : > { %v1638_v33 = vmax.f32 %v1574_v39, %v1606_v19 }
 0x186   : > { %v1637_v55 = vmax.f32 %v1573_v11, %v1605_v26 }
 0x187   : > { %1671 = vst.msk [vmem:[%s2946_s18 + $0xf8] sm:$0xff] %vm1639_vm4, %v1638_v33 }
 0x188   : > { %1670 = vst.msk [vmem:[%s2946_s18 + $0xf0] sm:$0xff] %vm1639_vm4, %v1637_v55 }
 0x189 PF: > { %s13_s12 = sadd.s32 1, %s2268_s12  }
 0x18a   : > { %p10_p5 = scmp.ge.s32.totalorder %s13_s12, 4  }
 0x18c   :  { %12 = sbr.rel (!%p10_p5) target bundleno = 1 (0x1), region = 62 }

// kernel: cnn_forward.4
= control target key start
LH: loop header
LB: loop body
LE: loop exit
PB: predicated region body
PF: predicated region fallthrough
CT: control target
= control target key end

     0   :  { %s3410_s12 = smov 0   ;;  %s5003_s0 = inlined_call_operand.vmem [shape: f32[8,8,8,1600], index: 0, kind: input, shape index: {}]   ;;  %s5004_s1 = inlined_call_operand.vmem [shape: f32[1600,128], index: 1, kind: input, shape index: {}]   ;;  %s5005_s2 = inlined_call_operand.vmem [shape: f32[1,128], index: 2, kind: input, shape index: {}]   ;;  %s5006_s3 = inlined_call_operand.vmem [shape: f32[2,8,8,128], index: 3, kind: output, shape index: {}]  }
   0x1 LB: > { %s3416_s13 = sadd.s32 4294967295, %s3387_s12   ;;  %p2594_p0 = scmp.ge.s32.totalorder %s3387_s12, 1  ;;  %s3387_s12 = sphi %s3410_s12, %s13_s12  }
   0x2   : > { %p139_p1 = scmp.lt.s32.totalorder %s3387_s12, 3 }
   0x4   : > { %p140_p2 = pnand %p2594_p0, %p139_p1 }
   0x5   : > { %v592_v0 = vld [vmem:[%s5004_s1] sm:$0xff] (!%p140_p2)  ;;  %v593_v1 = vld [vmem:[%s5004_s1 + $0x8] sm:$0xff] (!%p140_p2)  ;;  %v3389_v3 = vmov (!%p140_p2), 0.0|0.0   ;;  %v594_v6 = vld [vmem:[%s5004_s1 + $0x10] sm:$0xff] (!%p140_p2)  ;;  %s2595_s30 = sshll.u32 (!%p140_p2), %s3416_s13, 2  ;;  %vm799_vm0 = vcmask (!%p140_p2), 523264  }
   0x6   : > { %143 = sbr.rel (%p140_p2) target bundleno = 707 (0x2c3), region = 32  ;;  %v656_v2 = vld [vmem:[%s5004_s1 + $0x200] sm:$0xff] (!%p140_p2)  ;;  %2739 = vmatprep.subr.bf16.mxu1 (!%p140_p2), %v3389_v3  ;;  %2835 = vmatprep.subr.bf16.mxu0 (!%p140_p2), %v3389_v3  ;;  %v2740_v4 = vpack.c.bf16 (!%p140_p2), %v593_v1, %v592_v0  ;;  %v657_v5 = vld [vmem:[%s5004_s1 + $0x208] sm:$0xff] (!%p140_p2)  ;;  %v595_v7 = vld [vmem:[%s5004_s1 + $0x18] sm:$0xff] (!%p140_p2)  ;;  %p165_p3 = scmp.lt.s32.totalorder (!%p140_p2), %s2595_s30, 7 }
   0x7   : > { %v2836_v8 = vpack.c.bf16 (!%p140_p2), %v657_v5, %v656_v2  ;;  %v658_v9 = vld [vmem:[%s5004_s1 + $0x210] sm:$0xff] (!%p140_p2)  ;;  %v659_v10 = vld [vmem:[%s5004_s1 + $0x218] sm:$0xff] (!%p140_p2)  ;;  %v2743_v11 = vpack.c.bf16 (!%p140_p2), %v595_v7, %v594_v6  ;;  %v596_v13 = vld [vmem:[%s5004_s1 + $0x20] sm:$0xff] (!%p140_p2)  ;;  %p171_p4 = scmp.lt.s32.totalorder (!%p140_p2), %s3416_s13, 1 }
   0x8   : > { %2741 = vmatpush1.bf16.msra.mxu1 (!%p140_p2), %v2740_v4  ;;  %v2839_v12 = vpack.c.bf16 (!%p140_p2), %v659_v10, %v658_v9  ;;  %v597_v14 = vld [vmem:[%s5004_s1 + $0x28] sm:$0xff] (!%p140_p2)  ;;  %v660_v15 = vld [vmem:[%s5004_s1 + $0x220] sm:$0xff] (!%p140_p2)  ;;  %v598_v19 = vld [vmem:[%s5004_s1 + $0x30] sm:$0xff] (!%p140_p2) }
   0x9   : > { %2837 = vmatpush1.bf16.msra.mxu0 (!%p140_p2), %v2836_v8  ;;  %2742 = vmatprep.subr.bf16.mxu1 (!%p140_p2), %v3389_v3  ;;  %v661_v16 = vld [vmem:[%s5004_s1 + $0x228] sm:$0xff] (!%p140_p2)  ;;  %v2746_v17 = vpack.c.bf16 (!%p140_p2), %v597_v14, %v596_v13  ;;  %v599_v20 = vld [vmem:[%s5004_s1 + $0x38] sm:$0xff] (!%p140_p2)  ;;  %v662_v21 = vld [vmem:[%s5004_s1 + $0x230] sm:$0xff] (!%p140_p2) }
   0xa   : > { %2838 = vmatprep.subr.bf16.mxu0 (!%p140_p2), %v3389_v3  ;;  %v2842_v18 = vpack.c.bf16 (!%p140_p2), %v661_v16, %v660_v15  ;;  %v663_v22 = vld [vmem:[%s5004_s1 + $0x238] sm:$0xff] (!%p140_p2)  ;;  %v2749_v23 = vpack.c.bf16 (!%p140_p2), %v599_v20, %v598_v19  ;;  %v600_v25 = vld [vmem:[%s5004_s1 + $0x40] sm:$0xff] (!%p140_p2)  ;;  %v601_v26 = vld [vmem:[%s5004_s1 + $0x48] sm:$0xff] (!%p140_p2) }
   0xb   : > { %v2845_v24 = vpack.c.bf16 (!%p140_p2), %v663_v22, %v662_v21  ;;  %v664_v27 = vld [vmem:[%s5004_s1 + $0x240] sm:$0xff] (!%p140_p2)  ;;  %v665_v28 = vld [vmem:[%s5004_s1 + $0x248] sm:$0xff] (!%p140_p2)  ;;  %v2752_v29 = vpack.c.bf16 (!%p140_p2), %v601_v26, %v600_v25  ;;  %v602_v31 = vld [vmem:[%s5004_s1 + $0x50] sm:$0xff] (!%p140_p2) }
   0xc   : > { %2744 = vmatpush1.bf16.msra.mxu1 (!%p140_p2), %v2743_v11  ;;  %v2848_v30 = vpack.c.bf16 (!%p140_p2), %v665_v28, %v664_v27  ;;  %v603_v32 = vld [vmem:[%s5004_s1 + $0x58] sm:$0xff] (!%p140_p2)  ;;  %v666_v33 = vld [vmem:[%s5004_s1 + $0x250] sm:$0xff] (!%p140_p2)  ;;  %v604_v37 = vld [vmem:[%s5004_s1 + $0x60] sm:$0xff] (!%p140_p2) }
   0xd   : > { %2840 = vmatpush1.bf16.msra.mxu0 %v2839_v12  ;;  %2745 = vmatprep.subr.bf16.mxu1 %v3389_v3  ;;  %s5008_s30 = smov (!%p165_p3, %s2595_s30), 7  ;;  %v667_v34 = vld [vmem:[%s5004_s1 + $0x258] sm:$0xff]  ;;  %v2755_v35 = vpack.c.bf16 %v603_v32, %v602_v31  ;;  %v605_v38 = vld [vmem:[%s5004_s1 + $0x68] sm:$0xff]  ;;  %v668_v39 = vld [vmem:[%s5004_s1 + $0x260] sm:$0xff]  ;;  %s5010_s13 = smov (!%p171_p4, %s3416_s13), 1 }
   0xe   : > { %2841 = vmatprep.subr.bf16.mxu0 %v3389_v3  ;;  %s3371_s4 = smul.u32 832, %s5008_s30  ;;  %v2851_v36 = vpack.c.bf16 %v667_v34, %v666_v33  ;;  %v669_v40 = vld [vmem:[%s5004_s1 + $0x268] sm:$0xff]  ;;  %v2758_v43 = vpack.c.bf16 %v605_v38, %v604_v37  ;;  %v606_v45 = vld [vmem:[%s5004_s1 + $0x70] sm:$0xff]  ;;  %v607_v46 = vld [vmem:[%s5004_s1 + $0x78] sm:$0xff]  ;;  %s2634_s8 = sshll.u32 %s5010_s13, 6 }
   0xf   : > { %v2854_v44 = vpack.c.bf16 %v669_v40, %v668_v39  ;;  %v670_v47 = vld [vmem:[%s5004_s1 + $0x270] sm:$0xff]  ;;  %v671_v48 = vld [vmem:[%s5004_s1 + $0x278] sm:$0xff]  ;;  %v2761_v49 = vpack.c.bf16 %v607_v46, %v606_v45  ;;  %v608_v51 = vld [vmem:[%s5004_s1 + $0x80] sm:$0xff]  ;;  %s4969_s10 = scalar_lea.vmem %s5006_s3, %s2634_s8 }
  0x10   : > { %2747 = vmatpush1.bf16.msra.mxu1 %v2746_v17  ;;  %s3506_s16 = scalar_lea.vmem %s5003_s0, %s3371_s4  ;;  %v2857_v50 = vpack.c.bf16 %v671_v48, %v670_v47  ;;  %v609_v52 = vld [vmem:[%s5004_s1 + $0x88] sm:$0xff]  ;;  %v672_v53 = vld [vmem:[%s5004_s1 + $0x280] sm:$0xff]  ;;  %v610_v57 = vld [vmem:[%s5004_s1 + $0x90] sm:$0xff] }
  0x11   : > { %2843 = vmatpush1.bf16.msra.mxu0 %v2842_v18  ;;  %2748 = vmatprep.subr.bf16.mxu1 %v3389_v3  ;;  %v177_v41 = vld [vmem:[%s3506_s16 + $0x8] sm:$0xff]  ;;  %v2764_v55 = vpack.c.bf16 %v609_v52, %v608_v51  ;;  %v611_v58 = vld [vmem:[%s5004_s1 + $0x98] sm:$0xff]  ;;  %v674_v59 = vld [vmem:[%s5004_s1 + $0x290] sm:$0xff] }
  0x12   : > { %2844 = vmatprep.subr.bf16.mxu0 %v3389_v3  ;;  %v181_v42 = vld [vmem:[%s3506_s16 + $0x28] sm:$0xff]  ;;  %960 = vmatprep.mubr.f32.mxu1 %v177_v41  ;;  %v675_v60 = vld [vmem:[%s5004_s1 + $0x298] sm:$0xff]  ;;  %v2767_v61 = vpack.c.bf16 %v611_v58, %v610_v57  ;;  %v612_v63 = vld [vmem:[%s5004_s1 + $0xa0] sm:$0xff] }
  0x13   : > { %1410 = vmatprep.mubr.f32.mxu0 %v181_v42  ;;  %v673_v54 = vld [vmem:[%s5004_s1 + $0x288] sm:$0xff]  ;;  %v2863_v62 = vpack.c.bf16 %v675_v60, %v674_v59  ;;  %v676_v1 = vld [vmem:[%s5004_s1 + $0x2a0] sm:$0xff]  ;;  %v614_v6 = vld [vmem:[%s5004_s1 + $0xb0] sm:$0xff] }
  0x14   : > { %2750 = vmatpush1.bf16.msra.mxu1 %v2749_v23  ;;  %v2860_v56 = vpack.c.bf16 %v673_v54, %v672_v53  ;;  %v613_v0 = vld [vmem:[%s5004_s1 + $0xa8] sm:$0xff]  ;;  %v615_v7 = vld [vmem:[%s5004_s1 + $0xb8] sm:$0xff]  ;;  %v678_v8 = vld [vmem:[%s5004_s1 + $0x2b0] sm:$0xff] }
  0x15   : > { %2846 = vmatpush1.bf16.msra.mxu0 %v2845_v24  ;;  %2751 = vmatprep.subr.bf16.mxu1 %v3389_v3  ;;  %v677_v2 = vld [vmem:[%s5004_s1 + $0x2a8] sm:$0xff]  ;;  %v2770_v4 = vpack.c.bf16 %v613_v0, %v612_v63  ;;  %v679_v9 = vld [vmem:[%s5004_s1 + $0x2b8] sm:$0xff]  ;;  %v2773_v10 = vpack.c.bf16 %v615_v7, %v614_v6  ;;  %v616_v12 = vld [vmem:[%s5004_s1 + $0xc0] sm:$0xff] }
  0x16   : > { %2847 = vmatprep.subr.bf16.mxu0 %v3389_v3  ;;  %v2866_v5 = vpack.c.bf16 %v677_v2, %v676_v1  ;;  %v2869_v11 = vpack.c.bf16 %v679_v9, %v678_v8  ;;  %v617_v13 = vld [vmem:[%s5004_s1 + $0xc8] sm:$0xff]  ;;  %v680_v14 = vld [vmem:[%s5004_s1 + $0x2c0] sm:$0xff]  ;;  %v618_v18 = vld [vmem:[%s5004_s1 + $0xd0] sm:$0xff] }
  0x17   : > { %v681_v15 = vld [vmem:[%s5004_s1 + $0x2c8] sm:$0xff]  ;;  %v2776_v16 = vpack.c.bf16 %v617_v13, %v616_v12  ;;  %v619_v19 = vld [vmem:[%s5004_s1 + $0xd8] sm:$0xff]  ;;  %v682_v20 = vld [vmem:[%s5004_s1 + $0x2d0] sm:$0xff] }
  0x18   : > { %2753 = vmatpush1.bf16.msra.mxu1 %v2752_v29  ;;  %v2872_v17 = vpack.c.bf16 %v681_v15, %v680_v14  ;;  %v683_v21 = vld [vmem:[%s5004_s1 + $0x2d8] sm:$0xff]  ;;  %v2779_v22 = vpack.c.bf16 %v619_v19, %v618_v18  ;;  %v620_v24 = vld [vmem:[%s5004_s1 + $0xe0] sm:$0xff]  ;;  %v621_v25 = vld [vmem:[%s5004_s1 + $0xe8] sm:$0xff] }
  0x19   : > { %2849 = vmatpush1.bf16.msra.mxu0 %v2848_v30  ;;  %2754 = vmatprep.subr.bf16.mxu1 %v3389_v3  ;;  %v2875_v23 = vpack.c.bf16 %v683_v21, %v682_v20  ;;  %v684_v26 = vld [vmem:[%s5004_s1 + $0x2e0] sm:$0xff]  ;;  %v685_v27 = vld [vmem:[%s5004_s1 + $0x2e8] sm:$0xff]  ;;  %v2782_v28 = vpack.c.bf16 %v621_v25, %v620_v24  ;;  %v622_v30 = vld [vmem:[%s5004_s1 + $0xf0] sm:$0xff] }
  0x1a   : > { %2850 = vmatprep.subr.bf16.mxu0 %v3389_v3  ;;  %v2878_v29 = vpack.c.bf16 %v685_v27, %v684_v26  ;;  %v623_v31 = vld [vmem:[%s5004_s1 + $0xf8] sm:$0xff]  ;;  %v686_v32 = vld [vmem:[%s5004_s1 + $0x2f0] sm:$0xff]  ;;  %v625_v37 = vld [vmem:[%s5004_s1 + $0x108] sm:$0xff] }
  0x1b   : > { %v687_v33 = vld [vmem:[%s5004_s1 + $0x2f8] sm:$0xff]  ;;  %v2785_v34 = vpack.c.bf16 %v623_v31, %v622_v30  ;;  %v688_v38 = vld [vmem:[%s5004_s1 + $0x300] sm:$0xff]  ;;  %v689_v39 = vld [vmem:[%s5004_s1 + $0x308] sm:$0xff] }
  0x1c   : > { %2756 = vmatpush1.bf16.msra.mxu1 %v2755_v35  ;;  %v2881_v35 = vpack.c.bf16 %v687_v33, %v686_v32  ;;  %v176_v40 = vld [vmem:[%s3506_s16] sm:$0xff]  ;;  %v690_v45 = vld [vmem:[%s5004_s1 + $0x310] sm:$0xff]  ;;  %v691_v46 = vld [vmem:[%s5004_s1 + $0x318] sm:$0xff] }
  0x1d   : > { %2852 = vmatpush1.bf16.msra.mxu0 %v2851_v36  ;;  %2757 = vmatprep.subr.bf16.mxu1 %v3389_v3  ;;  %v624_v36 = vld [vmem:[%s5004_s1 + $0x100] sm:$0xff]  ;;  %v194_v47 = vld [vmem:[%s3506_s16 + $0x90] sm:$0xff]  ;;  %v193_v51 = vld [vmem:[%s3506_s16 + $0x88] sm:$0xff]  ;;  %v2887_v53 = vpack.c.bf16 %v691_v46, %v690_v45 }
  0x1e   : > { %2853 = vmatprep.subr.bf16.mxu0 %v3389_v3  ;;  %v2788_v41 = vpack.c.bf16 %v625_v37, %v624_v36  ;;  %v180_v42 = vld [vmem:[%s3506_s16 + $0x20] sm:$0xff]  ;;  %v626_v48 = vld [vmem:[%s5004_s1 + $0x110] sm:$0xff]  ;;  %v203_v52 = vld [vmem:[%s3506_s16 + $0xd8] sm:$0xff] }
  0x1f   : > { %v207_v54 = vld [vmem:[%s3506_s16 + $0xf8] sm:$0xff]  ;;  %v693_v57 = vld [vmem:[%s5004_s1 + $0x328] sm:$0xff]  ;;  %v628_v58 = vld [vmem:[%s5004_s1 + $0x120] sm:$0xff] }
  0x20   : > { %2759 = vmatpush1.bf16.msra.mxu1 %v2758_v43  ;;  %v2884_v43 = vpack.c.bf16 %v689_v39, %v688_v38  ;;  %v629_v59 = vld [vmem:[%s5004_s1 + $0x128] sm:$0xff]  ;;  %v202_v60 = vld [vmem:[%s3506_s16 + $0xd0] sm:$0xff]  ;;  %v220_v0 = vld [vmem:[%s3506_s16 + $0x160] sm:$0xff] }
  0x21   : > { %2855 = vmatpush1.bf16.msra.mxu0 %v2854_v44  ;;  %2760 = vmatprep.subr.bf16.mxu1 %v3389_v3  ;;  %v190_v44 = vld [vmem:[%s3506_s16 + $0x70] sm:$0xff]  ;;  %v2794_v1 = vpack.c.bf16 %v629_v59, %v628_v58  ;;  %v631_v6 = vld [vmem:[%s5004_s1 + $0x138] sm:$0xff]  ;;  %v229_v9 = vld [vmem:[%s3506_s16 + $0x1a8] sm:$0xff] }
  0x22   : > { %2856 = vmatprep.subr.bf16.mxu0 %v3389_v3  ;;  %v694_v2 = vld [vmem:[%s5004_s1 + $0x330] sm:$0xff]  ;;  %v215_v7 = vld [vmem:[%s3506_s16 + $0x138] sm:$0xff]  ;;  %v696_v13 = vld [vmem:[%s5004_s1 + $0x340] sm:$0xff] }
  0x23   : > { %v219_v8 = vld [vmem:[%s3506_s16 + $0x158] sm:$0xff]  ;;  %v697_v14 = vld [vmem:[%s5004_s1 + $0x348] sm:$0xff]  ;;  %v632_v15 = vld [vmem:[%s5004_s1 + $0x140] sm:$0xff] }
  0x24   : > { %2762 = vmatpush1.bf16.msra.mxu1 %v2761_v49  ;;  %v627_v49 = vld [vmem:[%s5004_s1 + $0x118] sm:$0xff]  ;;  %v232_v18 = vld [vmem:[%s3506_s16 + $0x1c0] sm:$0xff]  ;;  %v242_v19 = vld [vmem:[%s3506_s16 + $0x210] sm:$0xff]  ;;  %v2896_v20 = vpack.c.bf16 %v697_v14, %v696_v13 }
  0x25   : > { %2858 = vmatpush1.bf16.msra.mxu0 %v2857_v50  ;;  %2763 = vmatprep.subr.bf16.mxu1 %v3389_v3  ;;  %v189_v50 = vld [vmem:[%s3506_s16 + $0x68] sm:$0xff]  ;;  %v246_v21 = vld [vmem:[%s3506_s16 + $0x230] sm:$0xff]  ;;  %v699_v24 = vld [vmem:[%s5004_s1 + $0x358] sm:$0xff] }
  0x26   : > { %2859 = vmatprep.subr.bf16.mxu0 %v3389_v3  ;;  %v634_v25 = vld [vmem:[%s5004_s1 + $0x150] sm:$0xff]  ;;  %v635_v26 = vld [vmem:[%s5004_s1 + $0x158] sm:$0xff]  ;;  %v241_v27 = vld [vmem:[%s3506_s16 + $0x208] sm:$0xff] }
  0x27   : > { %v259_v31 = vld [vmem:[%s3506_s16 + $0x298] sm:$0xff]  ;;  %v2803_v32 = vpack.c.bf16 %v635_v26, %v634_v25  ;;  %v700_v33 = vld [vmem:[%s5004_s1 + $0x360] sm:$0xff]  ;;  %v637_v36 = vld [vmem:[%s5004_s1 + $0x168] sm:$0xff] }
  0x28   : > { %2765 = vmatpush1.bf16.msra.mxu1 %v2764_v55  ;;  %v2791_v55 = vpack.c.bf16 %v627_v49, %v626_v48  ;;  %v254_v37 = vld [vmem:[%s3506_s16 + $0x270] sm:$0xff]  ;;  %v268_v39 = vld [vmem:[%s3506_s16 + $0x2e0] sm:$0xff]  ;;  %v639_v46 = vld [vmem:[%s5004_s1 + $0x178] sm:$0xff] }
  0x29   : > { %2861 = vmatpush1.bf16.msra.mxu0 %v2860_v56  ;;  %2766 = vmatprep.subr.bf16.mxu1 %v3389_v3  ;;  %v692_v56 = vld [vmem:[%s5004_s1 + $0x320] sm:$0xff]  ;;  %v258_v38 = vld [vmem:[%s3506_s16 + $0x290] sm:$0xff]  ;;  %v271_v48 = vld [vmem:[%s3506_s16 + $0x2f8] sm:$0xff] }
  0x2a   : > { %2862 = vmatprep.subr.bf16.mxu0 %v3389_v3  ;;  %v2890_v63 = vpack.c.bf16 %v693_v57, %v692_v56  ;;  %v638_v45 = vld [vmem:[%s5004_s1 + $0x170] sm:$0xff]  ;;  %v281_v49 = vld [vmem:[%s3506_s16 + $0x348] sm:$0xff]  ;;  %v280_v57 = vld [vmem:[%s3506_s16 + $0x340] sm:$0xff] }
  0x2b   : > { %v641_v56 = vld [vmem:[%s5004_s1 + $0x188] sm:$0xff]  ;;  %v284_v58 = vld [vmem:[%s3506_s16 + $0x360] sm:$0xff]  ;;  %v294_v59 = vld [vmem:[%s3506_s16 + $0x3b0] sm:$0xff] }
  0x2c   : > { %2768 = vmatpush1.bf16.msra.mxu1 %v2767_v61  ;;  %v206_v61 = vld [vmem:[%s3506_s16 + $0xf0] sm:$0xff]  ;;  %v645_v13 = vld [vmem:[%s5004_s1 + $0x1a8] sm:$0xff]  ;;  %v323_v25 = vld [vmem:[%s3506_s16 + $0x498] sm:$0xff] }
  0x2d   : > { %2864 = vmatpush1.bf16.msra.mxu0 %v2863_v62  ;;  %2769 = vmatprep.subr.bf16.mxu1 %v3389_v3  ;;  %v216_v62 = vld [vmem:[%s3506_s16 + $0x140] sm:$0xff]  ;;  %v306_v14 = vld [vmem:[%s3506_s16 + $0x410] sm:$0xff]  ;;  %v333_v26 = vld [vmem:[%s3506_s16 + $0x4e8] sm:$0xff] }
  0x2e   : > { %2865 = vmatprep.subr.bf16.mxu0 %v3389_v3 }
  0x30   : > { %2771 = vmatpush1.bf16.msra.mxu1 %v2770_v4  ;;  %v695_v4 = vld [vmem:[%s5004_s1 + $0x338] sm:$0xff] }
  0x31   : > { %2867 = vmatpush1.bf16.msra.mxu0 %v2866_v5  ;;  %2772 = vmatprep.subr.bf16.mxu1 %v3389_v3  ;;  %v630_v5 = vld [vmem:[%s5004_s1 + $0x130] sm:$0xff] }
  0x32   : > { %2868 = vmatprep.subr.bf16.mxu0 %v3389_v3  ;;  %v2797_v12 = vpack.c.bf16 %v631_v6, %v630_v5  ;;  %v297_v5 = vld [vmem:[%s3506_s16 + $0x3c8] sm:$0xff]  ;;  %v307_v6 = vld [vmem:[%s3506_s16 + $0x418] sm:$0xff] }
  0x34   : > { %2774 = vmatpush1.bf16.msra.mxu1 %v2773_v10  ;;  %v2893_v10 = vpack.c.bf16 %v695_v4, %v694_v2  ;;  %v643_v2 = vld [vmem:[%s5004_s1 + $0x198] sm:$0xff]  ;;  %v293_v4 = vld [vmem:[%s3506_s16 + $0x3a8] sm:$0xff] }
  0x35   : > { %2870 = vmatpush1.bf16.msra.mxu0 %v2869_v11  ;;  %2775 = vmatprep.subr.bf16.mxu1 %v3389_v3  ;;  %v233_v11 = vld [vmem:[%s3506_s16 + $0x1c8] sm:$0xff] }
  0x36   : > { %2871 = vmatprep.subr.bf16.mxu0 %v3389_v3 }
  0x38   : > { %2777 = vmatpush1.bf16.msra.mxu1 %v2776_v16  ;;  %v633_v16 = vld [vmem:[%s5004_s1 + $0x148] sm:$0xff] }
  0x39   : > { %2873 = vmatpush1.bf16.msra.mxu0 %v2872_v17  ;;  %2778 = vmatprep.subr.bf16.mxu1 %v3389_v3  ;;  %v228_v17 = vld [vmem:[%s3506_s16 + $0x1a0] sm:$0xff] }
  0x3a   : > { %2874 = vmatprep.subr.bf16.mxu0 %v3389_v3 }
  0x3c   : > { %2780 = vmatpush1.bf16.msra.mxu1 %v2779_v22  ;;  %v2800_v22 = vpack.c.bf16 %v633_v16, %v632_v15  ;;  %v310_v15 = vld [vmem:[%s3506_s16 + $0x430] sm:$0xff]  ;;  %v320_v16 = vld [vmem:[%s3506_s16 + $0x480] sm:$0xff] }
  0x3d   : > { %2876 = vmatpush1.bf16.msra.mxu0 %v2875_v23  ;;  %2781 = vmatprep.subr.bf16.mxu1 %v3389_v3  ;;  %v698_v23 = vld [vmem:[%s5004_s1 + $0x350] sm:$0xff] }
  0x3e   : > { %2877 = vmatprep.subr.bf16.mxu0 %v3389_v3  ;;  %v2899_v30 = vpack.c.bf16 %v699_v24, %v698_v23  ;;  %v647_v23 = vld [vmem:[%s5004_s1 + $0x1b8] sm:$0xff] }
  0x3f   : > { %v319_v24 = vld [vmem:[%s3506_s16 + $0x478] sm:$0xff] }
  0x40   : > { %2783 = vmatpush1.bf16.msra.mxu1 %v2782_v28  ;;  %v245_v28 = vld [vmem:[%s3506_s16 + $0x228] sm:$0xff] }
  0x41   : > { %2879 = vmatpush1.bf16.msra.mxu0 %v2878_v29  ;;  %2784 = vmatprep.subr.bf16.mxu1 %v3389_v3  ;;  %v255_v29 = vld [vmem:[%s3506_s16 + $0x278] sm:$0xff] }
  0x42   : > { %2880 = vmatprep.subr.bf16.mxu0 %v3389_v3 }
  0x44   : > { %2786 = vmatpush1.bf16.msra.mxu1 %v2785_v34  ;;  %v701_v34 = vld [vmem:[%s5004_s1 + $0x368] sm:$0xff] }
  0x45   : > { %2882 = vmatpush1.bf16.msra.mxu0 %v2881_v35  ;;  %2787 = vmatprep.subr.bf16.mxu1 %v3389_v3  ;;  %v636_v35 = vld [vmem:[%s5004_s1 + $0x160] sm:$0xff] }
  0x46   : > { %2883 = vmatprep.subr.bf16.mxu0 %v3389_v3 }
  0x47   : > { %961 = vmatmul.mubr.f32.vlgmr.msra.gmra.mrb[0].mxu1 %v176_v40  ;;  %v2902_v40 = vpack.c.bf16 %v701_v34, %v700_v33  ;;  %v649_v33 = vld [vmem:[%s5004_s1 + $0x1c8] sm:$0xff]  ;;  %v332_v34 = vld [vmem:[%s3506_s16 + $0x4e0] sm:$0xff] }
  0x48   : > { %1411 = vmatmul.mubr.f32.vlgmr.msra.gmra.mrb[0].mxu0 %v180_v42  ;;  %2789 = vmatpush1.bf16.msra.mxu1 %v2788_v41  ;;  %v272_v41 = vld [vmem:[%s3506_s16 + $0x300] sm:$0xff]  ;;  %v2806_v42 = vpack.c.bf16 %v637_v36, %v636_v35  ;;  %v346_v36 = vld [vmem:[%s3506_s16 + $0x550] sm:$0xff] }
  0x49   : > { %2885 = vmatpush1.bf16.msra.mxu0 %v2884_v43  ;;  %965 = vmatprep.mubr.f32.mxu1 %v190_v44  ;;  %v702_v43 = vld [vmem:[%s5004_s1 + $0x370] sm:$0xff]  ;;  %v703_v44 = vld [vmem:[%s5004_s1 + $0x378] sm:$0xff]  ;;  %v336_v35 = vld [vmem:[%s3506_s16 + $0x500] sm:$0xff] }
  0x4a   : > { %1415 = vmatprep.mubr.f32.mxu0 %v194_v47  ;;  %2886 = vmatprep.subr.bf16.mxu0 %v3389_v3  ;;  %v267_v47 = vld [vmem:[%s3506_s16 + $0x2d8] sm:$0xff] }
  0x4b   : > { %966 = vmatmul.mubr.f32.gmra.mrb[2].mxu1 %v189_v50  ;;  %2790 = vmatprep.subr.bf16.mxu1 %v3389_v3  ;;  %v2905_v50 = vpack.c.bf16 %v703_v44, %v702_v43  ;;  %v651_v43 = vld [vmem:[%s5004_s1 + $0x1d8] sm:$0xff]  ;;  %v345_v44 = vld [vmem:[%s3506_s16 + $0x548] sm:$0xff] }
  0x4c   : > { %1416 = vmatmul.mubr.f32.gmra.mrb[2].mxu0 %v193_v51  ;;  %970 = vmatprep.mubr.f32.mxu1 %v203_v52  ;;  %v285_v51 = vld [vmem:[%s3506_s16 + $0x368] sm:$0xff]  ;;  %v2809_v52 = vpack.c.bf16 %v639_v46, %v638_v45  ;;  %v359_v46 = vld [vmem:[%s3506_s16 + $0x5b8] sm:$0xff] }
  0x4d   : > { %1420 = vmatprep.mubr.f32.mxu0 %v207_v54  ;;  %2888 = vmatpush1.bf16.msra.mxu0 %v2887_v53  ;;  %v704_v53 = vld [vmem:[%s5004_s1 + $0x380] sm:$0xff]  ;;  %v705_v54 = vld [vmem:[%s5004_s1 + $0x388] sm:$0xff] }
  0x4e   : > { %2792 = vmatpush1.bf16.msra.mxu1 %v2791_v55  ;;  %2889 = vmatprep.subr.bf16.mxu0 %v3389_v3  ;;  %v640_v55 = vld [vmem:[%s5004_s1 + $0x180] sm:$0xff]  ;;  %v349_v45 = vld [vmem:[%s3506_s16 + $0x568] sm:$0xff] }
  0x4f   : > { %971 = vmatmul.mubr.f32.gmra.mrb[4].mxu1 %v202_v60  ;;  %2793 = vmatprep.subr.bf16.mxu1 %v3389_v3  ;;  %v2908_v60 = vpack.c.bf16 %v705_v54, %v704_v53  ;;  %v653_v53 = vld [vmem:[%s5004_s1 + $0x1e8] sm:$0xff]  ;;  %v358_v54 = vld [vmem:[%s3506_s16 + $0x5b0] sm:$0xff] }
  0x50   : > { %1421 = vmatmul.mubr.f32.gmra.mrb[4].mxu0 %v206_v61  ;;  %975 = vmatprep.mubr.f32.mxu1 %v216_v62  ;;  %v298_v61 = vld [vmem:[%s3506_s16 + $0x3d0] sm:$0xff]  ;;  %v2812_v62 = vpack.c.bf16 %v641_v56, %v640_v55  ;;  %v372_v56 = vld [vmem:[%s3506_s16 + $0x620] sm:$0xff] }
  0x51   : > { %1425 = vmatprep.mubr.f32.mxu0 %v220_v0  ;;  %2891 = vmatpush1.bf16.msra.mxu0 %v2890_v63  ;;  %v706_v63 = vld [vmem:[%s5004_s1 + $0x390] sm:$0xff]  ;;  %v707_v0 = vld [vmem:[%s5004_s1 + $0x398] sm:$0xff] }
  0x52   : > { %2795 = vmatpush1.bf16.msra.mxu1 %v2794_v1  ;;  %2892 = vmatprep.subr.bf16.mxu0 %v3389_v3  ;;  %v642_v1 = vld [vmem:[%s5004_s1 + $0x190] sm:$0xff] }
  0x53   : > { %976 = vmatmul.mubr.f32.gmra.mrb[6].mxu1 %v215_v7  ;;  %2796 = vmatprep.subr.bf16.mxu1 %v3389_v3  ;;  %v2911_v7 = vpack.c.bf16 %v707_v0, %v706_v63  ;;  %v362_v55 = vld [vmem:[%s3506_s16 + $0x5d0] sm:$0xff]  ;;  %v655_v63 = vld [vmem:[%s5004_s1 + $0x1f8] sm:$0xff] }
  0x54   : > { %1426 = vmatmul.mubr.f32.gmra.mrb[6].mxu0 %v219_v8  ;;  %980 = vmatprep.mubr.f32.mxu1 %v229_v9  ;;  %v311_v8 = vld [vmem:[%s3506_s16 + $0x438] sm:$0xff]  ;;  %v2815_v9 = vpack.c.bf16 %v643_v2, %v642_v1  ;;  %v385_v2 = vld [vmem:[%s3506_s16 + $0x688] sm:$0xff] }
  0x55   : > { %1430 = vmatprep.mubr.f32.mxu0 %v233_v11  ;;  %2894 = vmatpush1.bf16.msra.mxu0 %v2893_v10  ;;  %v708_v10 = vld [vmem:[%s5004_s1 + $0x3a0] sm:$0xff]  ;;  %v709_v11 = vld [vmem:[%s5004_s1 + $0x3a8] sm:$0xff]  ;;  %v371_v0 = vld [vmem:[%s3506_s16 + $0x618] sm:$0xff] }
  0x56   : > { %2798 = vmatpush1.bf16.msra.mxu1 %v2797_v12  ;;  %2895 = vmatprep.subr.bf16.mxu0 %v3389_v3  ;;  %v644_v12 = vld [vmem:[%s5004_s1 + $0x1a0] sm:$0xff]  ;;  %v375_v1 = vld [vmem:[%s3506_s16 + $0x638] sm:$0xff] }
  0x57   : > { %981 = vmatmul.mubr.f32.gmra.mrb[8].mxu1 %v228_v17  ;;  %2799 = vmatprep.subr.bf16.mxu1 %v3389_v3  ;;  %v2914_v17 = vpack.c.bf16 %v709_v11, %v708_v10  ;;  %v402_v10 = vld [vmem:[%s3506_s16 + $0x710] sm:$0xff]  ;;  %v397_v11 = vld [vmem:[%s3506_s16 + $0x6e8] sm:$0xff] }
  0x58   : > { %1431 = vmatmul.mubr.f32.gmra.mrb[8].mxu0 %v232_v18  ;;  %985 = vmatprep.mubr.f32.mxu1 %v242_v19  ;;  %v324_v18 = vld [vmem:[%s3506_s16 + $0x4a0] sm:$0xff]  ;;  %v2818_v19 = vpack.c.bf16 %v645_v13, %v644_v12  ;;  %v401_v12 = vld [vmem:[%s3506_s16 + $0x708] sm:$0xff]  ;;  %v411_v13 = vld [vmem:[%s3506_s16 + $0x758] sm:$0xff] }
  0x59   : > { %1435 = vmatprep.mubr.f32.mxu0 %v246_v21  ;;  %2897 = vmatpush1.bf16.msra.mxu0 %v2896_v20  ;;  %v710_v20 = vld [vmem:[%s5004_s1 + $0x3b0] sm:$0xff]  ;;  %v711_v21 = vld [vmem:[%s5004_s1 + $0x3b8] sm:$0xff] }
  0x5a   : > { %2801 = vmatpush1.bf16.msra.mxu1 %v2800_v22  ;;  %2898 = vmatprep.subr.bf16.mxu0 %v3389_v3  ;;  %v646_v22 = vld [vmem:[%s5004_s1 + $0x1b0] sm:$0xff] }
  0x5b   : > { %986 = vmatmul.mubr.f32.gmra.mrb[10].mxu1 %v241_v27  ;;  %2802 = vmatprep.subr.bf16.mxu1 %v3389_v3  ;;  %v2917_v27 = vpack.c.bf16 %v711_v21, %v710_v20  ;;  %v427_v20 = vld [vmem:[%s3506_s16 + $0x7d8] sm:$0xff]  ;;  %v437_v21 = vld [vmem:[%s3506_s16 + $0x828] sm:$0xff] }
  0x5c   : > { %1436 = vmatmul.mubr.f32.gmra.mrb[10].mxu0 %v245_v28  ;;  %990 = vmatprep.mubr.f32.mxu1 %v255_v29  ;;  %v337_v28 = vld [vmem:[%s3506_s16 + $0x508] sm:$0xff]  ;;  %v2821_v29 = vpack.c.bf16 %v647_v23, %v646_v22  ;;  %v436_v23 = vld [vmem:[%s3506_s16 + $0x820] sm:$0xff] }
  0x5d   : > { %1440 = vmatprep.mubr.f32.mxu0 %v259_v31  ;;  %2900 = vmatpush1.bf16.msra.mxu0 %v2899_v30  ;;  %v712_v30 = vld [vmem:[%s5004_s1 + $0x3c0] sm:$0xff]  ;;  %v713_v31 = vld [vmem:[%s5004_s1 + $0x3c8] sm:$0xff] }
  0x5e   : > { %2804 = vmatpush1.bf16.msra.mxu1 %v2803_v32  ;;  %2901 = vmatprep.subr.bf16.mxu0 %v3389_v3  ;;  %v648_v32 = vld [vmem:[%s5004_s1 + $0x1c0] sm:$0xff]  ;;  %v441_v22 = vld [vmem:[%s3506_s16 + $0x848] sm:$0xff] }
  0x5f   : > { %991 = vmatmul.mubr.f32.gmra.mrb[12].mxu1 %v254_v37  ;;  %2805 = vmatprep.subr.bf16.mxu1 %v3389_v3  ;;  %v2920_v37 = vpack.c.bf16 %v713_v31, %v712_v30  ;;  %v467_v30 = vld [vmem:[%s3506_s16 + $0x918] sm:$0xff]  ;;  %v462_v31 = vld [vmem:[%s3506_s16 + $0x8f0] sm:$0xff] }
  0x60   : > { %1441 = vmatmul.mubr.f32.gmra.mrb[12].mxu0 %v258_v38  ;;  %995 = vmatprep.mubr.f32.mxu1 %v268_v39  ;;  %v350_v38 = vld [vmem:[%s3506_s16 + $0x570] sm:$0xff]  ;;  %v2824_v39 = vpack.c.bf16 %v649_v33, %v648_v32  ;;  %v476_v33 = vld [vmem:[%s3506_s16 + $0x960] sm:$0xff] }
  0x61   : > { %1445 = vmatprep.mubr.f32.mxu0 %v272_v41  ;;  %2903 = vmatpush1.bf16.msra.mxu0 %v2902_v40  ;;  %v714_v40 = vld [vmem:[%s5004_s1 + $0x3d0] sm:$0xff]  ;;  %v715_v41 = vld [vmem:[%s5004_s1 + $0x3d8] sm:$0xff] }
  0x62   : > { %2807 = vmatpush1.bf16.msra.mxu1 %v2806_v42  ;;  %2904 = vmatprep.subr.bf16.mxu0 %v3389_v3  ;;  %v650_v42 = vld [vmem:[%s5004_s1 + $0x1d0] sm:$0xff] }
  0x63   : > { %996 = vmatmul.mubr.f32.gmra.mrb[14].mxu1 %v267_v47  ;;  %2808 = vmatprep.subr.bf16.mxu1 %v3389_v3  ;;  %v2923_v47 = vpack.c.bf16 %v715_v41, %v714_v40  ;;  %v466_v32 = vld [vmem:[%s3506_s16 + $0x910] sm:$0xff]  ;;  %v492_v40 = vld [vmem:[%s3506_s16 + $0x9e0] sm:$0xff] }
  0x64   : > { %1446 = vmatmul.mubr.f32.gmra.mrb[14].mxu0 %v271_v48  ;;  %1000 = vmatprep.mubr.f32.mxu1 %v281_v49  ;;  %v363_v48 = vld [vmem:[%s3506_s16 + $0x5d8] sm:$0xff]  ;;  %v2827_v49 = vpack.c.bf16 %v651_v43, %v650_v42  ;;  %v502_v41 = vld [vmem:[%s3506_s16 + $0xa30] sm:$0xff]  ;;  %v501_v43 = vld [vmem:[%s3506_s16 + $0xa28] sm:$0xff] }
  0x65   : > { %1450 = vmatprep.mubr.f32.mxu0 %v285_v51  ;;  %2906 = vmatpush1.bf16.msra.mxu0 %v2905_v50  ;;  %v716_v50 = vld [vmem:[%s5004_s1 + $0x3e0] sm:$0xff]  ;;  %v717_v51 = vld [vmem:[%s5004_s1 + $0x3e8] sm:$0xff]  ;;  %v506_v42 = vld [vmem:[%s3506_s16 + $0xa50] sm:$0xff] }
  0x66   : > { %2810 = vmatpush1.bf16.msra.mxu1 %v2809_v52  ;;  %2907 = vmatprep.subr.bf16.mxu0 %v3389_v3  ;;  %v652_v52 = vld [vmem:[%s5004_s1 + $0x1e0] sm:$0xff] }
  0x67   : > { %1001 = vmatmul.mubr.f32.gmra.mrb[16].mxu1 %v280_v57  ;;  %2811 = vmatprep.subr.bf16.mxu1 %v3389_v3  ;;  %v2926_v57 = vpack.c.bf16 %v717_v51, %v716_v50  ;;  %v532_v50 = vld [vmem:[%s3506_s16 + $0xb20] sm:$0xff]  ;;  %v527_v51 = vld [vmem:[%s3506_s16 + $0xaf8] sm:$0xff] }
  0x68   : > { %1451 = vmatmul.mubr.f32.gmra.mrb[16].mxu0 %v284_v58  ;;  %1005 = vmatprep.mubr.f32.mxu1 %v294_v59  ;;  %v376_v58 = vld [vmem:[%s3506_s16 + $0x640] sm:$0xff]  ;;  %v2830_v59 = vpack.c.bf16 %v653_v53, %v652_v52  ;;  %v531_v52 = vld [vmem:[%s3506_s16 + $0xb18] sm:$0xff]  ;;  %v541_v53 = vld [vmem:[%s3506_s16 + $0xb68] sm:$0xff] }
  0x69   : > { %1455 = vmatprep.mubr.f32.mxu0 %v298_v61  ;;  %2909 = vmatpush1.bf16.msra.mxu0 %v2908_v60  ;;  %v718_v60 = vld [vmem:[%s5004_s1 + $0x3f0] sm:$0xff]  ;;  %v719_v61 = vld [vmem:[%s5004_s1 + $0x3f8] sm:$0xff] }
  0x6a   : > { %2813 = vmatpush1.bf16.msra.mxu1 %v2812_v62  ;;  %2910 = vmatprep.subr.bf16.mxu0 %v3389_v3  ;;  %v654_v62 = vld [vmem:[%s5004_s1 + $0x1f0] sm:$0xff] }
  0x6b   : > { %1006 = vmatmul.mubr.f32.gmra.mrb[18].mxu1 %v293_v4  ;;  %2814 = vmatprep.subr.bf16.mxu1 %v3389_v3  ;;  %v2929_v4 = vpack.c.bf16 %v719_v61, %v718_v60  ;;  %v557_v60 = vld [vmem:[%s3506_s16 + $0xbe8] sm:$0xff]  ;;  %v567_v61 = vld [vmem:[%s3506_s16 + $0xc38] sm:$0xff] }
  0x6c   : > { %1456 = vmatmul.mubr.f32.gmra.mrb[18].mxu0 %v297_v5  ;;  %1010 = vmatprep.mubr.f32.mxu1 %v307_v6  ;;  %v389_v5 = vld [vmem:[%s3506_s16 + $0x6a8] sm:$0xff]  ;;  %v2833_v6 = vpack.c.bf16 %v655_v63, %v654_v62  ;;  %v571_v62 = vld [vmem:[%s3506_s16 + $0xc58] sm:$0xff]  ;;  %v566_v63 = vld [vmem:[%s3506_s16 + $0xc30] sm:$0xff] }
  0x6d   : > { %1460 = vmatprep.mubr.f32.mxu0 %v311_v8  ;;  %2912 = vmatpush1.bf16.msra.mxu0 %v2911_v7  ;;  %v384_v7 = vld [vmem:[%s3506_s16 + $0x680] sm:$0xff] }
  0x6e   : > { %2816 = vmatpush1.bf16.msra.mxu1 %v2815_v9  ;;  %2913 = vmatprep.subr.bf16.mxu0 %v3389_v3  ;;  %v388_v8 = vld [vmem:[%s3506_s16 + $0x6a0] sm:$0xff]  ;;  %v398_v9 = vld [vmem:[%s3506_s16 + $0x6f0] sm:$0xff] }
  0x6f   : > { %1011 = vmatmul.mubr.f32.gmra.mrb[20].mxu1 %v306_v14  ;;  %2817 = vmatprep.subr.bf16.mxu1 %v3389_v3  ;;  %v415_v14 = vld [vmem:[%s3506_s16 + $0x778] sm:$0xff] }
  0x70   : > { %1461 = vmatmul.mubr.f32.gmra.mrb[20].mxu0 %v310_v15  ;;  %1015 = vmatprep.mubr.f32.mxu1 %v320_v16  ;;  %v410_v15 = vld [vmem:[%s3506_s16 + $0x750] sm:$0xff] }
  0x71   : > { %1465 = vmatprep.mubr.f32.mxu0 %v324_v18  ;;  %2915 = vmatpush1.bf16.msra.mxu0 %v2914_v17  ;;  %v414_v16 = vld [vmem:[%s3506_s16 + $0x770] sm:$0xff]  ;;  %v424_v17 = vld [vmem:[%s3506_s16 + $0x7c0] sm:$0xff] }
  0x72   : > { %2819 = vmatpush1.bf16.msra.mxu1 %v2818_v19  ;;  %2916 = vmatprep.subr.bf16.mxu0 %v3389_v3  ;;  %v428_v18 = vld [vmem:[%s3506_s16 + $0x7e0] sm:$0xff]  ;;  %v423_v19 = vld [vmem:[%s3506_s16 + $0x7b8] sm:$0xff] }
  0x73   : > { %1016 = vmatmul.mubr.f32.gmra.mrb[22].mxu1 %v319_v24  ;;  %2820 = vmatprep.subr.bf16.mxu1 %v3389_v3  ;;  %v440_v24 = vld [vmem:[%s3506_s16 + $0x840] sm:$0xff] }
  0x74   : > { %1466 = vmatmul.mubr.f32.gmra.mrb[22].mxu0 %v323_v25  ;;  %1020 = vmatprep.mubr.f32.mxu1 %v333_v26  ;;  %v450_v25 = vld [vmem:[%s3506_s16 + $0x890] sm:$0xff] }
  0x75   : > { %1470 = vmatprep.mubr.f32.mxu0 %v337_v28  ;;  %2918 = vmatpush1.bf16.msra.mxu0 %v2917_v27  ;;  %v454_v26 = vld [vmem:[%s3506_s16 + $0x8b0] sm:$0xff]  ;;  %v449_v27 = vld [vmem:[%s3506_s16 + $0x888] sm:$0xff] }
  0x76   : > { %2822 = vmatpush1.bf16.msra.mxu1 %v2821_v29  ;;  %2919 = vmatprep.subr.bf16.mxu0 %v3389_v3  ;;  %v453_v28 = vld [vmem:[%s3506_s16 + $0x8a8] sm:$0xff]  ;;  %v463_v29 = vld [vmem:[%s3506_s16 + $0x8f8] sm:$0xff] }
  0x77   : > { %1021 = vmatmul.mubr.f32.gmra.mrb[24].mxu1 %v332_v34  ;;  %2823 = vmatprep.subr.bf16.mxu1 %v3389_v3  ;;  %v480_v34 = vld [vmem:[%s3506_s16 + $0x980] sm:$0xff] }
  0x78   : > { %1471 = vmatmul.mubr.f32.gmra.mrb[24].mxu0 %v336_v35  ;;  %1025 = vmatprep.mubr.f32.mxu1 %v346_v36  ;;  %v475_v35 = vld [vmem:[%s3506_s16 + $0x958] sm:$0xff] }
  0x79   : > { %1475 = vmatprep.mubr.f32.mxu0 %v350_v38  ;;  %2921 = vmatpush1.bf16.msra.mxu0 %v2920_v37  ;;  %v479_v36 = vld [vmem:[%s3506_s16 + $0x978] sm:$0xff]  ;;  %v489_v37 = vld [vmem:[%s3506_s16 + $0x9c8] sm:$0xff] }
  0x7a   : > { %2825 = vmatpush1.bf16.msra.mxu1 %v2824_v39  ;;  %2922 = vmatprep.subr.bf16.mxu0 %v3389_v3  ;;  %v493_v38 = vld [vmem:[%s3506_s16 + $0x9e8] sm:$0xff]  ;;  %v488_v39 = vld [vmem:[%s3506_s16 + $0x9c0] sm:$0xff] }
  0x7b   : > { %1026 = vmatmul.mubr.f32.gmra.mrb[26].mxu1 %v345_v44  ;;  %2826 = vmatprep.subr.bf16.mxu1 %v3389_v3  ;;  %v505_v44 = vld [vmem:[%s3506_s16 + $0xa48] sm:$0xff] }
  0x7c   : > { %1476 = vmatmul.mubr.f32.gmra.mrb[26].mxu0 %v349_v45  ;;  %1030 = vmatprep.mubr.f32.mxu1 %v359_v46  ;;  %v515_v45 = vld [vmem:[%s3506_s16 + $0xa98] sm:$0xff] }
  0x7d   : > { %1480 = vmatprep.mubr.f32.mxu0 %v363_v48  ;;  %2924 = vmatpush1.bf16.msra.mxu0 %v2923_v47  ;;  %v519_v46 = vld [vmem:[%s3506_s16 + $0xab8] sm:$0xff]  ;;  %v514_v47 = vld [vmem:[%s3506_s16 + $0xa90] sm:$0xff] }
  0x7e   : > { %2828 = vmatpush1.bf16.msra.mxu1 %v2827_v49  ;;  %2925 = vmatprep.subr.bf16.mxu0 %v3389_v3  ;;  %v518_v48 = vld [vmem:[%s3506_s16 + $0xab0] sm:$0xff]  ;;  %v528_v49 = vld [vmem:[%s3506_s16 + $0xb00] sm:$0xff] }
  0x7f   : > { %1031 = vmatmul.mubr.f32.gmra.mrb[28].mxu1 %v358_v54  ;;  %2829 = vmatprep.subr.bf16.mxu1 %v3389_v3  ;;  %v545_v54 = vld [vmem:[%s3506_s16 + $0xb88] sm:$0xff] }
  0x80   : > { %1481 = vmatmul.mubr.f32.gmra.mrb[28].mxu0 %v362_v55  ;;  %1035 = vmatprep.mubr.f32.mxu1 %v372_v56  ;;  %v540_v55 = vld [vmem:[%s3506_s16 + $0xb60] sm:$0xff] }
  0x81   : > { %1485 = vmatprep.mubr.f32.mxu0 %v376_v58  ;;  %2927 = vmatpush1.bf16.msra.mxu0 %v2926_v57  ;;  %v544_v56 = vld [vmem:[%s3506_s16 + $0xb80] sm:$0xff]  ;;  %v554_v57 = vld [vmem:[%s3506_s16 + $0xbd0] sm:$0xff] }
  0x82   : > { %2831 = vmatpush1.bf16.msra.mxu1 %v2830_v59  ;;  %2928 = vmatprep.subr.bf16.mxu0 %v3389_v3  ;;  %v558_v58 = vld [vmem:[%s3506_s16 + $0xbf0] sm:$0xff]  ;;  %v553_v59 = vld [vmem:[%s3506_s16 + $0xbc8] sm:$0xff] }
  0x83   : > { %1036 = vmatmul.mubr.f32.gmra.mrb[30].mxu1 %v371_v0  ;;  %2832 = vmatprep.subr.bf16.mxu1 %v3389_v3  ;;  %v570_v0 = vld [vmem:[%s3506_s16 + $0xc50] sm:$0xff] }
  0x84   : > { %1486 = vmatmul.mubr.f32.gmra.mrb[30].mxu0 %v375_v1  ;;  %1040 = vmatprep.mubr.f32.mxu1 %v385_v2  ;;  %v580_v1 = vld [vmem:[%s3506_s16 + $0xca0] sm:$0xff] }
  0x85   : > { %1490 = vmatprep.mubr.f32.mxu0 %v389_v5  ;;  %2930 = vmatpush1.bf16.msra.mxu0 %v2929_v4  ;;  %v584_v2 = vld [vmem:[%s3506_s16 + $0xcc0] sm:$0xff]  ;;  %v579_v4 = vld [vmem:[%s3506_s16 + $0xc98] sm:$0xff] }
  0x86   : > { %2834 = vmatpush1.bf16.msra.mxu1 %v2833_v6  ;;  %2931 = vmatprep.subr.bf16.mxu0 %v3389_v3  ;;  %v583_v5 = vld [vmem:[%s3506_s16 + $0xcb8] sm:$0xff] }
  0x87   : > { %1041 = vmatmul.mubr.f32.gmra.mrb[32].mxu1 %v384_v7  ;;  %3043 = vmatprep.subr.bf16.mxu1 %v3389_v3  ;;  %v179_v6 = vld [vmem:[%s3506_s16 + $0x18] sm:$0xff]  ;;  %v752_v7 = vld [vmem:[%s5004_s1 + $0x500] sm:$0xff] }
  0x88   : > { %1491 = vmatmul.mubr.f32.gmra.mrb[32].mxu0 %v388_v8  ;;  %1045 = vmatprep.mubr.f32.mxu1 %v398_v9  ;;  %v753_v8 = vld [vmem:[%s5004_s1 + $0x508] sm:$0xff]  ;;  %v183_v9 = vld [vmem:[%s3506_s16 + $0x38] sm:$0xff] }
  0x89   : > { %1495 = vmatprep.mubr.f32.mxu0 %v402_v10  ;;  %v720_v10 = vld [vmem:[%s5004_s1 + $0x400] sm:$0xff] }
  0x8b   : > { %1046 = vmatmul.mubr.f32.gmra.mrb[34].mxu1 %v397_v11  ;;  %v721_v11 = vld [vmem:[%s5004_s1 + $0x408] sm:$0xff] }
  0x8c   : > { %1496 = vmatmul.mubr.f32.gmra.mrb[34].mxu0 %v401_v12  ;;  %1050 = vmatprep.mubr.f32.mxu1 %v411_v13  ;;  %v178_v12 = vld [vmem:[%s3506_s16 + $0x10] sm:$0xff]  ;;  %v4019_v13 = vpack.c.bf16 %v753_v8, %v752_v7  ;;  %v764_v7 = vld [vmem:[%s5004_s1 + $0x560] sm:$0xff]  ;;  %v765_v8 = vld [vmem:[%s5004_s1 + $0x568] sm:$0xff] }
  0x8d   : > { %1500 = vmatprep.mubr.f32.mxu0 %v415_v14  ;;  %v182_v14 = vld [vmem:[%s3506_s16 + $0x30] sm:$0xff] }
  0x8f   : > { %1051 = vmatmul.mubr.f32.gmra.mrb[36].mxu1 %v410_v15  ;;  %v2932_v15 = vpack.c.bf16 %v721_v11, %v720_v10  ;;  %v260_v10 = vld [vmem:[%s3506_s16 + $0x2a0] sm:$0xff]  ;;  %v270_v11 = vld [vmem:[%s3506_s16 + $0x2f0] sm:$0xff] }
  0x90   : > { %1501 = vmatmul.mubr.f32.gmra.mrb[36].mxu0 %v414_v16  ;;  %1055 = vmatprep.mubr.f32.mxu1 %v424_v17  ;;  %v192_v16 = vld [vmem:[%s3506_s16 + $0x80] sm:$0xff]  ;;  %v722_v17 = vld [vmem:[%s5004_s1 + $0x410] sm:$0xff] }
  0x91   : > { %1505 = vmatprep.mubr.f32.mxu0 %v428_v18  ;;  %v723_v18 = vld [vmem:[%s5004_s1 + $0x418] sm:$0xff] }
  0x93   : > { %1056 = vmatmul.mubr.f32.gmra.mrb[38].mxu1 %v423_v19  ;;  %v196_v19 = vld [vmem:[%s3506_s16 + $0xa0] sm:$0xff] }
  0x94   : > { %1506 = vmatmul.mubr.f32.gmra.mrb[38].mxu0 %v427_v20  ;;  %1060 = vmatprep.mubr.f32.mxu1 %v437_v21  ;;  %v754_v20 = vld [vmem:[%s5004_s1 + $0x510] sm:$0xff]  ;;  %v755_v21 = vld [vmem:[%s5004_s1 + $0x518] sm:$0xff] }
  0x95   : > { %1510 = vmatprep.mubr.f32.mxu0 %v441_v22  ;;  %v191_v22 = vld [vmem:[%s3506_s16 + $0x78] sm:$0xff] }
  0x97   : > { %1061 = vmatmul.mubr.f32.gmra.mrb[40].mxu1 %v436_v23  ;;  %v195_v23 = vld [vmem:[%s3506_s16 + $0x98] sm:$0xff] }
  0x98   : > { %1511 = vmatmul.mubr.f32.gmra.mrb[40].mxu0 %v440_v24  ;;  %1065 = vmatprep.mubr.f32.mxu1 %v450_v25  ;;  %v205_v24 = vld [vmem:[%s3506_s16 + $0xe8] sm:$0xff]  ;;  %v2935_v25 = vpack.c.bf16 %v723_v18, %v722_v17  ;;  %v735_v17 = vld [vmem:[%s5004_s1 + $0x478] sm:$0xff]  ;;  %v766_v18 = vld [vmem:[%s5004_s1 + $0x570] sm:$0xff] }
  0x99   : > { %1515 = vmatprep.mubr.f32.mxu0 %v454_v26  ;;  %v209_v26 = vld [vmem:[%s3506_s16 + $0x108] sm:$0xff] }
  0x9b   : > { %1066 = vmatmul.mubr.f32.gmra.mrb[42].mxu1 %v449_v27  ;;  %v4042_v27 = vpack.c.bf16 %v755_v21, %v754_v20  ;;  %v269_v20 = vld [vmem:[%s3506_s16 + $0x2e8] sm:$0xff] }
  0x9c   : > { %1516 = vmatmul.mubr.f32.gmra.mrb[42].mxu0 %v453_v28  ;;  %1070 = vmatprep.mubr.f32.mxu1 %v463_v29  ;;  %v724_v28 = vld [vmem:[%s5004_s1 + $0x420] sm:$0xff]  ;;  %v725_v29 = vld [vmem:[%s5004_s1 + $0x428] sm:$0xff] }
  0x9d   : > { %1520 = vmatprep.mubr.f32.mxu0 %v467_v30  ;;  %v756_v30 = vld [vmem:[%s5004_s1 + $0x520] sm:$0xff]  ;;  %v273_v21 = vld [vmem:[%s3506_s16 + $0x308] sm:$0xff] }
  0x9f   : > { %1071 = vmatmul.mubr.f32.gmra.mrb[44].mxu1 %v462_v31  ;;  %v757_v31 = vld [vmem:[%s5004_s1 + $0x528] sm:$0xff] }
  0xa0   : > { %1521 = vmatmul.mubr.f32.gmra.mrb[44].mxu0 %v466_v32  ;;  %1075 = vmatprep.mubr.f32.mxu1 %v476_v33  ;;  %v204_v32 = vld [vmem:[%s3506_s16 + $0xe0] sm:$0xff] }
  0xa1   : > { %1525 = vmatprep.mubr.f32.mxu0 %v480_v34  ;;  %v208_v33 = vld [vmem:[%s3506_s16 + $0x100] sm:$0xff]  ;;  %v218_v34 = vld [vmem:[%s3506_s16 + $0x150] sm:$0xff] }
  0xa3   : > { %1076 = vmatmul.mubr.f32.gmra.mrb[46].mxu1 %v475_v35  ;;  %v2938_v35 = vpack.c.bf16 %v725_v29, %v724_v28  ;;  %v737_v28 = vld [vmem:[%s5004_s1 + $0x488] sm:$0xff]  ;;  %v768_v29 = vld [vmem:[%s5004_s1 + $0x580] sm:$0xff] }
  0xa4   : > { %1526 = vmatmul.mubr.f32.gmra.mrb[46].mxu0 %v479_v36  ;;  %1080 = vmatprep.mubr.f32.mxu1 %v489_v37  ;;  %v222_v36 = vld [vmem:[%s3506_s16 + $0x170] sm:$0xff]  ;;  %v4063_v37 = vpack.c.bf16 %v757_v31, %v756_v30  ;;  %v769_v30 = vld [vmem:[%s5004_s1 + $0x588] sm:$0xff] }
  0xa5   : > { %1530 = vmatprep.mubr.f32.mxu0 %v493_v38  ;;  %v726_v38 = vld [vmem:[%s5004_s1 + $0x430] sm:$0xff] }
  0xa6   : > { %v282_v31 = vld [vmem:[%s3506_s16 + $0x350] sm:$0xff] }
  0xa7   : > { %1081 = vmatmul.mubr.f32.gmra.mrb[48].mxu1 %v488_v39  ;;  %v727_v39 = vld [vmem:[%s5004_s1 + $0x438] sm:$0xff] }
  0xa8   : > { %1531 = vmatmul.mubr.f32.gmra.mrb[48].mxu0 %v492_v40  ;;  %1085 = vmatprep.mubr.f32.mxu1 %v502_v41  ;;  %v758_v40 = vld [vmem:[%s5004_s1 + $0x530] sm:$0xff]  ;;  %v759_v41 = vld [vmem:[%s5004_s1 + $0x538] sm:$0xff] }
  0xa9   : > { %1535 = vmatprep.mubr.f32.mxu0 %v506_v42  ;;  %v217_v42 = vld [vmem:[%s3506_s16 + $0x148] sm:$0xff] }
  0xab   : > { %1086 = vmatmul.mubr.f32.gmra.mrb[50].mxu1 %v501_v43  ;;  %v221_v43 = vld [vmem:[%s3506_s16 + $0x168] sm:$0xff] }
  0xac   : > { %1536 = vmatmul.mubr.f32.gmra.mrb[50].mxu0 %v505_v44  ;;  %1090 = vmatprep.mubr.f32.mxu1 %v515_v45  ;;  %v231_v44 = vld [vmem:[%s3506_s16 + $0x1b8] sm:$0xff]  ;;  %v2941_v45 = vpack.c.bf16 %v727_v39, %v726_v38  ;;  %v738_v38 = vld [vmem:[%s5004_s1 + $0x490] sm:$0xff] }
  0xad   : > { %1540 = vmatprep.mubr.f32.mxu0 %v519_v46  ;;  %v235_v46 = vld [vmem:[%s3506_s16 + $0x1d8] sm:$0xff] }
  0xae   : > { %v739_v39 = vld [vmem:[%s5004_s1 + $0x498] sm:$0xff] }
  0xaf   : > { %1091 = vmatmul.mubr.f32.gmra.mrb[52].mxu1 %v514_v47  ;;  %v4084_v47 = vpack.c.bf16 %v759_v41, %v758_v40  ;;  %v770_v40 = vld [vmem:[%s5004_s1 + $0x590] sm:$0xff]  ;;  %v771_v41 = vld [vmem:[%s5004_s1 + $0x598] sm:$0xff] }
  0xb0   : > { %1541 = vmatmul.mubr.f32.gmra.mrb[52].mxu0 %v518_v48  ;;  %1095 = vmatprep.mubr.f32.mxu1 %v528_v49  ;;  %v728_v48 = vld [vmem:[%s5004_s1 + $0x440] sm:$0xff]  ;;  %v729_v49 = vld [vmem:[%s5004_s1 + $0x448] sm:$0xff] }
  0xb1   : > { %1545 = vmatprep.mubr.f32.mxu0 %v532_v50  ;;  %v760_v50 = vld [vmem:[%s5004_s1 + $0x540] sm:$0xff] }
  0xb3   : > { %1096 = vmatmul.mubr.f32.gmra.mrb[54].mxu1 %v527_v51  ;;  %v761_v51 = vld [vmem:[%s5004_s1 + $0x548] sm:$0xff] }
  0xb4   : > { %1546 = vmatmul.mubr.f32.gmra.mrb[54].mxu0 %v531_v52  ;;  %1100 = vmatprep.mubr.f32.mxu1 %v541_v53  ;;  %v230_v52 = vld [vmem:[%s3506_s16 + $0x1b0] sm:$0xff] }
  0xb5   : > { %1550 = vmatprep.mubr.f32.mxu0 %v545_v54  ;;  %v234_v53 = vld [vmem:[%s3506_s16 + $0x1d0] sm:$0xff]  ;;  %v244_v54 = vld [vmem:[%s3506_s16 + $0x220] sm:$0xff] }
  0xb7   : > { %1101 = vmatmul.mubr.f32.gmra.mrb[56].mxu1 %v540_v55  ;;  %v2944_v55 = vpack.c.bf16 %v729_v49, %v728_v48  ;;  %v4210_v48 = vpack.c.bf16 %v771_v41, %v770_v40  ;;  %v740_v49 = vld [vmem:[%s5004_s1 + $0x4a0] sm:$0xff]  ;;  %v374_v40 = vld [vmem:[%s3506_s16 + $0x630] sm:$0xff] }
  0xb8   : > { %1551 = vmatmul.mubr.f32.gmra.mrb[56].mxu0 %v544_v56  ;;  %1105 = vmatprep.mubr.f32.mxu1 %v554_v57  ;;  %v248_v56 = vld [vmem:[%s3506_s16 + $0x240] sm:$0xff]  ;;  %v4105_v57 = vpack.c.bf16 %v761_v51, %v760_v50  ;;  %v741_v50 = vld [vmem:[%s5004_s1 + $0x4a8] sm:$0xff] }
  0xb9   : > { %1555 = vmatprep.mubr.f32.mxu0 %v558_v58  ;;  %v730_v58 = vld [vmem:[%s5004_s1 + $0x450] sm:$0xff]  ;;  %v772_v51 = vld [vmem:[%s5004_s1 + $0x5a0] sm:$0xff] }
  0xbb   : > { %1106 = vmatmul.mubr.f32.gmra.mrb[58].mxu1 %v553_v59  ;;  %v731_v59 = vld [vmem:[%s5004_s1 + $0x458] sm:$0xff] }
  0xbc   : > { %1556 = vmatmul.mubr.f32.gmra.mrb[58].mxu0 %v557_v60  ;;  %1110 = vmatprep.mubr.f32.mxu1 %v567_v61  ;;  %v762_v60 = vld [vmem:[%s5004_s1 + $0x550] sm:$0xff]  ;;  %v763_v61 = vld [vmem:[%s5004_s1 + $0x558] sm:$0xff] }
  0xbd   : > { %1560 = vmatprep.mubr.f32.mxu0 %v571_v62  ;;  %v243_v62 = vld [vmem:[%s3506_s16 + $0x218] sm:$0xff] }
  0xbf   : > { %1111 = vmatmul.mubr.f32.gmra.mrb[60].mxu1 %v566_v63  ;;  %v247_v63 = vld [vmem:[%s3506_s16 + $0x238] sm:$0xff] }
  0xc0   : > { %1561 = vmatmul.mubr.f32.gmra.mrb[60].mxu0 %v570_v0  ;;  %1115 = vmatprep.mubr.f32.mxu1 %v580_v1  ;;  %v257_v0 = vld [vmem:[%s3506_s16 + $0x288] sm:$0xff]  ;;  %v2947_v1 = vpack.c.bf16 %v731_v59, %v730_v58  ;;  %v326_v58 = vld [vmem:[%s3506_s16 + $0x4b0] sm:$0xff] }
  0xc1   : > { %1565 = vmatprep.mubr.f32.mxu0 %v584_v2  ;;  %v261_v2 = vld [vmem:[%s3506_s16 + $0x2a8] sm:$0xff] }
  0xc3   : > { %1116 = vmatmul.mubr.f32.gmra.mrb[62].mxu1 %v579_v4  ;;  %v4126_v4 = vpack.c.bf16 %v763_v61, %v762_v60  ;;  %v742_v60 = vld [vmem:[%s5004_s1 + $0x4b0] sm:$0xff]  ;;  %v743_v61 = vld [vmem:[%s5004_s1 + $0x4b8] sm:$0xff] }
  0xc4   : > { %1566 = vmatmul.mubr.f32.gmra.mrb[62].mxu0 %v583_v5  ;;  %1185 = vmatprep.mubr.f32.mxu1 %v179_v6  ;;  %v732_v5 = vld [vmem:[%s5004_s1 + $0x460] sm:$0xff]  ;;  %v733_v6 = vld [vmem:[%s5004_s1 + $0x468] sm:$0xff] }
  0xc5   : > { %1635 = vmatprep.mubr.f32.mxu0 %v183_v9  ;;  %v256_v9 = vld [vmem:[%s3506_s16 + $0x280] sm:$0xff] }
  0xc7   : > { %1186 = vmatmul.mubr.f32.vlgmr.msra.gmra.mrb[0].mxu1 %v178_v12  ;;  %v2950_v12 = vpack.c.bf16 %v733_v6, %v732_v5  ;;  %v2965_v5 = vpack.c.bf16 %v743_v61, %v742_v60  ;;  %v339_v6 = vld [vmem:[%s3506_s16 + $0x518] sm:$0xff]  ;;  %v386_v61 = vld [vmem:[%s3506_s16 + $0x690] sm:$0xff] }
  0xc8   : > { %1636 = vmatmul.mubr.f32.vlgmr.msra.gmra.mrb[0].mxu0 %v182_v14  ;;  %3059 = vmatpush1.bf16.msra.mxu1 %v4019_v13  ;;  %v274_v14 = vld [vmem:[%s3506_s16 + $0x310] sm:$0xff] }
  0xc9   : > { %2933 = vmatpush1.bf16.msra.mxu0 %v2932_v15  ;;  %1190 = vmatprep.mubr.f32.mxu1 %v192_v16  ;;  %v4147_v15 = vpack.c.bf16 %v765_v8, %v764_v7  ;;  %v734_v16 = vld [vmem:[%s5004_s1 + $0x470] sm:$0xff]  ;;  %v744_v8 = vld [vmem:[%s5004_s1 + $0x4c0] sm:$0xff] }
  0xca   : > { %1640 = vmatprep.mubr.f32.mxu0 %v196_v19  ;;  %2934 = vmatprep.subr.bf16.mxu0 %v3389_v3  ;;  %v767_v19 = vld [vmem:[%s5004_s1 + $0x578] sm:$0xff] }
  0xcb   : > { %1191 = vmatmul.mubr.f32.gmra.mrb[2].mxu1 %v191_v22  ;;  %3044 = vmatprep.subr.bf16.mxu1 %v3389_v3  ;;  %v283_v22 = vld [vmem:[%s3506_s16 + $0x358] sm:$0xff] }
  0xcc   : > { %1641 = vmatmul.mubr.f32.gmra.mrb[2].mxu0 %v195_v23  ;;  %1195 = vmatprep.mubr.f32.mxu1 %v205_v24  ;;  %v2953_v23 = vpack.c.bf16 %v735_v17, %v734_v16  ;;  %v287_v24 = vld [vmem:[%s3506_s16 + $0x378] sm:$0xff]  ;;  %v348_v16 = vld [vmem:[%s3506_s16 + $0x560] sm:$0xff] }
  0xcd   : > { %1645 = vmatprep.mubr.f32.mxu0 %v209_v26  ;;  %2936 = vmatpush1.bf16.msra.mxu0 %v2935_v25  ;;  %v4168_v25 = vpack.c.bf16 %v767_v19, %v766_v18  ;;  %v736_v26 = vld [vmem:[%s5004_s1 + $0x480] sm:$0xff] }
  0xce   : > { %3060 = vmatpush1.bf16.msra.mxu1 %v4042_v27  ;;  %2937 = vmatprep.subr.bf16.mxu0 %v3389_v3  ;;  %v352_v18 = vld [vmem:[%s3506_s16 + $0x580] sm:$0xff] }
  0xcf   : > { %1196 = vmatmul.mubr.f32.gmra.mrb[4].mxu1 %v204_v32  ;;  %3045 = vmatprep.subr.bf16.mxu1 %v3389_v3  ;;  %v286_v32 = vld [vmem:[%s3506_s16 + $0x370] sm:$0xff] }
  0xd0   : > { %1646 = vmatmul.mubr.f32.gmra.mrb[4].mxu0 %v208_v33  ;;  %1200 = vmatprep.mubr.f32.mxu1 %v218_v34  ;;  %v296_v33 = vld [vmem:[%s3506_s16 + $0x3c0] sm:$0xff]  ;;  %v2956_v34 = vpack.c.bf16 %v737_v28, %v736_v26  ;;  %v351_v26 = vld [vmem:[%s3506_s16 + $0x578] sm:$0xff]  ;;  %v361_v28 = vld [vmem:[%s3506_s16 + $0x5c8] sm:$0xff] }
  0xd1   : > { %1650 = vmatprep.mubr.f32.mxu0 %v222_v36  ;;  %2939 = vmatpush1.bf16.msra.mxu0 %v2938_v35  ;;  %v300_v35 = vld [vmem:[%s3506_s16 + $0x3e0] sm:$0xff]  ;;  %v4189_v36 = vpack.c.bf16 %v769_v30, %v768_v29  ;;  %v365_v30 = vld [vmem:[%s3506_s16 + $0x5e8] sm:$0xff] }
  0xd2   : > { %3061 = vmatpush1.bf16.msra.mxu1 %v4063_v37  ;;  %2940 = vmatprep.subr.bf16.mxu0 %v3389_v3 }
  0xd3   : > { %1201 = vmatmul.mubr.f32.gmra.mrb[6].mxu1 %v217_v42  ;;  %3046 = vmatprep.subr.bf16.mxu1 %v3389_v3  ;;  %v295_v42 = vld [vmem:[%s3506_s16 + $0x3b8] sm:$0xff] }
  0xd4   : > { %1651 = vmatmul.mubr.f32.gmra.mrb[6].mxu0 %v221_v43  ;;  %1205 = vmatprep.mubr.f32.mxu1 %v231_v44  ;;  %v299_v43 = vld [vmem:[%s3506_s16 + $0x3d8] sm:$0xff]  ;;  %v309_v44 = vld [vmem:[%s3506_s16 + $0x428] sm:$0xff] }
  0xd5   : > { %1655 = vmatprep.mubr.f32.mxu0 %v235_v46  ;;  %2942 = vmatpush1.bf16.msra.mxu0 %v2941_v45  ;;  %v2959_v45 = vpack.c.bf16 %v739_v39, %v738_v38  ;;  %v313_v46 = vld [vmem:[%s3506_s16 + $0x448] sm:$0xff]  ;;  %v360_v38 = vld [vmem:[%s3506_s16 + $0x5c0] sm:$0xff] }
  0xd6   : > { %3062 = vmatpush1.bf16.msra.mxu1 %v4084_v47  ;;  %2943 = vmatprep.subr.bf16.mxu0 %v3389_v3  ;;  %v364_v39 = vld [vmem:[%s3506_s16 + $0x5e0] sm:$0xff] }
  0xd7   : > { %1206 = vmatmul.mubr.f32.gmra.mrb[8].mxu1 %v230_v52  ;;  %3047 = vmatprep.subr.bf16.mxu1 %v3389_v3  ;;  %v773_v52 = vld [vmem:[%s5004_s1 + $0x5a8] sm:$0xff] }
  0xd8   : > { %1656 = vmatmul.mubr.f32.gmra.mrb[8].mxu0 %v234_v53  ;;  %1210 = vmatprep.mubr.f32.mxu1 %v244_v54  ;;  %v308_v53 = vld [vmem:[%s3506_s16 + $0x420] sm:$0xff]  ;;  %v4231_v59 = vpack.c.bf16 %v773_v52, %v772_v51  ;;  %v785_v52 = vld [vmem:[%s5004_s1 + $0x608] sm:$0xff] }
  0xd9   : > { %1660 = vmatprep.mubr.f32.mxu0 %v248_v56  ;;  %2945 = vmatpush1.bf16.msra.mxu0 %v2944_v55  ;;  %v312_v54 = vld [vmem:[%s3506_s16 + $0x440] sm:$0xff]  ;;  %v322_v55 = vld [vmem:[%s3506_s16 + $0x490] sm:$0xff]  ;;  %v2962_v56 = vpack.c.bf16 %v741_v50, %v740_v49  ;;  %v783_v49 = vld [vmem:[%s5004_s1 + $0x5f8] sm:$0xff] }
  0xda   : > { %3063 = vmatpush1.bf16.msra.mxu1 %v4105_v57  ;;  %2946 = vmatprep.subr.bf16.mxu0 %v3389_v3  ;;  %v373_v50 = vld [vmem:[%s3506_s16 + $0x628] sm:$0xff]  ;;  %v784_v51 = vld [vmem:[%s5004_s1 + $0x600] sm:$0xff] }
  0xdb   : > { %1211 = vmatmul.mubr.f32.gmra.mrb[10].mxu1 %v243_v62  ;;  %3048 = vmatprep.subr.bf16.mxu1 %v3389_v3  ;;  %v774_v62 = vld [vmem:[%s5004_s1 + $0x5b0] sm:$0xff]  ;;  %v4345_v60 = vpack.c.bf16 %v785_v52, %v784_v51  ;;  %v516_v51 = vld [vmem:[%s3506_s16 + $0xaa0] sm:$0xff] }
  0xdc   : > { %1661 = vmatmul.mubr.f32.gmra.mrb[10].mxu0 %v247_v63  ;;  %1215 = vmatprep.mubr.f32.mxu1 %v257_v0  ;;  %v775_v63 = vld [vmem:[%s5004_s1 + $0x5b8] sm:$0xff]  ;;  %v321_v0 = vld [vmem:[%s3506_s16 + $0x488] sm:$0xff]  ;;  %v520_v52 = vld [vmem:[%s3506_s16 + $0xac0] sm:$0xff] }
  0xdd   : > { %1665 = vmatprep.mubr.f32.mxu0 %v261_v2  ;;  %2948 = vmatpush1.bf16.msra.mxu0 %v2947_v1  ;;  %v325_v1 = vld [vmem:[%s3506_s16 + $0x4a8] sm:$0xff]  ;;  %v335_v2 = vld [vmem:[%s3506_s16 + $0x4f8] sm:$0xff]  ;;  %v4252_v7 = vpack.c.bf16 %v775_v63, %v774_v62  ;;  %v390_v62 = vld [vmem:[%s3506_s16 + $0x6b0] sm:$0xff] }
  0xde   : > { %3064 = vmatpush1.bf16.msra.mxu1 %v4126_v4  ;;  %2949 = vmatprep.subr.bf16.mxu0 %v3389_v3  ;;  %v400_v63 = vld [vmem:[%s3506_s16 + $0x700] sm:$0xff] }
  0xdf   : > { %1216 = vmatmul.mubr.f32.gmra.mrb[12].mxu1 %v256_v9  ;;  %3049 = vmatprep.subr.bf16.mxu1 %v3389_v3  ;;  %v745_v9 = vld [vmem:[%s5004_s1 + $0x4c8] sm:$0xff] }
  0xe0   : > { %1666 = vmatmul.mubr.f32.gmra.mrb[12].mxu0 %v260_v10  ;;  %1220 = vmatprep.mubr.f32.mxu1 %v270_v11  ;;  %v776_v10 = vld [vmem:[%s5004_s1 + $0x5c0] sm:$0xff]  ;;  %v777_v11 = vld [vmem:[%s5004_s1 + $0x5c8] sm:$0xff]  ;;  %v2968_v17 = vpack.c.bf16 %v745_v9, %v744_v8 }
  0xe1   : > { %1670 = vmatprep.mubr.f32.mxu0 %v274_v14  ;;  %2951 = vmatpush1.bf16.msra.mxu0 %v2950_v12  ;;  %v334_v12 = vld [vmem:[%s3506_s16 + $0x4f0] sm:$0xff]  ;;  %v4273_v19 = vpack.c.bf16 %v777_v11, %v776_v10  ;;  %v412_v8 = vld [vmem:[%s3506_s16 + $0x760] sm:$0xff] }
  0xe2   : > { %3065 = vmatpush1.bf16.msra.mxu1 %v4147_v15  ;;  %2952 = vmatprep.subr.bf16.mxu0 %v3389_v3  ;;  %v338_v14 = vld [vmem:[%s3506_s16 + $0x510] sm:$0xff]  ;;  %v416_v9 = vld [vmem:[%s3506_s16 + $0x780] sm:$0xff] }
  0xe3   : > { %1221 = vmatmul.mubr.f32.gmra.mrb[14].mxu1 %v269_v20  ;;  %3050 = vmatprep.subr.bf16.mxu1 %v3389_v3  ;;  %v746_v20 = vld [vmem:[%s5004_s1 + $0x4d0] sm:$0xff] }
  0xe4   : > { %1671 = vmatmul.mubr.f32.gmra.mrb[14].mxu0 %v273_v21  ;;  %1225 = vmatprep.mubr.f32.mxu1 %v283_v22  ;;  %v747_v21 = vld [vmem:[%s5004_s1 + $0x4d8] sm:$0xff]  ;;  %v778_v22 = vld [vmem:[%s5004_s1 + $0x5d0] sm:$0xff] }
  0xe5   : > { %1675 = vmatprep.mubr.f32.mxu0 %v287_v24  ;;  %2954 = vmatpush1.bf16.msra.mxu0 %v2953_v23  ;;  %v779_v23 = vld [vmem:[%s5004_s1 + $0x5d8] sm:$0xff]  ;;  %v2971_v29 = vpack.c.bf16 %v747_v21, %v746_v20  ;;  %v426_v10 = vld [vmem:[%s3506_s16 + $0x7d0] sm:$0xff]  ;;  %v452_v21 = vld [vmem:[%s3506_s16 + $0x8a0] sm:$0xff] }
  0xe6   : > { %3066 = vmatpush1.bf16.msra.mxu1 %v4168_v25  ;;  %2955 = vmatprep.subr.bf16.mxu0 %v3389_v3  ;;  %v347_v24 = vld [vmem:[%s3506_s16 + $0x558] sm:$0xff]  ;;  %v430_v11 = vld [vmem:[%s3506_s16 + $0x7f0] sm:$0xff] }
  0xe7   : > { %1226 = vmatmul.mubr.f32.gmra.mrb[16].mxu1 %v282_v31  ;;  %3051 = vmatprep.subr.bf16.mxu1 %v3389_v3  ;;  %v4294_v31 = vpack.c.bf16 %v779_v23, %v778_v22  ;;  %v442_v20 = vld [vmem:[%s3506_s16 + $0x850] sm:$0xff]  ;;  %v456_v22 = vld [vmem:[%s3506_s16 + $0x8c0] sm:$0xff]  ;;  %v451_v23 = vld [vmem:[%s3506_s16 + $0x898] sm:$0xff] }
  0xe8   : > { %1676 = vmatmul.mubr.f32.gmra.mrb[16].mxu0 %v286_v32  ;;  %1230 = vmatprep.mubr.f32.mxu1 %v296_v33  ;;  %v748_v32 = vld [vmem:[%s5004_s1 + $0x4e0] sm:$0xff]  ;;  %v749_v33 = vld [vmem:[%s5004_s1 + $0x4e8] sm:$0xff] }
  0xe9   : > { %1680 = vmatprep.mubr.f32.mxu0 %v300_v35  ;;  %2957 = vmatpush1.bf16.msra.mxu0 %v2956_v34  ;;  %v780_v34 = vld [vmem:[%s5004_s1 + $0x5e0] sm:$0xff]  ;;  %v781_v35 = vld [vmem:[%s5004_s1 + $0x5e8] sm:$0xff]  ;;  %v2974_v41 = vpack.c.bf16 %v749_v33, %v748_v32  ;;  %v478_v32 = vld [vmem:[%s3506_s16 + $0x970] sm:$0xff] }
  0xea   : > { %3067 = vmatpush1.bf16.msra.mxu1 %v4189_v36  ;;  %2958 = vmatprep.subr.bf16.mxu0 %v3389_v3  ;;  %v482_v33 = vld [vmem:[%s3506_s16 + $0x990] sm:$0xff] }
  0xeb   : > { %1231 = vmatmul.mubr.f32.gmra.mrb[18].mxu1 %v295_v42  ;;  %3052 = vmatprep.subr.bf16.mxu1 %v3389_v3  ;;  %v378_v42 = vld [vmem:[%s3506_s16 + $0x650] sm:$0xff] }
  0xec   : > { %1681 = vmatmul.mubr.f32.gmra.mrb[18].mxu0 %v299_v43  ;;  %1235 = vmatprep.mubr.f32.mxu1 %v309_v44  ;;  %v4315_v43 = vpack.c.bf16 %v781_v35, %v780_v34  ;;  %v750_v44 = vld [vmem:[%s5004_s1 + $0x4f0] sm:$0xff]  ;;  %v477_v34 = vld [vmem:[%s3506_s16 + $0x968] sm:$0xff] }
  0xed   : > { %1685 = vmatprep.mubr.f32.mxu0 %v313_v46  ;;  %2960 = vmatpush1.bf16.msra.mxu0 %v2959_v45  ;;  %v751_v45 = vld [vmem:[%s5004_s1 + $0x4f8] sm:$0xff]  ;;  %v782_v46 = vld [vmem:[%s5004_s1 + $0x5f0] sm:$0xff]  ;;  %v481_v35 = vld [vmem:[%s3506_s16 + $0x988] sm:$0xff] }
  0xee   : > { %3068 = vmatpush1.bf16.msra.mxu1 %v4210_v48  ;;  %2961 = vmatprep.subr.bf16.mxu0 %v3389_v3 }
  0xef   : > { %1236 = vmatmul.mubr.f32.gmra.mrb[20].mxu1 %v308_v53  ;;  %3053 = vmatprep.subr.bf16.mxu1 %v3389_v3  ;;  %v377_v53 = vld [vmem:[%s3506_s16 + $0x648] sm:$0xff] }
  0xf0   : > { %1686 = vmatmul.mubr.f32.gmra.mrb[20].mxu0 %v312_v54  ;;  %1240 = vmatprep.mubr.f32.mxu1 %v322_v55  ;;  %v387_v54 = vld [vmem:[%s3506_s16 + $0x698] sm:$0xff]  ;;  %v2977_v55 = vpack.c.bf16 %v751_v45, %v750_v44  ;;  %v508_v44 = vld [vmem:[%s3506_s16 + $0xa60] sm:$0xff] }
  0xf1   : > { %1690 = vmatprep.mubr.f32.mxu0 %v326_v58  ;;  %2963 = vmatpush1.bf16.msra.mxu0 %v2962_v56  ;;  %v391_v56 = vld [vmem:[%s3506_s16 + $0x6b8] sm:$0xff]  ;;  %v4342_v58 = vpack.c.bf16 %v783_v49, %v782_v46  ;;  %v517_v49 = vld [vmem:[%s3506_s16 + $0xaa8] sm:$0xff] }
  0xf2   : > { %3069 = vmatpush1.bf16.msra.mxu1 %v4231_v59  ;;  %2964 = vmatprep.subr.bf16.mxu0 %v3389_v3  ;;  %v503_v45 = vld [vmem:[%s3506_s16 + $0xa38] sm:$0xff] }
  0xf3   : > { %1241 = vmatmul.mubr.f32.gmra.mrb[22].mxu1 %v321_v0  ;;  %3054 = vmatprep.subr.bf16.mxu1 %v3389_v3  ;;  %v404_v0 = vld [vmem:[%s3506_s16 + $0x720] sm:$0xff]  ;;  %v507_v46 = vld [vmem:[%s3506_s16 + $0xa58] sm:$0xff] }
  0xf4   : > { %1691 = vmatmul.mubr.f32.gmra.mrb[22].mxu0 %v325_v1  ;;  %1245 = vmatprep.mubr.f32.mxu1 %v335_v2  ;;  %v399_v1 = vld [vmem:[%s3506_s16 + $0x6f8] sm:$0xff] }
  0xf5   : > { %1695 = vmatprep.mubr.f32.mxu0 %v339_v6  ;;  %2966 = vmatpush1.bf16.msra.mxu0 %v2965_v5  ;;  %v403_v2 = vld [vmem:[%s3506_s16 + $0x718] sm:$0xff]  ;;  %v413_v5 = vld [vmem:[%s3506_s16 + $0x768] sm:$0xff] }
  0xf6   : > { %3070 = vmatpush1.bf16.msra.mxu1 %v4252_v7  ;;  %2967 = vmatprep.subr.bf16.mxu0 %v3389_v3  ;;  %v417_v6 = vld [vmem:[%s3506_s16 + $0x788] sm:$0xff] }
  0xf7   : > { %1246 = vmatmul.mubr.f32.gmra.mrb[24].mxu1 %v334_v12  ;;  %3055 = vmatprep.subr.bf16.mxu1 %v3389_v3  ;;  %v425_v12 = vld [vmem:[%s3506_s16 + $0x7c8] sm:$0xff] }
  0xf8   : > { %1696 = vmatmul.mubr.f32.gmra.mrb[24].mxu0 %v338_v14  ;;  %1250 = vmatprep.mubr.f32.mxu1 %v348_v16  ;;  %v429_v14 = vld [vmem:[%s3506_s16 + $0x7e8] sm:$0xff]  ;;  %v439_v16 = vld [vmem:[%s3506_s16 + $0x838] sm:$0xff] }
  0xf9   : > { %1700 = vmatprep.mubr.f32.mxu0 %v352_v18  ;;  %2969 = vmatpush1.bf16.msra.mxu0 %v2968_v17  ;;  %v443_v17 = vld [vmem:[%s3506_s16 + $0x858] sm:$0xff]  ;;  %v438_v18 = vld [vmem:[%s3506_s16 + $0x830] sm:$0xff] }
  0xfa   : > { %3071 = vmatpush1.bf16.msra.mxu1 %v4273_v19  ;;  %2970 = vmatprep.subr.bf16.mxu0 %v3389_v3 }
  0xfb   : > { %1251 = vmatmul.mubr.f32.gmra.mrb[26].mxu1 %v347_v24  ;;  %3056 = vmatprep.subr.bf16.mxu1 %v3389_v3  ;;  %v455_v24 = vld [vmem:[%s3506_s16 + $0x8b8] sm:$0xff] }
  0xfc   : > { %1701 = vmatmul.mubr.f32.gmra.mrb[26].mxu0 %v351_v26  ;;  %1255 = vmatprep.mubr.f32.mxu1 %v361_v28  ;;  %v465_v26 = vld [vmem:[%s3506_s16 + $0x908] sm:$0xff] }
  0xfd   : > { %1705 = vmatprep.mubr.f32.mxu0 %v365_v30  ;;  %2972 = vmatpush1.bf16.msra.mxu0 %v2971_v29  ;;  %v469_v28 = vld [vmem:[%s3506_s16 + $0x928] sm:$0xff]  ;;  %v464_v29 = vld [vmem:[%s3506_s16 + $0x900] sm:$0xff] }
  0xfe   : > { %3072 = vmatpush1.bf16.msra.mxu1 %v4294_v31  ;;  %2973 = vmatprep.subr.bf16.mxu0 %v3389_v3  ;;  %v468_v30 = vld [vmem:[%s3506_s16 + $0x920] sm:$0xff] }
  0xff   : > { %1256 = vmatmul.mubr.f32.gmra.mrb[28].mxu1 %v360_v38  ;;  %3057 = vmatprep.subr.bf16.mxu1 %v3389_v3  ;;  %v491_v38 = vld [vmem:[%s3506_s16 + $0x9d8] sm:$0xff] }
 0x100   : > { %1706 = vmatmul.mubr.f32.gmra.mrb[28].mxu0 %v364_v39  ;;  %1260 = vmatprep.mubr.f32.mxu1 %v374_v40  ;;  %v495_v39 = vld [vmem:[%s3506_s16 + $0x9f8] sm:$0xff]  ;;  %v490_v40 = vld [vmem:[%s3506_s16 + $0x9d0] sm:$0xff] }
 0x101   : > { %1710 = vmatprep.mubr.f32.mxu0 %v378_v42  ;;  %2975 = vmatpush1.bf16.msra.mxu0 %v2974_v41  ;;  %v494_v41 = vld [vmem:[%s3506_s16 + $0x9f0] sm:$0xff]  ;;  %v504_v42 = vld [vmem:[%s3506_s16 + $0xa40] sm:$0xff] }
 0x102   : > { %3073 = vmatpush1.bf16.msra.mxu1 %v4315_v43  ;;  %2976 = vmatprep.subr.bf16.mxu0 %v3389_v3 }
 0x103   : > { %1261 = vmatmul.mubr.f32.gmra.mrb[30].mxu1 %v373_v50  ;;  %3058 = vmatprep.subr.bf16.mxu1 %v3389_v3  ;;  %v521_v50 = vld [vmem:[%s3506_s16 + $0xac8] sm:$0xff] }
 0x104   : > { %1711 = vmatmul.mubr.f32.gmra.mrb[30].mxu0 %v377_v53  ;;  %1265 = vmatprep.mubr.f32.mxu1 %v387_v54  ;;  %v530_v53 = vld [vmem:[%s3506_s16 + $0xb10] sm:$0xff] }
 0x105   : > { %1715 = vmatprep.mubr.f32.mxu0 %v391_v56  ;;  %2978 = vmatpush1.bf16.msra.mxu0 %v2977_v55  ;;  %v534_v54 = vld [vmem:[%s3506_s16 + $0xb30] sm:$0xff]  ;;  %v529_v55 = vld [vmem:[%s3506_s16 + $0xb08] sm:$0xff] }
 0x106   : > { %3074 = vmatpush1.bf16.msra.mxu1 %v4342_v58  ;;  %2979 = vmatprep.subr.bf16.mxu0 %v3389_v3  ;;  %v533_v56 = vld [vmem:[%s3506_s16 + $0xb28] sm:$0xff] }
 0x107   : > { %1266 = vmatmul.mubr.f32.gmra.mrb[32].mxu1 %v386_v61  ;;  %3028 = vmatprep.subr.bf16.mxu1 %v4345_v60  ;;  %v543_v61 = vld [vmem:[%s3506_s16 + $0xb78] sm:$0xff] }
 0x108   : > { %1716 = vmatmul.mubr.f32.gmra.mrb[32].mxu0 %v390_v62  ;;  %1270 = vmatprep.mubr.f32.mxu1 %v400_v63  ;;  %v547_v62 = vld [vmem:[%s3506_s16 + $0xb98] sm:$0xff]  ;;  %v542_v63 = vld [vmem:[%s3506_s16 + $0xb70] sm:$0xff] }
 0x109   : > { %1720 = vmatprep.mubr.f32.mxu0 %v404_v0  ;;  %v546_v0 = vld [vmem:[%s3506_s16 + $0xb90] sm:$0xff] }
 0x10b   : > { %1271 = vmatmul.mubr.f32.gmra.mrb[34].mxu1 %v399_v1  ;;  %v556_v1 = vld [vmem:[%s3506_s16 + $0xbe0] sm:$0xff] }
 0x10c   : > { %1721 = vmatmul.mubr.f32.gmra.mrb[34].mxu0 %v403_v2  ;;  %1275 = vmatprep.mubr.f32.mxu1 %v413_v5  ;;  %v560_v2 = vld [vmem:[%s3506_s16 + $0xc00] sm:$0xff]  ;;  %v555_v5 = vld [vmem:[%s3506_s16 + $0xbd8] sm:$0xff] }
 0x10d   : > { %1725 = vmatprep.mubr.f32.mxu0 %v417_v6  ;;  %v559_v6 = vld [vmem:[%s3506_s16 + $0xbf8] sm:$0xff] }
 0x10f   : > { %1276 = vmatmul.mubr.f32.gmra.mrb[36].mxu1 %v412_v8  ;;  %v569_v8 = vld [vmem:[%s3506_s16 + $0xc48] sm:$0xff] }
 0x110   : > { %1726 = vmatmul.mubr.f32.gmra.mrb[36].mxu0 %v416_v9  ;;  %1280 = vmatprep.mubr.f32.mxu1 %v426_v10  ;;  %v573_v9 = vld [vmem:[%s3506_s16 + $0xc68] sm:$0xff]  ;;  %v568_v10 = vld [vmem:[%s3506_s16 + $0xc40] sm:$0xff] }
 0x111   : > { %1730 = vmatprep.mubr.f32.mxu0 %v430_v11  ;;  %v572_v11 = vld [vmem:[%s3506_s16 + $0xc60] sm:$0xff] }
 0x113   : > { %1281 = vmatmul.mubr.f32.gmra.mrb[38].mxu1 %v425_v12  ;;  %v582_v12 = vld [vmem:[%s3506_s16 + $0xcb0] sm:$0xff] }
 0x114   : > { %1731 = vmatmul.mubr.f32.gmra.mrb[38].mxu0 %v429_v14  ;;  %1285 = vmatprep.mubr.f32.mxu1 %v439_v16  ;;  %v586_v14 = vld [vmem:[%s3506_s16 + $0xcd0] sm:$0xff]  ;;  %v581_v16 = vld [vmem:[%s3506_s16 + $0xca8] sm:$0xff] }
 0x115   : > { %1735 = vmatprep.mubr.f32.mxu0 %v443_v17  ;;  %v585_v17 = vld [vmem:[%s3506_s16 + $0xcc8] sm:$0xff] }
 0x117   : > { %1286 = vmatmul.mubr.f32.gmra.mrb[40].mxu1 %v438_v18  ;;  %v291_v18 = vld [vmem:[%s3506_s16 + $0x398] sm:$0xff] }
 0x118   : > { %1736 = vmatmul.mubr.f32.gmra.mrb[40].mxu0 %v442_v20  ;;  %1290 = vmatprep.mubr.f32.mxu1 %v452_v21  ;;  %v185_v20 = vld [vmem:[%s3506_s16 + $0x48] sm:$0xff]  ;;  %v290_v21 = vld [vmem:[%s3506_s16 + $0x390] sm:$0xff] }
 0x119   : > { %1740 = vmatprep.mubr.f32.mxu0 %v456_v22  ;;  %v786_v22 = vld [vmem:[%s5004_s1 + $0x610] sm:$0xff] }
 0x11b   : > { %1291 = vmatmul.mubr.f32.gmra.mrb[42].mxu1 %v451_v23  ;;  %v787_v23 = vld [vmem:[%s5004_s1 + $0x618] sm:$0xff] }
 0x11c   : > { %1741 = vmatmul.mubr.f32.gmra.mrb[42].mxu0 %v455_v24  ;;  %1295 = vmatprep.mubr.f32.mxu1 %v465_v26  ;;  %v184_v24 = vld [vmem:[%s3506_s16 + $0x40] sm:$0xff]  ;;  %v198_v26 = vld [vmem:[%s3506_s16 + $0xb0] sm:$0xff] }
 0x11d   : > { %1745 = vmatprep.mubr.f32.mxu0 %v469_v28  ;;  %v304_v28 = vld [vmem:[%s3506_s16 + $0x400] sm:$0xff] }
 0x11f   : > { %1296 = vmatmul.mubr.f32.gmra.mrb[44].mxu1 %v464_v29  ;;  %v3031_v29 = vpack.c.bf16 %v787_v23, %v786_v22  ;;  %v340_v22 = vld [vmem:[%s3506_s16 + $0x520] sm:$0xff] }
 0x120   : > { %1746 = vmatmul.mubr.f32.gmra.mrb[44].mxu0 %v468_v30  ;;  %1300 = vmatprep.mubr.f32.mxu1 %v478_v32  ;;  %v303_v30 = vld [vmem:[%s3506_s16 + $0x3f8] sm:$0xff]  ;;  %v788_v32 = vld [vmem:[%s5004_s1 + $0x620] sm:$0xff] }
 0x121   : > { %1750 = vmatprep.mubr.f32.mxu0 %v482_v33  ;;  %v789_v33 = vld [vmem:[%s5004_s1 + $0x628] sm:$0xff]  ;;  %v460_v23 = vld [vmem:[%s3506_s16 + $0x8e0] sm:$0xff] }
 0x123   : > { %1301 = vmatmul.mubr.f32.gmra.mrb[46].mxu1 %v477_v34  ;;  %v197_v34 = vld [vmem:[%s3506_s16 + $0xa8] sm:$0xff] }
 0x124   : > { %1751 = vmatmul.mubr.f32.gmra.mrb[46].mxu0 %v481_v35  ;;  %1305 = vmatprep.mubr.f32.mxu1 %v491_v38  ;;  %v317_v35 = vld [vmem:[%s3506_s16 + $0x468] sm:$0xff]  ;;  %v3035_v38 = vpack.c.bf16 %v789_v33, %v788_v32  ;;  %v486_v32 = vld [vmem:[%s3506_s16 + $0x9b0] sm:$0xff]  ;;  %v380_v33 = vld [vmem:[%s3506_s16 + $0x660] sm:$0xff] }
 0x125   : > { %1755 = vmatprep.mubr.f32.mxu0 %v495_v39  ;;  %v316_v39 = vld [vmem:[%s3506_s16 + $0x460] sm:$0xff] }
 0x127   : > { %1306 = vmatmul.mubr.f32.gmra.mrb[48].mxu1 %v490_v40  ;;  %v791_v40 = vld [vmem:[%s5004_s1 + $0x638] sm:$0xff] }
 0x128   : > { %1756 = vmatmul.mubr.f32.gmra.mrb[48].mxu0 %v494_v41  ;;  %1310 = vmatprep.mubr.f32.mxu1 %v504_v42  ;;  %v210_v41 = vld [vmem:[%s3506_s16 + $0x110] sm:$0xff] }
 0x129   : > { %1760 = vmatprep.mubr.f32.mxu0 %v508_v44  ;;  %v330_v42 = vld [vmem:[%s3506_s16 + $0x4d0] sm:$0xff]  ;;  %v224_v44 = vld [vmem:[%s3506_s16 + $0x180] sm:$0xff] }
 0x12b   : > { %1311 = vmatmul.mubr.f32.gmra.mrb[50].mxu1 %v503_v45 }
 0x12c   : > { %1761 = vmatmul.mubr.f32.gmra.mrb[50].mxu0 %v507_v46  ;;  %1315 = vmatprep.mubr.f32.mxu1 %v517_v49  ;;  %v329_v46 = vld [vmem:[%s3506_s16 + $0x4c8] sm:$0xff]  ;;  %v223_v49 = vld [vmem:[%s3506_s16 + $0x178] sm:$0xff] }
 0x12d   : > { %1765 = vmatprep.mubr.f32.mxu0 %v521_v50  ;;  %v343_v50 = vld [vmem:[%s3506_s16 + $0x538] sm:$0xff] }
 0x12f   : > { %1316 = vmatmul.mubr.f32.gmra.mrb[52].mxu1 %v516_v51  ;;  %v342_v51 = vld [vmem:[%s3506_s16 + $0x530] sm:$0xff] }
 0x130   : > { %1766 = vmatmul.mubr.f32.gmra.mrb[52].mxu0 %v520_v52  ;;  %1320 = vmatprep.mubr.f32.mxu1 %v530_v53  ;;  %v236_v52 = vld [vmem:[%s3506_s16 + $0x1e0] sm:$0xff] }
 0x131   : > { %1770 = vmatprep.mubr.f32.mxu0 %v534_v54  ;;  %v356_v53 = vld [vmem:[%s3506_s16 + $0x5a0] sm:$0xff]  ;;  %v250_v54 = vld [vmem:[%s3506_s16 + $0x250] sm:$0xff] }
 0x133   : > { %1321 = vmatmul.mubr.f32.gmra.mrb[54].mxu1 %v529_v55  ;;  %v249_v55 = vld [vmem:[%s3506_s16 + $0x248] sm:$0xff] }
 0x134   : > { %1771 = vmatmul.mubr.f32.gmra.mrb[54].mxu0 %v533_v56  ;;  %1325 = vmatprep.mubr.f32.mxu1 %v543_v61  ;;  %v369_v56 = vld [vmem:[%s3506_s16 + $0x608] sm:$0xff]  ;;  %v263_v61 = vld [vmem:[%s3506_s16 + $0x2b8] sm:$0xff] }
 0x135   : > { %1775 = vmatprep.mubr.f32.mxu0 %v547_v62  ;;  %v262_v62 = vld [vmem:[%s3506_s16 + $0x2b0] sm:$0xff] }
 0x137   : > { %1326 = vmatmul.mubr.f32.gmra.mrb[56].mxu1 %v542_v63  ;;  %v382_v63 = vld [vmem:[%s3506_s16 + $0x670] sm:$0xff] }
 0x138   : > { %1776 = vmatmul.mubr.f32.gmra.mrb[56].mxu0 %v546_v0  ;;  %1330 = vmatprep.mubr.f32.mxu1 %v556_v1  ;;  %v276_v0 = vld [vmem:[%s3506_s16 + $0x320] sm:$0xff]  ;;  %v275_v1 = vld [vmem:[%s3506_s16 + $0x318] sm:$0xff] }
 0x139   : > { %1780 = vmatprep.mubr.f32.mxu0 %v560_v2  ;;  %v395_v2 = vld [vmem:[%s3506_s16 + $0x6d8] sm:$0xff] }
 0x13b   : > { %1331 = vmatmul.mubr.f32.gmra.mrb[58].mxu1 %v555_v5  ;;  %v289_v5 = vld [vmem:[%s3506_s16 + $0x388] sm:$0xff] }
 0x13c   : > { %1781 = vmatmul.mubr.f32.gmra.mrb[58].mxu0 %v559_v6  ;;  %1335 = vmatprep.mubr.f32.mxu1 %v569_v8  ;;  %v288_v6 = vld [vmem:[%s3506_s16 + $0x380] sm:$0xff] }
 0x13d   : > { %1785 = vmatprep.mubr.f32.mxu0 %v573_v9  ;;  %v408_v8 = vld [vmem:[%s3506_s16 + $0x740] sm:$0xff]  ;;  %v302_v9 = vld [vmem:[%s3506_s16 + $0x3f0] sm:$0xff] }
 0x13f   : > { %1336 = vmatmul.mubr.f32.gmra.mrb[60].mxu1 %v568_v10  ;;  %v301_v10 = vld [vmem:[%s3506_s16 + $0x3e8] sm:$0xff] }
 0x140   : > { %1786 = vmatmul.mubr.f32.gmra.mrb[60].mxu0 %v572_v11  ;;  %1340 = vmatprep.mubr.f32.mxu1 %v582_v12  ;;  %v421_v11 = vld [vmem:[%s3506_s16 + $0x7a8] sm:$0xff]  ;;  %v315_v12 = vld [vmem:[%s3506_s16 + $0x458] sm:$0xff] }
 0x141   : > { %1790 = vmatprep.mubr.f32.mxu0 %v586_v14  ;;  %v314_v14 = vld [vmem:[%s3506_s16 + $0x450] sm:$0xff] }
 0x143   : > { %1341 = vmatmul.mubr.f32.gmra.mrb[62].mxu1 %v581_v16  ;;  %v434_v16 = vld [vmem:[%s3506_s16 + $0x810] sm:$0xff] }
 0x144   : > { %1791 = vmatmul.mubr.f32.gmra.mrb[62].mxu0 %v585_v17  ;;  %2125 = vmatprep.mubr.f32.mxu1 %v291_v18  ;;  %v328_v17 = vld [vmem:[%s3506_s16 + $0x4c0] sm:$0xff]  ;;  %v327_v18 = vld [vmem:[%s3506_s16 + $0x4b8] sm:$0xff] }
 0x145   : > { %1860 = vmatprep.mubr.f32.mxu0 %v185_v20  ;;  %v447_v20 = vld [vmem:[%s3506_s16 + $0x878] sm:$0xff] }
 0x147   : > { %2126 = vmatmul.mubr.f32.vlgmr.msra.gmra.mrb[64].mxu1 %v290_v21  ;;  %v341_v21 = vld [vmem:[%s3506_s16 + $0x528] sm:$0xff] }
 0x148   : > { %1861 = vmatmul.mubr.f32.vlgmr.msra.gmra.mrb[0].mxu0 %v184_v24  ;;  %3030 = vmatpush3.bf16.msra.mxu1 %v4345_v60  ;;  %v211_v60 = vld [vmem:[%s3506_s16 + $0x118] sm:$0xff]  ;;  %v354_v24 = vld [vmem:[%s3506_s16 + $0x590] sm:$0xff] }
 0x149   : > { %2981 = vmatpush1.bf16.msra.mxu0 %v4019_v13  ;;  %1865 = vmatprep.mubr.f32.mxu0 %v198_v26  ;;  %v790_v13 = vld [vmem:[%s5004_s1 + $0x630] sm:$0xff]  ;;  %v353_v26 = vld [vmem:[%s3506_s16 + $0x588] sm:$0xff] }
 0x14a   : > { %2130 = vmatprep.mubr.f32.mxu1 %v304_v28  ;;  %2982 = vmatprep.subr.bf16.mxu0 %v3389_v3  ;;  %v3039_v45 = vpack.c.bf16 %v791_v40, %v790_v13  ;;  %v473_v28 = vld [vmem:[%s3506_s16 + $0x948] sm:$0xff]  ;;  %v406_v13 = vld [vmem:[%s3506_s16 + $0x730] sm:$0xff] }
 0x14b   : > { %2131 = vmatmul.mubr.f32.gmra.mrb[66].mxu1 %v303_v30  ;;  %3032 = vmatprep.subr.bf16.mxu1 %v3031_v29  ;;  %v366_v30 = vld [vmem:[%s3506_s16 + $0x5f0] sm:$0xff]  ;;  %v525_v40 = vld [vmem:[%s3506_s16 + $0xae8] sm:$0xff] }
 0x14c   : > { %1866 = vmatmul.mubr.f32.gmra.mrb[2].mxu0 %v197_v34  ;;  %2135 = vmatprep.mubr.f32.mxu1 %v317_v35  ;;  %v379_v34 = vld [vmem:[%s3506_s16 + $0x658] sm:$0xff] }
 0x14d   : > { %1870 = vmatprep.mubr.f32.mxu0 %v211_v60  ;;  %2984 = vmatpush1.bf16.msra.mxu0 %v4042_v27  ;;  %v237_v27 = vld [vmem:[%s3506_s16 + $0x1e8] sm:$0xff]  ;;  %v499_v35 = vld [vmem:[%s3506_s16 + $0xa18] sm:$0xff] }
 0x14e   : > { %2985 = vmatprep.subr.bf16.mxu0 %v3389_v3  ;;  %3034 = vmatpush3.bf16.msra.mxu1 %v3031_v29  ;;  %v367_v29 = vld [vmem:[%s3506_s16 + $0x5f8] sm:$0xff]  ;;  %v393_v60 = vld [vmem:[%s3506_s16 + $0x6c8] sm:$0xff] }
 0x14f   : > { %2136 = vmatmul.mubr.f32.gmra.mrb[68].mxu1 %v316_v39  ;;  %3036 = vmatprep.subr.bf16.mxu1 %v3035_v38  ;;  %v512_v39 = vld [vmem:[%s3506_s16 + $0xa80] sm:$0xff] }
 0x150   : > { %1871 = vmatmul.mubr.f32.gmra.mrb[4].mxu0 %v210_v41  ;;  %2140 = vmatprep.mubr.f32.mxu1 %v330_v42  ;;  %v419_v41 = vld [vmem:[%s3506_s16 + $0x798] sm:$0xff]  ;;  %v524_v42 = vld [vmem:[%s3506_s16 + $0xae0] sm:$0xff] }
 0x151   : > { %1875 = vmatprep.mubr.f32.mxu0 %v224_v44  ;;  %2987 = vmatpush1.bf16.msra.mxu0 %v4063_v37  ;;  %v355_v37 = vld [vmem:[%s3506_s16 + $0x598] sm:$0xff]  ;;  %v538_v44 = vld [vmem:[%s3506_s16 + $0xb50] sm:$0xff] }
 0x152   : > { %2988 = vmatprep.subr.bf16.mxu0 %v3389_v3  ;;  %3038 = vmatpush3.bf16.msra.mxu1 %v3035_v38  ;;  %v392_v38 = vld [vmem:[%s3506_s16 + $0x6c0] sm:$0xff] }
 0x153   : > { %2141 = vmatmul.mubr.f32.gmra.mrb[70].mxu1 %v329_v46  ;;  %3040 = vmatprep.subr.bf16.mxu1 %v3039_v45  ;;  %v537_v46 = vld [vmem:[%s3506_s16 + $0xb48] sm:$0xff] }
 0x154   : > { %1876 = vmatmul.mubr.f32.gmra.mrb[6].mxu0 %v223_v49  ;;  %2145 = vmatprep.mubr.f32.mxu1 %v343_v50  ;;  %v431_v49 = vld [vmem:[%s3506_s16 + $0x7f8] sm:$0xff] }
 0x155   : > { %1880 = vmatprep.mubr.f32.mxu0 %v237_v27  ;;  %2990 = vmatpush1.bf16.msra.mxu0 %v4084_v47  ;;  %v368_v47 = vld [vmem:[%s3506_s16 + $0x600] sm:$0xff]  ;;  %v551_v50 = vld [vmem:[%s3506_s16 + $0xbb8] sm:$0xff]  ;;  %v445_v27 = vld [vmem:[%s3506_s16 + $0x868] sm:$0xff] }
 0x156   : > { %2991 = vmatprep.subr.bf16.mxu0 %v3389_v3  ;;  %3042 = vmatpush3.bf16.msra.mxu1 %v3039_v45  ;;  %v432_v45 = vld [vmem:[%s3506_s16 + $0x800] sm:$0xff] }
 0x157   : > { %2146 = vmatmul.mubr.f32.gmra.mrb[72].mxu1 %v342_v51  ;;  %v550_v51 = vld [vmem:[%s3506_s16 + $0xbb0] sm:$0xff] }
 0x158   : > { %1881 = vmatmul.mubr.f32.gmra.mrb[8].mxu0 %v236_v52  ;;  %2150 = vmatprep.mubr.f32.mxu1 %v356_v53  ;;  %v444_v52 = vld [vmem:[%s3506_s16 + $0x860] sm:$0xff] }
 0x159   : > { %1885 = vmatprep.mubr.f32.mxu0 %v250_v54  ;;  %2993 = vmatpush1.bf16.msra.mxu0 %v4105_v57  ;;  %v381_v57 = vld [vmem:[%s3506_s16 + $0x668] sm:$0xff]  ;;  %v564_v53 = vld [vmem:[%s3506_s16 + $0xc20] sm:$0xff]  ;;  %v458_v54 = vld [vmem:[%s3506_s16 + $0x8d0] sm:$0xff] }
 0x15a   : > { %2994 = vmatprep.subr.bf16.mxu0 %v3389_v3 }
 0x15b   : > { %2151 = vmatmul.mubr.f32.gmra.mrb[74].mxu1 %v355_v37  ;;  %v563_v37 = vld [vmem:[%s3506_s16 + $0xc18] sm:$0xff] }
 0x15c   : > { %1886 = vmatmul.mubr.f32.gmra.mrb[10].mxu0 %v249_v55  ;;  %2155 = vmatprep.mubr.f32.mxu1 %v369_v56  ;;  %v457_v55 = vld [vmem:[%s3506_s16 + $0x8c8] sm:$0xff] }
 0x15d   : > { %1890 = vmatprep.mubr.f32.mxu0 %v263_v61  ;;  %2996 = vmatpush1.bf16.msra.mxu0 %v4126_v4  ;;  %v394_v4 = vld [vmem:[%s3506_s16 + $0x6d0] sm:$0xff]  ;;  %v577_v56 = vld [vmem:[%s3506_s16 + $0xc88] sm:$0xff] }
 0x15e   : > { %2997 = vmatprep.subr.bf16.mxu0 %v3389_v3 }
 0x15f   : > { %2156 = vmatmul.mubr.f32.gmra.mrb[76].mxu1 %v368_v47  ;;  %v471_v47 = vld [vmem:[%s3506_s16 + $0x938] sm:$0xff] }
 0x160   : > { %1891 = vmatmul.mubr.f32.gmra.mrb[12].mxu0 %v262_v62  ;;  %2160 = vmatprep.mubr.f32.mxu1 %v382_v63  ;;  %v576_v63 = vld [vmem:[%s3506_s16 + $0xc80] sm:$0xff] }
 0x161   : > { %1895 = vmatprep.mubr.f32.mxu0 %v276_v0  ;;  %2999 = vmatpush1.bf16.msra.mxu0 %v4147_v15  ;;  %v407_v15 = vld [vmem:[%s3506_s16 + $0x738] sm:$0xff]  ;;  %v470_v0 = vld [vmem:[%s3506_s16 + $0x930] sm:$0xff] }
 0x162   : > { %3000 = vmatprep.subr.bf16.mxu0 %v3389_v3 }
 0x163   : > { %2161 = vmatmul.mubr.f32.gmra.mrb[78].mxu1 %v381_v57  ;;  %v590_v57 = vld [vmem:[%s3506_s16 + $0xcf0] sm:$0xff] }
 0x164   : > { %1896 = vmatmul.mubr.f32.gmra.mrb[14].mxu0 %v275_v1  ;;  %2165 = vmatprep.mubr.f32.mxu1 %v395_v2  ;;  %v484_v2 = vld [vmem:[%s3506_s16 + $0x9a0] sm:$0xff] }
 0x165   : > { %1900 = vmatprep.mubr.f32.mxu0 %v289_v5  ;;  %3002 = vmatpush1.bf16.msra.mxu0 %v4168_v25  ;;  %v420_v25 = vld [vmem:[%s3506_s16 + $0x7a0] sm:$0xff] }
 0x166   : > { %3003 = vmatprep.subr.bf16.mxu0 %v3389_v3 }
 0x167   : > { %2166 = vmatmul.mubr.f32.gmra.mrb[80].mxu1 %v394_v4  ;;  %v589_v4 = vld [vmem:[%s3506_s16 + $0xce8] sm:$0xff] }
 0x168   : > { %1901 = vmatmul.mubr.f32.gmra.mrb[16].mxu0 %v288_v6  ;;  %2170 = vmatprep.mubr.f32.mxu1 %v408_v8  ;;  %v483_v6 = vld [vmem:[%s3506_s16 + $0x998] sm:$0xff]  ;;  %v188_v8 = vld [vmem:[%s3506_s16 + $0x60] sm:$0xff] }
 0x169   : > { %1905 = vmatprep.mubr.f32.mxu0 %v302_v9  ;;  %3005 = vmatpush1.bf16.msra.mxu0 %v4189_v36  ;;  %v433_v36 = vld [vmem:[%s3506_s16 + $0x808] sm:$0xff] }
 0x16a   : > { %3006 = vmatprep.subr.bf16.mxu0 %v3389_v3 }
 0x16b   : > { %2171 = vmatmul.mubr.f32.gmra.mrb[82].mxu1 %v407_v15  ;;  %v497_v15 = vld [vmem:[%s3506_s16 + $0xa08] sm:$0xff] }
 0x16c   : > { %1906 = vmatmul.mubr.f32.gmra.mrb[18].mxu0 %v301_v10  ;;  %2175 = vmatprep.mubr.f32.mxu1 %v421_v11  ;;  %v201_v11 = vld [vmem:[%s3506_s16 + $0xc8] sm:$0xff] }
 0x16d   : > { %1910 = vmatprep.mubr.f32.mxu0 %v315_v12  ;;  %3008 = vmatpush1.bf16.msra.mxu0 %v4210_v48  ;;  %v446_v48 = vld [vmem:[%s3506_s16 + $0x870] sm:$0xff]  ;;  %v496_v12 = vld [vmem:[%s3506_s16 + $0xa00] sm:$0xff] }
 0x16e   : > { %3009 = vmatprep.subr.bf16.mxu0 %v3389_v3 }
 0x16f   : > { %2176 = vmatmul.mubr.f32.gmra.mrb[84].mxu1 %v420_v25  ;;  %v214_v25 = vld [vmem:[%s3506_s16 + $0x130] sm:$0xff] }
 0x170   : > { %1911 = vmatmul.mubr.f32.gmra.mrb[20].mxu0 %v314_v14  ;;  %2180 = vmatprep.mubr.f32.mxu1 %v434_v16  ;;  %v510_v16 = vld [vmem:[%s3506_s16 + $0xa70] sm:$0xff] }
 0x171   : > { %1915 = vmatprep.mubr.f32.mxu0 %v328_v17  ;;  %3011 = vmatpush1.bf16.msra.mxu0 %v4231_v59  ;;  %v459_v59 = vld [vmem:[%s3506_s16 + $0x8d8] sm:$0xff] }
 0x172   : > { %3012 = vmatprep.subr.bf16.mxu0 %v3389_v3 }
 0x173   : > { %2181 = vmatmul.mubr.f32.gmra.mrb[86].mxu1 %v433_v36  ;;  %v227_v36 = vld [vmem:[%s3506_s16 + $0x198] sm:$0xff] }
 0x174   : > { %1916 = vmatmul.mubr.f32.gmra.mrb[22].mxu0 %v327_v18  ;;  %2185 = vmatprep.mubr.f32.mxu1 %v447_v20  ;;  %v509_v18 = vld [vmem:[%s3506_s16 + $0xa68] sm:$0xff]  ;;  %v240_v20 = vld [vmem:[%s3506_s16 + $0x200] sm:$0xff] }
 0x175   : > { %1920 = vmatprep.mubr.f32.mxu0 %v341_v21  ;;  %3014 = vmatpush1.bf16.msra.mxu0 %v4252_v7  ;;  %v472_v7 = vld [vmem:[%s3506_s16 + $0x940] sm:$0xff] }
 0x176   : > { %3015 = vmatprep.subr.bf16.mxu0 %v3389_v3 }
 0x177   : > { %2186 = vmatmul.mubr.f32.gmra.mrb[88].mxu1 %v446_v48  ;;  %v523_v48 = vld [vmem:[%s3506_s16 + $0xad8] sm:$0xff] }
 0x178   : > { %1921 = vmatmul.mubr.f32.gmra.mrb[24].mxu0 %v340_v22  ;;  %2190 = vmatprep.mubr.f32.mxu1 %v460_v23  ;;  %v253_v23 = vld [vmem:[%s3506_s16 + $0x268] sm:$0xff] }
 0x179   : > { %1925 = vmatprep.mubr.f32.mxu0 %v354_v24  ;;  %3017 = vmatpush1.bf16.msra.mxu0 %v4273_v19  ;;  %v485_v19 = vld [vmem:[%s3506_s16 + $0x9a8] sm:$0xff]  ;;  %v522_v24 = vld [vmem:[%s3506_s16 + $0xad0] sm:$0xff] }
 0x17a   : > { %3018 = vmatprep.subr.bf16.mxu0 %v3389_v3 }
 0x17b   : > { %2191 = vmatmul.mubr.f32.gmra.mrb[90].mxu1 %v459_v59  ;;  %v266_v59 = vld [vmem:[%s3506_s16 + $0x2d0] sm:$0xff] }
 0x17c   : > { %1926 = vmatmul.mubr.f32.gmra.mrb[26].mxu0 %v353_v26  ;;  %2195 = vmatprep.mubr.f32.mxu1 %v473_v28  ;;  %v536_v28 = vld [vmem:[%s3506_s16 + $0xb40] sm:$0xff] }
 0x17d   : > { %1930 = vmatprep.mubr.f32.mxu0 %v367_v29  ;;  %3020 = vmatpush1.bf16.msra.mxu0 %v4294_v31  ;;  %v498_v31 = vld [vmem:[%s3506_s16 + $0xa10] sm:$0xff] }
 0x17e   : > { %3021 = vmatprep.subr.bf16.mxu0 %v3389_v3 }
 0x17f   : > { %2196 = vmatmul.mubr.f32.gmra.mrb[92].mxu1 %v472_v7  ;;  %v279_v7 = vld [vmem:[%s3506_s16 + $0x338] sm:$0xff] }
 0x180   : > { %1931 = vmatmul.mubr.f32.gmra.mrb[28].mxu0 %v366_v30  ;;  %2200 = vmatprep.mubr.f32.mxu1 %v486_v32  ;;  %v535_v30 = vld [vmem:[%s3506_s16 + $0xb38] sm:$0xff]  ;;  %v292_v32 = vld [vmem:[%s3506_s16 + $0x3a0] sm:$0xff] }
 0x181   : > { %1935 = vmatprep.mubr.f32.mxu0 %v380_v33  ;;  %3023 = vmatpush1.bf16.msra.mxu0 %v4315_v43  ;;  %v405_v43 = vld [vmem:[%s3506_s16 + $0x728] sm:$0xff] }
 0x182   : > { %3024 = vmatprep.subr.bf16.mxu0 %v3389_v3  ;;  %v511_v3 = vld [vmem:[%s3506_s16 + $0xa78] sm:$0xff] }
 0x183   : > { %2201 = vmatmul.mubr.f32.gmra.mrb[94].mxu1 %v485_v19  ;;  %v549_v19 = vld [vmem:[%s3506_s16 + $0xba8] sm:$0xff] }
 0x184   : > { %1936 = vmatmul.mubr.f32.gmra.mrb[30].mxu0 %v379_v34  ;;  %2205 = vmatprep.mubr.f32.mxu1 %v499_v35  ;;  %v305_v35 = vld [vmem:[%s3506_s16 + $0x408] sm:$0xff] }
 0x185   : > { %1940 = vmatprep.mubr.f32.mxu0 %v393_v60  ;;  %3026 = vmatpush1.bf16.msra.mxu0 %v4342_v58  ;;  %v418_v58 = vld [vmem:[%s3506_s16 + $0x790] sm:$0xff]  ;;  %v548_v60 = vld [vmem:[%s3506_s16 + $0xba0] sm:$0xff] }
 0x187   : > { %2206 = vmatmul.mubr.f32.gmra.mrb[96].mxu1 %v498_v31  ;;  %v318_v31 = vld [vmem:[%s3506_s16 + $0x470] sm:$0xff] }
 0x188   : > { %1941 = vmatmul.mubr.f32.gmra.mrb[32].mxu0 %v392_v38  ;;  %2210 = vmatprep.mubr.f32.mxu1 %v512_v39  ;;  %v562_v39 = vld [vmem:[%s3506_s16 + $0xc10] sm:$0xff] }
 0x189   : > { %1945 = vmatprep.mubr.f32.mxu0 %v406_v13 }
 0x18b   : > { %2211 = vmatmul.mubr.f32.gmra.mrb[98].mxu1 %v511_v3  ;;  %v331_v3 = vld [vmem:[%s3506_s16 + $0x4d8] sm:$0xff] }
 0x18c   : > { %1946 = vmatmul.mubr.f32.gmra.mrb[34].mxu0 %v405_v43  ;;  %2215 = vmatprep.mubr.f32.mxu1 %v525_v40  ;;  %v561_v43 = vld [vmem:[%s3506_s16 + $0xc08] sm:$0xff]  ;;  %v344_v40 = vld [vmem:[%s3506_s16 + $0x540] sm:$0xff] }
 0x18d   : > { %1950 = vmatprep.mubr.f32.mxu0 %v419_v41 }
 0x18f   : > { %2216 = vmatmul.mubr.f32.gmra.mrb[100].mxu1 %v524_v42  ;;  %v575_v42 = vld [vmem:[%s3506_s16 + $0xc78] sm:$0xff] }
 0x190   : > { %1951 = vmatmul.mubr.f32.gmra.mrb[36].mxu0 %v418_v58  ;;  %2220 = vmatprep.mubr.f32.mxu1 %v538_v44  ;;  %v357_v44 = vld [vmem:[%s3506_s16 + $0x5a8] sm:$0xff] }
 0x191   : > { %1955 = vmatprep.mubr.f32.mxu0 %v432_v45  ;;  %v574_v45 = vld [vmem:[%s3506_s16 + $0xc70] sm:$0xff] }
 0x193   : > { %2221 = vmatmul.mubr.f32.gmra.mrb[102].mxu1 %v537_v46  ;;  %v370_v46 = vld [vmem:[%s3506_s16 + $0x610] sm:$0xff] }
 0x194   : > { %1956 = vmatmul.mubr.f32.gmra.mrb[38].mxu0 %v431_v49  ;;  %2225 = vmatprep.mubr.f32.mxu1 %v551_v50  ;;  %v588_v50 = vld [vmem:[%s3506_s16 + $0xce0] sm:$0xff] }
 0x195   : > { %1960 = vmatprep.mubr.f32.mxu0 %v445_v27 }
 0x197   : > { %2226 = vmatmul.mubr.f32.gmra.mrb[104].mxu1 %v550_v51  ;;  %v383_v51 = vld [vmem:[%s3506_s16 + $0x678] sm:$0xff] }
 0x198   : > { %1961 = vmatmul.mubr.f32.gmra.mrb[40].mxu0 %v444_v52  ;;  %2230 = vmatprep.mubr.f32.mxu1 %v564_v53  ;;  %v587_v52 = vld [vmem:[%s3506_s16 + $0xcd8] sm:$0xff]  ;;  %v396_v53 = vld [vmem:[%s3506_s16 + $0x6e0] sm:$0xff] }
 0x199   : > { %1965 = vmatprep.mubr.f32.mxu0 %v458_v54 }
 0x19a   : > { %v4551_v61 = vpop.f32.mrb[0].mxu1 }
 0x19b   : > { %v1189_v62 = vpop.f32.mrb[1].mxu1  ;;  %2231 = vmatmul.mubr.f32.gmra.mrb[106].mxu1 %v563_v37  ;;  %v187_v37 = vld [vmem:[%s3506_s16 + $0x58] sm:$0xff] }
 0x19c   : > { %1966 = vmatmul.mubr.f32.gmra.mrb[42].mxu0 %v457_v55  ;;  %2235 = vmatprep.mubr.f32.mxu1 %v577_v56  ;;  %v409_v56 = vld [vmem:[%s3506_s16 + $0x748] sm:$0xff]  ;;  %v422_v62 = vld [vmem:[%s3506_s16 + $0x7b0] sm:$0xff] }
 0x19d   : > { %1970 = vmatprep.mubr.f32.mxu0 %v471_v47  ;;  %v186_v47 = vld [vmem:[%s3506_s16 + $0x50] sm:$0xff] }
 0x19e   : > { %v4557_v1 = vpop.f32.mrb[2].mxu1 }
 0x19f   : > { %v1194_v5 = vpop.f32.mrb[3].mxu1  ;;  %2236 = vmatmul.mubr.f32.gmra.mrb[108].mxu1 %v576_v63 }
 0x1a0   : > { %1971 = vmatmul.mubr.f32.gmra.mrb[44].mxu0 %v470_v0  ;;  %2240 = vmatprep.mubr.f32.mxu1 %v590_v57  ;;  %v200_v0 = vld [vmem:[%s3506_s16 + $0xc0] sm:$0xff]  ;;  %v199_v5 = vld [vmem:[%s3506_s16 + $0xb8] sm:$0xff] }
 0x1a1   : > { %1975 = vmatprep.mubr.f32.mxu0 %v484_v2  ;;  %v435_v2 = vld [vmem:[%s3506_s16 + $0x818] sm:$0xff] }
 0x1a2   : > { %v4563_v9 = vpop.f32.mrb[4].mxu1 }
 0x1a3   : > { %v1199_v10 = vpop.f32.mrb[5].mxu1  ;;  %2241 = vmatmul.mubr.f32.gmra.mrb[110].mxu1 %v589_v4  ;;  %v448_v4 = vld [vmem:[%s3506_s16 + $0x880] sm:$0xff] }
 0x1a4   : > { %1976 = vmatmul.mubr.f32.gmra.mrb[46].mxu0 %v483_v6  ;;  %2691 = vmatprep.mubr.msk.f32.mxu1 %vm799_vm0, %v188_v8  ;;  %v213_v8 = vld [vmem:[%s3506_s16 + $0x128] sm:$0xff] }
 0x1a5   : > { %1980 = vmatprep.mubr.f32.mxu0 %v497_v15  ;;  %v461_v10 = vld [vmem:[%s3506_s16 + $0x8e8] sm:$0xff] }
 0x1a6   : > { %v4570_v14 = vpop.f32.mrb[6].mxu1 }
 0x1a7   : > { %v1204_v17 = vpop.f32.mrb[7].mxu1  ;;  %2692 = vmatmul.mubr.msk.f32.vlgmr.msra.gmra.mrb[112].mxu1 %vm799_vm0, %v201_v11  ;;  %v212_v11 = vld [vmem:[%s3506_s16 + $0x120] sm:$0xff] }
 0x1a8   : > { %1981 = vmatmul.mubr.f32.gmra.mrb[48].mxu0 %v496_v12  ;;  %2694 = vmatprep.mubr.msk.f32.mxu1 %vm799_vm0, %v214_v25  ;;  %v474_v12 = vld [vmem:[%s3506_s16 + $0x950] sm:$0xff] }
 0x1a9   : > { %1985 = vmatprep.mubr.f32.mxu0 %v510_v16  ;;  %v226_v16 = vld [vmem:[%s3506_s16 + $0x190] sm:$0xff] }
 0x1aa   : > { %v4578_v21 = vpop.f32.mrb[8].mxu1 }
 0x1ab   : > { %v1209_v22 = vpop.f32.mrb[9].mxu1  ;;  %2695 = vmatmul.mubr.msk.f32.gmra.mrb[114].mxu1 %vm799_vm0, %v227_v36  ;;  %v487_v36 = vld [vmem:[%s3506_s16 + $0x9b8] sm:$0xff] }
 0x1ac   : > { %1986 = vmatmul.mubr.f32.gmra.mrb[50].mxu0 %v509_v18  ;;  %2697 = vmatprep.mubr.msk.f32.mxu1 %vm799_vm0, %v240_v20  ;;  %v225_v18 = vld [vmem:[%s3506_s16 + $0x188] sm:$0xff]  ;;  %v500_v20 = vld [vmem:[%s3506_s16 + $0xa20] sm:$0xff]  ;;  %v239_v22 = vld [vmem:[%s3506_s16 + $0x1f8] sm:$0xff] }
 0x1ad   : > { %1990 = vmatprep.mubr.f32.mxu0 %v523_v48 }
 0x1ae   : > { %v4586_v26 = vpop.f32.mrb[10].mxu1 }
 0x1af   : > { %v1214_v29 = vpop.f32.mrb[11].mxu1  ;;  %2698 = vmatmul.mubr.msk.f32.gmra.mrb[116].mxu1 %vm799_vm0, %v253_v23 }
 0x1b0   : > { %1991 = vmatmul.mubr.f32.gmra.mrb[52].mxu0 %v522_v24  ;;  %2700 = vmatprep.mubr.msk.f32.mxu1 %vm799_vm0, %v266_v59  ;;  %v513_v24 = vld [vmem:[%s3506_s16 + $0xa88] sm:$0xff]  ;;  %v238_v59 = vld [vmem:[%s3506_s16 + $0x1f0] sm:$0xff] }
 0x1b1   : > { %1995 = vmatprep.mubr.f32.mxu0 %v536_v28  ;;  %v526_v28 = vld [vmem:[%s3506_s16 + $0xaf0] sm:$0xff] }
 0x1b2   : > { %v4594_v33 = vpop.f32.mrb[12].mxu1 }
 0x1b3   : > { %v1219_v34 = vpop.f32.mrb[13].mxu1  ;;  %2701 = vmatmul.mubr.msk.f32.gmra.mrb[118].mxu1 %vm799_vm0, %v279_v7  ;;  %v252_v7 = vld [vmem:[%s3506_s16 + $0x260] sm:$0xff] }
 0x1b4   : > { %1996 = vmatmul.mubr.f32.gmra.mrb[54].mxu0 %v535_v30  ;;  %2703 = vmatprep.mubr.msk.f32.mxu1 %vm799_vm0, %v292_v32  ;;  %v539_v32 = vld [vmem:[%s3506_s16 + $0xb58] sm:$0xff]  ;;  %v552_v34 = vld [vmem:[%s3506_s16 + $0xbc0] sm:$0xff] }
 0x1b5   : > { %2000 = vmatprep.mubr.f32.mxu0 %v549_v19  ;;  %v251_v19 = vld [vmem:[%s3506_s16 + $0x258] sm:$0xff] }
 0x1b6   : > { %v4602_v38 = vpop.f32.mrb[14].mxu1 }
 0x1b7   : > { %v1224_v13 = vpop.f32.mrb[15].mxu1  ;;  %2704 = vmatmul.mubr.msk.f32.gmra.mrb[120].mxu1 %vm799_vm0, %v305_v35 }
 0x1b8   : > { %2001 = vmatmul.mubr.f32.gmra.mrb[56].mxu0 %v548_v60  ;;  %2706 = vmatprep.mubr.msk.f32.mxu1 %vm799_vm0, %v318_v31  ;;  %v265_v60 = vld [vmem:[%s3506_s16 + $0x2c8] sm:$0xff]  ;;  %v264_v13 = vld [vmem:[%s3506_s16 + $0x2c0] sm:$0xff] }
 0x1b9   : > { %2005 = vmatprep.mubr.f32.mxu0 %v562_v39  ;;  %v565_v39 = vld [vmem:[%s3506_s16 + $0xc28] sm:$0xff] }
 0x1ba   : > { %v4610_v41 = vpop.f32.mrb[16].mxu1 }
 0x1bb   : > { %v1229_v58 = vpop.f32.mrb[17].mxu1  ;;  %2707 = vmatmul.mubr.msk.f32.gmra.mrb[122].mxu1 %vm799_vm0, %v331_v3  ;;  %v578_v3 = vld [vmem:[%s3506_s16 + $0xc90] sm:$0xff] }
 0x1bc   : > { %2006 = vmatmul.mubr.f32.gmra.mrb[58].mxu0 %v561_v43  ;;  %2709 = vmatprep.mubr.msk.f32.mxu1 %vm799_vm0, %v344_v40  ;;  %v278_v40 = vld [vmem:[%s3506_s16 + $0x330] sm:$0xff]  ;;  %v591_v58 = vld [vmem:[%s3506_s16 + $0xcf8] sm:$0xff] }
 0x1bd   : > { %2010 = vmatprep.mubr.f32.mxu0 %v575_v42 }
 0x1be   : > { %v4618_v49 = vpop.f32.mrb[18].mxu1 }
 0x1bf   : > { %v1234_v27 = vpop.f32.mrb[19].mxu1  ;;  %2710 = vmatmul.mubr.msk.f32.gmra.mrb[124].mxu1 %vm799_vm0, %v357_v44  ;;  %v277_v44 = vld [vmem:[%s3506_s16 + $0x328] sm:$0xff] }
 0x1c0   : > { %2011 = vmatmul.mubr.f32.gmra.mrb[60].mxu0 %v574_v45  ;;  %2712 = vmatprep.mubr.msk.f32.mxu1 %vm799_vm0, %v370_v46 }
 0x1c1   : > { %2015 = vmatprep.mubr.f32.mxu0 %v588_v50 }
 0x1c2   : > { %v4626_v54 = vpop.f32.mrb[20].mxu1 }
 0x1c3   : > { %v1239_v55 = vpop.f32.mrb[21].mxu1  ;;  %2713 = vmatmul.mubr.msk.f32.gmra.mrb[126].mxu1 %vm799_vm0, %v383_v51 }
 0x1c4   : > { %2016 = vmatmul.mubr.f32.gmra.mrb[62].mxu0 %v587_v52  ;;  %2715 = vmatprep.mubr.msk.f32.mxu1 %vm799_vm0, %v396_v53 }
 0x1c5   : > { %2085 = vmatprep.mubr.f32.mxu0 %v187_v37 }
 0x1c6   : > { %v4634_v63 = vpop.f32.mrb[22].mxu1 }
 0x1c7   : > { %v1244_v57 = vpop.f32.mrb[23].mxu1  ;;  %2716 = vmatmul.mubr.msk.f32.gmra.mrb[128].mxu1 %vm799_vm0, %v409_v56 }
 0x1c8   : > { %2086 = vmatmul.mubr.f32.vlgmr.msra.gmra.mrb[0].mxu0 %v186_v47  ;;  %2718 = vmatprep.mubr.msk.f32.mxu1 %vm799_vm0, %v422_v62 }
 0x1c9   : > { %2090 = vmatprep.mubr.f32.mxu0 %v200_v0 }
 0x1ca   : > { %v4642_v6 = vpop.f32.mrb[24].mxu1 }
 0x1cb   : > { %v1249_v15 = vpop.f32.mrb[25].mxu1  ;;  %2719 = vmatmul.mubr.msk.f32.gmra.mrb[130].mxu1 %vm799_vm0, %v435_v2 }
 0x1cc   : > { %2091 = vmatmul.mubr.f32.gmra.mrb[2].mxu0 %v199_v5  ;;  %2721 = vmatprep.mubr.msk.f32.mxu1 %vm799_vm0, %v448_v4 }
 0x1cd   : > { %2095 = vmatprep.mubr.f32.mxu0 %v213_v8 }
 0x1ce   : > { %v4650_v25 = vpop.f32.mrb[26].mxu1 }
 0x1cf   : > { %v1254_v17 = vpop.f32.mrb[27].mxu1  ;;  %2722 = vmatmul.mubr.msk.f32.gmra.mrb[132].mxu1 %vm799_vm0, %v461_v10 }
 0x1d0   : > { %2096 = vmatmul.mubr.f32.gmra.mrb[4].mxu0 %v212_v11  ;;  %2724 = vmatprep.mubr.msk.f32.mxu1 %vm799_vm0, %v474_v12 }
 0x1d1   : > { %2100 = vmatprep.mubr.f32.mxu0 %v226_v16 }
 0x1d2   : > { %v4658_v48 = vpop.f32.mrb[28].mxu1 }
 0x1d3   : > { %v1259_v23 = vpop.f32.mrb[29].mxu1  ;;  %2725 = vmatmul.mubr.msk.f32.gmra.mrb[134].mxu1 %vm799_vm0, %v487_v36 }
 0x1d4   : > { %2101 = vmatmul.mubr.f32.gmra.mrb[6].mxu0 %v225_v18  ;;  %2727 = vmatprep.mubr.msk.f32.mxu1 %vm799_vm0, %v500_v20 }
 0x1d5   : > { %2105 = vmatprep.mubr.f32.mxu0 %v239_v22 }
 0x1d6   : > { %v4666_v29 = vpop.f32.mrb[30].mxu1 }
 0x1d7   : > { %v1264_v30 = vpop.f32.mrb[31].mxu1  ;;  %2728 = vmatmul.mubr.msk.f32.gmra.mrb[136].mxu1 %vm799_vm0, %v513_v24 }
 0x1d8   : > { %2106 = vmatmul.mubr.f32.gmra.mrb[8].mxu0 %v238_v59  ;;  %2730 = vmatprep.mubr.msk.f32.mxu1 %vm799_vm0, %v526_v28 }
 0x1d9   : > { %2110 = vmatprep.mubr.f32.mxu0 %v252_v7 }
 0x1da   : > { %v4674_v35 = vpop.f32.mrb[32].mxu1 }
 0x1db   : > { %v1269_v31 = vpop.f32.mrb[33].mxu1  ;;  %2731 = vmatmul.mubr.msk.f32.gmra.mrb[138].mxu1 %vm799_vm0, %v539_v32 }
 0x1dc   : > { %2111 = vmatmul.mubr.f32.gmra.mrb[10].mxu0 %v251_v19  ;;  %2733 = vmatprep.mubr.msk.f32.mxu1 %vm799_vm0, %v552_v34 }
 0x1dd   : > { %2115 = vmatprep.mubr.f32.mxu0 %v265_v60 }
 0x1de   : > { %v4682_v43 = vpop.f32.mrb[34].mxu1 }
 0x1df   : > { %v1274_v42 = vpop.f32.mrb[35].mxu1  ;;  %2734 = vmatmul.mubr.msk.f32.gmra.mrb[140].mxu1 %vm799_vm0, %v565_v39 }
 0x1e0   : > { %2116 = vmatmul.mubr.f32.gmra.mrb[12].mxu0 %v264_v13  ;;  %2736 = vmatprep.mubr.msk.f32.mxu1 %vm799_vm0, %v578_v3 }
 0x1e1   : > { %2120 = vmatprep.mubr.f32.mxu0 %v278_v40 }
 0x1e2   : > { %v4689_v45 = vpop.f32.mrb[36].mxu1 }
 0x1e3   : > { %v1279_v46 = vpop.f32.mrb[37].mxu1  ;;  %2737 = vmatmul.mubr.msk.f32.gmra.mrb[142].mxu1 %vm799_vm0, %v591_v58  ;;  %v4721_v58 = vld [vmem:[%s5005_s2] ss:$0 sm:$0xff] }
 0x1e4   : > { %2121 = vmatmul.mubr.f32.gmra.mrb[14].mxu0 %v277_v44  ;;  %v3091_v44 = vadd.f32 %v4721_v58, %v4610_v41  ;;  %v3097_v41 = vadd.f32 %v4721_v58, %v4626_v54  ;;  %v3103_v54 = vadd.f32 %v4721_v58, %v4642_v6  ;;  %v3109_v6 = vadd.f32 %v4721_v58, %v4658_v48 }
 0x1e5   : > { %v3115_v48 = vadd.f32 %v4721_v58, %v4674_v35 }
 0x1e6   : > { %v4692_v50 = vpop.f32.mrb[38].mxu1 }
 0x1e7   : > { %v1284_v27 = vpop.f32.mrb[39].mxu1 }
 0x1ea   : > { %v4694_v51 = vpop.f32.mrb[40].mxu1 }
 0x1eb   : > { %v1289_v52 = vpop.f32.mrb[41].mxu1 }
 0x1ee   : > { %v4696_v53 = vpop.f32.mrb[42].mxu1 }
 0x1ef   : > { %v1294_v37 = vpop.f32.mrb[43].mxu1 }
 0x1f2   : > { %v4698_v55 = vpop.f32.mrb[44].mxu1 }
 0x1f3   : > { %v1299_v56 = vpop.f32.mrb[45].mxu1 }
 0x1f6   : > { %v4700_v47 = vpop.f32.mrb[46].mxu1 }
 0x1f7   : > { %v1304_v62 = vpop.f32.mrb[47].mxu1 }
 0x1f8   : > { %v3094_v62 = vadd.f32 %v4721_v58, %v4618_v49  ;;  %v3100_v49 = vadd.f32 %v4721_v58, %v4634_v63  ;;  %v3106_v63 = vadd.f32 %v4721_v58, %v4650_v25  ;;  %v3112_v25 = vadd.f32 %v4721_v58, %v4666_v29 }
 0x1f9   : > { %v3118_v29 = vadd.f32 %v4721_v58, %v4682_v43 }
 0x1fa   : > { %v4702_v0 = vpop.f32.mrb[48].mxu1 }
 0x1fb   : > { %v1309_v57 = vpop.f32.mrb[49].mxu1 }
 0x1fe   : > { %v4704_v2 = vpop.f32.mrb[50].mxu1 }
 0x1ff   : > { %v1314_v5 = vpop.f32.mrb[51].mxu1 }
 0x202   : > { %v4706_v4 = vpop.f32.mrb[52].mxu1 }
 0x203   : > { %v1319_v8 = vpop.f32.mrb[53].mxu1 }
 0x206   : > { %v4708_v15 = vpop.f32.mrb[54].mxu1 }
 0x207   : > { %v1324_v10 = vpop.f32.mrb[55].mxu1 }
 0x20a   : > { %v4710_v11 = vpop.f32.mrb[56].mxu1 }
 0x20b   : > { %v1329_v12 = vpop.f32.mrb[57].mxu1 }
 0x20e   : > { %v4712_v16 = vpop.f32.mrb[58].mxu1 }
 0x20f   : > { %v1334_v17 = vpop.f32.mrb[59].mxu1 }
 0x212   : > { %v4714_v36 = vpop.f32.mrb[60].mxu1 }
 0x213   : > { %v1339_v18 = vpop.f32.mrb[61].mxu1 }
 0x216   : > { %v4716_v20 = vpop.f32.mrb[62].mxu1 }
 0x217   : > { %v1344_v22 = vpop.f32.mrb[63].mxu1 }
 0x21a   : > { %v2127_v23 = vpop.f32.mrb[64].mxu1 }
 0x21b   : > { %v2129_v24 = vpop.f32.mrb[65].mxu1 }
 0x21e   : > { %v2132_v59 = vpop.f32.mrb[66].mxu1 }
 0x21f   : > { %v2134_v28 = vpop.f32.mrb[67].mxu1 }
 0x222   : > { %v2137_v7 = vpop.f32.mrb[68].mxu1 }
 0x223   : > { %v2139_v30 = vpop.f32.mrb[69].mxu1 }
 0x226   : > { %v2142_v32 = vpop.f32.mrb[70].mxu1 }
 0x227   : > { %v2144_v19 = vpop.f32.mrb[71].mxu1 }
 0x22a   : > { %v2147_v34 = vpop.f32.mrb[72].mxu1 }
 0x22b   : > { %v2149_v60 = vpop.f32.mrb[73].mxu1 }
 0x22e   : > { %v2152_v31 = vpop.f32.mrb[74].mxu1 }
 0x22f   : > { %v2154_v39 = vpop.f32.mrb[75].mxu1 }
 0x232   : > { %v2157_v13 = vpop.f32.mrb[76].mxu1 }
 0x233   : > { %v2159_v3 = vpop.f32.mrb[77].mxu1 }
 0x236   : > { %v2162_v40 = vpop.f32.mrb[78].mxu1 }
 0x237   : > { %v2164_v42 = vpop.f32.mrb[79].mxu1 }
 0x23a   : > { %v4725_v46 = vpop.f32.mrb[80].mxu1 }
 0x23b   : > { %v1902_v27 = vpop.f32.mrb[16].mxu0  ;;  %v2169_v52 = vpop.f32.mrb[81].mxu1 }
 0x23c   : > { %v3092_v37 = vadd.f32 %v3091_v44, %v1902_v27  ;;  %v1904_v56 = vpop.f32.mrb[17].mxu0 }
 0x23e   : > { %v4729_v57 = vpop.f32.mrb[82].mxu1  ;;  %v4731_v5 = vadd.f32 %v3092_v37, %v2127_v23 }
 0x23f   : > { %v1907_v8 = vpop.f32.mrb[18].mxu0  ;;  %v2174_v10 = vpop.f32.mrb[83].mxu1 }
 0x240   : > { %v3095_v12 = vadd.f32 %v3094_v62, %v1907_v8  ;;  %v1909_v17 = vpop.f32.mrb[19].mxu0 }
 0x242   : > { %v4735_v18 = vpop.f32.mrb[84].mxu1  ;;  %v4737_v22 = vadd.f32 %v3095_v12, %v2132_v59 }
 0x243   : > { %v1912_v24 = vpop.f32.mrb[20].mxu0  ;;  %v2179_v28 = vpop.f32.mrb[85].mxu1 }
 0x244   : > { %v3098_v30 = vadd.f32 %v3097_v41, %v1912_v24  ;;  %v1914_v19 = vpop.f32.mrb[21].mxu0 }
 0x246   : > { %v4741_v23 = vpop.f32.mrb[86].mxu1  ;;  %v4743_v60 = vadd.f32 %v3098_v30, %v2137_v7 }
 0x247   : > { %v1917_v39 = vpop.f32.mrb[22].mxu0  ;;  %v2184_v3 = vpop.f32.mrb[87].mxu1 }
 0x248   : > { %v3101_v42 = vadd.f32 %v3100_v49, %v1917_v39  ;;  %v1919_v44 = vpop.f32.mrb[23].mxu0 }
 0x24a   : > { %v4747_v59 = vpop.f32.mrb[88].mxu1  ;;  %v4749_v27 = vadd.f32 %v3101_v42, %v2142_v32 }
 0x24b   : > { %v1922_v52 = vpop.f32.mrb[24].mxu0  ;;  %v2189_v37 = vpop.f32.mrb[89].mxu1 }
 0x24c   : > { %v3104_v56 = vadd.f32 %v3103_v54, %v1922_v52  ;;  %v1924_v62 = vpop.f32.mrb[25].mxu0 }
 0x24e   : > { %v4753_v7 = vpop.f32.mrb[90].mxu1  ;;  %v4755_v8 = vadd.f32 %v3104_v56, %v2147_v34 }
 0x24f   : > { %v1927_v10 = vpop.f32.mrb[26].mxu0  ;;  %v2194_v12 = vpop.f32.mrb[91].mxu1 }
 0x250   : > { %v3107_v17 = vadd.f32 %v3106_v63, %v1927_v10  ;;  %v1929_v41 = vpop.f32.mrb[27].mxu0 }
 0x252   : > { %v4759_v32 = vpop.f32.mrb[92].mxu1  ;;  %v4761_v24 = vadd.f32 %v3107_v17, %v2152_v31 }
 0x253   : > { %v1932_v28 = vpop.f32.mrb[28].mxu0  ;;  %v2199_v30 = vpop.f32.mrb[93].mxu1 }
 0x254   : > { %v3110_v19 = vadd.f32 %v3109_v6, %v1932_v28  ;;  %v1934_v49 = vpop.f32.mrb[29].mxu0 }
 0x256   : > { %v4765_v34 = vpop.f32.mrb[94].mxu1  ;;  %v4767_v39 = vadd.f32 %v3110_v19, %v2157_v13 }
 0x257   : > { %v1937_v3 = vpop.f32.mrb[30].mxu0  ;;  %v2204_v42 = vpop.f32.mrb[95].mxu1 }
 0x258   : > { %v3113_v44 = vadd.f32 %v3112_v25, %v1937_v3  ;;  %v1939_v54 = vpop.f32.mrb[31].mxu0 }
 0x25a   : > { %v4771_v31 = vpop.f32.mrb[96].mxu1  ;;  %v4773_v52 = vadd.f32 %v3113_v44, %v2162_v40  ;;  %v3121_v40 = vadd.f32 %v4721_v58, %v4689_v45 }
 0x25b   : > { %v1942_v37 = vpop.f32.mrb[32].mxu0  ;;  %v2209_v56 = vpop.f32.mrb[97].mxu1 }
 0x25c   : > { %v3116_v62 = vadd.f32 %v3115_v48, %v1942_v37  ;;  %v1944_v63 = vpop.f32.mrb[33].mxu0 }
 0x25e   : > { %v4777_v13 = vpop.f32.mrb[98].mxu1  ;;  %v4780_v10 = vadd.f32 %v3116_v62, %v4725_v46  ;;  %v3124_v46 = vadd.f32 %v4721_v58, %v4692_v50 }
 0x25f   : > { %v1947_v12 = vpop.f32.mrb[34].mxu0  ;;  %v2214_v17 = vpop.f32.mrb[99].mxu1 }
 0x260   : > { %v3119_v41 = vadd.f32 %v3118_v29, %v1947_v12  ;;  %v1949_v35 = vpop.f32.mrb[35].mxu0 }
 0x262   : > { %v4784_v6 = vpop.f32.mrb[100].mxu1  ;;  %v4787_v28 = vadd.f32 %v3119_v41, %v4729_v57  ;;  %v3127_v57 = vadd.f32 %v4721_v58, %v4694_v51 }
 0x263   : > { %v1952_v30 = vpop.f32.mrb[36].mxu0  ;;  %v2219_v19 = vpop.f32.mrb[101].mxu1 }
 0x264   : > { %v3122_v43 = vadd.f32 %v3121_v40, %v1952_v30  ;;  %v1954_v49 = vpop.f32.mrb[37].mxu0 }
 0x266   : > { %v4791_v25 = vpop.f32.mrb[102].mxu1  ;;  %v4794_v3 = vadd.f32 %v3122_v43, %v4735_v18  ;;  %v3130_v18 = vadd.f32 %v4721_v58, %v4696_v53 }
 0x267   : > { %v1957_v42 = vpop.f32.mrb[38].mxu0  ;;  %v2224_v44 = vpop.f32.mrb[103].mxu1 }
 0x268   : > { %v3125_v45 = vadd.f32 %v3124_v46, %v1957_v42  ;;  %v1959_v54 = vpop.f32.mrb[39].mxu0 }
 0x26a   : > { %v4798_v48 = vpop.f32.mrb[104].mxu1  ;;  %v4801_v37 = vadd.f32 %v3125_v45, %v4741_v23  ;;  %v3133_v23 = vadd.f32 %v4721_v58, %v4698_v55 }
 0x26b   : > { %v1962_v56 = vpop.f32.mrb[40].mxu0  ;;  %v2229_v62 = vpop.f32.mrb[105].mxu1 }
 0x26c   : > { %v3128_v50 = vadd.f32 %v3127_v57, %v1962_v56  ;;  %v1964_v63 = vpop.f32.mrb[41].mxu0 }
 0x26e   : > { %v4805_v29 = vpop.f32.mrb[106].mxu1  ;;  %v4808_v12 = vadd.f32 %v3128_v50, %v4747_v59  ;;  %v3136_v59 = vadd.f32 %v4721_v58, %v4700_v47 }
 0x26f   : > { %v1967_v17 = vpop.f32.mrb[42].mxu0  ;;  %v2234_v41 = vpop.f32.mrb[107].mxu1 }
 0x270   : > { %v3131_v51 = vadd.f32 %v3130_v18, %v1967_v17  ;;  %v1969_v35 = vpop.f32.mrb[43].mxu0 }
 0x272   : > { %v4812_v40 = vpop.f32.mrb[108].mxu1  ;;  %v4815_v30 = vadd.f32 %v3131_v51, %v4753_v7  ;;  %v3139_v7 = vadd.f32 %v4721_v58, %v4702_v0 }
 0x273   : > { %v1972_v19 = vpop.f32.mrb[44].mxu0  ;;  %v2239_v43 = vpop.f32.mrb[109].mxu1 }
 0x274   : > { %v3134_v53 = vadd.f32 %v3133_v23, %v1972_v19  ;;  %v1974_v49 = vpop.f32.mrb[45].mxu0 }
 0x276   : > { %v4819_v46 = vpop.f32.mrb[110].mxu1  ;;  %v4822_v42 = vadd.f32 %v3134_v53, %v4759_v32  ;;  %v3142_v32 = vadd.f32 %v4721_v58, %v4704_v2 }
 0x277   : > { %v1977_v44 = vpop.f32.mrb[46].mxu0  ;;  %v2244_v45 = vpop.f32.mrb[111].mxu1 }
 0x278   : > { %v3137_v55 = vadd.f32 %v3136_v59, %v1977_v44  ;;  %v1979_v54 = vpop.f32.mrb[47].mxu0 }
 0x27a   : > { %v4826_v57 = vpop.f32.mrb[112].mxu1  ;;  %v4829_v56 = vadd.f32 %v3137_v55, %v4765_v34  ;;  %v3145_v34 = vadd.f32 %v4721_v58, %v4706_v4 }
 0x27b   : > { %v1982_v62 = vpop.f32.mrb[48].mxu0  ;;  %v4831_v50 = vpop.f32.mrb[113].mxu1 }
 0x27c   : > { %v3140_v47 = vadd.f32 %v3139_v7, %v1982_v62  ;;  %v1984_v63 = vpop.f32.mrb[49].mxu0 }
 0x27e   : > { %v4835_v18 = vpop.f32.mrb[114].mxu1  ;;  %v4838_v17 = vadd.f32 %v3140_v47, %v4771_v31  ;;  %v3148_v31 = vadd.f32 %v4721_v58, %v4708_v15 }
 0x27f   : > { %v1987_v41 = vpop.f32.mrb[50].mxu0  ;;  %v4840_v0 = vpop.f32.mrb[115].mxu1 }
 0x280   : > { %v3143_v51 = vadd.f32 %v3142_v32, %v1987_v41  ;;  %v1989_v35 = vpop.f32.mrb[51].mxu0 }
 0x282   : > { %v4844_v23 = vpop.f32.mrb[116].mxu1  ;;  %v4847_v19 = vadd.f32 %v3143_v51, %v4777_v13  ;;  %v3151_v13 = vadd.f32 %v4721_v58, %v4710_v11  ;;  %v3154_v51 = vadd.f32 %v4721_v58, %v4712_v16 }
 0x283   : > { %v1992_v43 = vpop.f32.mrb[52].mxu0  ;;  %v4849_v2 = vpop.f32.mrb[117].mxu1 }
 0x284   : > { %v3146_v53 = vadd.f32 %v3145_v34, %v1992_v43  ;;  %v1994_v49 = vpop.f32.mrb[53].mxu0 }
 0x286   : > { %v4853_v59 = vpop.f32.mrb[118].mxu1  ;;  %v4856_v44 = vadd.f32 %v3146_v53, %v4784_v6 }
 0x287   : > { %v1997_v45 = vpop.f32.mrb[54].mxu0  ;;  %v4858_v4 = vpop.f32.mrb[119].mxu1 }
 0x288   : > { %v3149_v55 = vadd.f32 %v3148_v31, %v1997_v45  ;;  %v1999_v54 = vpop.f32.mrb[55].mxu0 }
 0x28a   : > { %v2705_v7 = vpop.f32.mrb[120].mxu1  ;;  %v4863_v62 = vadd.f32 %v3149_v55, %v4791_v25 }
 0x28b   : > { %v2002_v47 = vpop.f32.mrb[56].mxu0  ;;  %v4866_v15 = vadd.f32 %v4737_v22, %v2705_v7  ;;  %v2352_v63 = vpop.f32.mrb[121].mxu1 }
 0x28c   : > { %v3152_v32 = vadd.f32 %v3151_v13, %v2002_v47  ;;  %v2004_v6 = vpop.f32.mrb[57].mxu0  ;;  %v2353_v41 = vadd.f32 %v4731_v5, %v2352_v63  ;;  %v3157_v5 = vadd.f32 %v4721_v58, %v4714_v36 }
 0x28e   : > { %v2708_v35 = vpop.f32.mrb[122].mxu1  ;;  %v4872_v34 = vadd.f32 %v3152_v32, %v4798_v48 }
 0x28f   : > { %v2007_v11 = vpop.f32.mrb[58].mxu0  ;;  %v4875_v25 = vadd.f32 %v4749_v27, %v2708_v35  ;;  %v2362_v43 = vpop.f32.mrb[123].mxu1 }
 0x290   : > { %v3155_v53 = vadd.f32 %v3154_v51, %v2007_v11  ;;  %v2009_v22 = vpop.f32.mrb[59].mxu0  ;;  %v4878_v49 = vadd.f32 %v4743_v60, %v2362_v43  ;;  %v3160_v60 = vadd.f32 %v4721_v58, %v4716_v20 }
 0x292   : > { %v2711_v31 = vpop.f32.mrb[124].mxu1  ;;  %v4883_v16 = vadd.f32 %v3155_v53, %v4805_v29 }
 0x293   : > { %v2012_v45 = vpop.f32.mrb[60].mxu0  ;;  %v4886_v48 = vadd.f32 %v4761_v24, %v2711_v31  ;;  %v2372_v55 = vpop.f32.mrb[125].mxu1 }
 0x294   : > { %v3158_v27 = vadd.f32 %v3157_v5, %v2012_v45  ;;  %v2014_v54 = vpop.f32.mrb[61].mxu0  ;;  %v4889_v13 = vadd.f32 %v4755_v8, %v2372_v55  ;;  %v3075_v8 = vadd.f32 %v4721_v58, %v4551_v61  ;;  %v2479_v45 = vmax.f32 %v2353_v41, 0.0 }
 0x296   : > { %v2714_v7 = vpop.f32.mrb[126].mxu1  ;;  %v4894_v36 = vadd.f32 %v3158_v27, %v4812_v40 }
 0x297   : > { %v2017_v47 = vpop.f32.mrb[62].mxu0  ;;  %v4897_v29 = vadd.f32 %v4773_v52, %v2714_v7  ;;  %v2382_v63 = vpop.f32.mrb[127].mxu1 }
 0x298   : > { %v3161_v24 = vadd.f32 %v3160_v60, %v2017_v47  ;;  %v2019_v32 = vpop.f32.mrb[63].mxu0  ;;  %v4900_v6 = vadd.f32 %v4767_v39, %v2382_v63  ;;  %v3077_v39 = vadd.f32 %v4721_v58, %v4557_v1  ;;  %v2480_v47 = vmax.f32 %v4866_v15, 0.0 }
 0x29a   : > { %v2717_v51 = vpop.f32.mrb[128].mxu1  ;;  %v4905_v20 = vadd.f32 %v3161_v24, %v4819_v46 }
 0x29b   : > { %v2087_v35 = vpop.f32.mrb[0].mxu0  ;;  %v4908_v40 = vadd.f32 %v4787_v28, %v2717_v51  ;;  %v2392_v11 = vpop.f32.mrb[129].mxu1 }
 0x29c   : > { %v3076_v52 = vadd.f32 %v3075_v8, %v2087_v35  ;;  %v2089_v43 = vpop.f32.mrb[1].mxu0  ;;  %v4911_v53 = vadd.f32 %v4780_v10, %v2392_v11  ;;  %v3079_v10 = vadd.f32 %v4721_v58, %v4563_v9  ;;  %v3081_v9 = vadd.f32 %v4721_v58, %v4570_v14 }
 0x29d   : > { %v2481_v11 = vmax.f32 %v4878_v49, 0.0  ;;  %v3083_v14 = vadd.f32 %v4721_v58, %v4578_v21  ;;  %v2488_v21 = vmax.f32 %v4908_v40, 0.0 }
 0x29e   : > { %v2313_v22 = vadd.f32 %v3076_v52, %v4831_v50  ;;  %v2720_v61 = vpop.f32.mrb[130].mxu1 }
 0x29f   : > { %v2092_v5 = vpop.f32.mrb[2].mxu0  ;;  %v4917_v46 = vadd.f32 %v4801_v37, %v2720_v61  ;;  %v2402_v31 = vpop.f32.mrb[131].mxu1 }
 0x2a0   : > { %v2471_v28 = vmax.f32 %v2313_v22, 0.0  ;;  %v3078_v55 = vadd.f32 %v3077_v39, %v2092_v5  ;;  %v2094_v27 = vpop.f32.mrb[3].mxu0  ;;  %v4920_v54 = vadd.f32 %v4794_v3, %v2402_v31  ;;  %v2482_v31 = vmax.f32 %v4875_v25, 0.0 }
 0x2a1   : > { %v3085_v27 = vadd.f32 %v4721_v58, %v4586_v26  ;;  %v3087_v25 = vadd.f32 %v4721_v58, %v4594_v33  ;;  %v2490_v33 = vmax.f32 %v4917_v46, 0.0 }
 0x2a2   : > { %v4924_v1 = vmax.f32 %v2471_v28, %v2479_v45  ;;  %v2318_v50 = vadd.f32 %v3078_v55, %v4826_v57  ;;  %v2723_v60 = vpop.f32.mrb[132].mxu1 }
 0x2a3   : > { %v2097_v7 = vpop.f32.mrb[4].mxu0  ;;  %v4928_v37 = vadd.f32 %v4815_v30, %v2723_v60  ;;  %v2412_v41 = vpop.f32.mrb[133].mxu1 }
 0x2a4   : > { %v2472_v63 = vmax.f32 %v2318_v50, 0.0  ;;  %v3080_v24 = vadd.f32 %v3079_v10, %v2097_v7  ;;  %v2099_v3 = vpop.f32.mrb[5].mxu0  ;;  %v4932_v32 = vadd.f32 %v4808_v12, %v2412_v41  ;;  %v2483_v41 = vmax.f32 %v4889_v13, 0.0 }
 0x2a5   : > { %v2489_v13 = vmax.f32 %v4920_v54, 0.0 }
 0x2a6   : > { %v2504_v57 = vmax.f32 %v2472_v63, %v2480_v47  ;;  %v2323_v8 = vadd.f32 %v3080_v24, %v4840_v0  ;;  %v2726_v51 = vpop.f32.mrb[134].mxu1 }
 0x2a7   : > { %v2102_v30 = vpop.f32.mrb[6].mxu0  ;;  %v4939_v35 = vadd.f32 %v4829_v56, %v2726_v51  ;;  %v2422_v15 = vpop.f32.mrb[135].mxu1 }
 0x2a8   : > { %v2473_v52 = vmax.f32 %v2323_v8, 0.0  ;;  %v3082_v43 = vadd.f32 %v3081_v9, %v2102_v30  ;;  %v2104_v39 = vpop.f32.mrb[7].mxu0  ;;  %v4943_v12 = vadd.f32 %v4822_v42, %v2422_v15 }
 0x2aa   : > { %v4950_v0 = vmax.f32 %v2473_v52, %v2481_v11  ;;  %v2328_v56 = vadd.f32 %v3082_v43, %v4835_v18  ;;  %v2729_v22 = vpop.f32.mrb[136].mxu1  ;;  %v2487_v18 = vmax.f32 %v4911_v53, 0.0  ;;  %v3089_v52 = vadd.f32 %v4721_v58, %v4602_v38 }
 0x2ab   : > { %v2107_v61 = vpop.f32.mrb[8].mxu0  ;;  %v2438_v49 = vadd.f32 %v4847_v19, %v2729_v22  ;;  %v2432_v5 = vpop.f32.mrb[137].mxu1  ;;  %v2484_v43 = vmax.f32 %v4886_v48, 0.0  ;;  %v2492_v22 = vmax.f32 %v4928_v37, 0.0  ;;  %v2491_v38 = vmax.f32 %v4932_v32, 0.0 }
 0x2ac   : > { %v2474_v45 = vmax.f32 %v2328_v56, 0.0  ;;  %v3084_v42 = vadd.f32 %v3083_v14, %v2107_v61  ;;  %v2109_v28 = vpop.f32.mrb[9].mxu0  ;;  %v2433_v55 = vadd.f32 %v4838_v17, %v2432_v5 }
 0x2ad   : > { %v2496_v10 = vmax.f32 %v2438_v49, 0.0 }
 0x2ae   : > { %v2506_v50 = vmax.f32 %v2474_v45, %v2482_v31  ;;  %v2333_v19 = vadd.f32 %v3084_v42, %v4849_v2  ;;  %v2495_v60 = vmax.f32 %v2433_v55, 0.0  ;;  %v2732_v7 = vpop.f32.mrb[138].mxu1  ;;  %v2485_v45 = vmax.f32 %v4900_v6, 0.0 }
 0x2af   : > { %v2512_v17 = vmax.f32 %v2488_v21, %v2496_v10  ;;  %v2112_v47 = vpop.f32.mrb[10].mxu0  ;;  %v2448_v26 = vadd.f32 %v4863_v62, %v2732_v7  ;;  %v2442_v63 = vpop.f32.mrb[139].mxu1  ;;  %v2493_v10 = vmax.f32 %v4943_v12, 0.0 }
 0x2b0   : > { %v2475_v40 = vmax.f32 %v2333_v19, 0.0  ;;  %v2511_v2 = vmax.f32 %v2487_v18, %v2495_v60  ;;  %v3086_v53 = vadd.f32 %v3085_v27, %v2112_v47  ;;  %v2114_v24 = vpop.f32.mrb[11].mxu0  ;;  %v2443_v3 = vadd.f32 %v4856_v44, %v2442_v63 }
 0x2b1   : > { %v2520_v9 = vmax.f32 %v2504_v57, %v2512_v17  ;;  %v2498_v62 = vmax.f32 %v2448_v26, 0.0 }
 0x2b2   : > { %v2507_v8 = vmax.f32 %v2475_v40, %v2483_v41  ;;  %v2519_v51 = vmax.f32 %v4924_v1, %v2511_v2  ;;  %v2338_v30 = vadd.f32 %v3086_v53, %v4844_v23  ;;  %v2497_v15 = vmax.f32 %v2443_v3, 0.0  ;;  %v2735_v11 = vpop.f32.mrb[140].mxu1 }
 0x2b3   : > { %2528 = vst [vmem:[%s4969_s10 + $0x8] sm:$0xff] %v2520_v9  ;;  %v2514_v44 = vmax.f32 %v2490_v33, %v2498_v62  ;;  %v2117_v46 = vpop.f32.mrb[12].mxu0  ;;  %v2458_v39 = vadd.f32 %v4883_v16, %v2735_v11  ;;  %v2452_v54 = vpop.f32.mrb[141].mxu1 }
 0x2b4   : > { %2527 = vst [vmem:[%s4969_s10] sm:$0xff] %v2519_v51  ;;  %v2476_v57 = vmax.f32 %v2338_v30, 0.0  ;;  %v2513_v14 = vmax.f32 %v2489_v13, %v2497_v15  ;;  %v3088_v1 = vadd.f32 %v3087_v25, %v2117_v46  ;;  %v2119_v56 = vpop.f32.mrb[13].mxu0  ;;  %v2453_v23 = vadd.f32 %v4872_v34, %v2452_v54 }
 0x2b5   : > { %v2522_v58 = vmax.f32 %v2506_v50, %v2514_v44  ;;  %v2500_v48 = vmax.f32 %v2458_v39, 0.0  ;;  %v2486_v25 = vmax.f32 %v4897_v29, 0.0 }
 0x2b6   : > { %v2508_v61 = vmax.f32 %v2476_v57, %v2484_v43  ;;  %v2521_v49 = vmax.f32 %v4950_v0, %v2513_v14  ;;  %v2343_v16 = vadd.f32 %v3088_v1, %v4858_v4  ;;  %v2499_v5 = vmax.f32 %v2453_v23, 0.0  ;;  %v2738_v31 = vpop.f32.mrb[142].mxu1 }
 0x2b7   : > { %2530 = vst [vmem:[%s4969_s10 + $0x18] sm:$0xff] %v2522_v58  ;;  %v2516_v42 = vmax.f32 %v2492_v22, %v2500_v48  ;;  %v2122_v28 = vpop.f32.mrb[14].mxu0  ;;  %v2468_v34 = vadd.f32 %v4905_v20, %v2738_v31  ;;  %v2462_v37 = vpop.f32.mrb[143].mxu1  ;;  %v2494_v4 = vmax.f32 %v4939_v35, 0.0 }
 0x2b8   : > { %2529 = vst [vmem:[%s4969_s10 + $0x10] sm:$0xff] %v2521_v49  ;;  %v2477_v32 = vmax.f32 %v2343_v16, 0.0  ;;  %v2515_v55 = vmax.f32 %v2491_v38, %v2499_v5  ;;  %v3090_v27 = vadd.f32 %v3089_v52, %v2122_v28  ;;  %v2124_v21 = vpop.f32.mrb[15].mxu0  ;;  %v2463_v0 = vadd.f32 %v4894_v36, %v2462_v37 }
 0x2b9   : > { %v2524_v6 = vmax.f32 %v2508_v61, %v2516_v42  ;;  %v2502_v18 = vmax.f32 %v2468_v34, 0.0 }
 0x2ba   : > { %v2509_v50 = vmax.f32 %v2477_v32, %v2485_v45  ;;  %v2523_v20 = vmax.f32 %v2507_v8, %v2515_v55  ;;  %v2348_v19 = vadd.f32 %v3090_v27, %v4853_v59  ;;  %v2501_v60 = vmax.f32 %v2463_v0, 0.0 }
 0x2bb   : > { %2532 = vst [vmem:[%s4969_s10 + $0x28] sm:$0xff] %v2524_v6  ;;  %v2518_v7 = vmax.f32 %v2494_v4, %v2502_v18 }
 0x2bc   : > { %2531 = vst [vmem:[%s4969_s10 + $0x20] sm:$0xff] %v2523_v20  ;;  %v2478_v41 = vmax.f32 %v2348_v19, 0.0  ;;  %v2517_v36 = vmax.f32 %v2493_v10, %v2501_v60 }
 0x2be   : > { %v2510_v17 = vmax.f32 %v2478_v41, %v2486_v25  ;;  %v2525_v35 = vmax.f32 %v2509_v50, %v2517_v36 }
 0x2c0   : > { %v2526_v47 = vmax.f32 %v2510_v17, %v2518_v7  ;;  %2533 = vst [vmem:[%s4969_s10 + $0x30] sm:$0xff] %v2525_v35 }
 0x2c2   : > { %2534 = vst [vmem:[%s4969_s10 + $0x38] sm:$0xff] %v2526_v47 }
 0x2c3 PF: > { %s13_s12 = sadd.s32 1, %s3387_s12  }
 0x2c4   : > { %p10_p5 = scmp.ge.s32.totalorder %s13_s12, 4  }
 0x2c6   :  { %12 = sbr.rel (!%p10_p5) target bundleno = 1 (0x1), region = 62 }

// kernel: cnn_forward.5
= control target key start
LH: loop header
LB: loop body
LE: loop exit
PB: predicated region body
PF: predicated region fallthrough
CT: control target
= control target key end

     0   :  { %s7202_s15 = smov 0   ;;  %s7204_s16 = smov 0   ;;  %s9025_s0 = inlined_call_operand.vmem [shape: bf16[2,8192], index: 0, kind: input, shape index: {}]   ;;  %s9026_s1 = inlined_call_operand.vmem [shape: bf16[8192,1024], index: 1, kind: input, shape index: {}]   ;;  %s9027_s2 = inlined_call_operand.vmem [shape: f32[1,1024], index: 2, kind: input, shape index: {}]   ;;  %s9028_s3 = inlined_call_operand.vmem [shape: f32[1024,128], index: 3, kind: input, shape index: {}]   ;;  %s9029_s4 = inlined_call_operand.vmem [shape: f32[2,2,128], index: 4, kind: output, shape index: {}]  }
   0x1   :  { %s7206_s17 = smov 0   ;;  %s7208_s18 = smov 0  }
   0x2   :  { %s7210_s19 = smov 0   ;;  %s7212_s20 = smov 0  }
   0x3   :  { %s7214_s21 = smov 0  }
   0x4 LB: > { %s23_s22 = sadd.s32 1, %s7164_s19  ;;  %s26_s23 = sadd.s32 1, %s7168_s20  ;;  %s7172_s21 = sphi %s7214_s21, %s14_s21   ;;  %s7168_s20 = sphi %s7212_s20, %s9035_s20   ;;  %s7164_s19 = sphi %s7210_s19, %s9034_s19   ;;  %s7160_s18 = sphi %s7208_s18, %s9033_s18   ;;  %s7156_s17 = sphi %s7206_s17, %s9032_s17   ;;  %s7152_s16 = sphi %s7204_s16, %s9031_s16   ;;  %s7148_s15 = sphi %s7202_s15, %s9030_s15  }
   0x5   : > { %p24_p0 = scmp.ge.s32.totalorder %s23_s22, 4  ;;  %p68_p1 = scmp.ne.s32.totalorder %s7152_s16, %s7148_s15 }
   0x6   : > { %p69_p2 = scmp.eq.s32.totalorder %s7172_s21, 0  ;;  %s61_s27 = sadd.s32 1, %s7152_s16 }
   0x7   : > { %s9037_s22 = smov (%p24_p0, %s23_s22), 0  ;;  %s9039_s23 = smov (!%p24_p0, %s26_s23), %s7168_s20 }
   0x8   : > { %p70_p3 = por %p69_p2, %p68_p1  ;;  %p28_p4 = scmp.ge.s32.totalorder %s9039_s23, 2 }
   0x9   : > { %s56_s24 = ssub.s32 %s7164_s19, %s9037_s22  ;;  %p5569_p6 = scmp.ge.s32.totalorder %s7172_s21, 8 }
   0xa   : > { %s9041_s23 = smov (%p28_p4, %s9039_s23), 0 }
   0xb   : > { %s57_s25 = ssub.s32 %s7168_s20, %s9041_s23  ;;  %172 = sbr.rel (%p5569_p6) target bundleno = 281 (0x119), region = 16 }
   0xc   : > { %s58_s26 = sor.u32 %s57_s25, %s56_s24 }
   0xd   : > { %p59_p5 = scmp.eq.s32.totalorder %s58_s26, 0 }
   0xf   : > { %s7253_s28 = scalar_select %p59_p5, %s7152_s16, %s61_s27  }
  0x12   : > { %183 = sbr.rel (!%p70_p3) target bundleno = 281 (0x119), region = 24  ;;  %s185_s29 = sand.u32 (%p70_p3), 1, %s7152_s16  }
  0x13   : > { %s5572_s30 = sshll.u32 (%p70_p3), %s7168_s20, 2  ;;  %s5570_s5 = sshll.u32 (%p70_p3), %s185_s29, 12 }
  0x14   : > { %s6098_s6 = sshll.u32 (%p70_p3), %s7164_s19, 11  ;;  %s7267_s12 = scalar_lea.vmem (%p70_p3), [#allocation3], %s5570_s5 }
  0x15   : > { %s191_s7 = sadd.s32 (%p70_p3), %s6098_s6, %s5572_s30 }
  0x16   : > { %s5574_s8 = sshll.u32 (%p70_p3), %s191_s7, 2 }
  0x17   : > { %s7262_s11 = scalar_lea.vmem (%p70_p3), %s9026_s1, %s5574_s8 }
  0x18   : > { %v206_v0 = vld [vmem:[%s7262_s11] sm:$0xff] (%p70_p3)  ;;  %v208_v1 = vld [vmem:[%s7262_s11 + $0x8] sm:$0xff] (%p70_p3) }
  0x19   : > { %v210_v2 = vld [vmem:[%s7262_s11 + $0x20] sm:$0xff]  ;;  %207 = vst [vmem:[%s7267_s12] sm:$0xff] %v206_v0  ;;  %209 = vst [vmem:[%s7267_s12 + $0x8] sm:$0xff] %v208_v1  ;;  %v212_v3 = vld [vmem:[%s7262_s11 + $0x28] sm:$0xff] }
  0x1a   : > { %211 = vst [vmem:[%s7267_s12 + $0x10] sm:$0xff] %v210_v2  ;;  %v214_v4 = vld [vmem:[%s7262_s11 + $0x40] sm:$0xff]  ;;  %v216_v5 = vld [vmem:[%s7262_s11 + $0x48] sm:$0xff]  ;;  %213 = vst [vmem:[%s7267_s12 + $0x18] sm:$0xff] %v212_v3 }
  0x1b   : > { %215 = vst [vmem:[%s7267_s12 + $0x20] sm:$0xff] %v214_v4  ;;  %217 = vst [vmem:[%s7267_s12 + $0x28] sm:$0xff] %v216_v5  ;;  %v218_v6 = vld [vmem:[%s7262_s11 + $0x60] sm:$0xff]  ;;  %v220_v7 = vld [vmem:[%s7262_s11 + $0x68] sm:$0xff] }
  0x1c   : > { %v222_v8 = vld [vmem:[%s7262_s11 + $0x80] sm:$0xff]  ;;  %219 = vst [vmem:[%s7267_s12 + $0x30] sm:$0xff] %v218_v6  ;;  %221 = vst [vmem:[%s7267_s12 + $0x38] sm:$0xff] %v220_v7  ;;  %v224_v9 = vld [vmem:[%s7262_s11 + $0x88] sm:$0xff] }
  0x1d   : > { %223 = vst [vmem:[%s7267_s12 + $0x40] sm:$0xff] %v222_v8  ;;  %v226_v10 = vld [vmem:[%s7262_s11 + $0xa0] sm:$0xff]  ;;  %v228_v11 = vld [vmem:[%s7262_s11 + $0xa8] sm:$0xff]  ;;  %225 = vst [vmem:[%s7267_s12 + $0x48] sm:$0xff] %v224_v9 }
  0x1e   : > { %227 = vst [vmem:[%s7267_s12 + $0x50] sm:$0xff] %v226_v10  ;;  %229 = vst [vmem:[%s7267_s12 + $0x58] sm:$0xff] %v228_v11  ;;  %v230_v12 = vld [vmem:[%s7262_s11 + $0xc0] sm:$0xff]  ;;  %v232_v13 = vld [vmem:[%s7262_s11 + $0xc8] sm:$0xff] }
  0x1f   : > { %v234_v14 = vld [vmem:[%s7262_s11 + $0xe0] sm:$0xff]  ;;  %231 = vst [vmem:[%s7267_s12 + $0x60] sm:$0xff] %v230_v12  ;;  %233 = vst [vmem:[%s7267_s12 + $0x68] sm:$0xff] %v232_v13  ;;  %v236_v15 = vld [vmem:[%s7262_s11 + $0xe8] sm:$0xff] }
  0x20   : > { %235 = vst [vmem:[%s7267_s12 + $0x70] sm:$0xff] %v234_v14  ;;  %v238_v16 = vld [vmem:[%s7262_s11 + $0x100] sm:$0xff]  ;;  %v240_v17 = vld [vmem:[%s7262_s11 + $0x108] sm:$0xff]  ;;  %237 = vst [vmem:[%s7267_s12 + $0x78] sm:$0xff] %v236_v15 }
  0x21   : > { %239 = vst [vmem:[%s7267_s12 + $0x80] sm:$0xff] %v238_v16  ;;  %241 = vst [vmem:[%s7267_s12 + $0x88] sm:$0xff] %v240_v17  ;;  %v242_v18 = vld [vmem:[%s7262_s11 + $0x120] sm:$0xff]  ;;  %v244_v19 = vld [vmem:[%s7262_s11 + $0x128] sm:$0xff] }
  0x22   : > { %v246_v20 = vld [vmem:[%s7262_s11 + $0x140] sm:$0xff]  ;;  %243 = vst [vmem:[%s7267_s12 + $0x90] sm:$0xff] %v242_v18  ;;  %245 = vst [vmem:[%s7267_s12 + $0x98] sm:$0xff] %v244_v19  ;;  %v248_v21 = vld [vmem:[%s7262_s11 + $0x148] sm:$0xff] }
  0x23   : > { %247 = vst [vmem:[%s7267_s12 + $0xa0] sm:$0xff] %v246_v20  ;;  %v250_v22 = vld [vmem:[%s7262_s11 + $0x160] sm:$0xff]  ;;  %v252_v23 = vld [vmem:[%s7262_s11 + $0x168] sm:$0xff]  ;;  %249 = vst [vmem:[%s7267_s12 + $0xa8] sm:$0xff] %v248_v21 }
  0x24   : > { %251 = vst [vmem:[%s7267_s12 + $0xb0] sm:$0xff] %v250_v22  ;;  %253 = vst [vmem:[%s7267_s12 + $0xb8] sm:$0xff] %v252_v23  ;;  %v254_v24 = vld [vmem:[%s7262_s11 + $0x180] sm:$0xff]  ;;  %v256_v25 = vld [vmem:[%s7262_s11 + $0x188] sm:$0xff] }
  0x25   : > { %v258_v26 = vld [vmem:[%s7262_s11 + $0x1a0] sm:$0xff]  ;;  %255 = vst [vmem:[%s7267_s12 + $0xc0] sm:$0xff] %v254_v24  ;;  %257 = vst [vmem:[%s7267_s12 + $0xc8] sm:$0xff] %v256_v25  ;;  %v260_v27 = vld [vmem:[%s7262_s11 + $0x1a8] sm:$0xff] }
  0x26   : > { %259 = vst [vmem:[%s7267_s12 + $0xd0] sm:$0xff] %v258_v26  ;;  %v262_v28 = vld [vmem:[%s7262_s11 + $0x1c0] sm:$0xff]  ;;  %v264_v29 = vld [vmem:[%s7262_s11 + $0x1c8] sm:$0xff]  ;;  %261 = vst [vmem:[%s7267_s12 + $0xd8] sm:$0xff] %v260_v27 }
  0x27   : > { %263 = vst [vmem:[%s7267_s12 + $0xe0] sm:$0xff] %v262_v28  ;;  %265 = vst [vmem:[%s7267_s12 + $0xe8] sm:$0xff] %v264_v29  ;;  %v266_v30 = vld [vmem:[%s7262_s11 + $0x1e0] sm:$0xff]  ;;  %v268_v31 = vld [vmem:[%s7262_s11 + $0x1e8] sm:$0xff] }
  0x28   : > { %v270_v32 = vld [vmem:[%s7262_s11 + $0x200] sm:$0xff]  ;;  %267 = vst [vmem:[%s7267_s12 + $0xf0] sm:$0xff] %v266_v30  ;;  %269 = vst [vmem:[%s7267_s12 + $0xf8] sm:$0xff] %v268_v31  ;;  %v272_v33 = vld [vmem:[%s7262_s11 + $0x208] sm:$0xff] }
  0x29   : > { %271 = vst [vmem:[%s7267_s12 + $0x100] sm:$0xff] %v270_v32  ;;  %v274_v34 = vld [vmem:[%s7262_s11 + $0x220] sm:$0xff]  ;;  %v276_v35 = vld [vmem:[%s7262_s11 + $0x228] sm:$0xff]  ;;  %273 = vst [vmem:[%s7267_s12 + $0x108] sm:$0xff] %v272_v33 }
  0x2a   : > { %275 = vst [vmem:[%s7267_s12 + $0x110] sm:$0xff] %v274_v34  ;;  %277 = vst [vmem:[%s7267_s12 + $0x118] sm:$0xff] %v276_v35  ;;  %v278_v36 = vld [vmem:[%s7262_s11 + $0x240] sm:$0xff]  ;;  %v280_v37 = vld [vmem:[%s7262_s11 + $0x248] sm:$0xff] }
  0x2b   : > { %v282_v38 = vld [vmem:[%s7262_s11 + $0x260] sm:$0xff]  ;;  %279 = vst [vmem:[%s7267_s12 + $0x120] sm:$0xff] %v278_v36  ;;  %281 = vst [vmem:[%s7267_s12 + $0x128] sm:$0xff] %v280_v37  ;;  %v284_v39 = vld [vmem:[%s7262_s11 + $0x268] sm:$0xff] }
  0x2c   : > { %283 = vst [vmem:[%s7267_s12 + $0x130] sm:$0xff] %v282_v38  ;;  %v286_v40 = vld [vmem:[%s7262_s11 + $0x280] sm:$0xff]  ;;  %v288_v41 = vld [vmem:[%s7262_s11 + $0x288] sm:$0xff]  ;;  %285 = vst [vmem:[%s7267_s12 + $0x138] sm:$0xff] %v284_v39 }
  0x2d   : > { %287 = vst [vmem:[%s7267_s12 + $0x140] sm:$0xff] %v286_v40  ;;  %289 = vst [vmem:[%s7267_s12 + $0x148] sm:$0xff] %v288_v41  ;;  %v290_v42 = vld [vmem:[%s7262_s11 + $0x2a0] sm:$0xff]  ;;  %v292_v43 = vld [vmem:[%s7262_s11 + $0x2a8] sm:$0xff] }
  0x2e   : > { %v294_v44 = vld [vmem:[%s7262_s11 + $0x2c0] sm:$0xff]  ;;  %291 = vst [vmem:[%s7267_s12 + $0x150] sm:$0xff] %v290_v42  ;;  %293 = vst [vmem:[%s7267_s12 + $0x158] sm:$0xff] %v292_v43  ;;  %v296_v45 = vld [vmem:[%s7262_s11 + $0x2c8] sm:$0xff] }
  0x2f   : > { %295 = vst [vmem:[%s7267_s12 + $0x160] sm:$0xff] %v294_v44  ;;  %v298_v46 = vld [vmem:[%s7262_s11 + $0x2e0] sm:$0xff]  ;;  %v300_v47 = vld [vmem:[%s7262_s11 + $0x2e8] sm:$0xff]  ;;  %297 = vst [vmem:[%s7267_s12 + $0x168] sm:$0xff] %v296_v45 }
  0x30   : > { %299 = vst [vmem:[%s7267_s12 + $0x170] sm:$0xff] %v298_v46  ;;  %301 = vst [vmem:[%s7267_s12 + $0x178] sm:$0xff] %v300_v47  ;;  %v302_v48 = vld [vmem:[%s7262_s11 + $0x300] sm:$0xff]  ;;  %v304_v49 = vld [vmem:[%s7262_s11 + $0x308] sm:$0xff] }
  0x31   : > { %v306_v50 = vld [vmem:[%s7262_s11 + $0x320] sm:$0xff]  ;;  %303 = vst [vmem:[%s7267_s12 + $0x180] sm:$0xff] %v302_v48  ;;  %305 = vst [vmem:[%s7267_s12 + $0x188] sm:$0xff] %v304_v49  ;;  %v308_v51 = vld [vmem:[%s7262_s11 + $0x328] sm:$0xff] }
  0x32   : > { %307 = vst [vmem:[%s7267_s12 + $0x190] sm:$0xff] %v306_v50  ;;  %v310_v52 = vld [vmem:[%s7262_s11 + $0x340] sm:$0xff]  ;;  %v312_v53 = vld [vmem:[%s7262_s11 + $0x348] sm:$0xff]  ;;  %309 = vst [vmem:[%s7267_s12 + $0x198] sm:$0xff] %v308_v51 }
  0x33   : > { %311 = vst [vmem:[%s7267_s12 + $0x1a0] sm:$0xff] %v310_v52  ;;  %313 = vst [vmem:[%s7267_s12 + $0x1a8] sm:$0xff] %v312_v53  ;;  %v314_v54 = vld [vmem:[%s7262_s11 + $0x360] sm:$0xff]  ;;  %v316_v55 = vld [vmem:[%s7262_s11 + $0x368] sm:$0xff] }
  0x34   : > { %v318_v56 = vld [vmem:[%s7262_s11 + $0x380] sm:$0xff]  ;;  %315 = vst [vmem:[%s7267_s12 + $0x1b0] sm:$0xff] %v314_v54  ;;  %317 = vst [vmem:[%s7267_s12 + $0x1b8] sm:$0xff] %v316_v55  ;;  %v320_v57 = vld [vmem:[%s7262_s11 + $0x388] sm:$0xff] }
  0x35   : > { %319 = vst [vmem:[%s7267_s12 + $0x1c0] sm:$0xff] %v318_v56  ;;  %v322_v58 = vld [vmem:[%s7262_s11 + $0x3a0] sm:$0xff]  ;;  %v324_v59 = vld [vmem:[%s7262_s11 + $0x3a8] sm:$0xff]  ;;  %321 = vst [vmem:[%s7267_s12 + $0x1c8] sm:$0xff] %v320_v57 }
  0x36   : > { %323 = vst [vmem:[%s7267_s12 + $0x1d0] sm:$0xff] %v322_v58  ;;  %325 = vst [vmem:[%s7267_s12 + $0x1d8] sm:$0xff] %v324_v59  ;;  %v326_v60 = vld [vmem:[%s7262_s11 + $0x3c0] sm:$0xff]  ;;  %v328_v61 = vld [vmem:[%s7262_s11 + $0x3c8] sm:$0xff] }
  0x37   : > { %v330_v62 = vld [vmem:[%s7262_s11 + $0x3e0] sm:$0xff]  ;;  %327 = vst [vmem:[%s7267_s12 + $0x1e0] sm:$0xff] %v326_v60  ;;  %329 = vst [vmem:[%s7267_s12 + $0x1e8] sm:$0xff] %v328_v61  ;;  %v332_v63 = vld [vmem:[%s7262_s11 + $0x3e8] sm:$0xff] }
  0x38   : > { %331 = vst [vmem:[%s7267_s12 + $0x1f0] sm:$0xff] %v330_v62  ;;  %v334_v0 = vld [vmem:[%s7262_s11 + $0x400] sm:$0xff]  ;;  %v336_v1 = vld [vmem:[%s7262_s11 + $0x408] sm:$0xff]  ;;  %333 = vst [vmem:[%s7267_s12 + $0x1f8] sm:$0xff] %v332_v63 }
  0x39   : > { %335 = vst [vmem:[%s7267_s12 + $0x200] sm:$0xff] %v334_v0  ;;  %337 = vst [vmem:[%s7267_s12 + $0x208] sm:$0xff] %v336_v1  ;;  %v338_v2 = vld [vmem:[%s7262_s11 + $0x420] sm:$0xff]  ;;  %v340_v3 = vld [vmem:[%s7262_s11 + $0x428] sm:$0xff] }
  0x3a   : > { %v342_v4 = vld [vmem:[%s7262_s11 + $0x440] sm:$0xff]  ;;  %339 = vst [vmem:[%s7267_s12 + $0x210] sm:$0xff] %v338_v2  ;;  %341 = vst [vmem:[%s7267_s12 + $0x218] sm:$0xff] %v340_v3  ;;  %v344_v5 = vld [vmem:[%s7262_s11 + $0x448] sm:$0xff] }
  0x3b   : > { %343 = vst [vmem:[%s7267_s12 + $0x220] sm:$0xff] %v342_v4  ;;  %v346_v6 = vld [vmem:[%s7262_s11 + $0x460] sm:$0xff]  ;;  %v348_v7 = vld [vmem:[%s7262_s11 + $0x468] sm:$0xff]  ;;  %345 = vst [vmem:[%s7267_s12 + $0x228] sm:$0xff] %v344_v5 }
  0x3c   : > { %347 = vst [vmem:[%s7267_s12 + $0x230] sm:$0xff] %v346_v6  ;;  %349 = vst [vmem:[%s7267_s12 + $0x238] sm:$0xff] %v348_v7  ;;  %v350_v8 = vld [vmem:[%s7262_s11 + $0x480] sm:$0xff]  ;;  %v352_v9 = vld [vmem:[%s7262_s11 + $0x488] sm:$0xff] }
  0x3d   : > { %v354_v10 = vld [vmem:[%s7262_s11 + $0x4a0] sm:$0xff]  ;;  %351 = vst [vmem:[%s7267_s12 + $0x240] sm:$0xff] %v350_v8  ;;  %353 = vst [vmem:[%s7267_s12 + $0x248] sm:$0xff] %v352_v9  ;;  %v356_v11 = vld [vmem:[%s7262_s11 + $0x4a8] sm:$0xff] }
  0x3e   : > { %355 = vst [vmem:[%s7267_s12 + $0x250] sm:$0xff] %v354_v10  ;;  %v358_v12 = vld [vmem:[%s7262_s11 + $0x4c0] sm:$0xff]  ;;  %v360_v13 = vld [vmem:[%s7262_s11 + $0x4c8] sm:$0xff]  ;;  %357 = vst [vmem:[%s7267_s12 + $0x258] sm:$0xff] %v356_v11 }
  0x3f   : > { %359 = vst [vmem:[%s7267_s12 + $0x260] sm:$0xff] %v358_v12  ;;  %361 = vst [vmem:[%s7267_s12 + $0x268] sm:$0xff] %v360_v13  ;;  %v362_v14 = vld [vmem:[%s7262_s11 + $0x4e0] sm:$0xff]  ;;  %v364_v15 = vld [vmem:[%s7262_s11 + $0x4e8] sm:$0xff] }
  0x40   : > { %v366_v16 = vld [vmem:[%s7262_s11 + $0x500] sm:$0xff]  ;;  %363 = vst [vmem:[%s7267_s12 + $0x270] sm:$0xff] %v362_v14  ;;  %365 = vst [vmem:[%s7267_s12 + $0x278] sm:$0xff] %v364_v15  ;;  %v368_v17 = vld [vmem:[%s7262_s11 + $0x508] sm:$0xff] }
  0x41   : > { %367 = vst [vmem:[%s7267_s12 + $0x280] sm:$0xff] %v366_v16  ;;  %v370_v18 = vld [vmem:[%s7262_s11 + $0x520] sm:$0xff]  ;;  %v372_v19 = vld [vmem:[%s7262_s11 + $0x528] sm:$0xff]  ;;  %369 = vst [vmem:[%s7267_s12 + $0x288] sm:$0xff] %v368_v17 }
  0x42   : > { %371 = vst [vmem:[%s7267_s12 + $0x290] sm:$0xff] %v370_v18  ;;  %373 = vst [vmem:[%s7267_s12 + $0x298] sm:$0xff] %v372_v19  ;;  %v374_v20 = vld [vmem:[%s7262_s11 + $0x540] sm:$0xff]  ;;  %v376_v21 = vld [vmem:[%s7262_s11 + $0x548] sm:$0xff] }
  0x43   : > { %v378_v22 = vld [vmem:[%s7262_s11 + $0x560] sm:$0xff]  ;;  %375 = vst [vmem:[%s7267_s12 + $0x2a0] sm:$0xff] %v374_v20  ;;  %377 = vst [vmem:[%s7267_s12 + $0x2a8] sm:$0xff] %v376_v21  ;;  %v380_v23 = vld [vmem:[%s7262_s11 + $0x568] sm:$0xff] }
  0x44   : > { %379 = vst [vmem:[%s7267_s12 + $0x2b0] sm:$0xff] %v378_v22  ;;  %v382_v24 = vld [vmem:[%s7262_s11 + $0x580] sm:$0xff]  ;;  %v384_v25 = vld [vmem:[%s7262_s11 + $0x588] sm:$0xff]  ;;  %381 = vst [vmem:[%s7267_s12 + $0x2b8] sm:$0xff] %v380_v23 }
  0x45   : > { %383 = vst [vmem:[%s7267_s12 + $0x2c0] sm:$0xff] %v382_v24  ;;  %385 = vst [vmem:[%s7267_s12 + $0x2c8] sm:$0xff] %v384_v25  ;;  %v386_v26 = vld [vmem:[%s7262_s11 + $0x5a0] sm:$0xff]  ;;  %v388_v27 = vld [vmem:[%s7262_s11 + $0x5a8] sm:$0xff] }
  0x46   : > { %v390_v28 = vld [vmem:[%s7262_s11 + $0x5c0] sm:$0xff]  ;;  %387 = vst [vmem:[%s7267_s12 + $0x2d0] sm:$0xff] %v386_v26  ;;  %389 = vst [vmem:[%s7267_s12 + $0x2d8] sm:$0xff] %v388_v27  ;;  %v392_v29 = vld [vmem:[%s7262_s11 + $0x5c8] sm:$0xff] }
  0x47   : > { %391 = vst [vmem:[%s7267_s12 + $0x2e0] sm:$0xff] %v390_v28  ;;  %v394_v30 = vld [vmem:[%s7262_s11 + $0x5e0] sm:$0xff]  ;;  %v396_v31 = vld [vmem:[%s7262_s11 + $0x5e8] sm:$0xff]  ;;  %393 = vst [vmem:[%s7267_s12 + $0x2e8] sm:$0xff] %v392_v29 }
  0x48   : > { %395 = vst [vmem:[%s7267_s12 + $0x2f0] sm:$0xff] %v394_v30  ;;  %397 = vst [vmem:[%s7267_s12 + $0x2f8] sm:$0xff] %v396_v31  ;;  %v398_v32 = vld [vmem:[%s7262_s11 + $0x600] sm:$0xff]  ;;  %v400_v33 = vld [vmem:[%s7262_s11 + $0x608] sm:$0xff] }
  0x49   : > { %v402_v34 = vld [vmem:[%s7262_s11 + $0x620] sm:$0xff]  ;;  %399 = vst [vmem:[%s7267_s12 + $0x300] sm:$0xff] %v398_v32  ;;  %401 = vst [vmem:[%s7267_s12 + $0x308] sm:$0xff] %v400_v33  ;;  %v404_v35 = vld [vmem:[%s7262_s11 + $0x628] sm:$0xff] }
  0x4a   : > { %403 = vst [vmem:[%s7267_s12 + $0x310] sm:$0xff] %v402_v34  ;;  %v406_v36 = vld [vmem:[%s7262_s11 + $0x640] sm:$0xff]  ;;  %v408_v37 = vld [vmem:[%s7262_s11 + $0x648] sm:$0xff]  ;;  %405 = vst [vmem:[%s7267_s12 + $0x318] sm:$0xff] %v404_v35 }
  0x4b   : > { %407 = vst [vmem:[%s7267_s12 + $0x320] sm:$0xff] %v406_v36  ;;  %409 = vst [vmem:[%s7267_s12 + $0x328] sm:$0xff] %v408_v37  ;;  %v410_v38 = vld [vmem:[%s7262_s11 + $0x660] sm:$0xff]  ;;  %v412_v39 = vld [vmem:[%s7262_s11 + $0x668] sm:$0xff] }
  0x4c   : > { %v414_v40 = vld [vmem:[%s7262_s11 + $0x680] sm:$0xff]  ;;  %411 = vst [vmem:[%s7267_s12 + $0x330] sm:$0xff] %v410_v38  ;;  %413 = vst [vmem:[%s7267_s12 + $0x338] sm:$0xff] %v412_v39  ;;  %v416_v41 = vld [vmem:[%s7262_s11 + $0x688] sm:$0xff] }
  0x4d   : > { %415 = vst [vmem:[%s7267_s12 + $0x340] sm:$0xff] %v414_v40  ;;  %v418_v42 = vld [vmem:[%s7262_s11 + $0x6a0] sm:$0xff]  ;;  %v420_v43 = vld [vmem:[%s7262_s11 + $0x6a8] sm:$0xff]  ;;  %417 = vst [vmem:[%s7267_s12 + $0x348] sm:$0xff] %v416_v41 }
  0x4e   : > { %419 = vst [vmem:[%s7267_s12 + $0x350] sm:$0xff] %v418_v42  ;;  %421 = vst [vmem:[%s7267_s12 + $0x358] sm:$0xff] %v420_v43  ;;  %v422_v44 = vld [vmem:[%s7262_s11 + $0x6c0] sm:$0xff]  ;;  %v424_v45 = vld [vmem:[%s7262_s11 + $0x6c8] sm:$0xff] }
  0x4f   : > { %v426_v46 = vld [vmem:[%s7262_s11 + $0x6e0] sm:$0xff]  ;;  %423 = vst [vmem:[%s7267_s12 + $0x360] sm:$0xff] %v422_v44  ;;  %425 = vst [vmem:[%s7267_s12 + $0x368] sm:$0xff] %v424_v45  ;;  %v428_v47 = vld [vmem:[%s7262_s11 + $0x6e8] sm:$0xff] }
  0x50   : > { %427 = vst [vmem:[%s7267_s12 + $0x370] sm:$0xff] %v426_v46  ;;  %v430_v48 = vld [vmem:[%s7262_s11 + $0x700] sm:$0xff]  ;;  %v432_v49 = vld [vmem:[%s7262_s11 + $0x708] sm:$0xff]  ;;  %429 = vst [vmem:[%s7267_s12 + $0x378] sm:$0xff] %v428_v47 }
  0x51   : > { %431 = vst [vmem:[%s7267_s12 + $0x380] sm:$0xff] %v430_v48  ;;  %433 = vst [vmem:[%s7267_s12 + $0x388] sm:$0xff] %v432_v49  ;;  %v434_v50 = vld [vmem:[%s7262_s11 + $0x720] sm:$0xff]  ;;  %v436_v51 = vld [vmem:[%s7262_s11 + $0x728] sm:$0xff] }
  0x52   : > { %v438_v52 = vld [vmem:[%s7262_s11 + $0x740] sm:$0xff]  ;;  %435 = vst [vmem:[%s7267_s12 + $0x390] sm:$0xff] %v434_v50  ;;  %437 = vst [vmem:[%s7267_s12 + $0x398] sm:$0xff] %v436_v51  ;;  %v440_v53 = vld [vmem:[%s7262_s11 + $0x748] sm:$0xff] }
  0x53   : > { %439 = vst [vmem:[%s7267_s12 + $0x3a0] sm:$0xff] %v438_v52  ;;  %v442_v54 = vld [vmem:[%s7262_s11 + $0x760] sm:$0xff]  ;;  %v444_v55 = vld [vmem:[%s7262_s11 + $0x768] sm:$0xff]  ;;  %441 = vst [vmem:[%s7267_s12 + $0x3a8] sm:$0xff] %v440_v53 }
  0x54   : > { %443 = vst [vmem:[%s7267_s12 + $0x3b0] sm:$0xff] %v442_v54  ;;  %445 = vst [vmem:[%s7267_s12 + $0x3b8] sm:$0xff] %v444_v55  ;;  %v446_v56 = vld [vmem:[%s7262_s11 + $0x780] sm:$0xff]  ;;  %v448_v57 = vld [vmem:[%s7262_s11 + $0x788] sm:$0xff] }
  0x55   : > { %v450_v58 = vld [vmem:[%s7262_s11 + $0x7a0] sm:$0xff]  ;;  %447 = vst [vmem:[%s7267_s12 + $0x3c0] sm:$0xff] %v446_v56  ;;  %449 = vst [vmem:[%s7267_s12 + $0x3c8] sm:$0xff] %v448_v57  ;;  %v452_v59 = vld [vmem:[%s7262_s11 + $0x7a8] sm:$0xff] }
  0x56   : > { %451 = vst [vmem:[%s7267_s12 + $0x3d0] sm:$0xff] %v450_v58  ;;  %v454_v60 = vld [vmem:[%s7262_s11 + $0x7c0] sm:$0xff]  ;;  %v456_v61 = vld [vmem:[%s7262_s11 + $0x7c8] sm:$0xff]  ;;  %453 = vst [vmem:[%s7267_s12 + $0x3d8] sm:$0xff] %v452_v59 }
  0x57   : > { %455 = vst [vmem:[%s7267_s12 + $0x3e0] sm:$0xff] %v454_v60  ;;  %457 = vst [vmem:[%s7267_s12 + $0x3e8] sm:$0xff] %v456_v61  ;;  %v458_v62 = vld [vmem:[%s7262_s11 + $0x7e0] sm:$0xff]  ;;  %v460_v63 = vld [vmem:[%s7262_s11 + $0x7e8] sm:$0xff] }
  0x58   : > { %v462_v0 = vld [vmem:[%s7262_s11 + $0x800] sm:$0xff]  ;;  %459 = vst [vmem:[%s7267_s12 + $0x3f0] sm:$0xff] %v458_v62  ;;  %461 = vst [vmem:[%s7267_s12 + $0x3f8] sm:$0xff] %v460_v63  ;;  %v464_v1 = vld [vmem:[%s7262_s11 + $0x808] sm:$0xff] }
  0x59   : > { %463 = vst [vmem:[%s7267_s12 + $0x400] sm:$0xff] %v462_v0  ;;  %v466_v2 = vld [vmem:[%s7262_s11 + $0x820] sm:$0xff]  ;;  %v468_v3 = vld [vmem:[%s7262_s11 + $0x828] sm:$0xff]  ;;  %465 = vst [vmem:[%s7267_s12 + $0x408] sm:$0xff] %v464_v1 }
  0x5a   : > { %467 = vst [vmem:[%s7267_s12 + $0x410] sm:$0xff] %v466_v2  ;;  %469 = vst [vmem:[%s7267_s12 + $0x418] sm:$0xff] %v468_v3  ;;  %v470_v4 = vld [vmem:[%s7262_s11 + $0x840] sm:$0xff]  ;;  %v472_v5 = vld [vmem:[%s7262_s11 + $0x848] sm:$0xff] }
  0x5b   : > { %v474_v6 = vld [vmem:[%s7262_s11 + $0x860] sm:$0xff]  ;;  %471 = vst [vmem:[%s7267_s12 + $0x420] sm:$0xff] %v470_v4  ;;  %473 = vst [vmem:[%s7267_s12 + $0x428] sm:$0xff] %v472_v5  ;;  %v476_v7 = vld [vmem:[%s7262_s11 + $0x868] sm:$0xff] }
  0x5c   : > { %475 = vst [vmem:[%s7267_s12 + $0x430] sm:$0xff] %v474_v6  ;;  %v478_v8 = vld [vmem:[%s7262_s11 + $0x880] sm:$0xff]  ;;  %v480_v9 = vld [vmem:[%s7262_s11 + $0x888] sm:$0xff]  ;;  %477 = vst [vmem:[%s7267_s12 + $0x438] sm:$0xff] %v476_v7 }
  0x5d   : > { %479 = vst [vmem:[%s7267_s12 + $0x440] sm:$0xff] %v478_v8  ;;  %481 = vst [vmem:[%s7267_s12 + $0x448] sm:$0xff] %v480_v9  ;;  %v482_v10 = vld [vmem:[%s7262_s11 + $0x8a0] sm:$0xff]  ;;  %v484_v11 = vld [vmem:[%s7262_s11 + $0x8a8] sm:$0xff] }
  0x5e   : > { %v486_v12 = vld [vmem:[%s7262_s11 + $0x8c0] sm:$0xff]  ;;  %483 = vst [vmem:[%s7267_s12 + $0x450] sm:$0xff] %v482_v10  ;;  %485 = vst [vmem:[%s7267_s12 + $0x458] sm:$0xff] %v484_v11  ;;  %v488_v13 = vld [vmem:[%s7262_s11 + $0x8c8] sm:$0xff] }
  0x5f   : > { %487 = vst [vmem:[%s7267_s12 + $0x460] sm:$0xff] %v486_v12  ;;  %v490_v14 = vld [vmem:[%s7262_s11 + $0x8e0] sm:$0xff]  ;;  %v492_v15 = vld [vmem:[%s7262_s11 + $0x8e8] sm:$0xff]  ;;  %489 = vst [vmem:[%s7267_s12 + $0x468] sm:$0xff] %v488_v13 }
  0x60   : > { %491 = vst [vmem:[%s7267_s12 + $0x470] sm:$0xff] %v490_v14  ;;  %493 = vst [vmem:[%s7267_s12 + $0x478] sm:$0xff] %v492_v15  ;;  %v494_v16 = vld [vmem:[%s7262_s11 + $0x900] sm:$0xff]  ;;  %v496_v17 = vld [vmem:[%s7262_s11 + $0x908] sm:$0xff] }
  0x61   : > { %v498_v18 = vld [vmem:[%s7262_s11 + $0x920] sm:$0xff]  ;;  %495 = vst [vmem:[%s7267_s12 + $0x480] sm:$0xff] %v494_v16  ;;  %497 = vst [vmem:[%s7267_s12 + $0x488] sm:$0xff] %v496_v17  ;;  %v500_v19 = vld [vmem:[%s7262_s11 + $0x928] sm:$0xff] }
  0x62   : > { %499 = vst [vmem:[%s7267_s12 + $0x490] sm:$0xff] %v498_v18  ;;  %v502_v20 = vld [vmem:[%s7262_s11 + $0x940] sm:$0xff]  ;;  %v504_v21 = vld [vmem:[%s7262_s11 + $0x948] sm:$0xff]  ;;  %501 = vst [vmem:[%s7267_s12 + $0x498] sm:$0xff] %v500_v19 }
  0x63   : > { %503 = vst [vmem:[%s7267_s12 + $0x4a0] sm:$0xff] %v502_v20  ;;  %505 = vst [vmem:[%s7267_s12 + $0x4a8] sm:$0xff] %v504_v21  ;;  %v506_v22 = vld [vmem:[%s7262_s11 + $0x960] sm:$0xff]  ;;  %v508_v23 = vld [vmem:[%s7262_s11 + $0x968] sm:$0xff] }
  0x64   : > { %v510_v24 = vld [vmem:[%s7262_s11 + $0x980] sm:$0xff]  ;;  %507 = vst [vmem:[%s7267_s12 + $0x4b0] sm:$0xff] %v506_v22  ;;  %509 = vst [vmem:[%s7267_s12 + $0x4b8] sm:$0xff] %v508_v23  ;;  %v512_v25 = vld [vmem:[%s7262_s11 + $0x988] sm:$0xff] }
  0x65   : > { %511 = vst [vmem:[%s7267_s12 + $0x4c0] sm:$0xff] %v510_v24  ;;  %v514_v26 = vld [vmem:[%s7262_s11 + $0x9a0] sm:$0xff]  ;;  %v516_v27 = vld [vmem:[%s7262_s11 + $0x9a8] sm:$0xff]  ;;  %513 = vst [vmem:[%s7267_s12 + $0x4c8] sm:$0xff] %v512_v25 }
  0x66   : > { %515 = vst [vmem:[%s7267_s12 + $0x4d0] sm:$0xff] %v514_v26  ;;  %517 = vst [vmem:[%s7267_s12 + $0x4d8] sm:$0xff] %v516_v27  ;;  %v518_v28 = vld [vmem:[%s7262_s11 + $0x9c0] sm:$0xff]  ;;  %v520_v29 = vld [vmem:[%s7262_s11 + $0x9c8] sm:$0xff] }
  0x67   : > { %v522_v30 = vld [vmem:[%s7262_s11 + $0x9e0] sm:$0xff]  ;;  %519 = vst [vmem:[%s7267_s12 + $0x4e0] sm:$0xff] %v518_v28  ;;  %521 = vst [vmem:[%s7267_s12 + $0x4e8] sm:$0xff] %v520_v29  ;;  %v524_v31 = vld [vmem:[%s7262_s11 + $0x9e8] sm:$0xff] }
  0x68   : > { %523 = vst [vmem:[%s7267_s12 + $0x4f0] sm:$0xff] %v522_v30  ;;  %v526_v32 = vld [vmem:[%s7262_s11 + $0xa00] sm:$0xff]  ;;  %v528_v33 = vld [vmem:[%s7262_s11 + $0xa08] sm:$0xff]  ;;  %525 = vst [vmem:[%s7267_s12 + $0x4f8] sm:$0xff] %v524_v31 }
  0x69   : > { %527 = vst [vmem:[%s7267_s12 + $0x500] sm:$0xff] %v526_v32  ;;  %529 = vst [vmem:[%s7267_s12 + $0x508] sm:$0xff] %v528_v33  ;;  %v530_v34 = vld [vmem:[%s7262_s11 + $0xa20] sm:$0xff]  ;;  %v532_v35 = vld [vmem:[%s7262_s11 + $0xa28] sm:$0xff] }
  0x6a   : > { %v534_v36 = vld [vmem:[%s7262_s11 + $0xa40] sm:$0xff]  ;;  %531 = vst [vmem:[%s7267_s12 + $0x510] sm:$0xff] %v530_v34  ;;  %533 = vst [vmem:[%s7267_s12 + $0x518] sm:$0xff] %v532_v35  ;;  %v536_v37 = vld [vmem:[%s7262_s11 + $0xa48] sm:$0xff] }
  0x6b   : > { %535 = vst [vmem:[%s7267_s12 + $0x520] sm:$0xff] %v534_v36  ;;  %v538_v38 = vld [vmem:[%s7262_s11 + $0xa60] sm:$0xff]  ;;  %v540_v39 = vld [vmem:[%s7262_s11 + $0xa68] sm:$0xff]  ;;  %537 = vst [vmem:[%s7267_s12 + $0x528] sm:$0xff] %v536_v37 }
  0x6c   : > { %539 = vst [vmem:[%s7267_s12 + $0x530] sm:$0xff] %v538_v38  ;;  %541 = vst [vmem:[%s7267_s12 + $0x538] sm:$0xff] %v540_v39  ;;  %v542_v40 = vld [vmem:[%s7262_s11 + $0xa80] sm:$0xff]  ;;  %v544_v41 = vld [vmem:[%s7262_s11 + $0xa88] sm:$0xff] }
  0x6d   : > { %v546_v42 = vld [vmem:[%s7262_s11 + $0xaa0] sm:$0xff]  ;;  %543 = vst [vmem:[%s7267_s12 + $0x540] sm:$0xff] %v542_v40  ;;  %545 = vst [vmem:[%s7267_s12 + $0x548] sm:$0xff] %v544_v41  ;;  %v548_v43 = vld [vmem:[%s7262_s11 + $0xaa8] sm:$0xff] }
  0x6e   : > { %547 = vst [vmem:[%s7267_s12 + $0x550] sm:$0xff] %v546_v42  ;;  %v550_v44 = vld [vmem:[%s7262_s11 + $0xac0] sm:$0xff]  ;;  %v552_v45 = vld [vmem:[%s7262_s11 + $0xac8] sm:$0xff]  ;;  %549 = vst [vmem:[%s7267_s12 + $0x558] sm:$0xff] %v548_v43 }
  0x6f   : > { %551 = vst [vmem:[%s7267_s12 + $0x560] sm:$0xff] %v550_v44  ;;  %553 = vst [vmem:[%s7267_s12 + $0x568] sm:$0xff] %v552_v45  ;;  %v554_v46 = vld [vmem:[%s7262_s11 + $0xae0] sm:$0xff]  ;;  %v556_v47 = vld [vmem:[%s7262_s11 + $0xae8] sm:$0xff] }
  0x70   : > { %v558_v48 = vld [vmem:[%s7262_s11 + $0xb00] sm:$0xff]  ;;  %555 = vst [vmem:[%s7267_s12 + $0x570] sm:$0xff] %v554_v46  ;;  %557 = vst [vmem:[%s7267_s12 + $0x578] sm:$0xff] %v556_v47  ;;  %v560_v49 = vld [vmem:[%s7262_s11 + $0xb08] sm:$0xff] }
  0x71   : > { %559 = vst [vmem:[%s7267_s12 + $0x580] sm:$0xff] %v558_v48  ;;  %v562_v50 = vld [vmem:[%s7262_s11 + $0xb20] sm:$0xff]  ;;  %v564_v51 = vld [vmem:[%s7262_s11 + $0xb28] sm:$0xff]  ;;  %561 = vst [vmem:[%s7267_s12 + $0x588] sm:$0xff] %v560_v49 }
  0x72   : > { %563 = vst [vmem:[%s7267_s12 + $0x590] sm:$0xff] %v562_v50  ;;  %565 = vst [vmem:[%s7267_s12 + $0x598] sm:$0xff] %v564_v51  ;;  %v566_v52 = vld [vmem:[%s7262_s11 + $0xb40] sm:$0xff]  ;;  %v568_v53 = vld [vmem:[%s7262_s11 + $0xb48] sm:$0xff] }
  0x73   : > { %v570_v54 = vld [vmem:[%s7262_s11 + $0xb60] sm:$0xff]  ;;  %567 = vst [vmem:[%s7267_s12 + $0x5a0] sm:$0xff] %v566_v52  ;;  %569 = vst [vmem:[%s7267_s12 + $0x5a8] sm:$0xff] %v568_v53  ;;  %v572_v55 = vld [vmem:[%s7262_s11 + $0xb68] sm:$0xff] }
  0x74   : > { %571 = vst [vmem:[%s7267_s12 + $0x5b0] sm:$0xff] %v570_v54  ;;  %v574_v56 = vld [vmem:[%s7262_s11 + $0xb80] sm:$0xff]  ;;  %v576_v57 = vld [vmem:[%s7262_s11 + $0xb88] sm:$0xff]  ;;  %573 = vst [vmem:[%s7267_s12 + $0x5b8] sm:$0xff] %v572_v55 }
  0x75   : > { %575 = vst [vmem:[%s7267_s12 + $0x5c0] sm:$0xff] %v574_v56  ;;  %577 = vst [vmem:[%s7267_s12 + $0x5c8] sm:$0xff] %v576_v57  ;;  %v578_v58 = vld [vmem:[%s7262_s11 + $0xba0] sm:$0xff]  ;;  %v580_v59 = vld [vmem:[%s7262_s11 + $0xba8] sm:$0xff] }
  0x76   : > { %v582_v60 = vld [vmem:[%s7262_s11 + $0xbc0] sm:$0xff]  ;;  %579 = vst [vmem:[%s7267_s12 + $0x5d0] sm:$0xff] %v578_v58  ;;  %581 = vst [vmem:[%s7267_s12 + $0x5d8] sm:$0xff] %v580_v59  ;;  %v584_v61 = vld [vmem:[%s7262_s11 + $0xbc8] sm:$0xff] }
  0x77   : > { %583 = vst [vmem:[%s7267_s12 + $0x5e0] sm:$0xff] %v582_v60  ;;  %v586_v62 = vld [vmem:[%s7262_s11 + $0xbe0] sm:$0xff]  ;;  %v588_v63 = vld [vmem:[%s7262_s11 + $0xbe8] sm:$0xff]  ;;  %585 = vst [vmem:[%s7267_s12 + $0x5e8] sm:$0xff] %v584_v61 }
  0x78   : > { %587 = vst [vmem:[%s7267_s12 + $0x5f0] sm:$0xff] %v586_v62  ;;  %589 = vst [vmem:[%s7267_s12 + $0x5f8] sm:$0xff] %v588_v63  ;;  %v590_v0 = vld [vmem:[%s7262_s11 + $0xc00] sm:$0xff]  ;;  %v592_v1 = vld [vmem:[%s7262_s11 + $0xc08] sm:$0xff] }
  0x79   : > { %v594_v2 = vld [vmem:[%s7262_s11 + $0xc20] sm:$0xff]  ;;  %591 = vst [vmem:[%s7267_s12 + $0x600] sm:$0xff] %v590_v0  ;;  %593 = vst [vmem:[%s7267_s12 + $0x608] sm:$0xff] %v592_v1  ;;  %v596_v3 = vld [vmem:[%s7262_s11 + $0xc28] sm:$0xff] }
  0x7a   : > { %595 = vst [vmem:[%s7267_s12 + $0x610] sm:$0xff] %v594_v2  ;;  %v598_v4 = vld [vmem:[%s7262_s11 + $0xc40] sm:$0xff]  ;;  %v600_v5 = vld [vmem:[%s7262_s11 + $0xc48] sm:$0xff]  ;;  %597 = vst [vmem:[%s7267_s12 + $0x618] sm:$0xff] %v596_v3 }
  0x7b   : > { %599 = vst [vmem:[%s7267_s12 + $0x620] sm:$0xff] %v598_v4  ;;  %601 = vst [vmem:[%s7267_s12 + $0x628] sm:$0xff] %v600_v5  ;;  %v602_v6 = vld [vmem:[%s7262_s11 + $0xc60] sm:$0xff]  ;;  %v604_v7 = vld [vmem:[%s7262_s11 + $0xc68] sm:$0xff] }
  0x7c   : > { %v606_v8 = vld [vmem:[%s7262_s11 + $0xc80] sm:$0xff]  ;;  %603 = vst [vmem:[%s7267_s12 + $0x630] sm:$0xff] %v602_v6  ;;  %605 = vst [vmem:[%s7267_s12 + $0x638] sm:$0xff] %v604_v7  ;;  %v608_v9 = vld [vmem:[%s7262_s11 + $0xc88] sm:$0xff] }
  0x7d   : > { %607 = vst [vmem:[%s7267_s12 + $0x640] sm:$0xff] %v606_v8  ;;  %v610_v10 = vld [vmem:[%s7262_s11 + $0xca0] sm:$0xff]  ;;  %v612_v11 = vld [vmem:[%s7262_s11 + $0xca8] sm:$0xff]  ;;  %609 = vst [vmem:[%s7267_s12 + $0x648] sm:$0xff] %v608_v9 }
  0x7e   : > { %611 = vst [vmem:[%s7267_s12 + $0x650] sm:$0xff] %v610_v10  ;;  %613 = vst [vmem:[%s7267_s12 + $0x658] sm:$0xff] %v612_v11  ;;  %v614_v12 = vld [vmem:[%s7262_s11 + $0xcc0] sm:$0xff]  ;;  %v616_v13 = vld [vmem:[%s7262_s11 + $0xcc8] sm:$0xff] }
  0x7f   : > { %v618_v14 = vld [vmem:[%s7262_s11 + $0xce0] sm:$0xff]  ;;  %615 = vst [vmem:[%s7267_s12 + $0x660] sm:$0xff] %v614_v12  ;;  %617 = vst [vmem:[%s7267_s12 + $0x668] sm:$0xff] %v616_v13  ;;  %v620_v15 = vld [vmem:[%s7262_s11 + $0xce8] sm:$0xff] }
  0x80   : > { %619 = vst [vmem:[%s7267_s12 + $0x670] sm:$0xff] %v618_v14  ;;  %v622_v16 = vld [vmem:[%s7262_s11 + $0xd00] sm:$0xff]  ;;  %v624_v17 = vld [vmem:[%s7262_s11 + $0xd08] sm:$0xff]  ;;  %621 = vst [vmem:[%s7267_s12 + $0x678] sm:$0xff] %v620_v15 }
  0x81   : > { %623 = vst [vmem:[%s7267_s12 + $0x680] sm:$0xff] %v622_v16  ;;  %625 = vst [vmem:[%s7267_s12 + $0x688] sm:$0xff] %v624_v17  ;;  %v626_v18 = vld [vmem:[%s7262_s11 + $0xd20] sm:$0xff]  ;;  %v628_v19 = vld [vmem:[%s7262_s11 + $0xd28] sm:$0xff] }
  0x82   : > { %v630_v20 = vld [vmem:[%s7262_s11 + $0xd40] sm:$0xff]  ;;  %627 = vst [vmem:[%s7267_s12 + $0x690] sm:$0xff] %v626_v18  ;;  %629 = vst [vmem:[%s7267_s12 + $0x698] sm:$0xff] %v628_v19  ;;  %v632_v21 = vld [vmem:[%s7262_s11 + $0xd48] sm:$0xff] }
  0x83   : > { %631 = vst [vmem:[%s7267_s12 + $0x6a0] sm:$0xff] %v630_v20  ;;  %v634_v22 = vld [vmem:[%s7262_s11 + $0xd60] sm:$0xff]  ;;  %v636_v23 = vld [vmem:[%s7262_s11 + $0xd68] sm:$0xff]  ;;  %633 = vst [vmem:[%s7267_s12 + $0x6a8] sm:$0xff] %v632_v21 }
  0x84   : > { %635 = vst [vmem:[%s7267_s12 + $0x6b0] sm:$0xff] %v634_v22  ;;  %637 = vst [vmem:[%s7267_s12 + $0x6b8] sm:$0xff] %v636_v23  ;;  %v638_v24 = vld [vmem:[%s7262_s11 + $0xd80] sm:$0xff]  ;;  %v640_v25 = vld [vmem:[%s7262_s11 + $0xd88] sm:$0xff] }
  0x85   : > { %v642_v26 = vld [vmem:[%s7262_s11 + $0xda0] sm:$0xff]  ;;  %639 = vst [vmem:[%s7267_s12 + $0x6c0] sm:$0xff] %v638_v24  ;;  %641 = vst [vmem:[%s7267_s12 + $0x6c8] sm:$0xff] %v640_v25  ;;  %v644_v27 = vld [vmem:[%s7262_s11 + $0xda8] sm:$0xff] }
  0x86   : > { %643 = vst [vmem:[%s7267_s12 + $0x6d0] sm:$0xff] %v642_v26  ;;  %v646_v28 = vld [vmem:[%s7262_s11 + $0xdc0] sm:$0xff]  ;;  %v648_v29 = vld [vmem:[%s7262_s11 + $0xdc8] sm:$0xff]  ;;  %645 = vst [vmem:[%s7267_s12 + $0x6d8] sm:$0xff] %v644_v27 }
  0x87   : > { %647 = vst [vmem:[%s7267_s12 + $0x6e0] sm:$0xff] %v646_v28  ;;  %649 = vst [vmem:[%s7267_s12 + $0x6e8] sm:$0xff] %v648_v29  ;;  %v650_v30 = vld [vmem:[%s7262_s11 + $0xde0] sm:$0xff]  ;;  %v652_v31 = vld [vmem:[%s7262_s11 + $0xde8] sm:$0xff] }
  0x88   : > { %v654_v32 = vld [vmem:[%s7262_s11 + $0xe00] sm:$0xff]  ;;  %651 = vst [vmem:[%s7267_s12 + $0x6f0] sm:$0xff] %v650_v30  ;;  %653 = vst [vmem:[%s7267_s12 + $0x6f8] sm:$0xff] %v652_v31  ;;  %v656_v33 = vld [vmem:[%s7262_s11 + $0xe08] sm:$0xff] }
  0x89   : > { %655 = vst [vmem:[%s7267_s12 + $0x700] sm:$0xff] %v654_v32  ;;  %v658_v34 = vld [vmem:[%s7262_s11 + $0xe20] sm:$0xff]  ;;  %v660_v35 = vld [vmem:[%s7262_s11 + $0xe28] sm:$0xff]  ;;  %657 = vst [vmem:[%s7267_s12 + $0x708] sm:$0xff] %v656_v33 }
  0x8a   : > { %659 = vst [vmem:[%s7267_s12 + $0x710] sm:$0xff] %v658_v34  ;;  %661 = vst [vmem:[%s7267_s12 + $0x718] sm:$0xff] %v660_v35  ;;  %v662_v36 = vld [vmem:[%s7262_s11 + $0xe40] sm:$0xff]  ;;  %v664_v37 = vld [vmem:[%s7262_s11 + $0xe48] sm:$0xff] }
  0x8b   : > { %v666_v38 = vld [vmem:[%s7262_s11 + $0xe60] sm:$0xff]  ;;  %663 = vst [vmem:[%s7267_s12 + $0x720] sm:$0xff] %v662_v36  ;;  %665 = vst [vmem:[%s7267_s12 + $0x728] sm:$0xff] %v664_v37  ;;  %v668_v39 = vld [vmem:[%s7262_s11 + $0xe68] sm:$0xff] }
  0x8c   : > { %667 = vst [vmem:[%s7267_s12 + $0x730] sm:$0xff] %v666_v38  ;;  %v670_v40 = vld [vmem:[%s7262_s11 + $0xe80] sm:$0xff]  ;;  %v672_v41 = vld [vmem:[%s7262_s11 + $0xe88] sm:$0xff]  ;;  %669 = vst [vmem:[%s7267_s12 + $0x738] sm:$0xff] %v668_v39 }
  0x8d   : > { %671 = vst [vmem:[%s7267_s12 + $0x740] sm:$0xff] %v670_v40  ;;  %673 = vst [vmem:[%s7267_s12 + $0x748] sm:$0xff] %v672_v41  ;;  %v674_v42 = vld [vmem:[%s7262_s11 + $0xea0] sm:$0xff]  ;;  %v676_v43 = vld [vmem:[%s7262_s11 + $0xea8] sm:$0xff] }
  0x8e   : > { %v678_v44 = vld [vmem:[%s7262_s11 + $0xec0] sm:$0xff]  ;;  %675 = vst [vmem:[%s7267_s12 + $0x750] sm:$0xff] %v674_v42  ;;  %677 = vst [vmem:[%s7267_s12 + $0x758] sm:$0xff] %v676_v43  ;;  %v680_v45 = vld [vmem:[%s7262_s11 + $0xec8] sm:$0xff] }
  0x8f   : > { %679 = vst [vmem:[%s7267_s12 + $0x760] sm:$0xff] %v678_v44  ;;  %v682_v46 = vld [vmem:[%s7262_s11 + $0xee0] sm:$0xff]  ;;  %v684_v47 = vld [vmem:[%s7262_s11 + $0xee8] sm:$0xff]  ;;  %681 = vst [vmem:[%s7267_s12 + $0x768] sm:$0xff] %v680_v45 }
  0x90   : > { %683 = vst [vmem:[%s7267_s12 + $0x770] sm:$0xff] %v682_v46  ;;  %685 = vst [vmem:[%s7267_s12 + $0x778] sm:$0xff] %v684_v47  ;;  %v686_v48 = vld [vmem:[%s7262_s11 + $0xf00] sm:$0xff]  ;;  %v688_v49 = vld [vmem:[%s7262_s11 + $0xf08] sm:$0xff] }
  0x91   : > { %v690_v50 = vld [vmem:[%s7262_s11 + $0xf20] sm:$0xff]  ;;  %687 = vst [vmem:[%s7267_s12 + $0x780] sm:$0xff] %v686_v48  ;;  %689 = vst [vmem:[%s7267_s12 + $0x788] sm:$0xff] %v688_v49  ;;  %v692_v51 = vld [vmem:[%s7262_s11 + $0xf28] sm:$0xff] }
  0x92   : > { %691 = vst [vmem:[%s7267_s12 + $0x790] sm:$0xff] %v690_v50  ;;  %v694_v52 = vld [vmem:[%s7262_s11 + $0xf40] sm:$0xff]  ;;  %v696_v53 = vld [vmem:[%s7262_s11 + $0xf48] sm:$0xff]  ;;  %693 = vst [vmem:[%s7267_s12 + $0x798] sm:$0xff] %v692_v51 }
  0x93   : > { %695 = vst [vmem:[%s7267_s12 + $0x7a0] sm:$0xff] %v694_v52  ;;  %697 = vst [vmem:[%s7267_s12 + $0x7a8] sm:$0xff] %v696_v53  ;;  %v698_v54 = vld [vmem:[%s7262_s11 + $0xf60] sm:$0xff]  ;;  %v700_v55 = vld [vmem:[%s7262_s11 + $0xf68] sm:$0xff] }
  0x94   : > { %v702_v56 = vld [vmem:[%s7262_s11 + $0xf80] sm:$0xff]  ;;  %699 = vst [vmem:[%s7267_s12 + $0x7b0] sm:$0xff] %v698_v54  ;;  %701 = vst [vmem:[%s7267_s12 + $0x7b8] sm:$0xff] %v700_v55  ;;  %v704_v57 = vld [vmem:[%s7262_s11 + $0xf88] sm:$0xff] }
  0x95   : > { %703 = vst [vmem:[%s7267_s12 + $0x7c0] sm:$0xff] %v702_v56  ;;  %v706_v58 = vld [vmem:[%s7262_s11 + $0xfa0] sm:$0xff]  ;;  %v708_v59 = vld [vmem:[%s7262_s11 + $0xfa8] sm:$0xff]  ;;  %705 = vst [vmem:[%s7267_s12 + $0x7c8] sm:$0xff] %v704_v57 }
  0x96   : > { %707 = vst [vmem:[%s7267_s12 + $0x7d0] sm:$0xff] %v706_v58  ;;  %709 = vst [vmem:[%s7267_s12 + $0x7d8] sm:$0xff] %v708_v59  ;;  %v710_v60 = vld [vmem:[%s7262_s11 + $0xfc0] sm:$0xff]  ;;  %v712_v61 = vld [vmem:[%s7262_s11 + $0xfc8] sm:$0xff] }
  0x97   : > { %v714_v62 = vld [vmem:[%s7262_s11 + $0xfe0] sm:$0xff]  ;;  %711 = vst [vmem:[%s7267_s12 + $0x7e0] sm:$0xff] %v710_v60  ;;  %713 = vst [vmem:[%s7267_s12 + $0x7e8] sm:$0xff] %v712_v61  ;;  %v716_v63 = vld [vmem:[%s7262_s11 + $0xfe8] sm:$0xff] }
  0x98   : > { %715 = vst [vmem:[%s7267_s12 + $0x7f0] sm:$0xff] %v714_v62  ;;  %v718_v0 = vld [vmem:[%s7262_s11 + $0x1000] sm:$0xff]  ;;  %v720_v1 = vld [vmem:[%s7262_s11 + $0x1008] sm:$0xff]  ;;  %717 = vst [vmem:[%s7267_s12 + $0x7f8] sm:$0xff] %v716_v63 }
  0x99   : > { %719 = vst [vmem:[%s7267_s12 + $0x800] sm:$0xff] %v718_v0  ;;  %721 = vst [vmem:[%s7267_s12 + $0x808] sm:$0xff] %v720_v1  ;;  %v722_v2 = vld [vmem:[%s7262_s11 + $0x1020] sm:$0xff]  ;;  %v724_v3 = vld [vmem:[%s7262_s11 + $0x1028] sm:$0xff] }
  0x9a   : > { %v726_v4 = vld [vmem:[%s7262_s11 + $0x1040] sm:$0xff]  ;;  %723 = vst [vmem:[%s7267_s12 + $0x810] sm:$0xff] %v722_v2  ;;  %725 = vst [vmem:[%s7267_s12 + $0x818] sm:$0xff] %v724_v3  ;;  %v728_v5 = vld [vmem:[%s7262_s11 + $0x1048] sm:$0xff] }
  0x9b   : > { %727 = vst [vmem:[%s7267_s12 + $0x820] sm:$0xff] %v726_v4  ;;  %v730_v6 = vld [vmem:[%s7262_s11 + $0x1060] sm:$0xff]  ;;  %v732_v7 = vld [vmem:[%s7262_s11 + $0x1068] sm:$0xff]  ;;  %729 = vst [vmem:[%s7267_s12 + $0x828] sm:$0xff] %v728_v5 }
  0x9c   : > { %731 = vst [vmem:[%s7267_s12 + $0x830] sm:$0xff] %v730_v6  ;;  %733 = vst [vmem:[%s7267_s12 + $0x838] sm:$0xff] %v732_v7  ;;  %v734_v8 = vld [vmem:[%s7262_s11 + $0x1080] sm:$0xff]  ;;  %v736_v9 = vld [vmem:[%s7262_s11 + $0x1088] sm:$0xff] }
  0x9d   : > { %v738_v10 = vld [vmem:[%s7262_s11 + $0x10a0] sm:$0xff]  ;;  %735 = vst [vmem:[%s7267_s12 + $0x840] sm:$0xff] %v734_v8  ;;  %737 = vst [vmem:[%s7267_s12 + $0x848] sm:$0xff] %v736_v9  ;;  %v740_v11 = vld [vmem:[%s7262_s11 + $0x10a8] sm:$0xff] }
  0x9e   : > { %739 = vst [vmem:[%s7267_s12 + $0x850] sm:$0xff] %v738_v10  ;;  %v742_v12 = vld [vmem:[%s7262_s11 + $0x10c0] sm:$0xff]  ;;  %v744_v13 = vld [vmem:[%s7262_s11 + $0x10c8] sm:$0xff]  ;;  %741 = vst [vmem:[%s7267_s12 + $0x858] sm:$0xff] %v740_v11 }
  0x9f   : > { %743 = vst [vmem:[%s7267_s12 + $0x860] sm:$0xff] %v742_v12  ;;  %745 = vst [vmem:[%s7267_s12 + $0x868] sm:$0xff] %v744_v13  ;;  %v746_v14 = vld [vmem:[%s7262_s11 + $0x10e0] sm:$0xff]  ;;  %v748_v15 = vld [vmem:[%s7262_s11 + $0x10e8] sm:$0xff] }
  0xa0   : > { %v750_v16 = vld [vmem:[%s7262_s11 + $0x1100] sm:$0xff]  ;;  %747 = vst [vmem:[%s7267_s12 + $0x870] sm:$0xff] %v746_v14  ;;  %749 = vst [vmem:[%s7267_s12 + $0x878] sm:$0xff] %v748_v15  ;;  %v752_v17 = vld [vmem:[%s7262_s11 + $0x1108] sm:$0xff] }
  0xa1   : > { %751 = vst [vmem:[%s7267_s12 + $0x880] sm:$0xff] %v750_v16  ;;  %v754_v18 = vld [vmem:[%s7262_s11 + $0x1120] sm:$0xff]  ;;  %v756_v19 = vld [vmem:[%s7262_s11 + $0x1128] sm:$0xff]  ;;  %753 = vst [vmem:[%s7267_s12 + $0x888] sm:$0xff] %v752_v17 }
  0xa2   : > { %755 = vst [vmem:[%s7267_s12 + $0x890] sm:$0xff] %v754_v18  ;;  %757 = vst [vmem:[%s7267_s12 + $0x898] sm:$0xff] %v756_v19  ;;  %v758_v20 = vld [vmem:[%s7262_s11 + $0x1140] sm:$0xff]  ;;  %v760_v21 = vld [vmem:[%s7262_s11 + $0x1148] sm:$0xff] }
  0xa3   : > { %v762_v22 = vld [vmem:[%s7262_s11 + $0x1160] sm:$0xff]  ;;  %759 = vst [vmem:[%s7267_s12 + $0x8a0] sm:$0xff] %v758_v20  ;;  %761 = vst [vmem:[%s7267_s12 + $0x8a8] sm:$0xff] %v760_v21  ;;  %v764_v23 = vld [vmem:[%s7262_s11 + $0x1168] sm:$0xff] }
  0xa4   : > { %763 = vst [vmem:[%s7267_s12 + $0x8b0] sm:$0xff] %v762_v22  ;;  %v766_v24 = vld [vmem:[%s7262_s11 + $0x1180] sm:$0xff]  ;;  %v768_v25 = vld [vmem:[%s7262_s11 + $0x1188] sm:$0xff]  ;;  %765 = vst [vmem:[%s7267_s12 + $0x8b8] sm:$0xff] %v764_v23 }
  0xa5   : > { %767 = vst [vmem:[%s7267_s12 + $0x8c0] sm:$0xff] %v766_v24  ;;  %769 = vst [vmem:[%s7267_s12 + $0x8c8] sm:$0xff] %v768_v25  ;;  %v770_v26 = vld [vmem:[%s7262_s11 + $0x11a0] sm:$0xff]  ;;  %v772_v27 = vld [vmem:[%s7262_s11 + $0x11a8] sm:$0xff] }
  0xa6   : > { %v774_v28 = vld [vmem:[%s7262_s11 + $0x11c0] sm:$0xff]  ;;  %771 = vst [vmem:[%s7267_s12 + $0x8d0] sm:$0xff] %v770_v26  ;;  %773 = vst [vmem:[%s7267_s12 + $0x8d8] sm:$0xff] %v772_v27  ;;  %v776_v29 = vld [vmem:[%s7262_s11 + $0x11c8] sm:$0xff] }
  0xa7   : > { %775 = vst [vmem:[%s7267_s12 + $0x8e0] sm:$0xff] %v774_v28  ;;  %v778_v30 = vld [vmem:[%s7262_s11 + $0x11e0] sm:$0xff]  ;;  %v780_v31 = vld [vmem:[%s7262_s11 + $0x11e8] sm:$0xff]  ;;  %777 = vst [vmem:[%s7267_s12 + $0x8e8] sm:$0xff] %v776_v29 }
  0xa8   : > { %779 = vst [vmem:[%s7267_s12 + $0x8f0] sm:$0xff] %v778_v30  ;;  %781 = vst [vmem:[%s7267_s12 + $0x8f8] sm:$0xff] %v780_v31  ;;  %v782_v32 = vld [vmem:[%s7262_s11 + $0x1200] sm:$0xff]  ;;  %v784_v33 = vld [vmem:[%s7262_s11 + $0x1208] sm:$0xff] }
  0xa9   : > { %v786_v34 = vld [vmem:[%s7262_s11 + $0x1220] sm:$0xff]  ;;  %783 = vst [vmem:[%s7267_s12 + $0x900] sm:$0xff] %v782_v32  ;;  %785 = vst [vmem:[%s7267_s12 + $0x908] sm:$0xff] %v784_v33  ;;  %v788_v35 = vld [vmem:[%s7262_s11 + $0x1228] sm:$0xff] }
  0xaa   : > { %787 = vst [vmem:[%s7267_s12 + $0x910] sm:$0xff] %v786_v34  ;;  %v790_v36 = vld [vmem:[%s7262_s11 + $0x1240] sm:$0xff]  ;;  %v792_v37 = vld [vmem:[%s7262_s11 + $0x1248] sm:$0xff]  ;;  %789 = vst [vmem:[%s7267_s12 + $0x918] sm:$0xff] %v788_v35 }
  0xab   : > { %791 = vst [vmem:[%s7267_s12 + $0x920] sm:$0xff] %v790_v36  ;;  %793 = vst [vmem:[%s7267_s12 + $0x928] sm:$0xff] %v792_v37  ;;  %v794_v38 = vld [vmem:[%s7262_s11 + $0x1260] sm:$0xff]  ;;  %v796_v39 = vld [vmem:[%s7262_s11 + $0x1268] sm:$0xff] }
  0xac   : > { %v798_v40 = vld [vmem:[%s7262_s11 + $0x1280] sm:$0xff]  ;;  %795 = vst [vmem:[%s7267_s12 + $0x930] sm:$0xff] %v794_v38  ;;  %797 = vst [vmem:[%s7267_s12 + $0x938] sm:$0xff] %v796_v39  ;;  %v800_v41 = vld [vmem:[%s7262_s11 + $0x1288] sm:$0xff] }
  0xad   : > { %799 = vst [vmem:[%s7267_s12 + $0x940] sm:$0xff] %v798_v40  ;;  %v802_v42 = vld [vmem:[%s7262_s11 + $0x12a0] sm:$0xff]  ;;  %v804_v43 = vld [vmem:[%s7262_s11 + $0x12a8] sm:$0xff]  ;;  %801 = vst [vmem:[%s7267_s12 + $0x948] sm:$0xff] %v800_v41 }
  0xae   : > { %803 = vst [vmem:[%s7267_s12 + $0x950] sm:$0xff] %v802_v42  ;;  %805 = vst [vmem:[%s7267_s12 + $0x958] sm:$0xff] %v804_v43  ;;  %v806_v44 = vld [vmem:[%s7262_s11 + $0x12c0] sm:$0xff]  ;;  %v808_v45 = vld [vmem:[%s7262_s11 + $0x12c8] sm:$0xff] }
  0xaf   : > { %v810_v46 = vld [vmem:[%s7262_s11 + $0x12e0] sm:$0xff]  ;;  %807 = vst [vmem:[%s7267_s12 + $0x960] sm:$0xff] %v806_v44  ;;  %809 = vst [vmem:[%s7267_s12 + $0x968] sm:$0xff] %v808_v45  ;;  %v812_v47 = vld [vmem:[%s7262_s11 + $0x12e8] sm:$0xff] }
  0xb0   : > { %811 = vst [vmem:[%s7267_s12 + $0x970] sm:$0xff] %v810_v46  ;;  %v814_v48 = vld [vmem:[%s7262_s11 + $0x1300] sm:$0xff]  ;;  %v816_v49 = vld [vmem:[%s7262_s11 + $0x1308] sm:$0xff]  ;;  %813 = vst [vmem:[%s7267_s12 + $0x978] sm:$0xff] %v812_v47 }
  0xb1   : > { %815 = vst [vmem:[%s7267_s12 + $0x980] sm:$0xff] %v814_v48  ;;  %817 = vst [vmem:[%s7267_s12 + $0x988] sm:$0xff] %v816_v49  ;;  %v818_v50 = vld [vmem:[%s7262_s11 + $0x1320] sm:$0xff]  ;;  %v820_v51 = vld [vmem:[%s7262_s11 + $0x1328] sm:$0xff] }
  0xb2   : > { %v822_v52 = vld [vmem:[%s7262_s11 + $0x1340] sm:$0xff]  ;;  %819 = vst [vmem:[%s7267_s12 + $0x990] sm:$0xff] %v818_v50  ;;  %821 = vst [vmem:[%s7267_s12 + $0x998] sm:$0xff] %v820_v51  ;;  %v824_v53 = vld [vmem:[%s7262_s11 + $0x1348] sm:$0xff] }
  0xb3   : > { %823 = vst [vmem:[%s7267_s12 + $0x9a0] sm:$0xff] %v822_v52  ;;  %v826_v54 = vld [vmem:[%s7262_s11 + $0x1360] sm:$0xff]  ;;  %v828_v55 = vld [vmem:[%s7262_s11 + $0x1368] sm:$0xff]  ;;  %825 = vst [vmem:[%s7267_s12 + $0x9a8] sm:$0xff] %v824_v53 }
  0xb4   : > { %827 = vst [vmem:[%s7267_s12 + $0x9b0] sm:$0xff] %v826_v54  ;;  %829 = vst [vmem:[%s7267_s12 + $0x9b8] sm:$0xff] %v828_v55  ;;  %v830_v56 = vld [vmem:[%s7262_s11 + $0x1380] sm:$0xff]  ;;  %v832_v57 = vld [vmem:[%s7262_s11 + $0x1388] sm:$0xff] }
  0xb5   : > { %v834_v58 = vld [vmem:[%s7262_s11 + $0x13a0] sm:$0xff]  ;;  %831 = vst [vmem:[%s7267_s12 + $0x9c0] sm:$0xff] %v830_v56  ;;  %833 = vst [vmem:[%s7267_s12 + $0x9c8] sm:$0xff] %v832_v57  ;;  %v836_v59 = vld [vmem:[%s7262_s11 + $0x13a8] sm:$0xff] }
  0xb6   : > { %835 = vst [vmem:[%s7267_s12 + $0x9d0] sm:$0xff] %v834_v58  ;;  %v838_v60 = vld [vmem:[%s7262_s11 + $0x13c0] sm:$0xff]  ;;  %v840_v61 = vld [vmem:[%s7262_s11 + $0x13c8] sm:$0xff]  ;;  %837 = vst [vmem:[%s7267_s12 + $0x9d8] sm:$0xff] %v836_v59 }
  0xb7   : > { %839 = vst [vmem:[%s7267_s12 + $0x9e0] sm:$0xff] %v838_v60  ;;  %841 = vst [vmem:[%s7267_s12 + $0x9e8] sm:$0xff] %v840_v61  ;;  %v842_v62 = vld [vmem:[%s7262_s11 + $0x13e0] sm:$0xff]  ;;  %v844_v63 = vld [vmem:[%s7262_s11 + $0x13e8] sm:$0xff] }
  0xb8   : > { %v846_v0 = vld [vmem:[%s7262_s11 + $0x1400] sm:$0xff]  ;;  %843 = vst [vmem:[%s7267_s12 + $0x9f0] sm:$0xff] %v842_v62  ;;  %845 = vst [vmem:[%s7267_s12 + $0x9f8] sm:$0xff] %v844_v63  ;;  %v848_v1 = vld [vmem:[%s7262_s11 + $0x1408] sm:$0xff] }
  0xb9   : > { %847 = vst [vmem:[%s7267_s12 + $0xa00] sm:$0xff] %v846_v0  ;;  %v850_v2 = vld [vmem:[%s7262_s11 + $0x1420] sm:$0xff]  ;;  %v852_v3 = vld [vmem:[%s7262_s11 + $0x1428] sm:$0xff]  ;;  %849 = vst [vmem:[%s7267_s12 + $0xa08] sm:$0xff] %v848_v1 }
  0xba   : > { %851 = vst [vmem:[%s7267_s12 + $0xa10] sm:$0xff] %v850_v2  ;;  %853 = vst [vmem:[%s7267_s12 + $0xa18] sm:$0xff] %v852_v3  ;;  %v854_v4 = vld [vmem:[%s7262_s11 + $0x1440] sm:$0xff]  ;;  %v856_v5 = vld [vmem:[%s7262_s11 + $0x1448] sm:$0xff] }
  0xbb   : > { %v858_v6 = vld [vmem:[%s7262_s11 + $0x1460] sm:$0xff]  ;;  %855 = vst [vmem:[%s7267_s12 + $0xa20] sm:$0xff] %v854_v4  ;;  %857 = vst [vmem:[%s7267_s12 + $0xa28] sm:$0xff] %v856_v5  ;;  %v860_v7 = vld [vmem:[%s7262_s11 + $0x1468] sm:$0xff] }
  0xbc   : > { %859 = vst [vmem:[%s7267_s12 + $0xa30] sm:$0xff] %v858_v6  ;;  %v862_v8 = vld [vmem:[%s7262_s11 + $0x1480] sm:$0xff]  ;;  %v864_v9 = vld [vmem:[%s7262_s11 + $0x1488] sm:$0xff]  ;;  %861 = vst [vmem:[%s7267_s12 + $0xa38] sm:$0xff] %v860_v7 }
  0xbd   : > { %863 = vst [vmem:[%s7267_s12 + $0xa40] sm:$0xff] %v862_v8  ;;  %865 = vst [vmem:[%s7267_s12 + $0xa48] sm:$0xff] %v864_v9  ;;  %v866_v10 = vld [vmem:[%s7262_s11 + $0x14a0] sm:$0xff]  ;;  %v868_v11 = vld [vmem:[%s7262_s11 + $0x14a8] sm:$0xff] }
  0xbe   : > { %v870_v12 = vld [vmem:[%s7262_s11 + $0x14c0] sm:$0xff]  ;;  %867 = vst [vmem:[%s7267_s12 + $0xa50] sm:$0xff] %v866_v10  ;;  %869 = vst [vmem:[%s7267_s12 + $0xa58] sm:$0xff] %v868_v11  ;;  %v872_v13 = vld [vmem:[%s7262_s11 + $0x14c8] sm:$0xff] }
  0xbf   : > { %871 = vst [vmem:[%s7267_s12 + $0xa60] sm:$0xff] %v870_v12  ;;  %v874_v14 = vld [vmem:[%s7262_s11 + $0x14e0] sm:$0xff]  ;;  %v876_v15 = vld [vmem:[%s7262_s11 + $0x14e8] sm:$0xff]  ;;  %873 = vst [vmem:[%s7267_s12 + $0xa68] sm:$0xff] %v872_v13 }
  0xc0   : > { %875 = vst [vmem:[%s7267_s12 + $0xa70] sm:$0xff] %v874_v14  ;;  %877 = vst [vmem:[%s7267_s12 + $0xa78] sm:$0xff] %v876_v15  ;;  %v878_v16 = vld [vmem:[%s7262_s11 + $0x1500] sm:$0xff]  ;;  %v880_v17 = vld [vmem:[%s7262_s11 + $0x1508] sm:$0xff] }
  0xc1   : > { %v882_v18 = vld [vmem:[%s7262_s11 + $0x1520] sm:$0xff]  ;;  %879 = vst [vmem:[%s7267_s12 + $0xa80] sm:$0xff] %v878_v16  ;;  %881 = vst [vmem:[%s7267_s12 + $0xa88] sm:$0xff] %v880_v17  ;;  %v884_v19 = vld [vmem:[%s7262_s11 + $0x1528] sm:$0xff] }
  0xc2   : > { %883 = vst [vmem:[%s7267_s12 + $0xa90] sm:$0xff] %v882_v18  ;;  %v886_v20 = vld [vmem:[%s7262_s11 + $0x1540] sm:$0xff]  ;;  %v888_v21 = vld [vmem:[%s7262_s11 + $0x1548] sm:$0xff]  ;;  %885 = vst [vmem:[%s7267_s12 + $0xa98] sm:$0xff] %v884_v19 }
  0xc3   : > { %887 = vst [vmem:[%s7267_s12 + $0xaa0] sm:$0xff] %v886_v20  ;;  %889 = vst [vmem:[%s7267_s12 + $0xaa8] sm:$0xff] %v888_v21  ;;  %v890_v22 = vld [vmem:[%s7262_s11 + $0x1560] sm:$0xff]  ;;  %v892_v23 = vld [vmem:[%s7262_s11 + $0x1568] sm:$0xff] }
  0xc4   : > { %v894_v24 = vld [vmem:[%s7262_s11 + $0x1580] sm:$0xff]  ;;  %891 = vst [vmem:[%s7267_s12 + $0xab0] sm:$0xff] %v890_v22  ;;  %893 = vst [vmem:[%s7267_s12 + $0xab8] sm:$0xff] %v892_v23  ;;  %v896_v25 = vld [vmem:[%s7262_s11 + $0x1588] sm:$0xff] }
  0xc5   : > { %895 = vst [vmem:[%s7267_s12 + $0xac0] sm:$0xff] %v894_v24  ;;  %v898_v26 = vld [vmem:[%s7262_s11 + $0x15a0] sm:$0xff]  ;;  %v900_v27 = vld [vmem:[%s7262_s11 + $0x15a8] sm:$0xff]  ;;  %897 = vst [vmem:[%s7267_s12 + $0xac8] sm:$0xff] %v896_v25 }
  0xc6   : > { %899 = vst [vmem:[%s7267_s12 + $0xad0] sm:$0xff] %v898_v26  ;;  %901 = vst [vmem:[%s7267_s12 + $0xad8] sm:$0xff] %v900_v27  ;;  %v902_v28 = vld [vmem:[%s7262_s11 + $0x15c0] sm:$0xff]  ;;  %v904_v29 = vld [vmem:[%s7262_s11 + $0x15c8] sm:$0xff] }
  0xc7   : > { %v906_v30 = vld [vmem:[%s7262_s11 + $0x15e0] sm:$0xff]  ;;  %903 = vst [vmem:[%s7267_s12 + $0xae0] sm:$0xff] %v902_v28  ;;  %905 = vst [vmem:[%s7267_s12 + $0xae8] sm:$0xff] %v904_v29  ;;  %v908_v31 = vld [vmem:[%s7262_s11 + $0x15e8] sm:$0xff] }
  0xc8   : > { %907 = vst [vmem:[%s7267_s12 + $0xaf0] sm:$0xff] %v906_v30  ;;  %v910_v32 = vld [vmem:[%s7262_s11 + $0x1600] sm:$0xff]  ;;  %v912_v33 = vld [vmem:[%s7262_s11 + $0x1608] sm:$0xff]  ;;  %909 = vst [vmem:[%s7267_s12 + $0xaf8] sm:$0xff] %v908_v31 }
  0xc9   : > { %911 = vst [vmem:[%s7267_s12 + $0xb00] sm:$0xff] %v910_v32  ;;  %913 = vst [vmem:[%s7267_s12 + $0xb08] sm:$0xff] %v912_v33  ;;  %v914_v34 = vld [vmem:[%s7262_s11 + $0x1620] sm:$0xff]  ;;  %v916_v35 = vld [vmem:[%s7262_s11 + $0x1628] sm:$0xff] }
  0xca   : > { %v918_v36 = vld [vmem:[%s7262_s11 + $0x1640] sm:$0xff]  ;;  %915 = vst [vmem:[%s7267_s12 + $0xb10] sm:$0xff] %v914_v34  ;;  %917 = vst [vmem:[%s7267_s12 + $0xb18] sm:$0xff] %v916_v35  ;;  %v920_v37 = vld [vmem:[%s7262_s11 + $0x1648] sm:$0xff] }
  0xcb   : > { %919 = vst [vmem:[%s7267_s12 + $0xb20] sm:$0xff] %v918_v36  ;;  %v922_v38 = vld [vmem:[%s7262_s11 + $0x1660] sm:$0xff]  ;;  %v924_v39 = vld [vmem:[%s7262_s11 + $0x1668] sm:$0xff]  ;;  %921 = vst [vmem:[%s7267_s12 + $0xb28] sm:$0xff] %v920_v37 }
  0xcc   : > { %923 = vst [vmem:[%s7267_s12 + $0xb30] sm:$0xff] %v922_v38  ;;  %925 = vst [vmem:[%s7267_s12 + $0xb38] sm:$0xff] %v924_v39  ;;  %v926_v40 = vld [vmem:[%s7262_s11 + $0x1680] sm:$0xff]  ;;  %v928_v41 = vld [vmem:[%s7262_s11 + $0x1688] sm:$0xff] }
  0xcd   : > { %v930_v42 = vld [vmem:[%s7262_s11 + $0x16a0] sm:$0xff]  ;;  %927 = vst [vmem:[%s7267_s12 + $0xb40] sm:$0xff] %v926_v40  ;;  %929 = vst [vmem:[%s7267_s12 + $0xb48] sm:$0xff] %v928_v41  ;;  %v932_v43 = vld [vmem:[%s7262_s11 + $0x16a8] sm:$0xff] }
  0xce   : > { %931 = vst [vmem:[%s7267_s12 + $0xb50] sm:$0xff] %v930_v42  ;;  %v934_v44 = vld [vmem:[%s7262_s11 + $0x16c0] sm:$0xff]  ;;  %v936_v45 = vld [vmem:[%s7262_s11 + $0x16c8] sm:$0xff]  ;;  %933 = vst [vmem:[%s7267_s12 + $0xb58] sm:$0xff] %v932_v43 }
  0xcf   : > { %935 = vst [vmem:[%s7267_s12 + $0xb60] sm:$0xff] %v934_v44  ;;  %937 = vst [vmem:[%s7267_s12 + $0xb68] sm:$0xff] %v936_v45  ;;  %v938_v46 = vld [vmem:[%s7262_s11 + $0x16e0] sm:$0xff]  ;;  %v940_v47 = vld [vmem:[%s7262_s11 + $0x16e8] sm:$0xff] }
  0xd0   : > { %v942_v48 = vld [vmem:[%s7262_s11 + $0x1700] sm:$0xff]  ;;  %939 = vst [vmem:[%s7267_s12 + $0xb70] sm:$0xff] %v938_v46  ;;  %941 = vst [vmem:[%s7267_s12 + $0xb78] sm:$0xff] %v940_v47  ;;  %v944_v49 = vld [vmem:[%s7262_s11 + $0x1708] sm:$0xff] }
  0xd1   : > { %943 = vst [vmem:[%s7267_s12 + $0xb80] sm:$0xff] %v942_v48  ;;  %v946_v50 = vld [vmem:[%s7262_s11 + $0x1720] sm:$0xff]  ;;  %v948_v51 = vld [vmem:[%s7262_s11 + $0x1728] sm:$0xff]  ;;  %945 = vst [vmem:[%s7267_s12 + $0xb88] sm:$0xff] %v944_v49 }
  0xd2   : > { %947 = vst [vmem:[%s7267_s12 + $0xb90] sm:$0xff] %v946_v50  ;;  %949 = vst [vmem:[%s7267_s12 + $0xb98] sm:$0xff] %v948_v51  ;;  %v950_v52 = vld [vmem:[%s7262_s11 + $0x1740] sm:$0xff]  ;;  %v952_v53 = vld [vmem:[%s7262_s11 + $0x1748] sm:$0xff] }
  0xd3   : > { %v954_v54 = vld [vmem:[%s7262_s11 + $0x1760] sm:$0xff]  ;;  %951 = vst [vmem:[%s7267_s12 + $0xba0] sm:$0xff] %v950_v52  ;;  %953 = vst [vmem:[%s7267_s12 + $0xba8] sm:$0xff] %v952_v53  ;;  %v956_v55 = vld [vmem:[%s7262_s11 + $0x1768] sm:$0xff] }
  0xd4   : > { %955 = vst [vmem:[%s7267_s12 + $0xbb0] sm:$0xff] %v954_v54  ;;  %v958_v56 = vld [vmem:[%s7262_s11 + $0x1780] sm:$0xff]  ;;  %v960_v57 = vld [vmem:[%s7262_s11 + $0x1788] sm:$0xff]  ;;  %957 = vst [vmem:[%s7267_s12 + $0xbb8] sm:$0xff] %v956_v55 }
  0xd5   : > { %959 = vst [vmem:[%s7267_s12 + $0xbc0] sm:$0xff] %v958_v56  ;;  %961 = vst [vmem:[%s7267_s12 + $0xbc8] sm:$0xff] %v960_v57  ;;  %v962_v58 = vld [vmem:[%s7262_s11 + $0x17a0] sm:$0xff]  ;;  %v964_v59 = vld [vmem:[%s7262_s11 + $0x17a8] sm:$0xff] }
  0xd6   : > { %v966_v60 = vld [vmem:[%s7262_s11 + $0x17c0] sm:$0xff]  ;;  %963 = vst [vmem:[%s7267_s12 + $0xbd0] sm:$0xff] %v962_v58  ;;  %965 = vst [vmem:[%s7267_s12 + $0xbd8] sm:$0xff] %v964_v59  ;;  %v968_v61 = vld [vmem:[%s7262_s11 + $0x17c8] sm:$0xff] }
  0xd7   : > { %967 = vst [vmem:[%s7267_s12 + $0xbe0] sm:$0xff] %v966_v60  ;;  %v970_v62 = vld [vmem:[%s7262_s11 + $0x17e0] sm:$0xff]  ;;  %v972_v63 = vld [vmem:[%s7262_s11 + $0x17e8] sm:$0xff]  ;;  %969 = vst [vmem:[%s7267_s12 + $0xbe8] sm:$0xff] %v968_v61 }
  0xd8   : > { %971 = vst [vmem:[%s7267_s12 + $0xbf0] sm:$0xff] %v970_v62  ;;  %973 = vst [vmem:[%s7267_s12 + $0xbf8] sm:$0xff] %v972_v63  ;;  %v974_v0 = vld [vmem:[%s7262_s11 + $0x1800] sm:$0xff]  ;;  %v976_v1 = vld [vmem:[%s7262_s11 + $0x1808] sm:$0xff] }
  0xd9   : > { %v978_v2 = vld [vmem:[%s7262_s11 + $0x1820] sm:$0xff]  ;;  %975 = vst [vmem:[%s7267_s12 + $0xc00] sm:$0xff] %v974_v0  ;;  %977 = vst [vmem:[%s7267_s12 + $0xc08] sm:$0xff] %v976_v1  ;;  %v980_v3 = vld [vmem:[%s7262_s11 + $0x1828] sm:$0xff] }
  0xda   : > { %979 = vst [vmem:[%s7267_s12 + $0xc10] sm:$0xff] %v978_v2  ;;  %v982_v4 = vld [vmem:[%s7262_s11 + $0x1840] sm:$0xff]  ;;  %v984_v5 = vld [vmem:[%s7262_s11 + $0x1848] sm:$0xff]  ;;  %981 = vst [vmem:[%s7267_s12 + $0xc18] sm:$0xff] %v980_v3 }
  0xdb   : > { %983 = vst [vmem:[%s7267_s12 + $0xc20] sm:$0xff] %v982_v4  ;;  %985 = vst [vmem:[%s7267_s12 + $0xc28] sm:$0xff] %v984_v5  ;;  %v986_v6 = vld [vmem:[%s7262_s11 + $0x1860] sm:$0xff]  ;;  %v988_v7 = vld [vmem:[%s7262_s11 + $0x1868] sm:$0xff] }
  0xdc   : > { %v990_v8 = vld [vmem:[%s7262_s11 + $0x1880] sm:$0xff]  ;;  %987 = vst [vmem:[%s7267_s12 + $0xc30] sm:$0xff] %v986_v6  ;;  %989 = vst [vmem:[%s7267_s12 + $0xc38] sm:$0xff] %v988_v7  ;;  %v992_v9 = vld [vmem:[%s7262_s11 + $0x1888] sm:$0xff] }
  0xdd   : > { %991 = vst [vmem:[%s7267_s12 + $0xc40] sm:$0xff] %v990_v8  ;;  %v994_v10 = vld [vmem:[%s7262_s11 + $0x18a0] sm:$0xff]  ;;  %v996_v11 = vld [vmem:[%s7262_s11 + $0x18a8] sm:$0xff]  ;;  %993 = vst [vmem:[%s7267_s12 + $0xc48] sm:$0xff] %v992_v9 }
  0xde   : > { %995 = vst [vmem:[%s7267_s12 + $0xc50] sm:$0xff] %v994_v10  ;;  %997 = vst [vmem:[%s7267_s12 + $0xc58] sm:$0xff] %v996_v11  ;;  %v998_v12 = vld [vmem:[%s7262_s11 + $0x18c0] sm:$0xff]  ;;  %v1000_v13 = vld [vmem:[%s7262_s11 + $0x18c8] sm:$0xff] }
  0xdf   : > { %v1002_v14 = vld [vmem:[%s7262_s11 + $0x18e0] sm:$0xff]  ;;  %999 = vst [vmem:[%s7267_s12 + $0xc60] sm:$0xff] %v998_v12  ;;  %1001 = vst [vmem:[%s7267_s12 + $0xc68] sm:$0xff] %v1000_v13  ;;  %v1004_v15 = vld [vmem:[%s7262_s11 + $0x18e8] sm:$0xff] }
  0xe0   : > { %1003 = vst [vmem:[%s7267_s12 + $0xc70] sm:$0xff] %v1002_v14  ;;  %v1006_v16 = vld [vmem:[%s7262_s11 + $0x1900] sm:$0xff]  ;;  %v1008_v17 = vld [vmem:[%s7262_s11 + $0x1908] sm:$0xff]  ;;  %1005 = vst [vmem:[%s7267_s12 + $0xc78] sm:$0xff] %v1004_v15 }
  0xe1   : > { %1007 = vst [vmem:[%s7267_s12 + $0xc80] sm:$0xff] %v1006_v16  ;;  %1009 = vst [vmem:[%s7267_s12 + $0xc88] sm:$0xff] %v1008_v17  ;;  %v1010_v18 = vld [vmem:[%s7262_s11 + $0x1920] sm:$0xff]  ;;  %v1012_v19 = vld [vmem:[%s7262_s11 + $0x1928] sm:$0xff] }
  0xe2   : > { %v1014_v20 = vld [vmem:[%s7262_s11 + $0x1940] sm:$0xff]  ;;  %1011 = vst [vmem:[%s7267_s12 + $0xc90] sm:$0xff] %v1010_v18  ;;  %1013 = vst [vmem:[%s7267_s12 + $0xc98] sm:$0xff] %v1012_v19  ;;  %v1016_v21 = vld [vmem:[%s7262_s11 + $0x1948] sm:$0xff] }
  0xe3   : > { %1015 = vst [vmem:[%s7267_s12 + $0xca0] sm:$0xff] %v1014_v20  ;;  %v1018_v22 = vld [vmem:[%s7262_s11 + $0x1960] sm:$0xff]  ;;  %v1020_v23 = vld [vmem:[%s7262_s11 + $0x1968] sm:$0xff]  ;;  %1017 = vst [vmem:[%s7267_s12 + $0xca8] sm:$0xff] %v1016_v21 }
  0xe4   : > { %1019 = vst [vmem:[%s7267_s12 + $0xcb0] sm:$0xff] %v1018_v22  ;;  %1021 = vst [vmem:[%s7267_s12 + $0xcb8] sm:$0xff] %v1020_v23  ;;  %v1022_v24 = vld [vmem:[%s7262_s11 + $0x1980] sm:$0xff]  ;;  %v1024_v25 = vld [vmem:[%s7262_s11 + $0x1988] sm:$0xff] }
  0xe5   : > { %v1026_v26 = vld [vmem:[%s7262_s11 + $0x19a0] sm:$0xff]  ;;  %1023 = vst [vmem:[%s7267_s12 + $0xcc0] sm:$0xff] %v1022_v24  ;;  %1025 = vst [vmem:[%s7267_s12 + $0xcc8] sm:$0xff] %v1024_v25  ;;  %v1028_v27 = vld [vmem:[%s7262_s11 + $0x19a8] sm:$0xff] }
  0xe6   : > { %1027 = vst [vmem:[%s7267_s12 + $0xcd0] sm:$0xff] %v1026_v26  ;;  %v1030_v28 = vld [vmem:[%s7262_s11 + $0x19c0] sm:$0xff]  ;;  %v1032_v29 = vld [vmem:[%s7262_s11 + $0x19c8] sm:$0xff]  ;;  %1029 = vst [vmem:[%s7267_s12 + $0xcd8] sm:$0xff] %v1028_v27 }
  0xe7   : > { %1031 = vst [vmem:[%s7267_s12 + $0xce0] sm:$0xff] %v1030_v28  ;;  %1033 = vst [vmem:[%s7267_s12 + $0xce8] sm:$0xff] %v1032_v29  ;;  %v1034_v30 = vld [vmem:[%s7262_s11 + $0x19e0] sm:$0xff]  ;;  %v1036_v31 = vld [vmem:[%s7262_s11 + $0x19e8] sm:$0xff] }
  0xe8   : > { %v1038_v32 = vld [vmem:[%s7262_s11 + $0x1a00] sm:$0xff]  ;;  %1035 = vst [vmem:[%s7267_s12 + $0xcf0] sm:$0xff] %v1034_v30  ;;  %1037 = vst [vmem:[%s7267_s12 + $0xcf8] sm:$0xff] %v1036_v31  ;;  %v1040_v33 = vld [vmem:[%s7262_s11 + $0x1a08] sm:$0xff] }
  0xe9   : > { %1039 = vst [vmem:[%s7267_s12 + $0xd00] sm:$0xff] %v1038_v32  ;;  %v1042_v34 = vld [vmem:[%s7262_s11 + $0x1a20] sm:$0xff]  ;;  %v1044_v35 = vld [vmem:[%s7262_s11 + $0x1a28] sm:$0xff]  ;;  %1041 = vst [vmem:[%s7267_s12 + $0xd08] sm:$0xff] %v1040_v33 }
  0xea   : > { %1043 = vst [vmem:[%s7267_s12 + $0xd10] sm:$0xff] %v1042_v34  ;;  %1045 = vst [vmem:[%s7267_s12 + $0xd18] sm:$0xff] %v1044_v35  ;;  %v1046_v36 = vld [vmem:[%s7262_s11 + $0x1a40] sm:$0xff]  ;;  %v1048_v37 = vld [vmem:[%s7262_s11 + $0x1a48] sm:$0xff] }
  0xeb   : > { %v1050_v38 = vld [vmem:[%s7262_s11 + $0x1a60] sm:$0xff]  ;;  %1047 = vst [vmem:[%s7267_s12 + $0xd20] sm:$0xff] %v1046_v36  ;;  %1049 = vst [vmem:[%s7267_s12 + $0xd28] sm:$0xff] %v1048_v37  ;;  %v1052_v39 = vld [vmem:[%s7262_s11 + $0x1a68] sm:$0xff] }
  0xec   : > { %1051 = vst [vmem:[%s7267_s12 + $0xd30] sm:$0xff] %v1050_v38  ;;  %v1054_v40 = vld [vmem:[%s7262_s11 + $0x1a80] sm:$0xff]  ;;  %v1056_v41 = vld [vmem:[%s7262_s11 + $0x1a88] sm:$0xff]  ;;  %1053 = vst [vmem:[%s7267_s12 + $0xd38] sm:$0xff] %v1052_v39 }
  0xed   : > { %1055 = vst [vmem:[%s7267_s12 + $0xd40] sm:$0xff] %v1054_v40  ;;  %1057 = vst [vmem:[%s7267_s12 + $0xd48] sm:$0xff] %v1056_v41  ;;  %v1058_v42 = vld [vmem:[%s7262_s11 + $0x1aa0] sm:$0xff]  ;;  %v1060_v43 = vld [vmem:[%s7262_s11 + $0x1aa8] sm:$0xff] }
  0xee   : > { %v1062_v44 = vld [vmem:[%s7262_s11 + $0x1ac0] sm:$0xff]  ;;  %1059 = vst [vmem:[%s7267_s12 + $0xd50] sm:$0xff] %v1058_v42  ;;  %1061 = vst [vmem:[%s7267_s12 + $0xd58] sm:$0xff] %v1060_v43  ;;  %v1064_v45 = vld [vmem:[%s7262_s11 + $0x1ac8] sm:$0xff] }
  0xef   : > { %1063 = vst [vmem:[%s7267_s12 + $0xd60] sm:$0xff] %v1062_v44  ;;  %v1066_v46 = vld [vmem:[%s7262_s11 + $0x1ae0] sm:$0xff]  ;;  %v1068_v47 = vld [vmem:[%s7262_s11 + $0x1ae8] sm:$0xff]  ;;  %1065 = vst [vmem:[%s7267_s12 + $0xd68] sm:$0xff] %v1064_v45 }
  0xf0   : > { %1067 = vst [vmem:[%s7267_s12 + $0xd70] sm:$0xff] %v1066_v46  ;;  %1069 = vst [vmem:[%s7267_s12 + $0xd78] sm:$0xff] %v1068_v47  ;;  %v1070_v48 = vld [vmem:[%s7262_s11 + $0x1b00] sm:$0xff]  ;;  %v1072_v49 = vld [vmem:[%s7262_s11 + $0x1b08] sm:$0xff] }
  0xf1   : > { %v1074_v50 = vld [vmem:[%s7262_s11 + $0x1b20] sm:$0xff]  ;;  %1071 = vst [vmem:[%s7267_s12 + $0xd80] sm:$0xff] %v1070_v48  ;;  %1073 = vst [vmem:[%s7267_s12 + $0xd88] sm:$0xff] %v1072_v49  ;;  %v1076_v51 = vld [vmem:[%s7262_s11 + $0x1b28] sm:$0xff] }
  0xf2   : > { %1075 = vst [vmem:[%s7267_s12 + $0xd90] sm:$0xff] %v1074_v50  ;;  %v1078_v52 = vld [vmem:[%s7262_s11 + $0x1b40] sm:$0xff]  ;;  %v1080_v53 = vld [vmem:[%s7262_s11 + $0x1b48] sm:$0xff]  ;;  %1077 = vst [vmem:[%s7267_s12 + $0xd98] sm:$0xff] %v1076_v51 }
  0xf3   : > { %1079 = vst [vmem:[%s7267_s12 + $0xda0] sm:$0xff] %v1078_v52  ;;  %1081 = vst [vmem:[%s7267_s12 + $0xda8] sm:$0xff] %v1080_v53  ;;  %v1082_v54 = vld [vmem:[%s7262_s11 + $0x1b60] sm:$0xff]  ;;  %v1084_v55 = vld [vmem:[%s7262_s11 + $0x1b68] sm:$0xff] }
  0xf4   : > { %v1086_v56 = vld [vmem:[%s7262_s11 + $0x1b80] sm:$0xff]  ;;  %1083 = vst [vmem:[%s7267_s12 + $0xdb0] sm:$0xff] %v1082_v54  ;;  %1085 = vst [vmem:[%s7267_s12 + $0xdb8] sm:$0xff] %v1084_v55  ;;  %v1088_v57 = vld [vmem:[%s7262_s11 + $0x1b88] sm:$0xff] }
  0xf5   : > { %1087 = vst [vmem:[%s7267_s12 + $0xdc0] sm:$0xff] %v1086_v56  ;;  %v1090_v58 = vld [vmem:[%s7262_s11 + $0x1ba0] sm:$0xff]  ;;  %v1092_v59 = vld [vmem:[%s7262_s11 + $0x1ba8] sm:$0xff]  ;;  %1089 = vst [vmem:[%s7267_s12 + $0xdc8] sm:$0xff] %v1088_v57 }
  0xf6   : > { %1091 = vst [vmem:[%s7267_s12 + $0xdd0] sm:$0xff] %v1090_v58  ;;  %1093 = vst [vmem:[%s7267_s12 + $0xdd8] sm:$0xff] %v1092_v59  ;;  %v1094_v60 = vld [vmem:[%s7262_s11 + $0x1bc0] sm:$0xff]  ;;  %v1096_v61 = vld [vmem:[%s7262_s11 + $0x1bc8] sm:$0xff] }
  0xf7   : > { %v1098_v62 = vld [vmem:[%s7262_s11 + $0x1be0] sm:$0xff]  ;;  %1095 = vst [vmem:[%s7267_s12 + $0xde0] sm:$0xff] %v1094_v60  ;;  %1097 = vst [vmem:[%s7267_s12 + $0xde8] sm:$0xff] %v1096_v61  ;;  %v1100_v63 = vld [vmem:[%s7262_s11 + $0x1be8] sm:$0xff] }
  0xf8   : > { %1099 = vst [vmem:[%s7267_s12 + $0xdf0] sm:$0xff] %v1098_v62  ;;  %v1102_v0 = vld [vmem:[%s7262_s11 + $0x1c00] sm:$0xff]  ;;  %v1104_v1 = vld [vmem:[%s7262_s11 + $0x1c08] sm:$0xff]  ;;  %1101 = vst [vmem:[%s7267_s12 + $0xdf8] sm:$0xff] %v1100_v63 }
  0xf9   : > { %1103 = vst [vmem:[%s7267_s12 + $0xe00] sm:$0xff] %v1102_v0  ;;  %1105 = vst [vmem:[%s7267_s12 + $0xe08] sm:$0xff] %v1104_v1  ;;  %v1106_v2 = vld [vmem:[%s7262_s11 + $0x1c20] sm:$0xff]  ;;  %v1108_v3 = vld [vmem:[%s7262_s11 + $0x1c28] sm:$0xff] }
  0xfa   : > { %v1110_v4 = vld [vmem:[%s7262_s11 + $0x1c40] sm:$0xff]  ;;  %1107 = vst [vmem:[%s7267_s12 + $0xe10] sm:$0xff] %v1106_v2  ;;  %1109 = vst [vmem:[%s7267_s12 + $0xe18] sm:$0xff] %v1108_v3  ;;  %v1112_v5 = vld [vmem:[%s7262_s11 + $0x1c48] sm:$0xff] }
  0xfb   : > { %1111 = vst [vmem:[%s7267_s12 + $0xe20] sm:$0xff] %v1110_v4  ;;  %v1114_v6 = vld [vmem:[%s7262_s11 + $0x1c60] sm:$0xff]  ;;  %v1116_v7 = vld [vmem:[%s7262_s11 + $0x1c68] sm:$0xff]  ;;  %1113 = vst [vmem:[%s7267_s12 + $0xe28] sm:$0xff] %v1112_v5 }
  0xfc   : > { %1115 = vst [vmem:[%s7267_s12 + $0xe30] sm:$0xff] %v1114_v6  ;;  %1117 = vst [vmem:[%s7267_s12 + $0xe38] sm:$0xff] %v1116_v7  ;;  %v1118_v8 = vld [vmem:[%s7262_s11 + $0x1c80] sm:$0xff]  ;;  %v1120_v9 = vld [vmem:[%s7262_s11 + $0x1c88] sm:$0xff] }
  0xfd   : > { %v1122_v10 = vld [vmem:[%s7262_s11 + $0x1ca0] sm:$0xff]  ;;  %1119 = vst [vmem:[%s7267_s12 + $0xe40] sm:$0xff] %v1118_v8  ;;  %1121 = vst [vmem:[%s7267_s12 + $0xe48] sm:$0xff] %v1120_v9  ;;  %v1124_v11 = vld [vmem:[%s7262_s11 + $0x1ca8] sm:$0xff] }
  0xfe   : > { %1123 = vst [vmem:[%s7267_s12 + $0xe50] sm:$0xff] %v1122_v10  ;;  %v1126_v12 = vld [vmem:[%s7262_s11 + $0x1cc0] sm:$0xff]  ;;  %v1128_v13 = vld [vmem:[%s7262_s11 + $0x1cc8] sm:$0xff]  ;;  %1125 = vst [vmem:[%s7267_s12 + $0xe58] sm:$0xff] %v1124_v11 }
  0xff   : > { %1127 = vst [vmem:[%s7267_s12 + $0xe60] sm:$0xff] %v1126_v12  ;;  %1129 = vst [vmem:[%s7267_s12 + $0xe68] sm:$0xff] %v1128_v13  ;;  %v1130_v14 = vld [vmem:[%s7262_s11 + $0x1ce0] sm:$0xff]  ;;  %v1132_v15 = vld [vmem:[%s7262_s11 + $0x1ce8] sm:$0xff] }
 0x100   : > { %v1134_v16 = vld [vmem:[%s7262_s11 + $0x1d00] sm:$0xff]  ;;  %1131 = vst [vmem:[%s7267_s12 + $0xe70] sm:$0xff] %v1130_v14  ;;  %1133 = vst [vmem:[%s7267_s12 + $0xe78] sm:$0xff] %v1132_v15  ;;  %v1136_v17 = vld [vmem:[%s7262_s11 + $0x1d08] sm:$0xff] }
 0x101   : > { %1135 = vst [vmem:[%s7267_s12 + $0xe80] sm:$0xff] %v1134_v16  ;;  %v1138_v18 = vld [vmem:[%s7262_s11 + $0x1d20] sm:$0xff]  ;;  %v1140_v19 = vld [vmem:[%s7262_s11 + $0x1d28] sm:$0xff]  ;;  %1137 = vst [vmem:[%s7267_s12 + $0xe88] sm:$0xff] %v1136_v17 }
 0x102   : > { %1139 = vst [vmem:[%s7267_s12 + $0xe90] sm:$0xff] %v1138_v18  ;;  %1141 = vst [vmem:[%s7267_s12 + $0xe98] sm:$0xff] %v1140_v19  ;;  %v1142_v20 = vld [vmem:[%s7262_s11 + $0x1d40] sm:$0xff]  ;;  %v1144_v21 = vld [vmem:[%s7262_s11 + $0x1d48] sm:$0xff] }
 0x103   : > { %v1146_v22 = vld [vmem:[%s7262_s11 + $0x1d60] sm:$0xff]  ;;  %1143 = vst [vmem:[%s7267_s12 + $0xea0] sm:$0xff] %v1142_v20  ;;  %1145 = vst [vmem:[%s7267_s12 + $0xea8] sm:$0xff] %v1144_v21  ;;  %v1148_v23 = vld [vmem:[%s7262_s11 + $0x1d68] sm:$0xff] }
 0x104   : > { %1147 = vst [vmem:[%s7267_s12 + $0xeb0] sm:$0xff] %v1146_v22  ;;  %v1150_v24 = vld [vmem:[%s7262_s11 + $0x1d80] sm:$0xff]  ;;  %v1152_v25 = vld [vmem:[%s7262_s11 + $0x1d88] sm:$0xff]  ;;  %1149 = vst [vmem:[%s7267_s12 + $0xeb8] sm:$0xff] %v1148_v23 }
 0x105   : > { %1151 = vst [vmem:[%s7267_s12 + $0xec0] sm:$0xff] %v1150_v24  ;;  %1153 = vst [vmem:[%s7267_s12 + $0xec8] sm:$0xff] %v1152_v25  ;;  %v1154_v26 = vld [vmem:[%s7262_s11 + $0x1da0] sm:$0xff]  ;;  %v1156_v27 = vld [vmem:[%s7262_s11 + $0x1da8] sm:$0xff] }
 0x106   : > { %v1158_v28 = vld [vmem:[%s7262_s11 + $0x1dc0] sm:$0xff]  ;;  %1155 = vst [vmem:[%s7267_s12 + $0xed0] sm:$0xff] %v1154_v26  ;;  %1157 = vst [vmem:[%s7267_s12 + $0xed8] sm:$0xff] %v1156_v27  ;;  %v1160_v29 = vld [vmem:[%s7262_s11 + $0x1dc8] sm:$0xff] }
 0x107   : > { %1159 = vst [vmem:[%s7267_s12 + $0xee0] sm:$0xff] %v1158_v28  ;;  %v1162_v30 = vld [vmem:[%s7262_s11 + $0x1de0] sm:$0xff]  ;;  %v1164_v31 = vld [vmem:[%s7262_s11 + $0x1de8] sm:$0xff]  ;;  %1161 = vst [vmem:[%s7267_s12 + $0xee8] sm:$0xff] %v1160_v29 }
 0x108   : > { %1163 = vst [vmem:[%s7267_s12 + $0xef0] sm:$0xff] %v1162_v30  ;;  %1165 = vst [vmem:[%s7267_s12 + $0xef8] sm:$0xff] %v1164_v31  ;;  %v1166_v32 = vld [vmem:[%s7262_s11 + $0x1e00] sm:$0xff]  ;;  %v1168_v33 = vld [vmem:[%s7262_s11 + $0x1e08] sm:$0xff] }
 0x109   : > { %v1170_v34 = vld [vmem:[%s7262_s11 + $0x1e20] sm:$0xff]  ;;  %1167 = vst [vmem:[%s7267_s12 + $0xf00] sm:$0xff] %v1166_v32  ;;  %1169 = vst [vmem:[%s7267_s12 + $0xf08] sm:$0xff] %v1168_v33  ;;  %v1172_v35 = vld [vmem:[%s7262_s11 + $0x1e28] sm:$0xff] }
 0x10a   : > { %1171 = vst [vmem:[%s7267_s12 + $0xf10] sm:$0xff] %v1170_v34  ;;  %v1174_v36 = vld [vmem:[%s7262_s11 + $0x1e40] sm:$0xff]  ;;  %v1176_v37 = vld [vmem:[%s7262_s11 + $0x1e48] sm:$0xff]  ;;  %1173 = vst [vmem:[%s7267_s12 + $0xf18] sm:$0xff] %v1172_v35 }
 0x10b   : > { %1175 = vst [vmem:[%s7267_s12 + $0xf20] sm:$0xff] %v1174_v36  ;;  %1177 = vst [vmem:[%s7267_s12 + $0xf28] sm:$0xff] %v1176_v37  ;;  %v1178_v38 = vld [vmem:[%s7262_s11 + $0x1e60] sm:$0xff]  ;;  %v1180_v39 = vld [vmem:[%s7262_s11 + $0x1e68] sm:$0xff] }
 0x10c   : > { %v1182_v40 = vld [vmem:[%s7262_s11 + $0x1e80] sm:$0xff]  ;;  %1179 = vst [vmem:[%s7267_s12 + $0xf30] sm:$0xff] %v1178_v38  ;;  %1181 = vst [vmem:[%s7267_s12 + $0xf38] sm:$0xff] %v1180_v39  ;;  %v1184_v41 = vld [vmem:[%s7262_s11 + $0x1e88] sm:$0xff] }
 0x10d   : > { %1183 = vst [vmem:[%s7267_s12 + $0xf40] sm:$0xff] %v1182_v40  ;;  %v1186_v42 = vld [vmem:[%s7262_s11 + $0x1ea0] sm:$0xff]  ;;  %v1188_v43 = vld [vmem:[%s7262_s11 + $0x1ea8] sm:$0xff]  ;;  %1185 = vst [vmem:[%s7267_s12 + $0xf48] sm:$0xff] %v1184_v41 }
 0x10e   : > { %1187 = vst [vmem:[%s7267_s12 + $0xf50] sm:$0xff] %v1186_v42  ;;  %1189 = vst [vmem:[%s7267_s12 + $0xf58] sm:$0xff] %v1188_v43  ;;  %v1190_v44 = vld [vmem:[%s7262_s11 + $0x1ec0] sm:$0xff]  ;;  %v1192_v45 = vld [vmem:[%s7262_s11 + $0x1ec8] sm:$0xff] }
 0x10f   : > { %v1194_v46 = vld [vmem:[%s7262_s11 + $0x1ee0] sm:$0xff]  ;;  %1191 = vst [vmem:[%s7267_s12 + $0xf60] sm:$0xff] %v1190_v44  ;;  %1193 = vst [vmem:[%s7267_s12 + $0xf68] sm:$0xff] %v1192_v45  ;;  %v1196_v47 = vld [vmem:[%s7262_s11 + $0x1ee8] sm:$0xff] }
 0x110   : > { %1195 = vst [vmem:[%s7267_s12 + $0xf70] sm:$0xff] %v1194_v46  ;;  %v1198_v48 = vld [vmem:[%s7262_s11 + $0x1f00] sm:$0xff]  ;;  %v1200_v49 = vld [vmem:[%s7262_s11 + $0x1f08] sm:$0xff]  ;;  %1197 = vst [vmem:[%s7267_s12 + $0xf78] sm:$0xff] %v1196_v47 }
 0x111   : > { %1199 = vst [vmem:[%s7267_s12 + $0xf80] sm:$0xff] %v1198_v48  ;;  %1201 = vst [vmem:[%s7267_s12 + $0xf88] sm:$0xff] %v1200_v49  ;;  %v1202_v50 = vld [vmem:[%s7262_s11 + $0x1f20] sm:$0xff]  ;;  %v1204_v51 = vld [vmem:[%s7262_s11 + $0x1f28] sm:$0xff] }
 0x112   : > { %v1206_v52 = vld [vmem:[%s7262_s11 + $0x1f40] sm:$0xff]  ;;  %1203 = vst [vmem:[%s7267_s12 + $0xf90] sm:$0xff] %v1202_v50  ;;  %1205 = vst [vmem:[%s7267_s12 + $0xf98] sm:$0xff] %v1204_v51  ;;  %v1208_v53 = vld [vmem:[%s7262_s11 + $0x1f48] sm:$0xff] }
 0x113   : > { %1207 = vst [vmem:[%s7267_s12 + $0xfa0] sm:$0xff] %v1206_v52  ;;  %v1210_v54 = vld [vmem:[%s7262_s11 + $0x1f60] sm:$0xff]  ;;  %v1212_v55 = vld [vmem:[%s7262_s11 + $0x1f68] sm:$0xff]  ;;  %1209 = vst [vmem:[%s7267_s12 + $0xfa8] sm:$0xff] %v1208_v53 }
 0x114   : > { %1211 = vst [vmem:[%s7267_s12 + $0xfb0] sm:$0xff] %v1210_v54  ;;  %1213 = vst [vmem:[%s7267_s12 + $0xfb8] sm:$0xff] %v1212_v55  ;;  %v1214_v56 = vld [vmem:[%s7262_s11 + $0x1f80] sm:$0xff]  ;;  %v1216_v57 = vld [vmem:[%s7262_s11 + $0x1f88] sm:$0xff] }
 0x115   : > { %v1218_v58 = vld [vmem:[%s7262_s11 + $0x1fa0] sm:$0xff]  ;;  %1215 = vst [vmem:[%s7267_s12 + $0xfc0] sm:$0xff] %v1214_v56  ;;  %1217 = vst [vmem:[%s7267_s12 + $0xfc8] sm:$0xff] %v1216_v57  ;;  %v1220_v59 = vld [vmem:[%s7262_s11 + $0x1fa8] sm:$0xff] }
 0x116   : > { %1219 = vst [vmem:[%s7267_s12 + $0xfd0] sm:$0xff] %v1218_v58  ;;  %v1222_v60 = vld [vmem:[%s7262_s11 + $0x1fc0] sm:$0xff]  ;;  %v1224_v61 = vld [vmem:[%s7262_s11 + $0x1fc8] sm:$0xff]  ;;  %1221 = vst [vmem:[%s7267_s12 + $0xfd8] sm:$0xff] %v1220_v59 }
 0x117   : > { %1223 = vst [vmem:[%s7267_s12 + $0xfe0] sm:$0xff] %v1222_v60  ;;  %1225 = vst [vmem:[%s7267_s12 + $0xfe8] sm:$0xff] %v1224_v61  ;;  %v1226_v62 = vld [vmem:[%s7262_s11 + $0x1fe0] sm:$0xff]  ;;  %v1228_v63 = vld [vmem:[%s7262_s11 + $0x1fe8] sm:$0xff] }
 0x118   : > { %1227 = vst [vmem:[%s7267_s12 + $0xff0] sm:$0xff] %v1226_v62  ;;  %1229 = vst [vmem:[%s7267_s12 + $0xff8] sm:$0xff] %v1228_v63 }
 0x119 PF: > { %p5575_p7 = scmp.ge.s32.totalorder %s7172_s21, 1  ;;  %p1251_p8 = scmp.lt.s32.totalorder %s7172_s21, 9 }
 0x11b   : > { %p1252_p9 = pnand %p5575_p7, %p1251_p8 }
 0x11c   : > { %s1258_s13 = sand.u32 (!%p1252_p9), 1, %s7148_s15   ;;  %s5577_s14 = sshll.u32 (!%p1252_p9), %s7156_s17, 4 }
 0x11d   : > { %1255 = sbr.rel (%p1252_p9) target bundleno = 1274 (0x4fa), region = 55  ;;  %s5576_s24 = sshll.u32 (!%p1252_p9), %s1258_s13, 12 }
 0x11e   : > { %p1296_p10 = scmp.lt.s32.totalorder (!%p1252_p9), %s5577_s14, 63  ;;  %s5578_s25 = sshll.u32 (!%p1252_p9), %s7160_s18, 2 }
 0x11f   : > { %p1303_p11 = scmp.lt.s32.totalorder (!%p1252_p9), %s5578_s25, 7  ;;  %s5579_s26 = sshll.u32 (!%p1252_p9), %s7160_s18, 6 }
 0x120   : > { %p1308_p12 = scmp.lt.s32.totalorder (!%p1252_p9), %s5579_s26, 127  ;;  %p1313_p13 = scmp.lt.s32.totalorder (!%p1252_p9), %s7160_s18, 1 }
 0x121   : > { %s8319_s27 = scalar_lea.vmem (!%p1252_p9), [#allocation3], %s5576_s24  ;;  %p5582_p0 = scmp.ne.s32.totalorder (!%p1252_p9), %s7156_s17, 0 }
 0x124   : > { %s9043_s14 = smov (!%p1296_p10, %s5577_s14), 63  ;;  %s9045_s25 = smov (!%p1303_p11, %s5578_s25), 7 }
 0x125   : > { %s8299_s30 = scalar_lea.vmem %s9025_s0, %s9043_s14  ;;  %s9047_s26 = smov (!%p1308_p12, %s5579_s26), 127  ;;  %v7174_v0 = vmov (!%p5582_p0), 0.0  }
 0x126   : > { %s1305_s6 = scalar_lea.vmem %s9027_s2, %s9045_s25  ;;  %s5580_s7 = sshll.u32 %s9047_s26, 3  ;;  %1321 = vst [vmem:[#allocation2] sm:$0xff] (!%p5582_p0), %v7174_v0 }
 0x127   : > { %s8311_s10 = scalar_lea.vmem %s9028_s3, %s5580_s7  ;;  %s9049_s18 = smov (!%p1313_p13, %s7160_s18), 1 }
 0x128   : > { %s5581_s11 = sshll.u32 %s9049_s18, 1  ;;  %1320 = sbr.rel (%p5582_p0) target bundleno = 303 (0x12f), region = 63 }
 0x129   : > { %s8317_s14 = scalar_lea.vmem %s9029_s4, %s5581_s11 }
 0x12f PF: > { %v6348_v1 = vld [vmem:[%s8319_s27 + $0x4] ss:$16 sps:$4 sm:$0xff]   ;;  %v6350_v2 = vld [vmem:[%s8319_s27 + $0xc] ss:$16 sps:$4 sm:$0xff]   ;;  %v6352_v3 = vld [vmem:[%s8319_s27] ss:$16 sps:$4 sm:$0xff]   ;;  %v1843_v39 = vlaneseq }
 0x130   : > { %4513 = vmatprep.subr.bf16.mxu0 %v6348_v1  ;;  %v6353_v4 = vld [vmem:[%s8319_s27 + $0x8] ss:$16 sps:$4 sm:$0xff]   ;;  %4841 = vmatprep.subr.bf16.mxu1 %v6350_v2  ;;  %v6354_v5 = vld [vmem:[%s8319_s27 + $0x24] ss:$16 sps:$4 sm:$0xff]   ;;  %v6356_v6 = vld [vmem:[%s8319_s27 + $0x2c] ss:$16 sps:$4 sm:$0xff]  }
 0x131   : > { %4514 = vmatpush1.bf16.msra.mxu0 %v6352_v3  ;;  %4842 = vmatpush1.bf16.msra.mxu1 %v6353_v4  ;;  %v6358_v7 = vld [vmem:[%s8319_s27 + $0x20] ss:$16 sps:$4 sm:$0xff]   ;;  %v6359_v8 = vld [vmem:[%s8319_s27 + $0x28] ss:$16 sps:$4 sm:$0xff]   ;;  %v6360_v9 = vld [vmem:[%s8319_s27 + $0x44] ss:$16 sps:$4 sm:$0xff]  }
 0x132   : > { %4515 = vmatprep.subr.bf16.mxu0 %v6354_v5  ;;  %4843 = vmatprep.subr.bf16.mxu1 %v6356_v6  ;;  %v6362_v10 = vld [vmem:[%s8319_s27 + $0x4c] ss:$16 sps:$4 sm:$0xff]   ;;  %v6364_v11 = vld [vmem:[%s8319_s27 + $0x40] ss:$16 sps:$4 sm:$0xff]   ;;  %v6365_v12 = vld [vmem:[%s8319_s27 + $0x48] ss:$16 sps:$4 sm:$0xff]  }
 0x133   : > { %v6366_v13 = vld [vmem:[%s8319_s27 + $0x64] ss:$16 sps:$4 sm:$0xff]   ;;  %v6368_v14 = vld [vmem:[%s8319_s27 + $0x6c] ss:$16 sps:$4 sm:$0xff]   ;;  %v6370_v15 = vld [vmem:[%s8319_s27 + $0x60] ss:$16 sps:$4 sm:$0xff]  }
 0x134   : > { %v6371_v16 = vld [vmem:[%s8319_s27 + $0x68] ss:$16 sps:$4 sm:$0xff]   ;;  %v6372_v17 = vld [vmem:[%s8319_s27 + $0x84] ss:$16 sps:$4 sm:$0xff]   ;;  %v6374_v18 = vld [vmem:[%s8319_s27 + $0x8c] ss:$16 sps:$4 sm:$0xff]  }
 0x135   : > { %4516 = vmatpush1.bf16.msra.mxu0 %v6358_v7  ;;  %4844 = vmatpush1.bf16.msra.mxu1 %v6359_v8  ;;  %v6376_v19 = vld [vmem:[%s8319_s27 + $0x80] ss:$16 sps:$4 sm:$0xff]   ;;  %v6377_v20 = vld [vmem:[%s8319_s27 + $0x88] ss:$16 sps:$4 sm:$0xff]   ;;  %v6378_v21 = vld [vmem:[%s8319_s27 + $0xa4] ss:$16 sps:$4 sm:$0xff]  }
 0x136   : > { %4517 = vmatprep.subr.bf16.mxu0 %v6360_v9  ;;  %4845 = vmatprep.subr.bf16.mxu1 %v6362_v10  ;;  %v6380_v22 = vld [vmem:[%s8319_s27 + $0xac] ss:$16 sps:$4 sm:$0xff]   ;;  %v6382_v23 = vld [vmem:[%s8319_s27 + $0xa0] ss:$16 sps:$4 sm:$0xff]   ;;  %v6383_v24 = vld [vmem:[%s8319_s27 + $0xa8] ss:$16 sps:$4 sm:$0xff]  }
 0x137   : > { %v6384_v25 = vld [vmem:[%s8319_s27 + $0xc4] ss:$16 sps:$4 sm:$0xff]   ;;  %v6386_v26 = vld [vmem:[%s8319_s27 + $0xcc] ss:$16 sps:$4 sm:$0xff]   ;;  %v6388_v27 = vld [vmem:[%s8319_s27 + $0xc0] ss:$16 sps:$4 sm:$0xff]  }
 0x138   : > { %v6389_v28 = vld [vmem:[%s8319_s27 + $0xc8] ss:$16 sps:$4 sm:$0xff]   ;;  %v6390_v29 = vld [vmem:[%s8319_s27 + $0xe4] ss:$16 sps:$4 sm:$0xff]   ;;  %v6392_v30 = vld [vmem:[%s8319_s27 + $0xec] ss:$16 sps:$4 sm:$0xff]  }
 0x139   : > { %4518 = vmatpush1.bf16.msra.mxu0 %v6364_v11  ;;  %4846 = vmatpush1.bf16.msra.mxu1 %v6365_v12  ;;  %v6394_v31 = vld [vmem:[%s8319_s27 + $0xe0] ss:$16 sps:$4 sm:$0xff]   ;;  %v6395_v32 = vld [vmem:[%s8319_s27 + $0xe8] ss:$16 sps:$4 sm:$0xff]   ;;  %v6396_v33 = vld [vmem:[%s8319_s27 + $0x104] ss:$16 sps:$4 sm:$0xff]  }
 0x13a   : > { %4519 = vmatprep.subr.bf16.mxu0 %v6366_v13  ;;  %4847 = vmatprep.subr.bf16.mxu1 %v6368_v14  ;;  %v6398_v34 = vld [vmem:[%s8319_s27 + $0x10c] ss:$16 sps:$4 sm:$0xff]   ;;  %v6400_v35 = vld [vmem:[%s8319_s27 + $0x100] ss:$16 sps:$4 sm:$0xff]   ;;  %v6401_v36 = vld [vmem:[%s8319_s27 + $0x108] ss:$16 sps:$4 sm:$0xff]  }
 0x13b   : > { %v7175_v37 = vmov 1966171168   ;;  %v6402_v40 = vld [vmem:[%s8319_s27 + $0x124] ss:$16 sps:$4 sm:$0xff]   ;;  %v6404_v41 = vld [vmem:[%s8319_s27 + $0x12c] ss:$16 sps:$4 sm:$0xff]  }
 0x13c   : > { %v1841_v38 = vunpack.c.l.s4 %v7175_v37  ;;  %v6406_v42 = vld [vmem:[%s8319_s27 + $0x120] ss:$16 sps:$4 sm:$0xff]   ;;  %v8361_v44 = vshrl.u32 %v1843_v39, 7  ;;  %v6407_v45 = vld [vmem:[%s8319_s27 + $0x128] ss:$16 sps:$4 sm:$0xff]   ;;  %p6095_p1 = scmp.ne.s32.totalorder %s7156_s17, 3 }
 0x13d   : > { %4520 = vmatpush1.bf16.msra.mxu0 %v6370_v15  ;;  %4848 = vmatpush1.bf16.msra.mxu1 %v6371_v16  ;;  %v6408_v46 = vld [vmem:[%s8319_s27 + $0x144] ss:$16 sps:$4 sm:$0xff]   ;;  %v6410_v47 = vld [vmem:[%s8319_s27 + $0x14c] ss:$16 sps:$4 sm:$0xff]   ;;  %v6412_v48 = vld [vmem:[%s8319_s27 + $0x140] ss:$16 sps:$4 sm:$0xff]  }
 0x13e   : > { %4521 = vmatprep.subr.bf16.mxu0 %v6372_v17  ;;  %4849 = vmatprep.subr.bf16.mxu1 %v6374_v18  ;;  %v1842_v43 = vunpack.c.0.s8 %v1841_v38  ;;  %v6413_v49 = vld [vmem:[%s8319_s27 + $0x148] ss:$16 sps:$4 sm:$0xff]   ;;  %v6414_v51 = vld [vmem:[%s8319_s27 + $0x164] ss:$16 sps:$4 sm:$0xff]   ;;  %v6416_v52 = vld [vmem:[%s8319_s27 + $0x16c] ss:$16 sps:$4 sm:$0xff]  }
 0x13f   : > { %v8374_v53 = vld [vmem:[%s8299_s30] sm:$0xff]  ;;  %v6418_v54 = vld [vmem:[%s8319_s27 + $0x160] ss:$16 sps:$4 sm:$0xff]   ;;  %v6420_v57 = vld [vmem:[%s8319_s27 + $0x184] ss:$16 sps:$4 sm:$0xff]  }
 0x140   : > { %v8369_v50 = vsub.s32 %v1842_v43, %v8361_v44  ;;  %v6419_v56 = vld [vmem:[%s8319_s27 + $0x168] ss:$16 sps:$4 sm:$0xff]   ;;  %v6422_v58 = vld [vmem:[%s8319_s27 + $0x18c] ss:$16 sps:$4 sm:$0xff]   ;;  %v6424_v60 = vld [vmem:[%s8319_s27 + $0x180] ss:$16 sps:$4 sm:$0xff]  }
 0x141   : > { %4522 = vmatpush1.bf16.msra.mxu0 %v6376_v19  ;;  %4850 = vmatpush1.bf16.msra.mxu1 %v6377_v20  ;;  %v6425_v62 = vld [vmem:[%s8319_s27 + $0x188] ss:$16 sps:$4 sm:$0xff]   ;;  %v6426_v63 = vld [vmem:[%s8319_s27 + $0x1a4] ss:$16 sps:$4 sm:$0xff]   ;;  %v6428_v0 = vld [vmem:[%s8319_s27 + $0x1ac] ss:$16 sps:$4 sm:$0xff]  }
 0x142   : > { %4523 = vmatprep.subr.bf16.mxu0 %v6378_v21  ;;  %4851 = vmatprep.subr.bf16.mxu1 %v6380_v22  ;;  %v1846_v55 = vrot.slane %v8374_v53, %v8369_v50  ;;  %v6430_v1 = vld [vmem:[%s8319_s27 + $0x1a0] ss:$16 sps:$4 sm:$0xff]   ;;  %v6431_v2 = vld [vmem:[%s8319_s27 + $0x1a8] ss:$16 sps:$4 sm:$0xff]   ;;  %v6432_v3 = vld [vmem:[%s8319_s27 + $0x1c4] ss:$16 sps:$4 sm:$0xff]  }
 0x143   : > { %v6434_v4 = vld [vmem:[%s8319_s27 + $0x1cc] ss:$16 sps:$4 sm:$0xff]   ;;  %v6436_v5 = vld [vmem:[%s8319_s27 + $0x1c0] ss:$16 sps:$4 sm:$0xff]   ;;  %v6437_v6 = vld [vmem:[%s8319_s27 + $0x1c8] ss:$16 sps:$4 sm:$0xff]  }
 0x144   : > { %v1854_v59 = vcombine.high %v1846_v55, %v1846_v55  ;;  %v6438_v7 = vld [vmem:[%s8319_s27 + $0x1e4] ss:$16 sps:$4 sm:$0xff]   ;;  %v6440_v8 = vld [vmem:[%s8319_s27 + $0x1ec] ss:$16 sps:$4 sm:$0xff]   ;;  %v6442_v9 = vld [vmem:[%s8319_s27 + $0x1e0] ss:$16 sps:$4 sm:$0xff]   ;;  %v8401_v14 = vrot.slane %v1846_v55, %v8369_v50 }
 0x145   : > { %4524 = vmatpush1.bf16.msra.mxu0 %v6382_v23  ;;  %4852 = vmatpush1.bf16.msra.mxu1 %v6383_v24  ;;  %v6443_v10 = vld [vmem:[%s8319_s27 + $0x1e8] ss:$16 sps:$4 sm:$0xff]   ;;  %v6446_v11 = vld [vmem:[%s8319_s27 + $0x204] ss:$16 sps:$4 sm:$0xff]   ;;  %v6449_v12 = vld [vmem:[%s8319_s27 + $0x20c] ss:$16 sps:$4 sm:$0xff]  }
 0x146   : > { %4525 = vmatprep.subr.bf16.mxu0 %v6384_v25  ;;  %4853 = vmatprep.subr.bf16.mxu1 %v6386_v26  ;;  %v1876_v61 = vrot.slane %v1854_v59, %v8369_v50  ;;  %v6444_v13 = vld [vmem:[%s8319_s27 + $0x200] ss:$16 sps:$4 sm:$0xff]   ;;  %v6447_v15 = vld [vmem:[%s8319_s27 + $0x208] ss:$16 sps:$4 sm:$0xff]   ;;  %v6452_v16 = vld [vmem:[%s8319_s27 + $0x224] ss:$16 sps:$4 sm:$0xff]  }
 0x147   : > { %v6455_v17 = vld [vmem:[%s8319_s27 + $0x22c] ss:$16 sps:$4 sm:$0xff]   ;;  %v6450_v19 = vld [vmem:[%s8319_s27 + $0x220] ss:$16 sps:$4 sm:$0xff]   ;;  %v6453_v20 = vld [vmem:[%s8319_s27 + $0x228] ss:$16 sps:$4 sm:$0xff]  }
 0x148   : > { %4545 = vmatprep.mubr.bf16.mxu0 %v1876_v61  ;;  %4873 = vmatprep.mubr.bf16.mxu1 %v1876_v61  ;;  %v1886_v18 = vcombine.high %v1876_v61, %v1876_v61  ;;  %v6458_v21 = vld [vmem:[%s8319_s27 + $0x244] ss:$16 sps:$4 sm:$0xff]   ;;  %v6461_v22 = vld [vmem:[%s8319_s27 + $0x24c] ss:$16 sps:$4 sm:$0xff]   ;;  %v6456_v23 = vld [vmem:[%s8319_s27 + $0x240] ss:$16 sps:$4 sm:$0xff]  }
 0x149   : > { %4526 = vmatpush1.bf16.msra.mxu0 %v6388_v27  ;;  %4854 = vmatpush1.bf16.msra.mxu1 %v6389_v28  ;;  %v6459_v24 = vld [vmem:[%s8319_s27 + $0x248] ss:$16 sps:$4 sm:$0xff]   ;;  %v6464_v25 = vld [vmem:[%s8319_s27 + $0x264] ss:$16 sps:$4 sm:$0xff]   ;;  %v6467_v26 = vld [vmem:[%s8319_s27 + $0x26c] ss:$16 sps:$4 sm:$0xff]  }
 0x14a   : > { %4527 = vmatprep.subr.bf16.mxu0 %v6390_v29  ;;  %4855 = vmatprep.subr.bf16.mxu1 %v6392_v30  ;;  %v6462_v27 = vld [vmem:[%s8319_s27 + $0x260] ss:$16 sps:$4 sm:$0xff]   ;;  %v6465_v28 = vld [vmem:[%s8319_s27 + $0x268] ss:$16 sps:$4 sm:$0xff]   ;;  %v6470_v29 = vld [vmem:[%s8319_s27 + $0x284] ss:$16 sps:$4 sm:$0xff]  }
 0x14b   : > { %v6473_v30 = vld [vmem:[%s8319_s27 + $0x28c] ss:$16 sps:$4 sm:$0xff]   ;;  %v6482_v37 = vld [vmem:[%s8319_s27 + $0x2c4] ss:$16 sps:$4 sm:$0xff]   ;;  %v6480_v39 = vld [vmem:[%s8319_s27 + $0x2c0] ss:$16 sps:$4 sm:$0xff]  }
 0x14c   : > { %v6485_v38 = vld [vmem:[%s8319_s27 + $0x2cc] ss:$16 sps:$4 sm:$0xff]   ;;  %v6486_v43 = vld [vmem:[%s8319_s27 + $0x2e0] ss:$16 sps:$4 sm:$0xff]   ;;  %v6501_v55 = vld [vmem:[%s8319_s27 + $0x328] ss:$16 sps:$4 sm:$0xff]  }
 0x14d   : > { %4528 = vmatpush1.bf16.msra.mxu0 %v6394_v31  ;;  %4856 = vmatpush1.bf16.msra.mxu1 %v6395_v32  ;;  %v6468_v31 = vld [vmem:[%s8319_s27 + $0x280] ss:$16 sps:$4 sm:$0xff]   ;;  %v6471_v32 = vld [vmem:[%s8319_s27 + $0x288] ss:$16 sps:$4 sm:$0xff]   ;;  %v6515_v61 = vld [vmem:[%s8319_s27 + $0x36c] ss:$16 sps:$4 sm:$0xff]  }
 0x14e   : > { %4529 = vmatprep.subr.bf16.mxu0 %v6396_v33  ;;  %4857 = vmatprep.subr.bf16.mxu1 %v6398_v34  ;;  %v6476_v33 = vld [vmem:[%s8319_s27 + $0x2a4] ss:$16 sps:$4 sm:$0xff]   ;;  %v6479_v34 = vld [vmem:[%s8319_s27 + $0x2ac] ss:$16 sps:$4 sm:$0xff]   ;;  %v6507_v59 = vld [vmem:[%s8319_s27 + $0x348] ss:$16 sps:$4 sm:$0xff]  }
 0x151   : > { %4530 = vmatpush1.bf16.msra.mxu0 %v6400_v35  ;;  %4858 = vmatpush1.bf16.msra.mxu1 %v6401_v36  ;;  %v6474_v35 = vld [vmem:[%s8319_s27 + $0x2a0] ss:$16 sps:$4 sm:$0xff]   ;;  %v6477_v36 = vld [vmem:[%s8319_s27 + $0x2a8] ss:$16 sps:$4 sm:$0xff]  }
 0x152   : > { %4531 = vmatprep.subr.bf16.mxu0 %v6402_v40  ;;  %4859 = vmatprep.subr.bf16.mxu1 %v6404_v41  ;;  %v6483_v40 = vld [vmem:[%s8319_s27 + $0x2c8] ss:$16 sps:$4 sm:$0xff]   ;;  %v6488_v41 = vld [vmem:[%s8319_s27 + $0x2e4] ss:$16 sps:$4 sm:$0xff]  }
 0x155   : > { %4532 = vmatpush1.bf16.msra.mxu0 %v6406_v42  ;;  %4860 = vmatpush1.bf16.msra.mxu1 %v6407_v45  ;;  %v6491_v42 = vld [vmem:[%s8319_s27 + $0x2ec] ss:$16 sps:$4 sm:$0xff]   ;;  %v6489_v45 = vld [vmem:[%s8319_s27 + $0x2e8] ss:$16 sps:$4 sm:$0xff]  }
 0x156   : > { %4533 = vmatprep.subr.bf16.mxu0 %v6408_v46  ;;  %4861 = vmatprep.subr.bf16.mxu1 %v6410_v47  ;;  %v6494_v46 = vld [vmem:[%s8319_s27 + $0x304] ss:$16 sps:$4 sm:$0xff]   ;;  %v6497_v47 = vld [vmem:[%s8319_s27 + $0x30c] ss:$16 sps:$4 sm:$0xff]  }
 0x159   : > { %4534 = vmatpush1.bf16.msra.mxu0 %v6412_v48  ;;  %4862 = vmatpush1.bf16.msra.mxu1 %v6413_v49  ;;  %v6492_v48 = vld [vmem:[%s8319_s27 + $0x300] ss:$16 sps:$4 sm:$0xff]   ;;  %v6495_v49 = vld [vmem:[%s8319_s27 + $0x308] ss:$16 sps:$4 sm:$0xff]  }
 0x15a   : > { %4535 = vmatprep.subr.bf16.mxu0 %v6414_v51  ;;  %4863 = vmatprep.subr.bf16.mxu1 %v6416_v52  ;;  %v6500_v51 = vld [vmem:[%s8319_s27 + $0x324] ss:$16 sps:$4 sm:$0xff]   ;;  %v6503_v52 = vld [vmem:[%s8319_s27 + $0x32c] ss:$16 sps:$4 sm:$0xff]  }
 0x15d   : > { %4536 = vmatpush1.bf16.msra.mxu0 %v6418_v54  ;;  %4864 = vmatpush1.bf16.msra.mxu1 %v6419_v56  ;;  %v6498_v54 = vld [vmem:[%s8319_s27 + $0x320] ss:$16 sps:$4 sm:$0xff]   ;;  %v6506_v56 = vld [vmem:[%s8319_s27 + $0x344] ss:$16 sps:$4 sm:$0xff]  }
 0x15e   : > { %4537 = vmatprep.subr.bf16.mxu0 %v6420_v57  ;;  %4865 = vmatprep.subr.bf16.mxu1 %v6422_v58  ;;  %v6509_v57 = vld [vmem:[%s8319_s27 + $0x34c] ss:$16 sps:$4 sm:$0xff]   ;;  %v6504_v58 = vld [vmem:[%s8319_s27 + $0x340] ss:$16 sps:$4 sm:$0xff]  }
 0x161   : > { %4538 = vmatpush1.bf16.msra.mxu0 %v6424_v60  ;;  %4866 = vmatpush1.bf16.msra.mxu1 %v6425_v62  ;;  %v6512_v60 = vld [vmem:[%s8319_s27 + $0x364] ss:$16 sps:$4 sm:$0xff]   ;;  %v6510_v62 = vld [vmem:[%s8319_s27 + $0x360] ss:$16 sps:$4 sm:$0xff]  }
 0x162   : > { %4539 = vmatprep.subr.bf16.mxu0 %v6426_v63  ;;  %4867 = vmatprep.subr.bf16.mxu1 %v6428_v0  ;;  %v6513_v63 = vld [vmem:[%s8319_s27 + $0x368] ss:$16 sps:$4 sm:$0xff]   ;;  %v6518_v0 = vld [vmem:[%s8319_s27 + $0x384] ss:$16 sps:$4 sm:$0xff]  }
 0x165   : > { %4540 = vmatpush1.bf16.msra.mxu0 %v6430_v1  ;;  %4868 = vmatpush1.bf16.msra.mxu1 %v6431_v2  ;;  %v6521_v1 = vld [vmem:[%s8319_s27 + $0x38c] ss:$16 sps:$4 sm:$0xff]   ;;  %v6516_v2 = vld [vmem:[%s8319_s27 + $0x380] ss:$16 sps:$4 sm:$0xff]  }
 0x166   : > { %4541 = vmatprep.subr.bf16.mxu0 %v6432_v3  ;;  %4869 = vmatprep.subr.bf16.mxu1 %v6434_v4  ;;  %v6519_v3 = vld [vmem:[%s8319_s27 + $0x388] ss:$16 sps:$4 sm:$0xff]   ;;  %v6524_v4 = vld [vmem:[%s8319_s27 + $0x3a4] ss:$16 sps:$4 sm:$0xff]  }
 0x169   : > { %4542 = vmatpush1.bf16.msra.mxu0 %v6436_v5  ;;  %4870 = vmatpush1.bf16.msra.mxu1 %v6437_v6  ;;  %v6527_v5 = vld [vmem:[%s8319_s27 + $0x3ac] ss:$16 sps:$4 sm:$0xff]   ;;  %v6522_v6 = vld [vmem:[%s8319_s27 + $0x3a0] ss:$16 sps:$4 sm:$0xff]  }
 0x16a   : > { %4543 = vmatprep.subr.bf16.mxu0 %v6438_v7  ;;  %4871 = vmatprep.subr.bf16.mxu1 %v6440_v8  ;;  %v6525_v7 = vld [vmem:[%s8319_s27 + $0x3a8] ss:$16 sps:$4 sm:$0xff]   ;;  %v6530_v8 = vld [vmem:[%s8319_s27 + $0x3c4] ss:$16 sps:$4 sm:$0xff]  }
 0x16d   : > { %4544 = vmatpush1.bf16.msra.mxu0 %v6442_v9  ;;  %4872 = vmatpush1.bf16.msra.mxu1 %v6443_v10  ;;  %v6533_v9 = vld [vmem:[%s8319_s27 + $0x3cc] ss:$16 sps:$4 sm:$0xff]   ;;  %v1839_v10 = vcombine.high %v8374_v53, %v8374_v53  ;;  %v6537_v53 = vld [vmem:[%s8319_s27 + $0x3e8] ss:$16 sps:$4 sm:$0xff]  }
 0x16e   : > { %4554 = vmatprep.subr.bf16.mxu0 %v6446_v11  ;;  %4882 = vmatprep.subr.bf16.mxu1 %v6449_v12  ;;  %v6528_v11 = vld [vmem:[%s8319_s27 + $0x3c0] ss:$16 sps:$4 sm:$0xff]   ;;  %v6531_v12 = vld [vmem:[%s8319_s27 + $0x3c8] ss:$16 sps:$4 sm:$0xff]  }
 0x170   : > { %4546 = vmatmul.mubr.bf16.vlgmr.msra.gmra.mrb[0].mxu0 %v8401_v14  ;;  %4874 = vmatmul.mubr.bf16.vlgmr.msra.gmra.mrb[0].mxu1 %v8401_v14 }
 0x171   : > { %4555 = vmatpush1.bf16.msra.mxu0 %v6444_v13  ;;  %4883 = vmatpush1.bf16.msra.mxu1 %v6447_v15  ;;  %v6536_v13 = vld [vmem:[%s8319_s27 + $0x3e4] ss:$16 sps:$4 sm:$0xff]   ;;  %v6539_v15 = vld [vmem:[%s8319_s27 + $0x3ec] ss:$16 sps:$4 sm:$0xff]  }
 0x172   : > { %4556 = vmatprep.subr.bf16.mxu0 %v6452_v16  ;;  %4884 = vmatprep.subr.bf16.mxu1 %v6455_v17  ;;  %v8467_v16 = vrot.slane %v1839_v10, %v8369_v50  ;;  %v6534_v17 = vld [vmem:[%s8319_s27 + $0x3e0] ss:$16 sps:$4 sm:$0xff]   ;;  %v6615_v10 = vld [vmem:[%s8319_s27 + $0x588] ss:$16 sps:$4 sm:$0xff]  }
 0x173   : > { %4586 = vmatprep.mubr.bf16.mxu0 %v1886_v18  ;;  %4914 = vmatprep.mubr.bf16.mxu1 %v1886_v18  ;;  %v6542_v18 = vld [vmem:[%s8319_s27 + $0x404] ss:$16 sps:$4 sm:$0xff]  }
 0x175   : > { %4557 = vmatpush1.bf16.msra.mxu0 %v6450_v19  ;;  %4885 = vmatpush1.bf16.msra.mxu1 %v6453_v20  ;;  %v6545_v19 = vld [vmem:[%s8319_s27 + $0x40c] ss:$16 sps:$4 sm:$0xff]   ;;  %v1855_v20 = vcombine.high %v8467_v16, %v8467_v16 }
 0x176   : > { %4558 = vmatprep.subr.bf16.mxu0 %v6458_v21  ;;  %4886 = vmatprep.subr.bf16.mxu1 %v6461_v22  ;;  %v6540_v21 = vld [vmem:[%s8319_s27 + $0x400] ss:$16 sps:$4 sm:$0xff]   ;;  %v1884_v22 = vcombine.high %v8401_v14, %v8401_v14  ;;  %v6549_v14 = vld [vmem:[%s8319_s27 + $0x428] ss:$16 sps:$4 sm:$0xff]  }
 0x179   : > { %4559 = vmatpush1.bf16.msra.mxu0 %v6456_v23  ;;  %4887 = vmatpush1.bf16.msra.mxu1 %v6459_v24  ;;  %v6543_v23 = vld [vmem:[%s8319_s27 + $0x408] ss:$16 sps:$4 sm:$0xff]   ;;  %v6548_v24 = vld [vmem:[%s8319_s27 + $0x424] ss:$16 sps:$4 sm:$0xff]  }
 0x17a   : > { %4560 = vmatprep.subr.bf16.mxu0 %v6464_v25  ;;  %4888 = vmatprep.subr.bf16.mxu1 %v6467_v26  ;;  %v6551_v25 = vld [vmem:[%s8319_s27 + $0x42c] ss:$16 sps:$4 sm:$0xff]   ;;  %v8482_v26 = vrot.slane %v1855_v20, %v8369_v50  ;;  %v6632_v20 = vld [vmem:[%s8319_s27 + $0x5e4] ss:$16 sps:$4 sm:$0xff]  }
 0x17d   : > { %4561 = vmatpush1.bf16.msra.mxu0 %v6462_v27  ;;  %4889 = vmatpush1.bf16.msra.mxu1 %v6465_v28  ;;  %v6546_v27 = vld [vmem:[%s8319_s27 + $0x420] ss:$16 sps:$4 sm:$0xff]   ;;  %v6554_v28 = vld [vmem:[%s8319_s27 + $0x444] ss:$16 sps:$4 sm:$0xff]  }
 0x17e   : > { %4562 = vmatprep.subr.bf16.mxu0 %v6470_v29  ;;  %4890 = vmatprep.subr.bf16.mxu1 %v6473_v30  ;;  %v6557_v29 = vld [vmem:[%s8319_s27 + $0x44c] ss:$16 sps:$4 sm:$0xff]   ;;  %v6552_v30 = vld [vmem:[%s8319_s27 + $0x440] ss:$16 sps:$4 sm:$0xff]  }
 0x181   : > { %4563 = vmatpush1.bf16.msra.mxu0 %v6468_v31  ;;  %4891 = vmatpush1.bf16.msra.mxu1 %v6471_v32  ;;  %v6555_v31 = vld [vmem:[%s8319_s27 + $0x448] ss:$16 sps:$4 sm:$0xff]   ;;  %v6560_v32 = vld [vmem:[%s8319_s27 + $0x464] ss:$16 sps:$4 sm:$0xff]  }
 0x182   : > { %4564 = vmatprep.subr.bf16.mxu0 %v6476_v33  ;;  %4892 = vmatprep.subr.bf16.mxu1 %v6479_v34  ;;  %v6563_v33 = vld [vmem:[%s8319_s27 + $0x46c] ss:$16 sps:$4 sm:$0xff]   ;;  %v6558_v34 = vld [vmem:[%s8319_s27 + $0x460] ss:$16 sps:$4 sm:$0xff]  }
 0x185   : > { %4565 = vmatpush1.bf16.msra.mxu0 %v6474_v35  ;;  %4893 = vmatpush1.bf16.msra.mxu1 %v6477_v36  ;;  %v6561_v35 = vld [vmem:[%s8319_s27 + $0x468] ss:$16 sps:$4 sm:$0xff]   ;;  %v6566_v36 = vld [vmem:[%s8319_s27 + $0x484] ss:$16 sps:$4 sm:$0xff]  }
 0x186   : > { %4566 = vmatprep.subr.bf16.mxu0 %v6482_v37  ;;  %4894 = vmatprep.subr.bf16.mxu1 %v6485_v38  ;;  %v6569_v37 = vld [vmem:[%s8319_s27 + $0x48c] ss:$16 sps:$4 sm:$0xff]   ;;  %v6564_v38 = vld [vmem:[%s8319_s27 + $0x480] ss:$16 sps:$4 sm:$0xff]  }
 0x189   : > { %4567 = vmatpush1.bf16.msra.mxu0 %v6480_v39  ;;  %4895 = vmatpush1.bf16.msra.mxu1 %v6483_v40  ;;  %v6567_v39 = vld [vmem:[%s8319_s27 + $0x488] ss:$16 sps:$4 sm:$0xff]   ;;  %v6572_v40 = vld [vmem:[%s8319_s27 + $0x4a4] ss:$16 sps:$4 sm:$0xff]  }
 0x18a   : > { %4568 = vmatprep.subr.bf16.mxu0 %v6488_v41  ;;  %4896 = vmatprep.subr.bf16.mxu1 %v6491_v42  ;;  %v6575_v41 = vld [vmem:[%s8319_s27 + $0x4ac] ss:$16 sps:$4 sm:$0xff]   ;;  %v6570_v42 = vld [vmem:[%s8319_s27 + $0x4a0] ss:$16 sps:$4 sm:$0xff]  }
 0x18d   : > { %4569 = vmatpush1.bf16.msra.mxu0 %v6486_v43  ;;  %4897 = vmatpush1.bf16.msra.mxu1 %v6489_v45  ;;  %v6573_v43 = vld [vmem:[%s8319_s27 + $0x4a8] ss:$16 sps:$4 sm:$0xff]   ;;  %v6578_v45 = vld [vmem:[%s8319_s27 + $0x4c4] ss:$16 sps:$4 sm:$0xff]  }
 0x18e   : > { %4570 = vmatprep.subr.bf16.mxu0 %v6494_v46  ;;  %4898 = vmatprep.subr.bf16.mxu1 %v6497_v47  ;;  %v6581_v46 = vld [vmem:[%s8319_s27 + $0x4cc] ss:$16 sps:$4 sm:$0xff]   ;;  %v6576_v47 = vld [vmem:[%s8319_s27 + $0x4c0] ss:$16 sps:$4 sm:$0xff]  }
 0x191   : > { %4571 = vmatpush1.bf16.msra.mxu0 %v6492_v48  ;;  %4899 = vmatpush1.bf16.msra.mxu1 %v6495_v49  ;;  %v6579_v48 = vld [vmem:[%s8319_s27 + $0x4c8] ss:$16 sps:$4 sm:$0xff]   ;;  %v6584_v49 = vld [vmem:[%s8319_s27 + $0x4e4] ss:$16 sps:$4 sm:$0xff]  }
 0x192   : > { %4572 = vmatprep.subr.bf16.mxu0 %v6500_v51  ;;  %4900 = vmatprep.subr.bf16.mxu1 %v6503_v52  ;;  %v6587_v51 = vld [vmem:[%s8319_s27 + $0x4ec] ss:$16 sps:$4 sm:$0xff]   ;;  %v6582_v52 = vld [vmem:[%s8319_s27 + $0x4e0] ss:$16 sps:$4 sm:$0xff]  }
 0x195   : > { %4573 = vmatpush1.bf16.msra.mxu0 %v6498_v54  ;;  %4901 = vmatpush1.bf16.msra.mxu1 %v6501_v55  ;;  %v6585_v54 = vld [vmem:[%s8319_s27 + $0x4e8] ss:$16 sps:$4 sm:$0xff]   ;;  %v6590_v55 = vld [vmem:[%s8319_s27 + $0x504] ss:$16 sps:$4 sm:$0xff]  }
 0x196   : > { %4574 = vmatprep.subr.bf16.mxu0 %v6506_v56  ;;  %4902 = vmatprep.subr.bf16.mxu1 %v6509_v57  ;;  %v6593_v56 = vld [vmem:[%s8319_s27 + $0x50c] ss:$16 sps:$4 sm:$0xff]   ;;  %v6588_v57 = vld [vmem:[%s8319_s27 + $0x500] ss:$16 sps:$4 sm:$0xff]  }
 0x199   : > { %4575 = vmatpush1.bf16.msra.mxu0 %v6504_v58  ;;  %4903 = vmatpush1.bf16.msra.mxu1 %v6507_v59  ;;  %v6591_v58 = vld [vmem:[%s8319_s27 + $0x508] ss:$16 sps:$4 sm:$0xff]   ;;  %v6596_v59 = vld [vmem:[%s8319_s27 + $0x524] ss:$16 sps:$4 sm:$0xff]  }
 0x19a   : > { %4576 = vmatprep.subr.bf16.mxu0 %v6512_v60  ;;  %4904 = vmatprep.subr.bf16.mxu1 %v6515_v61  ;;  %v6599_v60 = vld [vmem:[%s8319_s27 + $0x52c] ss:$16 sps:$4 sm:$0xff]   ;;  %v6594_v61 = vld [vmem:[%s8319_s27 + $0x520] ss:$16 sps:$4 sm:$0xff]  }
 0x19d   : > { %4577 = vmatpush1.bf16.msra.mxu0 %v6510_v62  ;;  %4905 = vmatpush1.bf16.msra.mxu1 %v6513_v63  ;;  %v6597_v62 = vld [vmem:[%s8319_s27 + $0x528] ss:$16 sps:$4 sm:$0xff]   ;;  %v6602_v63 = vld [vmem:[%s8319_s27 + $0x544] ss:$16 sps:$4 sm:$0xff]  }
 0x19e   : > { %4578 = vmatprep.subr.bf16.mxu0 %v6518_v0  ;;  %4906 = vmatprep.subr.bf16.mxu1 %v6521_v1  ;;  %v6605_v0 = vld [vmem:[%s8319_s27 + $0x54c] ss:$16 sps:$4 sm:$0xff]   ;;  %v6600_v1 = vld [vmem:[%s8319_s27 + $0x540] ss:$16 sps:$4 sm:$0xff]  }
 0x1a1   : > { %4579 = vmatpush1.bf16.msra.mxu0 %v6516_v2  ;;  %4907 = vmatpush1.bf16.msra.mxu1 %v6519_v3  ;;  %v6603_v2 = vld [vmem:[%s8319_s27 + $0x548] ss:$16 sps:$4 sm:$0xff]   ;;  %v6608_v3 = vld [vmem:[%s8319_s27 + $0x564] ss:$16 sps:$4 sm:$0xff]  }
 0x1a2   : > { %4580 = vmatprep.subr.bf16.mxu0 %v6524_v4  ;;  %4908 = vmatprep.subr.bf16.mxu1 %v6527_v5  ;;  %v6611_v4 = vld [vmem:[%s8319_s27 + $0x56c] ss:$16 sps:$4 sm:$0xff]   ;;  %v6606_v5 = vld [vmem:[%s8319_s27 + $0x560] ss:$16 sps:$4 sm:$0xff]  }
 0x1a5   : > { %4581 = vmatpush1.bf16.msra.mxu0 %v6522_v6  ;;  %4909 = vmatpush1.bf16.msra.mxu1 %v6525_v7  ;;  %v6609_v6 = vld [vmem:[%s8319_s27 + $0x568] ss:$16 sps:$4 sm:$0xff]   ;;  %v6614_v7 = vld [vmem:[%s8319_s27 + $0x584] ss:$16 sps:$4 sm:$0xff]  }
 0x1a6   : > { %4582 = vmatprep.subr.bf16.mxu0 %v6530_v8  ;;  %4910 = vmatprep.subr.bf16.mxu1 %v6533_v9  ;;  %v6617_v8 = vld [vmem:[%s8319_s27 + $0x58c] ss:$16 sps:$4 sm:$0xff]   ;;  %v6612_v9 = vld [vmem:[%s8319_s27 + $0x580] ss:$16 sps:$4 sm:$0xff]  }
 0x1a9   : > { %4583 = vmatpush1.bf16.msra.mxu0 %v6528_v11  ;;  %4911 = vmatpush1.bf16.msra.mxu1 %v6531_v12  ;;  %v6620_v11 = vld [vmem:[%s8319_s27 + $0x5a4] ss:$16 sps:$4 sm:$0xff]   ;;  %v6623_v12 = vld [vmem:[%s8319_s27 + $0x5ac] ss:$16 sps:$4 sm:$0xff]  }
 0x1aa   : > { %4584 = vmatprep.subr.bf16.mxu0 %v6536_v13  ;;  %4912 = vmatprep.subr.bf16.mxu1 %v6539_v15  ;;  %v6618_v13 = vld [vmem:[%s8319_s27 + $0x5a0] ss:$16 sps:$4 sm:$0xff]   ;;  %v6621_v15 = vld [vmem:[%s8319_s27 + $0x5a8] ss:$16 sps:$4 sm:$0xff]  }
 0x1ad   : > { %4585 = vmatpush1.bf16.msra.mxu0 %v6534_v17  ;;  %4913 = vmatpush1.bf16.msra.mxu1 %v6537_v53  ;;  %v6626_v17 = vld [vmem:[%s8319_s27 + $0x5c4] ss:$16 sps:$4 sm:$0xff]   ;;  %v6629_v53 = vld [vmem:[%s8319_s27 + $0x5cc] ss:$16 sps:$4 sm:$0xff]  }
 0x1ae   : > { %4595 = vmatprep.subr.bf16.mxu0 %v6542_v18  ;;  %4923 = vmatprep.subr.bf16.mxu1 %v6545_v19  ;;  %v6624_v18 = vld [vmem:[%s8319_s27 + $0x5c0] ss:$16 sps:$4 sm:$0xff]   ;;  %v6627_v19 = vld [vmem:[%s8319_s27 + $0x5c8] ss:$16 sps:$4 sm:$0xff]  }
 0x1b0   : > { %4587 = vmatmul.mubr.bf16.vlgmr.msra.gmra.mrb[0].mxu0 %v1884_v22  ;;  %4915 = vmatmul.mubr.bf16.vlgmr.msra.gmra.mrb[0].mxu1 %v1884_v22  ;;  %v6630_v22 = vld [vmem:[%s8319_s27 + $0x5e0] ss:$16 sps:$4 sm:$0xff]  }
 0x1b1   : > { %4596 = vmatpush1.bf16.msra.mxu0 %v6540_v21  ;;  %4924 = vmatpush1.bf16.msra.mxu1 %v6543_v23  ;;  %v6635_v21 = vld [vmem:[%s8319_s27 + $0x5ec] ss:$16 sps:$4 sm:$0xff]   ;;  %v6633_v23 = vld [vmem:[%s8319_s27 + $0x5e8] ss:$16 sps:$4 sm:$0xff]  }
 0x1b2   : > { %4597 = vmatprep.subr.bf16.mxu0 %v6548_v24  ;;  %4925 = vmatprep.subr.bf16.mxu1 %v6551_v25  ;;  %v6639_v24 = vld [vmem:[%s8319_s27 + $0x604] ss:$16 sps:$4 sm:$0xff]   ;;  %v6642_v25 = vld [vmem:[%s8319_s27 + $0x60c] ss:$16 sps:$4 sm:$0xff]  }
 0x1b3   : > { %4627 = vmatprep.mubr.bf16.mxu0 %v8482_v26  ;;  %4955 = vmatprep.mubr.bf16.mxu1 %v8482_v26 }
 0x1b5   : > { %4598 = vmatpush1.bf16.msra.mxu0 %v6546_v27  ;;  %4926 = vmatpush1.bf16.msra.mxu1 %v6549_v14  ;;  %v6637_v27 = vld [vmem:[%s8319_s27 + $0x600] ss:$16 sps:$4 sm:$0xff]   ;;  %v8549_v14 = vrot.slane %v8467_v16, %v8369_v50 }
 0x1b6   : > { %4599 = vmatprep.subr.bf16.mxu0 %v6554_v28  ;;  %4927 = vmatprep.subr.bf16.mxu1 %v6557_v29  ;;  %v6640_v28 = vld [vmem:[%s8319_s27 + $0x608] ss:$16 sps:$4 sm:$0xff]   ;;  %v6645_v29 = vld [vmem:[%s8319_s27 + $0x624] ss:$16 sps:$4 sm:$0xff]   ;;  %v6643_v16 = vld [vmem:[%s8319_s27 + $0x620] ss:$16 sps:$4 sm:$0xff]  }
 0x1b9   : > { %4600 = vmatpush1.bf16.msra.mxu0 %v6552_v30  ;;  %4928 = vmatpush1.bf16.msra.mxu1 %v6555_v31  ;;  %v6648_v30 = vld [vmem:[%s8319_s27 + $0x62c] ss:$16 sps:$4 sm:$0xff]   ;;  %v1887_v31 = vcombine.high %v8482_v26, %v8482_v26  ;;  %v6649_v26 = vld [vmem:[%s8319_s27 + $0x640] ss:$16 sps:$4 sm:$0xff]  }
 0x1ba   : > { %4601 = vmatprep.subr.bf16.mxu0 %v6560_v32  ;;  %4929 = vmatprep.subr.bf16.mxu1 %v6563_v33  ;;  %v6646_v32 = vld [vmem:[%s8319_s27 + $0x628] ss:$16 sps:$4 sm:$0xff]   ;;  %v6651_v33 = vld [vmem:[%s8319_s27 + $0x644] ss:$16 sps:$4 sm:$0xff]  }
 0x1bd   : > { %4602 = vmatpush1.bf16.msra.mxu0 %v6558_v34  ;;  %4930 = vmatpush1.bf16.msra.mxu1 %v6561_v35  ;;  %v6654_v34 = vld [vmem:[%s8319_s27 + $0x64c] ss:$16 sps:$4 sm:$0xff]   ;;  %v6652_v35 = vld [vmem:[%s8319_s27 + $0x648] ss:$16 sps:$4 sm:$0xff]  }
 0x1be   : > { %4603 = vmatprep.subr.bf16.mxu0 %v6566_v36  ;;  %4931 = vmatprep.subr.bf16.mxu1 %v6569_v37  ;;  %v6657_v36 = vld [vmem:[%s8319_s27 + $0x664] ss:$16 sps:$4 sm:$0xff]   ;;  %v6660_v37 = vld [vmem:[%s8319_s27 + $0x66c] ss:$16 sps:$4 sm:$0xff]  }
 0x1c1   : > { %4604 = vmatpush1.bf16.msra.mxu0 %v6564_v38  ;;  %4932 = vmatpush1.bf16.msra.mxu1 %v6567_v39  ;;  %v6655_v38 = vld [vmem:[%s8319_s27 + $0x660] ss:$16 sps:$4 sm:$0xff]   ;;  %v6658_v39 = vld [vmem:[%s8319_s27 + $0x668] ss:$16 sps:$4 sm:$0xff]  }
 0x1c2   : > { %4605 = vmatprep.subr.bf16.mxu0 %v6572_v40  ;;  %4933 = vmatprep.subr.bf16.mxu1 %v6575_v41  ;;  %v6663_v40 = vld [vmem:[%s8319_s27 + $0x684] ss:$16 sps:$4 sm:$0xff]   ;;  %v6666_v41 = vld [vmem:[%s8319_s27 + $0x68c] ss:$16 sps:$4 sm:$0xff]  }
 0x1c5   : > { %4606 = vmatpush1.bf16.msra.mxu0 %v6570_v42  ;;  %4934 = vmatpush1.bf16.msra.mxu1 %v6573_v43  ;;  %v6661_v42 = vld [vmem:[%s8319_s27 + $0x680] ss:$16 sps:$4 sm:$0xff]   ;;  %v6664_v43 = vld [vmem:[%s8319_s27 + $0x688] ss:$16 sps:$4 sm:$0xff]  }
 0x1c6   : > { %4607 = vmatprep.subr.bf16.mxu0 %v6578_v45  ;;  %4935 = vmatprep.subr.bf16.mxu1 %v6581_v46  ;;  %v6669_v45 = vld [vmem:[%s8319_s27 + $0x6a4] ss:$16 sps:$4 sm:$0xff]   ;;  %v6672_v46 = vld [vmem:[%s8319_s27 + $0x6ac] ss:$16 sps:$4 sm:$0xff]  }
 0x1c9   : > { %4608 = vmatpush1.bf16.msra.mxu0 %v6576_v47  ;;  %4936 = vmatpush1.bf16.msra.mxu1 %v6579_v48  ;;  %v6667_v47 = vld [vmem:[%s8319_s27 + $0x6a0] ss:$16 sps:$4 sm:$0xff]   ;;  %v6670_v48 = vld [vmem:[%s8319_s27 + $0x6a8] ss:$16 sps:$4 sm:$0xff]  }
 0x1ca   : > { %4609 = vmatprep.subr.bf16.mxu0 %v6584_v49  ;;  %4937 = vmatprep.subr.bf16.mxu1 %v6587_v51  ;;  %v6675_v49 = vld [vmem:[%s8319_s27 + $0x6c4] ss:$16 sps:$4 sm:$0xff]   ;;  %v6678_v51 = vld [vmem:[%s8319_s27 + $0x6cc] ss:$16 sps:$4 sm:$0xff]  }
 0x1cd   : > { %4610 = vmatpush1.bf16.msra.mxu0 %v6582_v52  ;;  %4938 = vmatpush1.bf16.msra.mxu1 %v6585_v54  ;;  %v6673_v52 = vld [vmem:[%s8319_s27 + $0x6c0] ss:$16 sps:$4 sm:$0xff]   ;;  %v6676_v54 = vld [vmem:[%s8319_s27 + $0x6c8] ss:$16 sps:$4 sm:$0xff]  }
 0x1ce   : > { %4611 = vmatprep.subr.bf16.mxu0 %v6590_v55  ;;  %4939 = vmatprep.subr.bf16.mxu1 %v6593_v56  ;;  %v6681_v55 = vld [vmem:[%s8319_s27 + $0x6e4] ss:$16 sps:$4 sm:$0xff]   ;;  %v6684_v56 = vld [vmem:[%s8319_s27 + $0x6ec] ss:$16 sps:$4 sm:$0xff]  }
 0x1d1   : > { %4612 = vmatpush1.bf16.msra.mxu0 %v6588_v57  ;;  %4940 = vmatpush1.bf16.msra.mxu1 %v6591_v58  ;;  %v6679_v57 = vld [vmem:[%s8319_s27 + $0x6e0] ss:$16 sps:$4 sm:$0xff]   ;;  %v6682_v58 = vld [vmem:[%s8319_s27 + $0x6e8] ss:$16 sps:$4 sm:$0xff]  }
 0x1d2   : > { %4613 = vmatprep.subr.bf16.mxu0 %v6596_v59  ;;  %4941 = vmatprep.subr.bf16.mxu1 %v6599_v60  ;;  %v6687_v59 = vld [vmem:[%s8319_s27 + $0x704] ss:$16 sps:$4 sm:$0xff]   ;;  %v6690_v60 = vld [vmem:[%s8319_s27 + $0x70c] ss:$16 sps:$4 sm:$0xff]  }
 0x1d5   : > { %4614 = vmatpush1.bf16.msra.mxu0 %v6594_v61  ;;  %4942 = vmatpush1.bf16.msra.mxu1 %v6597_v62  ;;  %v6685_v61 = vld [vmem:[%s8319_s27 + $0x700] ss:$16 sps:$4 sm:$0xff]   ;;  %v6688_v62 = vld [vmem:[%s8319_s27 + $0x708] ss:$16 sps:$4 sm:$0xff]  }
 0x1d6   : > { %4615 = vmatprep.subr.bf16.mxu0 %v6602_v63  ;;  %4943 = vmatprep.subr.bf16.mxu1 %v6605_v0  ;;  %v6693_v63 = vld [vmem:[%s8319_s27 + $0x724] ss:$16 sps:$4 sm:$0xff]   ;;  %v6696_v0 = vld [vmem:[%s8319_s27 + $0x72c] ss:$16 sps:$4 sm:$0xff]  }
 0x1d9   : > { %4616 = vmatpush1.bf16.msra.mxu0 %v6600_v1  ;;  %4944 = vmatpush1.bf16.msra.mxu1 %v6603_v2  ;;  %v6691_v1 = vld [vmem:[%s8319_s27 + $0x720] ss:$16 sps:$4 sm:$0xff]   ;;  %v6694_v2 = vld [vmem:[%s8319_s27 + $0x728] ss:$16 sps:$4 sm:$0xff]  }
 0x1da   : > { %4617 = vmatprep.subr.bf16.mxu0 %v6608_v3  ;;  %4945 = vmatprep.subr.bf16.mxu1 %v6611_v4  ;;  %v6699_v3 = vld [vmem:[%s8319_s27 + $0x744] ss:$16 sps:$4 sm:$0xff]   ;;  %v6702_v4 = vld [vmem:[%s8319_s27 + $0x74c] ss:$16 sps:$4 sm:$0xff]  }
 0x1dd   : > { %4618 = vmatpush1.bf16.msra.mxu0 %v6606_v5  ;;  %4946 = vmatpush1.bf16.msra.mxu1 %v6609_v6  ;;  %v6697_v5 = vld [vmem:[%s8319_s27 + $0x740] ss:$16 sps:$4 sm:$0xff]   ;;  %v6700_v6 = vld [vmem:[%s8319_s27 + $0x748] ss:$16 sps:$4 sm:$0xff]  }
 0x1de   : > { %4619 = vmatprep.subr.bf16.mxu0 %v6614_v7  ;;  %4947 = vmatprep.subr.bf16.mxu1 %v6617_v8  ;;  %v6705_v7 = vld [vmem:[%s8319_s27 + $0x764] ss:$16 sps:$4 sm:$0xff]   ;;  %v6708_v8 = vld [vmem:[%s8319_s27 + $0x76c] ss:$16 sps:$4 sm:$0xff]  }
 0x1e1   : > { %4620 = vmatpush1.bf16.msra.mxu0 %v6612_v9  ;;  %4948 = vmatpush1.bf16.msra.mxu1 %v6615_v10  ;;  %v6703_v9 = vld [vmem:[%s8319_s27 + $0x760] ss:$16 sps:$4 sm:$0xff]   ;;  %v6706_v10 = vld [vmem:[%s8319_s27 + $0x768] ss:$16 sps:$4 sm:$0xff]  }
 0x1e2   : > { %4621 = vmatprep.subr.bf16.mxu0 %v6620_v11  ;;  %4949 = vmatprep.subr.bf16.mxu1 %v6623_v12  ;;  %v6711_v11 = vld [vmem:[%s8319_s27 + $0x784] ss:$16 sps:$4 sm:$0xff]   ;;  %v6714_v12 = vld [vmem:[%s8319_s27 + $0x78c] ss:$16 sps:$4 sm:$0xff]  }
 0x1e5   : > { %4622 = vmatpush1.bf16.msra.mxu0 %v6618_v13  ;;  %4950 = vmatpush1.bf16.msra.mxu1 %v6621_v15  ;;  %v6709_v13 = vld [vmem:[%s8319_s27 + $0x780] ss:$16 sps:$4 sm:$0xff]   ;;  %v6712_v15 = vld [vmem:[%s8319_s27 + $0x788] ss:$16 sps:$4 sm:$0xff]  }
 0x1e6   : > { %4623 = vmatprep.subr.bf16.mxu0 %v6626_v17  ;;  %4951 = vmatprep.subr.bf16.mxu1 %v6629_v53  ;;  %v6717_v17 = vld [vmem:[%s8319_s27 + $0x7a4] ss:$16 sps:$4 sm:$0xff]   ;;  %v6720_v53 = vld [vmem:[%s8319_s27 + $0x7ac] ss:$16 sps:$4 sm:$0xff]  }
 0x1e9   : > { %4624 = vmatpush1.bf16.msra.mxu0 %v6624_v18  ;;  %4952 = vmatpush1.bf16.msra.mxu1 %v6627_v19  ;;  %v6715_v18 = vld [vmem:[%s8319_s27 + $0x7a0] ss:$16 sps:$4 sm:$0xff]   ;;  %v6718_v19 = vld [vmem:[%s8319_s27 + $0x7a8] ss:$16 sps:$4 sm:$0xff]  }
 0x1ea   : > { %4625 = vmatprep.subr.bf16.mxu0 %v6632_v20  ;;  %4953 = vmatprep.subr.bf16.mxu1 %v6635_v21  ;;  %v6723_v20 = vld [vmem:[%s8319_s27 + $0x7c4] ss:$16 sps:$4 sm:$0xff]   ;;  %v6726_v21 = vld [vmem:[%s8319_s27 + $0x7cc] ss:$16 sps:$4 sm:$0xff]  }
 0x1ed   : > { %4626 = vmatpush1.bf16.msra.mxu0 %v6630_v22  ;;  %4954 = vmatpush1.bf16.msra.mxu1 %v6633_v23  ;;  %v8611_v22 = vld [vmem:[%s8299_s30 + $0x8] sm:$0xff] }
 0x1ee   : > { %4636 = vmatprep.subr.bf16.mxu0 %v6639_v24  ;;  %4964 = vmatprep.subr.bf16.mxu1 %v6642_v25  ;;  %v6721_v23 = vld [vmem:[%s8319_s27 + $0x7c0] ss:$16 sps:$4 sm:$0xff]   ;;  %v6724_v24 = vld [vmem:[%s8319_s27 + $0x7c8] ss:$16 sps:$4 sm:$0xff]   ;;  %v6729_v25 = vld [vmem:[%s8319_s27 + $0x7e4] ss:$16 sps:$4 sm:$0xff]  }
 0x1f0   : > { %4628 = vmatmul.mubr.bf16.vlgmr.msra.gmra.mrb[0].mxu0 %v8549_v14  ;;  %4956 = vmatmul.mubr.bf16.vlgmr.msra.gmra.mrb[0].mxu1 %v8549_v14 }
 0x1f1   : > { %4637 = vmatpush1.bf16.msra.mxu0 %v6637_v27  ;;  %4965 = vmatpush1.bf16.msra.mxu1 %v6640_v28  ;;  %v6732_v27 = vld [vmem:[%s8319_s27 + $0x7ec] ss:$16 sps:$4 sm:$0xff]   ;;  %v8619_v28 = vrot.slane %v8611_v22, %v8369_v50 }
 0x1f2   : > { %4638 = vmatprep.subr.bf16.mxu0 %v6645_v29  ;;  %4966 = vmatprep.subr.bf16.mxu1 %v6648_v30  ;;  %v6727_v29 = vld [vmem:[%s8319_s27 + $0x7e0] ss:$16 sps:$4 sm:$0xff]   ;;  %v6730_v30 = vld [vmem:[%s8319_s27 + $0x7e8] ss:$16 sps:$4 sm:$0xff]  }
 0x1f3   : > { %4668 = vmatprep.mubr.bf16.mxu0 %v1887_v31  ;;  %4996 = vmatprep.mubr.bf16.mxu1 %v1887_v31  ;;  %v6735_v31 = vld [vmem:[%s8319_s27 + $0x804] ss:$16 sps:$4 sm:$0xff]  }
 0x1f5   : > { %4639 = vmatpush1.bf16.msra.mxu0 %v6643_v16  ;;  %4967 = vmatpush1.bf16.msra.mxu1 %v6646_v32  ;;  %v6738_v16 = vld [vmem:[%s8319_s27 + $0x80c] ss:$16 sps:$4 sm:$0xff]   ;;  %v1903_v32 = vcombine.high %v8619_v28, %v8619_v28 }
 0x1f6   : > { %4640 = vmatprep.subr.bf16.mxu0 %v6651_v33  ;;  %4968 = vmatprep.subr.bf16.mxu1 %v6654_v34  ;;  %v1885_v33 = vcombine.high %v8549_v14, %v8549_v14  ;;  %v6733_v34 = vld [vmem:[%s8319_s27 + $0x800] ss:$16 sps:$4 sm:$0xff]  }
 0x1f7   : > { %v6739_v14 = vld [vmem:[%s8319_s27 + $0x820] ss:$16 sps:$4 sm:$0xff]  }
 0x1f9   : > { %4641 = vmatpush1.bf16.msra.mxu0 %v6649_v26  ;;  %4969 = vmatpush1.bf16.msra.mxu1 %v6652_v35  ;;  %v6736_v26 = vld [vmem:[%s8319_s27 + $0x808] ss:$16 sps:$4 sm:$0xff]   ;;  %v6741_v35 = vld [vmem:[%s8319_s27 + $0x824] ss:$16 sps:$4 sm:$0xff]  }
 0x1fa   : > { %4642 = vmatprep.subr.bf16.mxu0 %v6657_v36  ;;  %4970 = vmatprep.subr.bf16.mxu1 %v6660_v37  ;;  %v6744_v36 = vld [vmem:[%s8319_s27 + $0x82c] ss:$16 sps:$4 sm:$0xff]   ;;  %v8634_v37 = vrot.slane %v1903_v32, %v8369_v50  ;;  %v6820_v32 = vld [vmem:[%s8319_s27 + $0x9c8] ss:$16 sps:$4 sm:$0xff]  }
 0x1fd   : > { %4643 = vmatpush1.bf16.msra.mxu0 %v6655_v38  ;;  %4971 = vmatpush1.bf16.msra.mxu1 %v6658_v39  ;;  %v6742_v38 = vld [vmem:[%s8319_s27 + $0x828] ss:$16 sps:$4 sm:$0xff]   ;;  %v6747_v39 = vld [vmem:[%s8319_s27 + $0x844] ss:$16 sps:$4 sm:$0xff]  }
 0x1fe   : > { %4644 = vmatprep.subr.bf16.mxu0 %v6663_v40  ;;  %4972 = vmatprep.subr.bf16.mxu1 %v6666_v41  ;;  %v6750_v40 = vld [vmem:[%s8319_s27 + $0x84c] ss:$16 sps:$4 sm:$0xff]   ;;  %v6745_v41 = vld [vmem:[%s8319_s27 + $0x840] ss:$16 sps:$4 sm:$0xff]  }
 0x201   : > { %4645 = vmatpush1.bf16.msra.mxu0 %v6661_v42  ;;  %4973 = vmatpush1.bf16.msra.mxu1 %v6664_v43  ;;  %v6748_v42 = vld [vmem:[%s8319_s27 + $0x848] ss:$16 sps:$4 sm:$0xff]   ;;  %v6753_v43 = vld [vmem:[%s8319_s27 + $0x864] ss:$16 sps:$4 sm:$0xff]  }
 0x202   : > { %4646 = vmatprep.subr.bf16.mxu0 %v6669_v45  ;;  %4974 = vmatprep.subr.bf16.mxu1 %v6672_v46  ;;  %v6756_v45 = vld [vmem:[%s8319_s27 + $0x86c] ss:$16 sps:$4 sm:$0xff]   ;;  %v6751_v46 = vld [vmem:[%s8319_s27 + $0x860] ss:$16 sps:$4 sm:$0xff]  }
 0x205   : > { %4647 = vmatpush1.bf16.msra.mxu0 %v6667_v47  ;;  %4975 = vmatpush1.bf16.msra.mxu1 %v6670_v48  ;;  %v6754_v47 = vld [vmem:[%s8319_s27 + $0x868] ss:$16 sps:$4 sm:$0xff]   ;;  %v6759_v48 = vld [vmem:[%s8319_s27 + $0x884] ss:$16 sps:$4 sm:$0xff]  }
 0x206   : > { %4648 = vmatprep.subr.bf16.mxu0 %v6675_v49  ;;  %4976 = vmatprep.subr.bf16.mxu1 %v6678_v51  ;;  %v6762_v49 = vld [vmem:[%s8319_s27 + $0x88c] ss:$16 sps:$4 sm:$0xff]   ;;  %v6757_v51 = vld [vmem:[%s8319_s27 + $0x880] ss:$16 sps:$4 sm:$0xff]  }
 0x209   : > { %4649 = vmatpush1.bf16.msra.mxu0 %v6673_v52  ;;  %4977 = vmatpush1.bf16.msra.mxu1 %v6676_v54  ;;  %v6760_v52 = vld [vmem:[%s8319_s27 + $0x888] ss:$16 sps:$4 sm:$0xff]   ;;  %v6765_v54 = vld [vmem:[%s8319_s27 + $0x8a4] ss:$16 sps:$4 sm:$0xff]  }
 0x20a   : > { %4650 = vmatprep.subr.bf16.mxu0 %v6681_v55  ;;  %4978 = vmatprep.subr.bf16.mxu1 %v6684_v56  ;;  %v6768_v55 = vld [vmem:[%s8319_s27 + $0x8ac] ss:$16 sps:$4 sm:$0xff]   ;;  %v6763_v56 = vld [vmem:[%s8319_s27 + $0x8a0] ss:$16 sps:$4 sm:$0xff]  }
 0x20d   : > { %4651 = vmatpush1.bf16.msra.mxu0 %v6679_v57  ;;  %4979 = vmatpush1.bf16.msra.mxu1 %v6682_v58  ;;  %v6766_v57 = vld [vmem:[%s8319_s27 + $0x8a8] ss:$16 sps:$4 sm:$0xff]   ;;  %v6771_v58 = vld [vmem:[%s8319_s27 + $0x8c4] ss:$16 sps:$4 sm:$0xff]  }
 0x20e   : > { %4652 = vmatprep.subr.bf16.mxu0 %v6687_v59  ;;  %4980 = vmatprep.subr.bf16.mxu1 %v6690_v60  ;;  %v6774_v59 = vld [vmem:[%s8319_s27 + $0x8cc] ss:$16 sps:$4 sm:$0xff]   ;;  %v6769_v60 = vld [vmem:[%s8319_s27 + $0x8c0] ss:$16 sps:$4 sm:$0xff]  }
 0x211   : > { %4653 = vmatpush1.bf16.msra.mxu0 %v6685_v61  ;;  %4981 = vmatpush1.bf16.msra.mxu1 %v6688_v62  ;;  %v6772_v61 = vld [vmem:[%s8319_s27 + $0x8c8] ss:$16 sps:$4 sm:$0xff]   ;;  %v6777_v62 = vld [vmem:[%s8319_s27 + $0x8e4] ss:$16 sps:$4 sm:$0xff]  }
 0x212   : > { %4654 = vmatprep.subr.bf16.mxu0 %v6693_v63  ;;  %4982 = vmatprep.subr.bf16.mxu1 %v6696_v0  ;;  %v6780_v63 = vld [vmem:[%s8319_s27 + $0x8ec] ss:$16 sps:$4 sm:$0xff]   ;;  %v6775_v0 = vld [vmem:[%s8319_s27 + $0x8e0] ss:$16 sps:$4 sm:$0xff]  }
 0x215   : > { %4655 = vmatpush1.bf16.msra.mxu0 %v6691_v1  ;;  %4983 = vmatpush1.bf16.msra.mxu1 %v6694_v2  ;;  %v6778_v1 = vld [vmem:[%s8319_s27 + $0x8e8] ss:$16 sps:$4 sm:$0xff]   ;;  %v6783_v2 = vld [vmem:[%s8319_s27 + $0x904] ss:$16 sps:$4 sm:$0xff]  }
 0x216   : > { %4656 = vmatprep.subr.bf16.mxu0 %v6699_v3  ;;  %4984 = vmatprep.subr.bf16.mxu1 %v6702_v4  ;;  %v6786_v3 = vld [vmem:[%s8319_s27 + $0x90c] ss:$16 sps:$4 sm:$0xff]   ;;  %v6781_v4 = vld [vmem:[%s8319_s27 + $0x900] ss:$16 sps:$4 sm:$0xff]  }
 0x219   : > { %4657 = vmatpush1.bf16.msra.mxu0 %v6697_v5  ;;  %4985 = vmatpush1.bf16.msra.mxu1 %v6700_v6  ;;  %v6784_v5 = vld [vmem:[%s8319_s27 + $0x908] ss:$16 sps:$4 sm:$0xff]   ;;  %v6789_v6 = vld [vmem:[%s8319_s27 + $0x924] ss:$16 sps:$4 sm:$0xff]  }
 0x21a   : > { %4658 = vmatprep.subr.bf16.mxu0 %v6705_v7  ;;  %4986 = vmatprep.subr.bf16.mxu1 %v6708_v8  ;;  %v6792_v7 = vld [vmem:[%s8319_s27 + $0x92c] ss:$16 sps:$4 sm:$0xff]   ;;  %v6787_v8 = vld [vmem:[%s8319_s27 + $0x920] ss:$16 sps:$4 sm:$0xff]  }
 0x21d   : > { %4659 = vmatpush1.bf16.msra.mxu0 %v6703_v9  ;;  %4987 = vmatpush1.bf16.msra.mxu1 %v6706_v10  ;;  %v6790_v9 = vld [vmem:[%s8319_s27 + $0x928] ss:$16 sps:$4 sm:$0xff]   ;;  %v6795_v10 = vld [vmem:[%s8319_s27 + $0x944] ss:$16 sps:$4 sm:$0xff]  }
 0x21e   : > { %4660 = vmatprep.subr.bf16.mxu0 %v6711_v11  ;;  %4988 = vmatprep.subr.bf16.mxu1 %v6714_v12  ;;  %v6798_v11 = vld [vmem:[%s8319_s27 + $0x94c] ss:$16 sps:$4 sm:$0xff]   ;;  %v6793_v12 = vld [vmem:[%s8319_s27 + $0x940] ss:$16 sps:$4 sm:$0xff]  }
 0x221   : > { %4661 = vmatpush1.bf16.msra.mxu0 %v6709_v13  ;;  %4989 = vmatpush1.bf16.msra.mxu1 %v6712_v15  ;;  %v6796_v13 = vld [vmem:[%s8319_s27 + $0x948] ss:$16 sps:$4 sm:$0xff]   ;;  %v6801_v15 = vld [vmem:[%s8319_s27 + $0x964] ss:$16 sps:$4 sm:$0xff]  }
 0x222   : > { %4662 = vmatprep.subr.bf16.mxu0 %v6717_v17  ;;  %4990 = vmatprep.subr.bf16.mxu1 %v6720_v53  ;;  %v6804_v17 = vld [vmem:[%s8319_s27 + $0x96c] ss:$16 sps:$4 sm:$0xff]   ;;  %v6799_v53 = vld [vmem:[%s8319_s27 + $0x960] ss:$16 sps:$4 sm:$0xff]  }
 0x225   : > { %4663 = vmatpush1.bf16.msra.mxu0 %v6715_v18  ;;  %4991 = vmatpush1.bf16.msra.mxu1 %v6718_v19  ;;  %v6802_v18 = vld [vmem:[%s8319_s27 + $0x968] ss:$16 sps:$4 sm:$0xff]   ;;  %v6807_v19 = vld [vmem:[%s8319_s27 + $0x984] ss:$16 sps:$4 sm:$0xff]  }
 0x226   : > { %4664 = vmatprep.subr.bf16.mxu0 %v6723_v20  ;;  %4992 = vmatprep.subr.bf16.mxu1 %v6726_v21  ;;  %v6810_v20 = vld [vmem:[%s8319_s27 + $0x98c] ss:$16 sps:$4 sm:$0xff]   ;;  %v6805_v21 = vld [vmem:[%s8319_s27 + $0x980] ss:$16 sps:$4 sm:$0xff]  }
 0x229   : > { %4665 = vmatpush1.bf16.msra.mxu0 %v6721_v23  ;;  %4993 = vmatpush1.bf16.msra.mxu1 %v6724_v24  ;;  %v6808_v23 = vld [vmem:[%s8319_s27 + $0x988] ss:$16 sps:$4 sm:$0xff]   ;;  %v6813_v24 = vld [vmem:[%s8319_s27 + $0x9a4] ss:$16 sps:$4 sm:$0xff]  }
 0x22a   : > { %4666 = vmatprep.subr.bf16.mxu0 %v6729_v25  ;;  %4994 = vmatprep.subr.bf16.mxu1 %v6732_v27  ;;  %v6816_v25 = vld [vmem:[%s8319_s27 + $0x9ac] ss:$16 sps:$4 sm:$0xff]   ;;  %v6811_v27 = vld [vmem:[%s8319_s27 + $0x9a0] ss:$16 sps:$4 sm:$0xff]  }
 0x22d   : > { %4667 = vmatpush1.bf16.msra.mxu0 %v6727_v29  ;;  %4995 = vmatpush1.bf16.msra.mxu1 %v6730_v30  ;;  %v6814_v29 = vld [vmem:[%s8319_s27 + $0x9a8] ss:$16 sps:$4 sm:$0xff]   ;;  %v6819_v30 = vld [vmem:[%s8319_s27 + $0x9c4] ss:$16 sps:$4 sm:$0xff]  }
 0x22e   : > { %4677 = vmatprep.subr.bf16.mxu0 %v6735_v31  ;;  %5005 = vmatprep.subr.bf16.mxu1 %v6738_v16  ;;  %v6822_v31 = vld [vmem:[%s8319_s27 + $0x9cc] ss:$16 sps:$4 sm:$0xff]   ;;  %v6817_v16 = vld [vmem:[%s8319_s27 + $0x9c0] ss:$16 sps:$4 sm:$0xff]  }
 0x230   : > { %4669 = vmatmul.mubr.bf16.vlgmr.msra.gmra.mrb[0].mxu0 %v1885_v33  ;;  %4997 = vmatmul.mubr.bf16.vlgmr.msra.gmra.mrb[0].mxu1 %v1885_v33  ;;  %v6825_v33 = vld [vmem:[%s8319_s27 + $0x9e4] ss:$16 sps:$4 sm:$0xff]  }
 0x231   : > { %4678 = vmatpush1.bf16.msra.mxu0 %v6733_v34  ;;  %5006 = vmatpush1.bf16.msra.mxu1 %v6736_v26  ;;  %v6828_v34 = vld [vmem:[%s8319_s27 + $0x9ec] ss:$16 sps:$4 sm:$0xff]   ;;  %v6823_v26 = vld [vmem:[%s8319_s27 + $0x9e0] ss:$16 sps:$4 sm:$0xff]  }
 0x232   : > { %4679 = vmatprep.subr.bf16.mxu0 %v6741_v35  ;;  %5007 = vmatprep.subr.bf16.mxu1 %v6744_v36  ;;  %v6826_v35 = vld [vmem:[%s8319_s27 + $0x9e8] ss:$16 sps:$4 sm:$0xff]   ;;  %v6831_v36 = vld [vmem:[%s8319_s27 + $0xa04] ss:$16 sps:$4 sm:$0xff]  }
 0x233   : > { %4709 = vmatprep.mubr.bf16.mxu0 %v8634_v37  ;;  %5037 = vmatprep.mubr.bf16.mxu1 %v8634_v37 }
 0x235   : > { %4680 = vmatpush1.bf16.msra.mxu0 %v6739_v14  ;;  %5008 = vmatpush1.bf16.msra.mxu1 %v6742_v38  ;;  %v6834_v14 = vld [vmem:[%s8319_s27 + $0xa0c] ss:$16 sps:$4 sm:$0xff]   ;;  %v8700_v38 = vrot.slane %v8619_v28, %v8369_v50  ;;  %v6835_v28 = vld [vmem:[%s8319_s27 + $0xa20] ss:$16 sps:$4 sm:$0xff]  }
 0x236   : > { %4681 = vmatprep.subr.bf16.mxu0 %v6747_v39  ;;  %5009 = vmatprep.subr.bf16.mxu1 %v6750_v40  ;;  %v6829_v39 = vld [vmem:[%s8319_s27 + $0xa00] ss:$16 sps:$4 sm:$0xff]   ;;  %v6832_v40 = vld [vmem:[%s8319_s27 + $0xa08] ss:$16 sps:$4 sm:$0xff]  }
 0x239   : > { %4682 = vmatpush1.bf16.msra.mxu0 %v6745_v41  ;;  %5010 = vmatpush1.bf16.msra.mxu1 %v6748_v42  ;;  %v6837_v41 = vld [vmem:[%s8319_s27 + $0xa24] ss:$16 sps:$4 sm:$0xff]   ;;  %v6840_v42 = vld [vmem:[%s8319_s27 + $0xa2c] ss:$16 sps:$4 sm:$0xff]  }
 0x23a   : > { %4683 = vmatprep.subr.bf16.mxu0 %v6753_v43  ;;  %5011 = vmatprep.subr.bf16.mxu1 %v6756_v45  ;;  %v1935_v43 = vcombine.high %v8634_v37, %v8634_v37  ;;  %v6838_v45 = vld [vmem:[%s8319_s27 + $0xa28] ss:$16 sps:$4 sm:$0xff]   ;;  %v6841_v37 = vld [vmem:[%s8319_s27 + $0xa40] ss:$16 sps:$4 sm:$0xff]  }
 0x23d   : > { %4684 = vmatpush1.bf16.msra.mxu0 %v6751_v46  ;;  %5012 = vmatpush1.bf16.msra.mxu1 %v6754_v47  ;;  %v6843_v46 = vld [vmem:[%s8319_s27 + $0xa44] ss:$16 sps:$4 sm:$0xff]   ;;  %v6846_v47 = vld [vmem:[%s8319_s27 + $0xa4c] ss:$16 sps:$4 sm:$0xff]  }
 0x23e   : > { %4685 = vmatprep.subr.bf16.mxu0 %v6759_v48  ;;  %5013 = vmatprep.subr.bf16.mxu1 %v6762_v49  ;;  %v6844_v48 = vld [vmem:[%s8319_s27 + $0xa48] ss:$16 sps:$4 sm:$0xff]   ;;  %v6849_v49 = vld [vmem:[%s8319_s27 + $0xa64] ss:$16 sps:$4 sm:$0xff]  }
 0x241   : > { %4686 = vmatpush1.bf16.msra.mxu0 %v6757_v51  ;;  %5014 = vmatpush1.bf16.msra.mxu1 %v6760_v52  ;;  %v6852_v51 = vld [vmem:[%s8319_s27 + $0xa6c] ss:$16 sps:$4 sm:$0xff]   ;;  %v6847_v52 = vld [vmem:[%s8319_s27 + $0xa60] ss:$16 sps:$4 sm:$0xff]  }
 0x242   : > { %4687 = vmatprep.subr.bf16.mxu0 %v6765_v54  ;;  %5015 = vmatprep.subr.bf16.mxu1 %v6768_v55  ;;  %v6850_v54 = vld [vmem:[%s8319_s27 + $0xa68] ss:$16 sps:$4 sm:$0xff]   ;;  %v6855_v55 = vld [vmem:[%s8319_s27 + $0xa84] ss:$16 sps:$4 sm:$0xff]  }
 0x245   : > { %4688 = vmatpush1.bf16.msra.mxu0 %v6763_v56  ;;  %5016 = vmatpush1.bf16.msra.mxu1 %v6766_v57  ;;  %v6858_v56 = vld [vmem:[%s8319_s27 + $0xa8c] ss:$16 sps:$4 sm:$0xff]   ;;  %v6853_v57 = vld [vmem:[%s8319_s27 + $0xa80] ss:$16 sps:$4 sm:$0xff]  }
 0x246   : > { %4689 = vmatprep.subr.bf16.mxu0 %v6771_v58  ;;  %5017 = vmatprep.subr.bf16.mxu1 %v6774_v59  ;;  %v6856_v58 = vld [vmem:[%s8319_s27 + $0xa88] ss:$16 sps:$4 sm:$0xff]   ;;  %v6861_v59 = vld [vmem:[%s8319_s27 + $0xaa4] ss:$16 sps:$4 sm:$0xff]  }
 0x249   : > { %4690 = vmatpush1.bf16.msra.mxu0 %v6769_v60  ;;  %5018 = vmatpush1.bf16.msra.mxu1 %v6772_v61  ;;  %v6864_v60 = vld [vmem:[%s8319_s27 + $0xaac] ss:$16 sps:$4 sm:$0xff]   ;;  %v6859_v61 = vld [vmem:[%s8319_s27 + $0xaa0] ss:$16 sps:$4 sm:$0xff]  }
 0x24a   : > { %4691 = vmatprep.subr.bf16.mxu0 %v6777_v62  ;;  %5019 = vmatprep.subr.bf16.mxu1 %v6780_v63  ;;  %v6862_v62 = vld [vmem:[%s8319_s27 + $0xaa8] ss:$16 sps:$4 sm:$0xff]   ;;  %v6867_v63 = vld [vmem:[%s8319_s27 + $0xac4] ss:$16 sps:$4 sm:$0xff]  }
 0x24d   : > { %4692 = vmatpush1.bf16.msra.mxu0 %v6775_v0  ;;  %5020 = vmatpush1.bf16.msra.mxu1 %v6778_v1  ;;  %v6870_v0 = vld [vmem:[%s8319_s27 + $0xacc] ss:$16 sps:$4 sm:$0xff]   ;;  %v6865_v1 = vld [vmem:[%s8319_s27 + $0xac0] ss:$16 sps:$4 sm:$0xff]  }
 0x24e   : > { %4693 = vmatprep.subr.bf16.mxu0 %v6783_v2  ;;  %5021 = vmatprep.subr.bf16.mxu1 %v6786_v3  ;;  %v6868_v2 = vld [vmem:[%s8319_s27 + $0xac8] ss:$16 sps:$4 sm:$0xff]   ;;  %v6873_v3 = vld [vmem:[%s8319_s27 + $0xae4] ss:$16 sps:$4 sm:$0xff]  }
 0x251   : > { %4694 = vmatpush1.bf16.msra.mxu0 %v6781_v4  ;;  %5022 = vmatpush1.bf16.msra.mxu1 %v6784_v5  ;;  %v6876_v4 = vld [vmem:[%s8319_s27 + $0xaec] ss:$16 sps:$4 sm:$0xff]   ;;  %v6871_v5 = vld [vmem:[%s8319_s27 + $0xae0] ss:$16 sps:$4 sm:$0xff]  }
 0x252   : > { %4695 = vmatprep.subr.bf16.mxu0 %v6789_v6  ;;  %5023 = vmatprep.subr.bf16.mxu1 %v6792_v7  ;;  %v6874_v6 = vld [vmem:[%s8319_s27 + $0xae8] ss:$16 sps:$4 sm:$0xff]   ;;  %v6879_v7 = vld [vmem:[%s8319_s27 + $0xb04] ss:$16 sps:$4 sm:$0xff]  }
 0x255   : > { %4696 = vmatpush1.bf16.msra.mxu0 %v6787_v8  ;;  %5024 = vmatpush1.bf16.msra.mxu1 %v6790_v9  ;;  %v6882_v8 = vld [vmem:[%s8319_s27 + $0xb0c] ss:$16 sps:$4 sm:$0xff]   ;;  %v6877_v9 = vld [vmem:[%s8319_s27 + $0xb00] ss:$16 sps:$4 sm:$0xff]  }
 0x256   : > { %4697 = vmatprep.subr.bf16.mxu0 %v6795_v10  ;;  %5025 = vmatprep.subr.bf16.mxu1 %v6798_v11  ;;  %v6880_v10 = vld [vmem:[%s8319_s27 + $0xb08] ss:$16 sps:$4 sm:$0xff]   ;;  %v6885_v11 = vld [vmem:[%s8319_s27 + $0xb24] ss:$16 sps:$4 sm:$0xff]  }
 0x259   : > { %4698 = vmatpush1.bf16.msra.mxu0 %v6793_v12  ;;  %5026 = vmatpush1.bf16.msra.mxu1 %v6796_v13  ;;  %v6888_v12 = vld [vmem:[%s8319_s27 + $0xb2c] ss:$16 sps:$4 sm:$0xff]   ;;  %v6883_v13 = vld [vmem:[%s8319_s27 + $0xb20] ss:$16 sps:$4 sm:$0xff]  }
 0x25a   : > { %4699 = vmatprep.subr.bf16.mxu0 %v6801_v15  ;;  %5027 = vmatprep.subr.bf16.mxu1 %v6804_v17  ;;  %v6886_v15 = vld [vmem:[%s8319_s27 + $0xb28] ss:$16 sps:$4 sm:$0xff]   ;;  %v6891_v17 = vld [vmem:[%s8319_s27 + $0xb44] ss:$16 sps:$4 sm:$0xff]  }
 0x25d   : > { %4700 = vmatpush1.bf16.msra.mxu0 %v6799_v53  ;;  %5028 = vmatpush1.bf16.msra.mxu1 %v6802_v18  ;;  %v6894_v53 = vld [vmem:[%s8319_s27 + $0xb4c] ss:$16 sps:$4 sm:$0xff]   ;;  %v6889_v18 = vld [vmem:[%s8319_s27 + $0xb40] ss:$16 sps:$4 sm:$0xff]  }
 0x25e   : > { %4701 = vmatprep.subr.bf16.mxu0 %v6807_v19  ;;  %5029 = vmatprep.subr.bf16.mxu1 %v6810_v20  ;;  %v6892_v19 = vld [vmem:[%s8319_s27 + $0xb48] ss:$16 sps:$4 sm:$0xff]   ;;  %v6897_v20 = vld [vmem:[%s8319_s27 + $0xb64] ss:$16 sps:$4 sm:$0xff]  }
 0x261   : > { %4702 = vmatpush1.bf16.msra.mxu0 %v6805_v21  ;;  %5030 = vmatpush1.bf16.msra.mxu1 %v6808_v23  ;;  %v6900_v21 = vld [vmem:[%s8319_s27 + $0xb6c] ss:$16 sps:$4 sm:$0xff]   ;;  %v6895_v23 = vld [vmem:[%s8319_s27 + $0xb60] ss:$16 sps:$4 sm:$0xff]  }
 0x262   : > { %4703 = vmatprep.subr.bf16.mxu0 %v6813_v24  ;;  %5031 = vmatprep.subr.bf16.mxu1 %v6816_v25  ;;  %v6898_v24 = vld [vmem:[%s8319_s27 + $0xb68] ss:$16 sps:$4 sm:$0xff]   ;;  %v6903_v25 = vld [vmem:[%s8319_s27 + $0xb84] ss:$16 sps:$4 sm:$0xff]  }
 0x265   : > { %4704 = vmatpush1.bf16.msra.mxu0 %v6811_v27  ;;  %5032 = vmatpush1.bf16.msra.mxu1 %v6814_v29  ;;  %v6906_v27 = vld [vmem:[%s8319_s27 + $0xb8c] ss:$16 sps:$4 sm:$0xff]   ;;  %v6901_v29 = vld [vmem:[%s8319_s27 + $0xb80] ss:$16 sps:$4 sm:$0xff]  }
 0x266   : > { %4705 = vmatprep.subr.bf16.mxu0 %v6819_v30  ;;  %5033 = vmatprep.subr.bf16.mxu1 %v6822_v31  ;;  %v6904_v30 = vld [vmem:[%s8319_s27 + $0xb88] ss:$16 sps:$4 sm:$0xff]   ;;  %v6909_v31 = vld [vmem:[%s8319_s27 + $0xba4] ss:$16 sps:$4 sm:$0xff]  }
 0x269   : > { %4706 = vmatpush1.bf16.msra.mxu0 %v6817_v16  ;;  %5034 = vmatpush1.bf16.msra.mxu1 %v6820_v32  ;;  %v6912_v16 = vld [vmem:[%s8319_s27 + $0xbac] ss:$16 sps:$4 sm:$0xff]   ;;  %v6907_v32 = vld [vmem:[%s8319_s27 + $0xba0] ss:$16 sps:$4 sm:$0xff]  }
 0x26a   : > { %4707 = vmatprep.subr.bf16.mxu0 %v6825_v33  ;;  %5035 = vmatprep.subr.bf16.mxu1 %v6828_v34  ;;  %v6910_v33 = vld [vmem:[%s8319_s27 + $0xba8] ss:$16 sps:$4 sm:$0xff]   ;;  %v6915_v34 = vld [vmem:[%s8319_s27 + $0xbc4] ss:$16 sps:$4 sm:$0xff]  }
 0x26d   : > { %4708 = vmatpush1.bf16.msra.mxu0 %v6823_v26  ;;  %5036 = vmatpush1.bf16.msra.mxu1 %v6826_v35  ;;  %v6918_v26 = vld [vmem:[%s8319_s27 + $0xbcc] ss:$16 sps:$4 sm:$0xff]   ;;  %v1888_v35 = vcombine.high %v8611_v22, %v8611_v22  ;;  %v6919_v22 = vld [vmem:[%s8319_s27 + $0xbe0] ss:$16 sps:$4 sm:$0xff]  }
 0x26e   : > { %4718 = vmatprep.subr.bf16.mxu0 %v6831_v36  ;;  %5046 = vmatprep.subr.bf16.mxu1 %v6834_v14  ;;  %v6913_v36 = vld [vmem:[%s8319_s27 + $0xbc0] ss:$16 sps:$4 sm:$0xff]   ;;  %v6916_v14 = vld [vmem:[%s8319_s27 + $0xbc8] ss:$16 sps:$4 sm:$0xff]  }
 0x270   : > { %4710 = vmatmul.mubr.bf16.vlgmr.msra.gmra.mrb[0].mxu0 %v8700_v38  ;;  %5038 = vmatmul.mubr.bf16.vlgmr.msra.gmra.mrb[0].mxu1 %v8700_v38 }
 0x271   : > { %4719 = vmatpush1.bf16.msra.mxu0 %v6829_v39  ;;  %5047 = vmatpush1.bf16.msra.mxu1 %v6832_v40  ;;  %v6921_v39 = vld [vmem:[%s8319_s27 + $0xbe4] ss:$16 sps:$4 sm:$0xff]   ;;  %v6924_v40 = vld [vmem:[%s8319_s27 + $0xbec] ss:$16 sps:$4 sm:$0xff]  }
 0x272   : > { %4720 = vmatprep.subr.bf16.mxu0 %v6837_v41  ;;  %5048 = vmatprep.subr.bf16.mxu1 %v6840_v42  ;;  %v8769_v41 = vrot.slane %v1888_v35, %v8369_v50  ;;  %v6922_v42 = vld [vmem:[%s8319_s27 + $0xbe8] ss:$16 sps:$4 sm:$0xff]  }
 0x273   : > { %4750 = vmatprep.mubr.bf16.mxu0 %v1935_v43  ;;  %5078 = vmatprep.mubr.bf16.mxu1 %v1935_v43  ;;  %v6927_v43 = vld [vmem:[%s8319_s27 + $0xc04] ss:$16 sps:$4 sm:$0xff]   ;;  %v7000_v35 = vld [vmem:[%s8319_s27 + $0xd88] ss:$16 sps:$4 sm:$0xff]  }
 0x275   : > { %4721 = vmatpush1.bf16.msra.mxu0 %v6835_v28  ;;  %5049 = vmatpush1.bf16.msra.mxu1 %v6838_v45  ;;  %v6930_v28 = vld [vmem:[%s8319_s27 + $0xc0c] ss:$16 sps:$4 sm:$0xff]   ;;  %v1904_v45 = vcombine.high %v8769_v41, %v8769_v41 }
 0x276   : > { %4722 = vmatprep.subr.bf16.mxu0 %v6843_v46  ;;  %5050 = vmatprep.subr.bf16.mxu1 %v6846_v47  ;;  %v1933_v46 = vcombine.high %v8700_v38, %v8700_v38  ;;  %v6925_v47 = vld [vmem:[%s8319_s27 + $0xc00] ss:$16 sps:$4 sm:$0xff]  }
 0x277   : > { %v6931_v38 = vld [vmem:[%s8319_s27 + $0xc20] ss:$16 sps:$4 sm:$0xff]  }
 0x279   : > { %4723 = vmatpush1.bf16.msra.mxu0 %v6841_v37  ;;  %5051 = vmatpush1.bf16.msra.mxu1 %v6844_v48  ;;  %v6928_v37 = vld [vmem:[%s8319_s27 + $0xc08] ss:$16 sps:$4 sm:$0xff]   ;;  %v6933_v48 = vld [vmem:[%s8319_s27 + $0xc24] ss:$16 sps:$4 sm:$0xff]  }
 0x27a   : > { %4724 = vmatprep.subr.bf16.mxu0 %v6849_v49  ;;  %5052 = vmatprep.subr.bf16.mxu1 %v6852_v51  ;;  %v6936_v49 = vld [vmem:[%s8319_s27 + $0xc2c] ss:$16 sps:$4 sm:$0xff]   ;;  %v8784_v51 = vrot.slane %v1904_v45, %v8369_v50  ;;  %v7017_v45 = vld [vmem:[%s8319_s27 + $0xde4] ss:$16 sps:$4 sm:$0xff]  }
 0x27d   : > { %4725 = vmatpush1.bf16.msra.mxu0 %v6847_v52  ;;  %5053 = vmatpush1.bf16.msra.mxu1 %v6850_v54  ;;  %v6934_v52 = vld [vmem:[%s8319_s27 + $0xc28] ss:$16 sps:$4 sm:$0xff]   ;;  %v6939_v54 = vld [vmem:[%s8319_s27 + $0xc44] ss:$16 sps:$4 sm:$0xff]  }
 0x27e   : > { %4726 = vmatprep.subr.bf16.mxu0 %v6855_v55  ;;  %5054 = vmatprep.subr.bf16.mxu1 %v6858_v56  ;;  %v6942_v55 = vld [vmem:[%s8319_s27 + $0xc4c] ss:$16 sps:$4 sm:$0xff]   ;;  %v6937_v56 = vld [vmem:[%s8319_s27 + $0xc40] ss:$16 sps:$4 sm:$0xff]  }
 0x281   : > { %4727 = vmatpush1.bf16.msra.mxu0 %v6853_v57  ;;  %5055 = vmatpush1.bf16.msra.mxu1 %v6856_v58  ;;  %v6940_v57 = vld [vmem:[%s8319_s27 + $0xc48] ss:$16 sps:$4 sm:$0xff]   ;;  %v6945_v58 = vld [vmem:[%s8319_s27 + $0xc64] ss:$16 sps:$4 sm:$0xff]  }
 0x282   : > { %4728 = vmatprep.subr.bf16.mxu0 %v6861_v59  ;;  %5056 = vmatprep.subr.bf16.mxu1 %v6864_v60  ;;  %v6948_v59 = vld [vmem:[%s8319_s27 + $0xc6c] ss:$16 sps:$4 sm:$0xff]   ;;  %v6943_v60 = vld [vmem:[%s8319_s27 + $0xc60] ss:$16 sps:$4 sm:$0xff]  }
 0x285   : > { %4729 = vmatpush1.bf16.msra.mxu0 %v6859_v61  ;;  %5057 = vmatpush1.bf16.msra.mxu1 %v6862_v62  ;;  %v6946_v61 = vld [vmem:[%s8319_s27 + $0xc68] ss:$16 sps:$4 sm:$0xff]   ;;  %v6951_v62 = vld [vmem:[%s8319_s27 + $0xc84] ss:$16 sps:$4 sm:$0xff]  }
 0x286   : > { %4730 = vmatprep.subr.bf16.mxu0 %v6867_v63  ;;  %5058 = vmatprep.subr.bf16.mxu1 %v6870_v0  ;;  %v6954_v63 = vld [vmem:[%s8319_s27 + $0xc8c] ss:$16 sps:$4 sm:$0xff]   ;;  %v6949_v0 = vld [vmem:[%s8319_s27 + $0xc80] ss:$16 sps:$4 sm:$0xff]  }
 0x289   : > { %4731 = vmatpush1.bf16.msra.mxu0 %v6865_v1  ;;  %5059 = vmatpush1.bf16.msra.mxu1 %v6868_v2  ;;  %v6952_v1 = vld [vmem:[%s8319_s27 + $0xc88] ss:$16 sps:$4 sm:$0xff]   ;;  %v6957_v2 = vld [vmem:[%s8319_s27 + $0xca4] ss:$16 sps:$4 sm:$0xff]  }
 0x28a   : > { %4732 = vmatprep.subr.bf16.mxu0 %v6873_v3  ;;  %5060 = vmatprep.subr.bf16.mxu1 %v6876_v4  ;;  %v6960_v3 = vld [vmem:[%s8319_s27 + $0xcac] ss:$16 sps:$4 sm:$0xff]   ;;  %v6955_v4 = vld [vmem:[%s8319_s27 + $0xca0] ss:$16 sps:$4 sm:$0xff]  }
 0x28d   : > { %4733 = vmatpush1.bf16.msra.mxu0 %v6871_v5  ;;  %5061 = vmatpush1.bf16.msra.mxu1 %v6874_v6  ;;  %v6958_v5 = vld [vmem:[%s8319_s27 + $0xca8] ss:$16 sps:$4 sm:$0xff]   ;;  %v6963_v6 = vld [vmem:[%s8319_s27 + $0xcc4] ss:$16 sps:$4 sm:$0xff]  }
 0x28e   : > { %4734 = vmatprep.subr.bf16.mxu0 %v6879_v7  ;;  %5062 = vmatprep.subr.bf16.mxu1 %v6882_v8  ;;  %v6966_v7 = vld [vmem:[%s8319_s27 + $0xccc] ss:$16 sps:$4 sm:$0xff]   ;;  %v6961_v8 = vld [vmem:[%s8319_s27 + $0xcc0] ss:$16 sps:$4 sm:$0xff]  }
 0x291   : > { %4735 = vmatpush1.bf16.msra.mxu0 %v6877_v9  ;;  %5063 = vmatpush1.bf16.msra.mxu1 %v6880_v10  ;;  %v6964_v9 = vld [vmem:[%s8319_s27 + $0xcc8] ss:$16 sps:$4 sm:$0xff]   ;;  %v6969_v10 = vld [vmem:[%s8319_s27 + $0xce4] ss:$16 sps:$4 sm:$0xff]  }
 0x292   : > { %4736 = vmatprep.subr.bf16.mxu0 %v6885_v11  ;;  %5064 = vmatprep.subr.bf16.mxu1 %v6888_v12  ;;  %v6972_v11 = vld [vmem:[%s8319_s27 + $0xcec] ss:$16 sps:$4 sm:$0xff]   ;;  %v6967_v12 = vld [vmem:[%s8319_s27 + $0xce0] ss:$16 sps:$4 sm:$0xff]  }
 0x295   : > { %4737 = vmatpush1.bf16.msra.mxu0 %v6883_v13  ;;  %5065 = vmatpush1.bf16.msra.mxu1 %v6886_v15  ;;  %v6970_v13 = vld [vmem:[%s8319_s27 + $0xce8] ss:$16 sps:$4 sm:$0xff]   ;;  %v6975_v15 = vld [vmem:[%s8319_s27 + $0xd04] ss:$16 sps:$4 sm:$0xff]  }
 0x296   : > { %4738 = vmatprep.subr.bf16.mxu0 %v6891_v17  ;;  %5066 = vmatprep.subr.bf16.mxu1 %v6894_v53  ;;  %v6978_v17 = vld [vmem:[%s8319_s27 + $0xd0c] ss:$16 sps:$4 sm:$0xff]   ;;  %v6973_v53 = vld [vmem:[%s8319_s27 + $0xd00] ss:$16 sps:$4 sm:$0xff]  }
 0x299   : > { %4739 = vmatpush1.bf16.msra.mxu0 %v6889_v18  ;;  %5067 = vmatpush1.bf16.msra.mxu1 %v6892_v19  ;;  %v6976_v18 = vld [vmem:[%s8319_s27 + $0xd08] ss:$16 sps:$4 sm:$0xff]   ;;  %v6981_v19 = vld [vmem:[%s8319_s27 + $0xd24] ss:$16 sps:$4 sm:$0xff]  }
 0x29a   : > { %4740 = vmatprep.subr.bf16.mxu0 %v6897_v20  ;;  %5068 = vmatprep.subr.bf16.mxu1 %v6900_v21  ;;  %v6984_v20 = vld [vmem:[%s8319_s27 + $0xd2c] ss:$16 sps:$4 sm:$0xff]   ;;  %v6979_v21 = vld [vmem:[%s8319_s27 + $0xd20] ss:$16 sps:$4 sm:$0xff]  }
 0x29d   : > { %4741 = vmatpush1.bf16.msra.mxu0 %v6895_v23  ;;  %5069 = vmatpush1.bf16.msra.mxu1 %v6898_v24  ;;  %v6982_v23 = vld [vmem:[%s8319_s27 + $0xd28] ss:$16 sps:$4 sm:$0xff]   ;;  %v6987_v24 = vld [vmem:[%s8319_s27 + $0xd44] ss:$16 sps:$4 sm:$0xff]  }
 0x29e   : > { %4742 = vmatprep.subr.bf16.mxu0 %v6903_v25  ;;  %5070 = vmatprep.subr.bf16.mxu1 %v6906_v27  ;;  %v6990_v25 = vld [vmem:[%s8319_s27 + $0xd4c] ss:$16 sps:$4 sm:$0xff]   ;;  %v6985_v27 = vld [vmem:[%s8319_s27 + $0xd40] ss:$16 sps:$4 sm:$0xff]  }
 0x2a1   : > { %4743 = vmatpush1.bf16.msra.mxu0 %v6901_v29  ;;  %5071 = vmatpush1.bf16.msra.mxu1 %v6904_v30  ;;  %v6988_v29 = vld [vmem:[%s8319_s27 + $0xd48] ss:$16 sps:$4 sm:$0xff]   ;;  %v6993_v30 = vld [vmem:[%s8319_s27 + $0xd64] ss:$16 sps:$4 sm:$0xff]  }
 0x2a2   : > { %4744 = vmatprep.subr.bf16.mxu0 %v6909_v31  ;;  %5072 = vmatprep.subr.bf16.mxu1 %v6912_v16  ;;  %v6996_v31 = vld [vmem:[%s8319_s27 + $0xd6c] ss:$16 sps:$4 sm:$0xff]   ;;  %v6991_v16 = vld [vmem:[%s8319_s27 + $0xd60] ss:$16 sps:$4 sm:$0xff]  }
 0x2a5   : > { %4745 = vmatpush1.bf16.msra.mxu0 %v6907_v32  ;;  %5073 = vmatpush1.bf16.msra.mxu1 %v6910_v33  ;;  %v6994_v32 = vld [vmem:[%s8319_s27 + $0xd68] ss:$16 sps:$4 sm:$0xff]   ;;  %v6999_v33 = vld [vmem:[%s8319_s27 + $0xd84] ss:$16 sps:$4 sm:$0xff]  }
 0x2a6   : > { %4746 = vmatprep.subr.bf16.mxu0 %v6915_v34  ;;  %5074 = vmatprep.subr.bf16.mxu1 %v6918_v26  ;;  %v7002_v34 = vld [vmem:[%s8319_s27 + $0xd8c] ss:$16 sps:$4 sm:$0xff]   ;;  %v6997_v26 = vld [vmem:[%s8319_s27 + $0xd80] ss:$16 sps:$4 sm:$0xff]  }
 0x2a9   : > { %4747 = vmatpush1.bf16.msra.mxu0 %v6913_v36  ;;  %5075 = vmatpush1.bf16.msra.mxu1 %v6916_v14  ;;  %v7005_v36 = vld [vmem:[%s8319_s27 + $0xda4] ss:$16 sps:$4 sm:$0xff]   ;;  %v7008_v14 = vld [vmem:[%s8319_s27 + $0xdac] ss:$16 sps:$4 sm:$0xff]  }
 0x2aa   : > { %4748 = vmatprep.subr.bf16.mxu0 %v6921_v39  ;;  %5076 = vmatprep.subr.bf16.mxu1 %v6924_v40  ;;  %v7003_v39 = vld [vmem:[%s8319_s27 + $0xda0] ss:$16 sps:$4 sm:$0xff]   ;;  %v7006_v40 = vld [vmem:[%s8319_s27 + $0xda8] ss:$16 sps:$4 sm:$0xff]  }
 0x2ad   : > { %4749 = vmatpush1.bf16.msra.mxu0 %v6919_v22  ;;  %5077 = vmatpush1.bf16.msra.mxu1 %v6922_v42  ;;  %v7011_v22 = vld [vmem:[%s8319_s27 + $0xdc4] ss:$16 sps:$4 sm:$0xff]   ;;  %v7014_v42 = vld [vmem:[%s8319_s27 + $0xdcc] ss:$16 sps:$4 sm:$0xff]  }
 0x2ae   : > { %4759 = vmatprep.subr.bf16.mxu0 %v6927_v43  ;;  %5087 = vmatprep.subr.bf16.mxu1 %v6930_v28  ;;  %v7009_v43 = vld [vmem:[%s8319_s27 + $0xdc0] ss:$16 sps:$4 sm:$0xff]   ;;  %v7012_v28 = vld [vmem:[%s8319_s27 + $0xdc8] ss:$16 sps:$4 sm:$0xff]  }
 0x2b0   : > { %4751 = vmatmul.mubr.bf16.vlgmr.msra.gmra.mrb[0].mxu0 %v1933_v46  ;;  %5079 = vmatmul.mubr.bf16.vlgmr.msra.gmra.mrb[0].mxu1 %v1933_v46  ;;  %v7020_v46 = vld [vmem:[%s8319_s27 + $0xdec] ss:$16 sps:$4 sm:$0xff]  }
 0x2b1   : > { %4760 = vmatpush1.bf16.msra.mxu0 %v6925_v47  ;;  %5088 = vmatpush1.bf16.msra.mxu1 %v6928_v37  ;;  %v7015_v47 = vld [vmem:[%s8319_s27 + $0xde0] ss:$16 sps:$4 sm:$0xff]   ;;  %v7018_v37 = vld [vmem:[%s8319_s27 + $0xde8] ss:$16 sps:$4 sm:$0xff]  }
 0x2b2   : > { %4761 = vmatprep.subr.bf16.mxu0 %v6933_v48  ;;  %5089 = vmatprep.subr.bf16.mxu1 %v6936_v49  ;;  %v7024_v48 = vld [vmem:[%s8319_s27 + $0xe04] ss:$16 sps:$4 sm:$0xff]   ;;  %v7027_v49 = vld [vmem:[%s8319_s27 + $0xe0c] ss:$16 sps:$4 sm:$0xff]  }
 0x2b3   : > { %4791 = vmatprep.mubr.bf16.mxu0 %v8784_v51  ;;  %5119 = vmatprep.mubr.bf16.mxu1 %v8784_v51 }
 0x2b5   : > { %4762 = vmatpush1.bf16.msra.mxu0 %v6931_v38  ;;  %5090 = vmatpush1.bf16.msra.mxu1 %v6934_v52  ;;  %v8850_v38 = vrot.slane %v8769_v41, %v8369_v50  ;;  %v7022_v52 = vld [vmem:[%s8319_s27 + $0xe00] ss:$16 sps:$4 sm:$0xff]   ;;  %v7031_v41 = vld [vmem:[%s8319_s27 + $0xe28] ss:$16 sps:$4 sm:$0xff]  }
 0x2b6   : > { %4763 = vmatprep.subr.bf16.mxu0 %v6939_v54  ;;  %5091 = vmatprep.subr.bf16.mxu1 %v6942_v55  ;;  %v7025_v54 = vld [vmem:[%s8319_s27 + $0xe08] ss:$16 sps:$4 sm:$0xff]   ;;  %v7030_v55 = vld [vmem:[%s8319_s27 + $0xe24] ss:$16 sps:$4 sm:$0xff]   ;;  %v7028_v50 = vld [vmem:[%s8319_s27 + $0xe20] ss:$16 sps:$4 sm:$0xff]  }
 0x2b9   : > { %4764 = vmatpush1.bf16.msra.mxu0 %v6937_v56  ;;  %5092 = vmatpush1.bf16.msra.mxu1 %v6940_v57  ;;  %v7033_v56 = vld [vmem:[%s8319_s27 + $0xe2c] ss:$16 sps:$4 sm:$0xff]   ;;  %v1936_v57 = vcombine.high %v8784_v51, %v8784_v51  ;;  %v7034_v51 = vld [vmem:[%s8319_s27 + $0xe40] ss:$16 sps:$4 sm:$0xff]  }
 0x2ba   : > { %4765 = vmatprep.subr.bf16.mxu0 %v6945_v58  ;;  %5093 = vmatprep.subr.bf16.mxu1 %v6948_v59  ;;  %v7036_v58 = vld [vmem:[%s8319_s27 + $0xe44] ss:$16 sps:$4 sm:$0xff]   ;;  %v7039_v59 = vld [vmem:[%s8319_s27 + $0xe4c] ss:$16 sps:$4 sm:$0xff]  }
 0x2bd   : > { %4766 = vmatpush1.bf16.msra.mxu0 %v6943_v60  ;;  %5094 = vmatpush1.bf16.msra.mxu1 %v6946_v61  ;;  %v7037_v60 = vld [vmem:[%s8319_s27 + $0xe48] ss:$16 sps:$4 sm:$0xff]   ;;  %v7042_v61 = vld [vmem:[%s8319_s27 + $0xe64] ss:$16 sps:$4 sm:$0xff]  }
 0x2be   : > { %4767 = vmatprep.subr.bf16.mxu0 %v6951_v62  ;;  %5095 = vmatprep.subr.bf16.mxu1 %v6954_v63  ;;  %v7045_v62 = vld [vmem:[%s8319_s27 + $0xe6c] ss:$16 sps:$4 sm:$0xff]   ;;  %v7040_v63 = vld [vmem:[%s8319_s27 + $0xe60] ss:$16 sps:$4 sm:$0xff]  }
 0x2c1   : > { %4768 = vmatpush1.bf16.msra.mxu0 %v6949_v0  ;;  %5096 = vmatpush1.bf16.msra.mxu1 %v6952_v1  ;;  %v7043_v0 = vld [vmem:[%s8319_s27 + $0xe68] ss:$16 sps:$4 sm:$0xff]   ;;  %v7048_v1 = vld [vmem:[%s8319_s27 + $0xe84] ss:$16 sps:$4 sm:$0xff]  }
 0x2c2   : > { %4769 = vmatprep.subr.bf16.mxu0 %v6957_v2  ;;  %5097 = vmatprep.subr.bf16.mxu1 %v6960_v3  ;;  %v7051_v2 = vld [vmem:[%s8319_s27 + $0xe8c] ss:$16 sps:$4 sm:$0xff]   ;;  %v7046_v3 = vld [vmem:[%s8319_s27 + $0xe80] ss:$16 sps:$4 sm:$0xff]  }
 0x2c5   : > { %4770 = vmatpush1.bf16.msra.mxu0 %v6955_v4  ;;  %5098 = vmatpush1.bf16.msra.mxu1 %v6958_v5  ;;  %v7049_v4 = vld [vmem:[%s8319_s27 + $0xe88] ss:$16 sps:$4 sm:$0xff]   ;;  %v7054_v5 = vld [vmem:[%s8319_s27 + $0xea4] ss:$16 sps:$4 sm:$0xff]  }
 0x2c6   : > { %4771 = vmatprep.subr.bf16.mxu0 %v6963_v6  ;;  %5099 = vmatprep.subr.bf16.mxu1 %v6966_v7  ;;  %v7057_v6 = vld [vmem:[%s8319_s27 + $0xeac] ss:$16 sps:$4 sm:$0xff]   ;;  %v7052_v7 = vld [vmem:[%s8319_s27 + $0xea0] ss:$16 sps:$4 sm:$0xff]  }
 0x2c9   : > { %4772 = vmatpush1.bf16.msra.mxu0 %v6961_v8  ;;  %5100 = vmatpush1.bf16.msra.mxu1 %v6964_v9  ;;  %v7055_v8 = vld [vmem:[%s8319_s27 + $0xea8] ss:$16 sps:$4 sm:$0xff]   ;;  %v7060_v9 = vld [vmem:[%s8319_s27 + $0xec4] ss:$16 sps:$4 sm:$0xff]  }
 0x2ca   : > { %4773 = vmatprep.subr.bf16.mxu0 %v6969_v10  ;;  %5101 = vmatprep.subr.bf16.mxu1 %v6972_v11  ;;  %v7063_v10 = vld [vmem:[%s8319_s27 + $0xecc] ss:$16 sps:$4 sm:$0xff]   ;;  %v7058_v11 = vld [vmem:[%s8319_s27 + $0xec0] ss:$16 sps:$4 sm:$0xff]  }
 0x2cd   : > { %4774 = vmatpush1.bf16.msra.mxu0 %v6967_v12  ;;  %5102 = vmatpush1.bf16.msra.mxu1 %v6970_v13  ;;  %v7061_v12 = vld [vmem:[%s8319_s27 + $0xec8] ss:$16 sps:$4 sm:$0xff]   ;;  %v7066_v13 = vld [vmem:[%s8319_s27 + $0xee4] ss:$16 sps:$4 sm:$0xff]  }
 0x2ce   : > { %4775 = vmatprep.subr.bf16.mxu0 %v6975_v15  ;;  %5103 = vmatprep.subr.bf16.mxu1 %v6978_v17  ;;  %v7069_v15 = vld [vmem:[%s8319_s27 + $0xeec] ss:$16 sps:$4 sm:$0xff]   ;;  %v7064_v17 = vld [vmem:[%s8319_s27 + $0xee0] ss:$16 sps:$4 sm:$0xff]  }
 0x2d1   : > { %4776 = vmatpush1.bf16.msra.mxu0 %v6973_v53  ;;  %5104 = vmatpush1.bf16.msra.mxu1 %v6976_v18  ;;  %v7067_v53 = vld [vmem:[%s8319_s27 + $0xee8] ss:$16 sps:$4 sm:$0xff]   ;;  %v7072_v18 = vld [vmem:[%s8319_s27 + $0xf04] ss:$16 sps:$4 sm:$0xff]  }
 0x2d2   : > { %4777 = vmatprep.subr.bf16.mxu0 %v6981_v19  ;;  %5105 = vmatprep.subr.bf16.mxu1 %v6984_v20  ;;  %v7075_v19 = vld [vmem:[%s8319_s27 + $0xf0c] ss:$16 sps:$4 sm:$0xff]   ;;  %v7070_v20 = vld [vmem:[%s8319_s27 + $0xf00] ss:$16 sps:$4 sm:$0xff]  }
 0x2d5   : > { %4778 = vmatpush1.bf16.msra.mxu0 %v6979_v21  ;;  %5106 = vmatpush1.bf16.msra.mxu1 %v6982_v23  ;;  %v7073_v21 = vld [vmem:[%s8319_s27 + $0xf08] ss:$16 sps:$4 sm:$0xff]   ;;  %v7078_v23 = vld [vmem:[%s8319_s27 + $0xf24] ss:$16 sps:$4 sm:$0xff]  }
 0x2d6   : > { %4779 = vmatprep.subr.bf16.mxu0 %v6987_v24  ;;  %5107 = vmatprep.subr.bf16.mxu1 %v6990_v25  ;;  %v7081_v24 = vld [vmem:[%s8319_s27 + $0xf2c] ss:$16 sps:$4 sm:$0xff]   ;;  %v7076_v25 = vld [vmem:[%s8319_s27 + $0xf20] ss:$16 sps:$4 sm:$0xff]  }
 0x2d9   : > { %4780 = vmatpush1.bf16.msra.mxu0 %v6985_v27  ;;  %5108 = vmatpush1.bf16.msra.mxu1 %v6988_v29  ;;  %v7079_v27 = vld [vmem:[%s8319_s27 + $0xf28] ss:$16 sps:$4 sm:$0xff]   ;;  %v7084_v29 = vld [vmem:[%s8319_s27 + $0xf44] ss:$16 sps:$4 sm:$0xff]  }
 0x2da   : > { %4781 = vmatprep.subr.bf16.mxu0 %v6993_v30  ;;  %5109 = vmatprep.subr.bf16.mxu1 %v6996_v31  ;;  %v7087_v30 = vld [vmem:[%s8319_s27 + $0xf4c] ss:$16 sps:$4 sm:$0xff]   ;;  %v7082_v31 = vld [vmem:[%s8319_s27 + $0xf40] ss:$16 sps:$4 sm:$0xff]  }
 0x2dd   : > { %4782 = vmatpush1.bf16.msra.mxu0 %v6991_v16  ;;  %5110 = vmatpush1.bf16.msra.mxu1 %v6994_v32  ;;  %v7085_v16 = vld [vmem:[%s8319_s27 + $0xf48] ss:$16 sps:$4 sm:$0xff]   ;;  %v7090_v32 = vld [vmem:[%s8319_s27 + $0xf64] ss:$16 sps:$4 sm:$0xff]  }
 0x2de   : > { %4783 = vmatprep.subr.bf16.mxu0 %v6999_v33  ;;  %5111 = vmatprep.subr.bf16.mxu1 %v7002_v34  ;;  %v7093_v33 = vld [vmem:[%s8319_s27 + $0xf6c] ss:$16 sps:$4 sm:$0xff]   ;;  %v7088_v34 = vld [vmem:[%s8319_s27 + $0xf60] ss:$16 sps:$4 sm:$0xff]  }
 0x2e1   : > { %4784 = vmatpush1.bf16.msra.mxu0 %v6997_v26  ;;  %5112 = vmatpush1.bf16.msra.mxu1 %v7000_v35  ;;  %v7091_v26 = vld [vmem:[%s8319_s27 + $0xf68] ss:$16 sps:$4 sm:$0xff]   ;;  %v7096_v35 = vld [vmem:[%s8319_s27 + $0xf84] ss:$16 sps:$4 sm:$0xff]  }
 0x2e2   : > { %4785 = vmatprep.subr.bf16.mxu0 %v7005_v36  ;;  %5113 = vmatprep.subr.bf16.mxu1 %v7008_v14  ;;  %v7099_v36 = vld [vmem:[%s8319_s27 + $0xf8c] ss:$16 sps:$4 sm:$0xff]   ;;  %v7094_v14 = vld [vmem:[%s8319_s27 + $0xf80] ss:$16 sps:$4 sm:$0xff]  }
 0x2e5   : > { %4786 = vmatpush1.bf16.msra.mxu0 %v7003_v39  ;;  %5114 = vmatpush1.bf16.msra.mxu1 %v7006_v40  ;;  %v7097_v39 = vld [vmem:[%s8319_s27 + $0xf88] ss:$16 sps:$4 sm:$0xff]   ;;  %v7102_v40 = vld [vmem:[%s8319_s27 + $0xfa4] ss:$16 sps:$4 sm:$0xff]  }
 0x2e6   : > { %4787 = vmatprep.subr.bf16.mxu0 %v7011_v22  ;;  %5115 = vmatprep.subr.bf16.mxu1 %v7014_v42  ;;  %v7105_v22 = vld [vmem:[%s8319_s27 + $0xfac] ss:$16 sps:$4 sm:$0xff]   ;;  %v7100_v42 = vld [vmem:[%s8319_s27 + $0xfa0] ss:$16 sps:$4 sm:$0xff]  }
 0x2e9   : > { %4788 = vmatpush1.bf16.msra.mxu0 %v7009_v43  ;;  %5116 = vmatpush1.bf16.msra.mxu1 %v7012_v28  ;;  %v7103_v43 = vld [vmem:[%s8319_s27 + $0xfa8] ss:$16 sps:$4 sm:$0xff]   ;;  %v7108_v28 = vld [vmem:[%s8319_s27 + $0xfc4] ss:$16 sps:$4 sm:$0xff]  }
 0x2ea   : > { %4789 = vmatprep.subr.bf16.mxu0 %v7017_v45  ;;  %5117 = vmatprep.subr.bf16.mxu1 %v7020_v46  ;;  %v7111_v45 = vld [vmem:[%s8319_s27 + $0xfcc] ss:$16 sps:$4 sm:$0xff]   ;;  %v7106_v46 = vld [vmem:[%s8319_s27 + $0xfc0] ss:$16 sps:$4 sm:$0xff]  }
 0x2ed   : > { %4790 = vmatpush1.bf16.msra.mxu0 %v7015_v47  ;;  %5118 = vmatpush1.bf16.msra.mxu1 %v7018_v37  ;;  %v7109_v47 = vld [vmem:[%s8319_s27 + $0xfc8] ss:$16 sps:$4 sm:$0xff]   ;;  %v7114_v37 = vld [vmem:[%s8319_s27 + $0xfe4] ss:$16 sps:$4 sm:$0xff]  }
 0x2ee   : > { %4800 = vmatprep.subr.bf16.mxu0 %v7024_v48  ;;  %5128 = vmatprep.subr.bf16.mxu1 %v7027_v49  ;;  %v7117_v48 = vld [vmem:[%s8319_s27 + $0xfec] ss:$16 sps:$4 sm:$0xff]   ;;  %v7112_v49 = vld [vmem:[%s8319_s27 + $0xfe0] ss:$16 sps:$4 sm:$0xff]  }
 0x2f0   : > { %4792 = vmatmul.mubr.bf16.vlgmr.msra.gmra.mrb[0].mxu0 %v8850_v38  ;;  %5120 = vmatmul.mubr.bf16.vlgmr.msra.gmra.mrb[0].mxu1 %v8850_v38 }
 0x2f1   : > { %4801 = vmatpush1.bf16.msra.mxu0 %v7022_v52  ;;  %5129 = vmatpush1.bf16.msra.mxu1 %v7025_v54  ;;  %v7115_v52 = vld [vmem:[%s8319_s27 + $0xfe8] ss:$16 sps:$4 sm:$0xff]   ;;  %v1934_v54 = vcombine.high %v8850_v38, %v8850_v38 }
 0x2f2   : > { %4802 = vmatprep.subr.bf16.mxu0 %v7030_v55  ;;  %5130 = vmatprep.subr.bf16.mxu1 %v7033_v56  ;;  %v7176_v55 = vmov 1983009808  }
 0x2f3   : > { %4832 = vmatprep.mubr.bf16.mxu0 %v1936_v57  ;;  %5160 = vmatprep.mubr.bf16.mxu1 %v1936_v57  ;;  %v5176_v56 = vunpack.c.l.s4 %v7176_v55  ;;  %v5274_v55 = vld [vmem:[%s8311_s10 + $0x130] sm:$0xff] (!%p6095_p1) }
 0x2f5   : > { %4803 = vmatpush1.bf16.msra.mxu0 %v7028_v50  ;;  %5131 = vmatpush1.bf16.msra.mxu1 %v7031_v41  ;;  %v5177_v57 = vunpack.c.0.s8 %v5176_v56  ;;  %v5275_v56 = vld [vmem:[%s8311_s10 + $0x138] sm:$0xff] (!%p6095_p1) }
 0x2f6   : > { %4804 = vmatprep.subr.bf16.mxu0 %v7036_v58  ;;  %5132 = vmatprep.subr.bf16.mxu1 %v7039_v59 }
 0x2f7   : > { %v8921_v58 = vsub.s32 %v5177_v57, %v8361_v44  ;;  %v5260_v57 = vld [vmem:[%s8311_s10 + $0xc0] sm:$0xff] (!%p6095_p1) }
 0x2f9   : > { %4805 = vmatpush1.bf16.msra.mxu0 %v7034_v51  ;;  %5133 = vmatpush1.bf16.msra.mxu1 %v7037_v60 }
 0x2fa   : > { %4806 = vmatprep.subr.bf16.mxu0 %v7042_v61  ;;  %5134 = vmatprep.subr.bf16.mxu1 %v7045_v62 }
 0x2fd   : > { %4807 = vmatpush1.bf16.msra.mxu0 %v7040_v63  ;;  %5135 = vmatpush1.bf16.msra.mxu1 %v7043_v0 }
 0x2fe   : > { %4808 = vmatprep.subr.bf16.mxu0 %v7048_v1  ;;  %5136 = vmatprep.subr.bf16.mxu1 %v7051_v2 }
 0x301   : > { %4809 = vmatpush1.bf16.msra.mxu0 %v7046_v3  ;;  %5137 = vmatpush1.bf16.msra.mxu1 %v7049_v4  ;;  %v1322_v3 = vld [vmem:[#allocation2] sm:$0xff] }
 0x302   : > { %4810 = vmatprep.subr.bf16.mxu0 %v7054_v5  ;;  %5138 = vmatprep.subr.bf16.mxu1 %v7057_v6  ;;  %v5252_v6 = vld [vmem:[%s8311_s10 + $0x80] sm:$0xff] (!%p6095_p1) }
 0x305   : > { %4811 = vmatpush1.bf16.msra.mxu0 %v7052_v7  ;;  %5139 = vmatpush1.bf16.msra.mxu1 %v7055_v8  ;;  %v5253_v7 = vld [vmem:[%s8311_s10 + $0x88] sm:$0xff] (!%p6095_p1)  ;;  %v5284_v8 = vld [vmem:[%s8311_s10 + $0x180] sm:$0xff] (!%p6095_p1) }
 0x306   : > { %4812 = vmatprep.subr.bf16.mxu0 %v7060_v9  ;;  %5140 = vmatprep.subr.bf16.mxu1 %v7063_v10  ;;  %v6169_v9 = vpack.c.bf16 (!%p6095_p1), %v5253_v7, %v5252_v6  ;;  %v5285_v10 = vld [vmem:[%s8311_s10 + $0x188] sm:$0xff] (!%p6095_p1) }
 0x309   : > { %4813 = vmatpush1.bf16.msra.mxu0 %v7058_v11  ;;  %5141 = vmatpush1.bf16.msra.mxu1 %v7061_v12  ;;  %v5236_v11 = vld [vmem:[%s8311_s10] sm:$0xff] (!%p6095_p1)  ;;  %v5237_v12 = vld [vmem:[%s8311_s10 + $0x8] sm:$0xff] (!%p6095_p1) }
 0x30a   : > { %4814 = vmatprep.subr.bf16.mxu0 %v7066_v13  ;;  %5142 = vmatprep.subr.bf16.mxu1 %v7069_v15  ;;  %v6201_v13 = vpack.c.bf16 (!%p6095_p1), %v5285_v10, %v5284_v8  ;;  %v6171_v15 = vpack.c.bf16 (!%p6095_p1), %v5237_v12, %v5236_v11  ;;  %v5247_v10 = vld [vmem:[%s8311_s10 + $0x58] sm:$0xff] (!%p6095_p1)  ;;  %v5278_v11 = vld [vmem:[%s8311_s10 + $0x150] sm:$0xff] (!%p6095_p1) }
 0x30d   : > { %4815 = vmatpush1.bf16.msra.mxu0 %v7064_v17  ;;  %5143 = vmatpush1.bf16.msra.mxu1 %v7067_v53  ;;  %v5268_v17 = vld [vmem:[%s8311_s10 + $0x100] sm:$0xff] (!%p6095_p1)  ;;  %v5269_v53 = vld [vmem:[%s8311_s10 + $0x108] sm:$0xff] (!%p6095_p1) }
 0x30e   : > { %4816 = vmatprep.subr.bf16.mxu0 %v7072_v18  ;;  %5144 = vmatprep.subr.bf16.mxu1 %v7075_v19  ;;  %v5254_v18 = vld [vmem:[%s8311_s10 + $0x90] sm:$0xff] (!%p6095_p1)  ;;  %v6203_v19 = vpack.c.bf16 (!%p6095_p1), %v5269_v53, %v5268_v17  ;;  %v5265_v17 = vld [vmem:[%s8311_s10 + $0xe8] sm:$0xff] (!%p6095_p1)  ;;  %v5202_v53 = vsub.s32 (!%p6095_p1), 0, %v8361_v44 }
 0x311   : > { %4817 = vmatpush1.bf16.msra.mxu0 %v7070_v20  ;;  %5145 = vmatpush1.bf16.msra.mxu1 %v7073_v21  ;;  %v5255_v20 = vld [vmem:[%s8311_s10 + $0x98] sm:$0xff] (!%p6095_p1)  ;;  %v5286_v21 = vld [vmem:[%s8311_s10 + $0x190] sm:$0xff] (!%p6095_p1) }
 0x312   : > { %4818 = vmatprep.subr.bf16.mxu0 %v7078_v23  ;;  %5146 = vmatprep.subr.bf16.mxu1 %v7081_v24  ;;  %v5287_v23 = vld [vmem:[%s8311_s10 + $0x198] sm:$0xff] (!%p6095_p1)  ;;  %v6173_v24 = vpack.c.bf16 (!%p6095_p1), %v5255_v20, %v5254_v18  ;;  %v5206_v18 = vsub.s32 (!%p6095_p1), 1, %v8361_v44  ;;  %v5296_v20 = vld [vmem:[%s8311_s10 + $0x1e0] sm:$0xff] (!%p6095_p1) }
 0x315   : > { %4819 = vmatpush1.bf16.msra.mxu0 %v7076_v25  ;;  %5147 = vmatpush1.bf16.msra.mxu1 %v7079_v27  ;;  %v6205_v25 = vpack.c.bf16 (!%p6095_p1), %v5287_v23, %v5286_v21  ;;  %v5238_v27 = vld [vmem:[%s8311_s10 + $0x10] sm:$0xff] (!%p6095_p1)  ;;  %v5297_v21 = vld [vmem:[%s8311_s10 + $0x1e8] sm:$0xff] (!%p6095_p1)  ;;  %v5214_v23 = vsub.s32 (!%p6095_p1), 3, %v8361_v44 }
 0x316   : > { %4820 = vmatprep.subr.bf16.mxu0 %v7084_v29  ;;  %5148 = vmatprep.subr.bf16.mxu1 %v7087_v30  ;;  %v5239_v29 = vld [vmem:[%s8311_s10 + $0x18] sm:$0xff] (!%p6095_p1)  ;;  %v5270_v30 = vld [vmem:[%s8311_s10 + $0x110] sm:$0xff] (!%p6095_p1) }
 0x319   : > { %4821 = vmatpush1.bf16.msra.mxu0 %v7082_v31  ;;  %5149 = vmatpush1.bf16.msra.mxu1 %v7085_v16  ;;  %v6175_v31 = vpack.c.bf16 (!%p6095_p1), %v5239_v29, %v5238_v27  ;;  %v5271_v16 = vld [vmem:[%s8311_s10 + $0x118] sm:$0xff] (!%p6095_p1) }
 0x31a   : > { %4822 = vmatprep.subr.bf16.mxu0 %v7090_v32  ;;  %5150 = vmatprep.subr.bf16.mxu1 %v7093_v33  ;;  %v5256_v32 = vld [vmem:[%s8311_s10 + $0xa0] sm:$0xff] (!%p6095_p1)  ;;  %v5257_v33 = vld [vmem:[%s8311_s10 + $0xa8] sm:$0xff] (!%p6095_p1) }
 0x31d   : > { %4823 = vmatpush1.bf16.msra.mxu0 %v7088_v34  ;;  %5151 = vmatpush1.bf16.msra.mxu1 %v7091_v26  ;;  %v6207_v34 = vpack.c.bf16 (!%p6095_p1), %v5271_v16, %v5270_v30  ;;  %v6177_v26 = vpack.c.bf16 (!%p6095_p1), %v5257_v33, %v5256_v32  ;;  %v5249_v30 = vld [vmem:[%s8311_s10 + $0x68] sm:$0xff] (!%p6095_p1)  ;;  %v5198_v16 = vld [vmem:[%s1305_s6] sm:$0xf] (!%p6095_p1)  ;;  %v6225_v32 = vpack.c.bf16 (!%p6095_p1), %v5297_v21, %v5296_v20 }
 0x31e   : > { %4824 = vmatprep.subr.bf16.mxu0 %v7096_v35  ;;  %5152 = vmatprep.subr.bf16.mxu1 %v7099_v36  ;;  %v5288_v35 = vld [vmem:[%s8311_s10 + $0x1a0] sm:$0xff] (!%p6095_p1)  ;;  %v5289_v36 = vld [vmem:[%s8311_s10 + $0x1a8] sm:$0xff] (!%p6095_p1) }
 0x31f   : > { %v5281_v33 = vld [vmem:[%s8311_s10 + $0x168] sm:$0xff] (!%p6095_p1) }
 0x321   : > { %4825 = vmatpush1.bf16.msra.mxu0 %v7094_v14  ;;  %5153 = vmatpush1.bf16.msra.mxu1 %v7097_v39  ;;  %v5240_v14 = vld [vmem:[%s8311_s10 + $0x20] sm:$0xff] (!%p6095_p1)  ;;  %v6209_v39 = vpack.c.bf16 (!%p6095_p1), %v5289_v36, %v5288_v35  ;;  %v5207_v35 = vrot.slane (!%p6095_p1), %v5198_v16, %v5206_v18 }
 0x322   : > { %4826 = vmatprep.subr.bf16.mxu0 %v7102_v40  ;;  %5154 = vmatprep.subr.bf16.mxu1 %v7105_v22  ;;  %v5241_v40 = vld [vmem:[%s8311_s10 + $0x28] sm:$0xff] (!%p6095_p1)  ;;  %v5272_v22 = vld [vmem:[%s8311_s10 + $0x120] sm:$0xff] (!%p6095_p1) }
 0x325   : > { %4827 = vmatpush1.bf16.msra.mxu0 %v7100_v42  ;;  %5155 = vmatpush1.bf16.msra.mxu1 %v7103_v43  ;;  %v5273_v42 = vld [vmem:[%s8311_s10 + $0x128] sm:$0xff] (!%p6095_p1)  ;;  %v6179_v43 = vpack.c.bf16 (!%p6095_p1), %v5241_v40, %v5240_v14  ;;  %v5298_v14 = vld [vmem:[%s8311_s10 + $0x1f0] sm:$0xff] (!%p6095_p1)  ;;  %v5215_v40 = vrot.slane (!%p6095_p1), %v5198_v16, %v5214_v23 }
 0x326   : > { %4828 = vmatprep.subr.bf16.mxu0 %v7108_v28  ;;  %5156 = vmatprep.subr.bf16.mxu1 %v7111_v45  ;;  %v5258_v28 = vld [vmem:[%s8311_s10 + $0xb0] sm:$0xff] (!%p6095_p1)  ;;  %v5259_v45 = vld [vmem:[%s8311_s10 + $0xb8] sm:$0xff] (!%p6095_p1) }
 0x329   : > { %4829 = vmatpush1.bf16.msra.mxu0 %v7106_v46  ;;  %5157 = vmatpush1.bf16.msra.mxu1 %v7109_v47  ;;  %v5290_v46 = vld [vmem:[%s8311_s10 + $0x1b0] sm:$0xff] (!%p6095_p1)  ;;  %v6211_v47 = vpack.c.bf16 (!%p6095_p1), %v5273_v42, %v5272_v22 }
 0x32a   : > { %4830 = vmatprep.subr.bf16.mxu0 %v7114_v37  ;;  %5158 = vmatprep.subr.bf16.mxu1 %v7117_v48  ;;  %v6181_v37 = vpack.c.bf16 (!%p6095_p1), %v5259_v45, %v5258_v28  ;;  %v5291_v48 = vld [vmem:[%s8311_s10 + $0x1b8] sm:$0xff] (!%p6095_p1)  ;;  %v5250_v45 = vld [vmem:[%s8311_s10 + $0x70] sm:$0xff] (!%p6095_p1) }
 0x32d   : > { %4831 = vmatpush1.bf16.msra.mxu0 %v7112_v49  ;;  %5159 = vmatpush1.bf16.msra.mxu1 %v7115_v52  ;;  %v5242_v49 = vld [vmem:[%s8311_s10 + $0x30] sm:$0xff] (!%p6095_p1)  ;;  %v5243_v52 = vld [vmem:[%s8311_s10 + $0x38] sm:$0xff] (!%p6095_p1) }
 0x32e   : > { %6170 = vmatprep.subr.bf16.mxu0 (!%p6095_p1), %v6169_v9  ;;  %6202 = vmatprep.subr.bf16.mxu1 (!%p6095_p1), %v6201_v13  ;;  %v5246_v9 = vld [vmem:[%s8311_s10 + $0x50] sm:$0xff] (!%p6095_p1)  ;;  %v5279_v13 = vld [vmem:[%s8311_s10 + $0x158] sm:$0xff] (!%p6095_p1) }
 0x32f   : > { %v6223_v27 = vpack.c.bf16 (!%p6095_p1), %v5279_v13, %v5278_v11 }
 0x330   : > { %4833 = vmatmul.mubr.bf16.vlgmr.msra.gmra.mrb[0].mxu0 %v1934_v54  ;;  %5161 = vmatmul.mubr.bf16.vlgmr.msra.gmra.mrb[0].mxu1 %v1934_v54  ;;  %v6213_v54 = vpack.c.bf16 (!%p6095_p1), %v5291_v48, %v5290_v46  ;;  %v5251_v46 = vld [vmem:[%s8311_s10 + $0x78] sm:$0xff] (!%p6095_p1)  ;;  %v5282_v48 = vld [vmem:[%s8311_s10 + $0x170] sm:$0xff] (!%p6095_p1) }
 0x331   : > { %6172 = vmatpush3.bf16.msra.mxu0 (!%p6095_p1), %v6171_v15  ;;  %6204 = vmatpush3.bf16.msra.mxu1 (!%p6095_p1), %v6203_v19  ;;  %v5264_v15 = vld [vmem:[%s8311_s10 + $0xe0] sm:$0xff] (!%p6095_p1)  ;;  %v5210_v19 = vsub.s32 (!%p6095_p1), 2, %v8361_v44  ;;  %v5266_v44 = vld [vmem:[%s8311_s10 + $0xf0] sm:$0xff] (!%p6095_p1) }
 0x332   : > { %6174 = vmatprep.subr.bf16.mxu0 (!%p6095_p1), %v6173_v24  ;;  %6206 = vmatprep.subr.bf16.mxu1 (!%p6095_p1), %v6205_v25  ;;  %v6191_v24 = vpack.c.bf16 (!%p6095_p1), %v5247_v10, %v5246_v9  ;;  %v5248_v25 = vld [vmem:[%s8311_s10 + $0x60] sm:$0xff] (!%p6095_p1)  ;;  %v6193_v29 = vpack.c.bf16 (!%p6095_p1), %v5265_v17, %v5264_v15 }
 0x333   : > { %v5211_v36 = vrot.slane (!%p6095_p1), %v5198_v16, %v5210_v19  ;;  %v6195_v22 = vpack.c.bf16 (!%p6095_p1), %v5249_v30, %v5248_v25 }
 0x335   : > { %6176 = vmatpush3.bf16.msra.mxu0 (!%p6095_p1), %v6175_v31  ;;  %6208 = vmatpush3.bf16.msra.mxu1 (!%p6095_p1), %v6207_v34  ;;  %v5280_v31 = vld [vmem:[%s8311_s10 + $0x160] sm:$0xff] (!%p6095_p1)  ;;  %v5267_v34 = vld [vmem:[%s8311_s10 + $0xf8] sm:$0xff] (!%p6095_p1) }
 0x336   : > { %6178 = vmatprep.subr.bf16.mxu0 (!%p6095_p1), %v6177_v26  ;;  %6210 = vmatprep.subr.bf16.mxu1 (!%p6095_p1), %v6209_v39  ;;  %v5203_v26 = vrot.slane (!%p6095_p1), %v5198_v16, %v5202_v53  ;;  %v5299_v39 = vld [vmem:[%s8311_s10 + $0x1f8] sm:$0xff] (!%p6095_p1)  ;;  %v6197_v28 = vpack.c.bf16 (!%p6095_p1), %v5267_v34, %v5266_v44 }
 0x338   : > { %v5216_v42 = vcombine.low (!%p6095_p1), %v5203_v26, %v5207_v35 }
 0x339   : > { %6180 = vmatpush3.bf16.msra.mxu0 (!%p6095_p1), %v6179_v43  ;;  %6212 = vmatpush3.bf16.msra.mxu1 (!%p6095_p1), %v6211_v47  ;;  %v6227_v43 = vpack.c.bf16 (!%p6095_p1), %v5281_v33, %v5280_v31  ;;  %v5217_v47 = vcombine.low (!%p6095_p1), %v5211_v36, %v5215_v40 }
 0x33a   : > { %6182 = vmatprep.subr.bf16.mxu0 (!%p6095_p1), %v6181_v37  ;;  %6214 = vmatprep.subr.bf16.mxu1 (!%p6095_p1), %v6213_v54  ;;  %v6229_v37 = vpack.c.bf16 (!%p6095_p1), %v5299_v39, %v5298_v14 }
 0x33b   : > { %v5231_v54 = vrot.slane (!%p6095_p1), %v5217_v47, %v8921_v58 }
 0x403   : > { %v4834_v50 = vpop.f32.mrb[0].mxu0  ;;  %v5162_v41 = vpop.f32.mrb[0].mxu1 }
 0x404   : > { %v4836_v59 = vpop.f32.mrb[1].mxu0  ;;  %v5164_v51 = vpop.f32.mrb[1].mxu1 }
 0x405   : > { %v5173_v60 = vcombine.low %v4834_v50, %v4836_v59  ;;  %v5174_v61 = vcombine.low %v5162_v41, %v5164_v51  ;;  %v4838_v62 = vpop.f32.mrb[2].mxu0  ;;  %v5166_v63 = vpop.f32.mrb[2].mxu1  ;;  %v5261_v50 = vld [vmem:[%s8311_s10 + $0xc8] sm:$0xff] (!%p6095_p1)  ;;  %v5292_v41 = vld [vmem:[%s8311_s10 + $0x1c0] sm:$0xff] (!%p6095_p1)  ;;  %v6183_v51 = vpack.c.bf16 (!%p6095_p1), %v5243_v52, %v5242_v49  ;;  %v5283_v49 = vld [vmem:[%s8311_s10 + $0x178] sm:$0xff] (!%p6095_p1)  ;;  %v5224_v52 = vrot.slane (!%p6095_p1), %v5216_v42, %v8921_v58 }
 0x406   : > { %v4839_v0 = vpop.f32.mrb[3].mxu0  ;;  %v5167_v38 = vpop.f32.mrb[3].mxu1  ;;  %v5293_v59 = vld [vmem:[%s8311_s10 + $0x1c8] sm:$0xff] (!%p6095_p1)  ;;  %v5244_v62 = vld [vmem:[%s8311_s10 + $0x40] sm:$0xff] (!%p6095_p1) }
 0x407   : > { %v5181_v1 = vrot.slane %v5173_v60, %v8921_v58  ;;  %v5188_v2 = vrot.slane %v5174_v61, %v8921_v58  ;;  %5196 = sbr.rel (%p6095_p1) target bundleno = 1274 (0x4fa), region = 67  ;;  %v6215_v60 = vpack.c.bf16 (!%p6095_p1), %v5275_v56, %v5274_v55  ;;  %v6185_v61 = vpack.c.bf16 (!%p6095_p1), %v5261_v50, %v5260_v57  ;;  %v5245_v63 = vld [vmem:[%s8311_s10 + $0x48] sm:$0xff] (!%p6095_p1)  ;;  %v5276_v0 = vld [vmem:[%s8311_s10 + $0x140] sm:$0xff] (!%p6095_p1)  ;;  %6184 = vmatpush3.bf16.msra.mxu0 (!%p6095_p1), %v6183_v51 }
 0x408   : > { %v6217_v38 = vpack.c.bf16 (!%p6095_p1), %v5293_v59, %v5292_v41  ;;  %v6187_v6 = vpack.c.bf16 (!%p6095_p1), %v5245_v63, %v5244_v62  ;;  %v6199_v55 = vpack.c.bf16 (!%p6095_p1), %v5251_v46, %v5250_v45  ;;  %v6231_v57 = vpack.c.bf16 (!%p6095_p1), %v5283_v49, %v5282_v48 }
 0x409   : > { %v5189_v4 = vcombine.low %v5181_v1, %v5188_v2  ;;  %v5277_v1 = vld [vmem:[%s8311_s10 + $0x148] sm:$0xff] (!%p6095_p1)  ;;  %v5262_v2 = vld [vmem:[%s8311_s10 + $0xd0] sm:$0xff] (!%p6095_p1)  ;;  %6216 = vmatpush3.bf16.msra.mxu1 (!%p6095_p1), %v6215_v60  ;;  %6186 = vmatprep.subr.bf16.mxu0 (!%p6095_p1), %v6185_v61  ;;  %v5232_v50 = vcombine.low (!%p6095_p1), %v5224_v52, %v5231_v54 }
 0x40a   : > { %v6219_v7 = vpack.c.bf16 (!%p6095_p1), %v5277_v1, %v5276_v0  ;;  %6218 = vmatprep.subr.bf16.mxu1 (!%p6095_p1), %v6217_v38 }
 0x40b   : > { %v5191_v5 = vadd.f32 %v5189_v4, %v1322_v3  ;;  %v5263_v3 = vld [vmem:[%s8311_s10 + $0xd8] sm:$0xff] (!%p6095_p1)  ;;  %v5294_v4 = vld [vmem:[%s8311_s10 + $0x1d0] sm:$0xff] (!%p6095_p1)  ;;  %6188 = vmatpush3.bf16.msra.mxu0 (!%p6095_p1), %v6187_v6 }
 0x40c   : > { %v6189_v8 = vpack.c.bf16 (!%p6095_p1), %v5263_v3, %v5262_v2 }
 0x40d   : > { %5192 = vst [vmem:[#allocation2] sm:$0xff] %v5191_v5  ;;  %v5295_v5 = vld [vmem:[%s8311_s10 + $0x1d8] sm:$0xff] (!%p6095_p1)  ;;  %6220 = vmatpush3.bf16.msra.mxu1 (!%p6095_p1), %v6219_v7 }
 0x40e   : > { %v6221_v12 = vpack.c.bf16 %v5295_v5, %v5294_v4  ;;  %6190 = vmatprep.subr.bf16.mxu0 %v6189_v8 }
 0x40f   : > { %6192 = vmatpush3.bf16.msra.mxu0 %v6191_v24 }
 0x410   : > { %6222 = vmatprep.subr.bf16.mxu1 %v6221_v12  ;;  %6194 = vmatprep.subr.bf16.mxu0 %v6193_v29 }
 0x411   : > { %6224 = vmatpush3.bf16.msra.mxu1 %v6223_v27 }
 0x412   : > { %6226 = vmatprep.subr.bf16.mxu1 %v6225_v32 }
 0x413   : > { %6196 = vmatpush3.bf16.msra.mxu0 %v6195_v22 }
 0x414   : > { %v5197_v56 = vld [vmem:[#allocation2] sm:$0xff]  ;;  %6198 = vmatprep.subr.bf16.mxu0 %v6197_v28 }
 0x415   : > { %6228 = vmatpush3.bf16.msra.mxu1 %v6227_v43  ;;  %v5234_v41 = vadd.f32 %v5232_v50, %v5197_v56 }
 0x416   : > { %6230 = vmatprep.subr.bf16.mxu1 %v6229_v37 }
 0x417   : > { %6200 = vmatpush3.bf16.msra.mxu0 %v6199_v55  ;;  %v5235_v59 = vmax.f32 %v5234_v41, 0.0 }
 0x419   : > { %6232 = vmatpush3.bf16.msra.mxu1 %v6231_v57  ;;  %v5308_v51 = vrot.slane %v5235_v59, %v8921_v58  ;;  %v5301_v60 = vcombine.high %v5235_v59, %v5235_v59 }
 0x41b   : > { %v5316_v61 = vcombine.high %v5308_v51, %v5308_v51  ;;  %v5315_v62 = vrot.slane %v5301_v60, %v8921_v58 }
 0x41d   : > { %5386 = vmatprep.mubr.f32.mxu0 %v5316_v61  ;;  %v5317_v63 = vcombine.high %v5315_v62, %v5315_v62 }
 0x41e   : > { %5387 = vmatmul.mubr.f32.vlgmr.msra.gmra.mrb[0].mxu0 %v5308_v51 }
 0x41f   : > { %5456 = vmatprep.mubr.f32.mxu1 %v5317_v63 }
 0x420   : > { %5457 = vmatmul.mubr.f32.vlgmr.msra.gmra.mrb[0].mxu1 %v5315_v62 }
 0x4f1   : > { %v6131_v0 = vpop.f32.mrb[0].mxu0 }
 0x4f2   : > { %v6132_v38 = vpop.f32.mrb[1].mxu0 }
 0x4f3   : > { %v6166_v1 = vpop.f32.mrb[0].mxu1  ;;  %v6133_v2 = vadd.f32 %v6132_v38, %v6131_v0 }
 0x4f4   : > { %v6167_v3 = vpop.f32.mrb[1].mxu1 }
 0x4f5   : > { %v6168_v4 = vadd.f32 %v6167_v3, %v6166_v1 }
 0x4f7   : > { %v5459_v5 = vadd.f32 %v6168_v4, %v6133_v2 }
 0x4f9   : > { %5462 = vst [vmem:[%s8317_s14] sm:$0x3] %v5459_v5 }
 0x4fa PF: > { %s14_s21 = sadd.s32 1, %s7172_s21   ;;  %s9030_s15 = smov %s7152_s16 }
 0x4fb   : > { %p11_p2 = scmp.ge.s32.totalorder %s14_s21, 10   ;;  %s9031_s16 = smov %s7253_s28 }
 0x4fc   : > { %s9032_s17 = smov %s7164_s19  ;;  %s9033_s18 = smov %s7168_s20 }
 0x4fd   : > { %s9034_s19 = smov %s9037_s22  ;;  %s9035_s20 = smov %s9041_s23 }
 0x4fe   :  { %13 = sbr.rel (!%p11_p2) target bundleno = 4 (0x4), region = 111 }

</bundles_post_ra>
